<compile_context>
chip_gen: v5e
topology: v5e:2x2
jax: 0.10.0
libtpu: 0.0.40
codegen_flags: <defaults>
</compile_context>

<pallas_src>
import functools

import jax
import jax.numpy as jnp
import numpy as np
from jax.experimental import pallas as pl
from jax.experimental.pallas import tpu as pltpu

# ------------------------------- model hyper-parameters -------------------------------
NB_CLASSES = 4
CHANS = 4
FS = 16            # sampling freq -> conv1 kernel = Fs//2 = 8, stride = Fs//16 = 1
SAMPLES = 400
F_FILT = 16        # encoder filters F (128 in the paper; shrunk for a small demo)
POOL = 8
K2 = 8             # conv2/3/4 temporal kernel (hard-coded to 8 in TinySleepNetEncoder)
HIDDEN_LSTM = 32
MAX_DENSE_NORM = 2.0
BN_EPS = 1e-5
BATCH = 2


# --------------------------------- fused forward kernel --------------------------------
def tinysleepnet_kernel(x_ref, w1_ref, w2_ref, w3_ref, w4_ref, aff_ref,
                        sel1_ref, sel2_ref, wih_ref, whh_ref, lb_ref,
                        wd_ref, bd_ref, out_ref, *, k1, k2, pool1, pool2):
    """One TinySleepNet forward (eval mode) for ONE sample (grid step = batch index)."""
    exact = jax.lax.Precision.HIGHEST   # only for the 0/1 pool-column selector dots
    H = whh_ref.shape[1]

    # Folded conv-bias + BN scale/shift (packed (F, 8)); sliced once per program.
    aff = aff_ref[...]
    scales = [aff[:, 2 * i:2 * i + 1] for i in range(4)]
    shifts = [aff[:, 2 * i + 1:2 * i + 2] for i in range(4)]

    def conv_bn_relu(h, w_flat, k, scale, shift):
        # h: (C_in, W_in); w_flat: (C_out, k*C_in) laid out as [o, t*C_in + c].
        # Temporal taps stacked on the sublane axis -> one MXU matmul per stage.
        w_out = h.shape[1] - k + 1
        xs = jnp.concatenate([h[:, t:t + w_out] for t in range(k)], axis=0)
        y = jnp.dot(w_flat, xs, preferred_element_type=jnp.float32)   # DEFAULT precision
        return jnp.maximum(y * scale + shift, 0.0)                    # folded BN + ReLU

    def maxpool(h, pool, sel):
        # Non-overlapping max pool (kernel == stride == pool) along the lane (time) axis.
        w_valid = h.shape[1] - pool + 1
        m = h[:, 0:w_valid]
        for p in range(1, pool):
            m = jnp.maximum(m, h[:, p:p + w_valid])
        # `sel` is a precomputed 0/1 matrix picking columns j*pool. Kept at HIGHEST so the
        # selection is exact on f32 activations (single bf16 pass would truncate them).
        return jnp.dot(m, sel, precision=exact, preferred_element_type=jnp.float32)

    # ---- convolutional encoder (one sample) ----
    h = x_ref[0]                                             # (CH_PAD, S)
    h = conv_bn_relu(h, w1_ref[...], k1, scales[0], shifts[0])
    h = maxpool(h, pool1, sel1_ref[...])
    h = conv_bn_relu(h, w2_ref[...], k2, scales[1], shifts[1])
    h = conv_bn_relu(h, w3_ref[...], k2, scales[2], shifts[2])
    h = conv_bn_relu(h, w4_ref[...], k2, scales[3], shifts[3])
    feats = maxpool(h, pool2, sel2_ref[...])                 # (F, T)
    t_len = feats.shape[1]

    # ---- LSTM (single layer), column layout: state (H,1), gates (4H,1).
    # xproj is time-contiguous, so each step reads ONE contiguous lane slice.
    xproj = jnp.dot(wih_ref[...], feats,
                    preferred_element_type=jnp.float32) + lb_ref[...]   # (4H, T)
    whh = whh_ref[...]
    h_st = jnp.zeros((H, 1), jnp.float32)
    c_st = jnp.zeros((H, 1), jnp.float32)
    for t in range(t_len):                                   # T is small and static
        gates = xproj[:, t:t + 1] + jnp.dot(whh, h_st,
                                            preferred_element_type=jnp.float32)
        i_g = jax.nn.sigmoid(gates[0 * H:1 * H, :])          # PyTorch gate order i,f,g,o
        f_g = jax.nn.sigmoid(gates[1 * H:2 * H, :])
        g_g = jnp.tanh(gates[2 * H:3 * H, :])
        o_g = jax.nn.sigmoid(gates[3 * H:4 * H, :])
        c_st = f_g * c_st + i_g * g_g
        h_st = o_g * jnp.tanh(c_st)

    # ---- classifier head (return_logits=True -> no softmax) ----
    out_ref[0] = jnp.dot(wd_ref[...], h_st,
                         preferred_element_type=jnp.float32) + bd_ref[...]   # (N, 1)


# ------------------------------------- wrapper ------------------------------------------
def _pool_selector(w_in, pool):
    """0/1 matrix selecting columns 0, pool, 2*pool, ... from the window-max array."""
    w_valid = w_in - pool + 1
    w_out = (w_in - pool) // pool + 1
    rows = jnp.arange(w_valid)[:, None]
    cols = jnp.arange(w_out)[None, :]
    return (rows == cols * pool).astype(jnp.float32)


@jax.jit
def tinysleepnet_forward(x, kp):
    """x: (B, Chans, Samples) -> logits (B, nb_classes)."""
    B, chans, S = x.shape
    k1 = FS // 2
    stride1 = FS // 16
    assert stride1 == 1, "TODO(synk): conv1 stride > 1 (Fs >= 32) not implemented"
    ch_pad = ((chans + 7) // 8) * 8

    # Zero-pad EEG channels to a sublane multiple so the in-kernel tap stacking stays
    # 8-row aligned (padded channels have zero weights, so results are unchanged).
    x_p = jnp.pad(x, ((0, 0), (0, ch_pad - chans), (0, 0)))

    w1_conv = S - k1 + 1                                      # conv1 output width
    pool2 = POOL // 2
    w2_in = (w1_conv - POOL) // POOL + 1                      # width after pool1
    w4_conv = w2_in - 3 * (K2 - 1)                            # width entering pool2
    sel1 = _pool_selector(w1_conv, POOL)
    sel2 = _pool_selector(w4_conv, pool2)

    n_out = kp["wd"].shape[0]

    def full_spec(a):
        nd = a.ndim
        return pl.BlockSpec(a.shape, lambda b, _nd=nd: (0,) * _nd)   # resident weight

    weights = [kp["w1"], kp["w2"], kp["w3"], kp["w4"], kp["aff"],
               sel1, sel2, kp["wih"], kp["whh"], kp["lb"], kp["wd"], kp["bd"]]
    in_specs = ([pl.BlockSpec((1, ch_pad, S), lambda b: (b, 0, 0))]
                + [full_spec(a) for a in weights])

    out3 = pl.pallas_call(
        functools.partial(tinysleepnet_kernel, k1=k1, k2=K2, pool1=POOL, pool2=pool2),
        grid=(B,),
        in_specs=in_specs,
        out_specs=pl.BlockSpec((1, n_out, 1), lambda b: (b, 0, 0)),
        out_shape=jax.ShapeDtypeStruct((B, n_out, 1), jnp.float32),
        compiler_params=pltpu.CompilerParams(dimension_semantics=("parallel",)),
    )(x_p, *weights)
    return out3[:, :, 0]                                      # (B, nb_classes)


# -------------------------------- parameter utilities -----------------------------------
def dense_max_norm(w, max_norm):
    """ConstrainedDense.forward's scale_norm (note: forward passes max_norm as `eps`)."""
    norm = jnp.sqrt(jnp.sum(w * w, axis=1, keepdims=True))
    desired = jnp.clip(norm, 0.0, max_norm)
    w_scaled = w * desired / (max_norm + norm)
    return jnp.where(jnp.any(norm > max_norm), w_scaled, w)    # jit-safe (no python bool)


def make_params(key):
    keys = jax.random.split(key, 32)
    ki = iter(keys)
    nrm = lambda shape, s=0.1: s * jax.random.normal(next(ki), shape, jnp.float32)

    F = F_FILT
    k1 = FS // 2
    H = HIDDEN_LSTM
    N = 1 if NB_CLASSES <= 2 else NB_CLASSES
    ch_pad = ((CHANS + 7) // 8) * 8

    raw = {}
    # conv stack (PyTorch nn.Conv1d layouts: (C_out, C_in, k))
    raw["c1_w"] = nrm((F, CHANS, k1)); raw["c1_b"] = nrm((F,))
    raw["c2_w"] = nrm((F, F, K2));     raw["c2_b"] = nrm((F,))
    raw["c3_w"] = nrm((F, F, K2));     raw["c3_b"] = nrm((F,))
    raw["c4_w"] = nrm((F, F, K2));     raw["c4_b"] = nrm((F,))
    # BatchNorm1d (eval-mode running statistics)
    for i in range(1, 5):
        raw[f"bn{i}_g"] = 1.0 + nrm((F,))
        raw[f"bn{i}_b"] = nrm((F,))
        raw[f"bn{i}_m"] = nrm((F,))
        raw[f"bn{i}_v"] = jnp.abs(nrm((F,))) + 0.5
    # LSTM (single layer, PyTorch layouts)
    raw["w_ih"] = nrm((4 * H, F)); raw["w_hh"] = nrm((4 * H, H))
    raw["b_ih"] = nrm((4 * H,));   raw["b_hh"] = nrm((4 * H,))
    # ConstrainedDense with the forward-time max-norm constraint applied
    raw["d_w"] = dense_max_norm(nrm((N, H)), MAX_DENSE_NORM)
    raw["d_b"] = nrm((N,))

    # ---- kernel-ready (flattened / folded / packed) parameters ----
    kp = {}
    w1_t = jnp.pad(jnp.transpose(raw["c1_w"], (0, 2, 1)),       # (F, k1, Chans) -> pad chans
                   ((0, 0), (0, 0), (0, ch_pad - CHANS)))
    kp["w1"] = w1_t.reshape(F, k1 * ch_pad)                     # [o, t*CH_PAD + c]
    kp["w2"] = jnp.transpose(raw["c2_w"], (0, 2, 1)).reshape(F, K2 * F)
    kp["w3"] = jnp.transpose(raw["c3_w"], (0, 2, 1)).reshape(F, K2 * F)
    kp["w4"] = jnp.transpose(raw["c4_w"], (0, 2, 1)).reshape(F, K2 * F)

    cols = []
    for i, cb in zip(range(1, 5), ("c1_b", "c2_b", "c3_b", "c4_b")):
        a = raw[f"bn{i}_g"] / jnp.sqrt(raw[f"bn{i}_v"] + BN_EPS)
        s = a * (raw[cb] - raw[f"bn{i}_m"]) + raw[f"bn{i}_b"]
        cols += [a, s]
    kp["aff"] = jnp.stack(cols, axis=1)                         # (F, 8) packed scale/shift

    kp["wih"] = raw["w_ih"]                                     # (4H, F)
    kp["whh"] = raw["w_hh"]                                     # (4H, H)
    kp["lb"] = (raw["b_ih"] + raw["b_hh"]).reshape(4 * H, 1)
    kp["wd"] = raw["d_w"]                                       # (N, H)
    kp["bd"] = raw["d_b"].reshape(N, 1)

    return {"raw": raw, "kernel": kp}


# -------------------------------- pure-JAX reference ------------------------------------
def reference_forward(x, raw):
    prec = jax.lax.Precision.HIGHEST

    def conv1d(h, w, b):
        k = w.shape[-1]
        w_out = h.shape[-1] - k + 1
        y = jnp.zeros((h.shape[0], w.shape[0], w_out), jnp.float32)
        for t in range(k):
            y = y + jnp.einsum("oc,bcw->bow", w[:, :, t], h[:, :, t:t + w_out],
                               precision=prec)
        return y + b[None, :, None]

    def bn(h, i):
        g, bt = raw[f"bn{i}_g"], raw[f"bn{i}_b"]
        m, v = raw[f"bn{i}_m"], raw[f"bn{i}_v"]
        return ((h - m[None, :, None]) / jnp.sqrt(v[None, :, None] + BN_EPS)
                * g[None, :, None] + bt[None, :, None])

    def maxpool(h, pool):
        w_out = (h.shape[-1] - pool) // pool + 1
        windows = jnp.stack(
            [h[:, :, p:p + (w_out - 1) * pool + 1:pool] for p in range(pool)], axis=-1)
        return jnp.max(windows, axis=-1)

    h = conv1d(x, raw["c1_w"], raw["c1_b"])
    h = jnp.maximum(bn(h, 1), 0.0)
    h = maxpool(h, POOL)
    h = conv1d(h, raw["c2_w"], raw["c2_b"]); h = jnp.maximum(bn(h, 2), 0.0)
    h = conv1d(h, raw["c3_w"], raw["c3_b"]); h = jnp.maximum(bn(h, 3), 0.0)
    h = conv1d(h, raw["c4_w"], raw["c4_b"]); h = jnp.maximum(bn(h, 4), 0.0)
    h = maxpool(h, POOL // 2)                                   # (B, F, T)

    B, H, T = x.shape[0], raw["w_hh"].shape[1], h.shape[-1]
    xs = jnp.transpose(h, (2, 0, 1))                            # (T, B, F)  (batch_first=False)
    h_t = jnp.zeros((B, H), jnp.float32)
    c_t = jnp.zeros((B, H), jnp.float32)
    for t in range(T):
        gates = (jnp.dot(xs[t], raw["w_ih"].T, precision=prec)
                 + jnp.dot(h_t, raw["w_hh"].T, precision=prec)
                 + raw["b_ih"] + raw["b_hh"])
        i_g = jax.nn.sigmoid(gates[:, 0 * H:1 * H])
        f_g = jax.nn.sigmoid(gates[:, 1 * H:2 * H])
        g_g = jnp.tanh(gates[:, 2 * H:3 * H])
        o_g = jax.nn.sigmoid(gates[:, 3 * H:4 * H])
        c_t = f_g * c_t + i_g * g_g
        h_t = o_g * jnp.tanh(c_t)

    return jnp.dot(h_t, raw["d_w"].T, precision=prec) + raw["d_b"][None, :]


# ---------------------------------------- main ------------------------------------------
if __name__ == "__main__":
    key = jax.random.PRNGKey(0)
    k_params, k_x = jax.random.split(key)
    params = make_params(k_params)
    x = jax.random.normal(k_x, (BATCH, CHANS, SAMPLES), jnp.float32)

    out = tinysleepnet_forward(x, params["kernel"])
    out = jax.block_until_ready(out)
    n_out = NB_CLASSES if NB_CLASSES > 2 else 1
    assert out.shape == (BATCH, n_out)
    assert not bool(jnp.any(jnp.isnan(out)))

    # Correctness check against a pure-JAX f32 reference of the PyTorch (eval-mode) model.
    # Kernel uses single-pass bf16 MXU matmuls (DEFAULT precision) per the perf review, so
    # the tolerance is set accordingly (reference stays at HIGHEST / f32 semantics).
    ref = reference_forward(x, params["raw"])
    np.testing.assert_allclose(np.asarray(out), np.asarray(ref), rtol=2e-2, atol=2e-2)

    print("KERNEL_OK")
</pallas_src>

<mosaic_0001>
module attributes {stable_mosaic.version = 11 : i64} {
  func.func @tinysleepnet_kernel(%arg0: i32, %arg1: memref<1x8x400xf32, #tpu.memory_space<vmem>>, %arg2: memref<16x64xf32, #tpu.memory_space<vmem>>, %arg3: memref<16x128xf32, #tpu.memory_space<vmem>>, %arg4: memref<16x128xf32, #tpu.memory_space<vmem>>, %arg5: memref<16x128xf32, #tpu.memory_space<vmem>>, %arg6: memref<16x8xf32, #tpu.memory_space<vmem>>, %arg7: memref<386x49xf32, #tpu.memory_space<vmem>>, %arg8: memref<25x7xf32, #tpu.memory_space<vmem>>, %arg9: memref<128x16xf32, #tpu.memory_space<vmem>>, %arg10: memref<128x32xf32, #tpu.memory_space<vmem>>, %arg11: memref<128x1xf32, #tpu.memory_space<vmem>>, %arg12: memref<4x32xf32, #tpu.memory_space<vmem>>, %arg13: memref<4x1xf32, #tpu.memory_space<vmem>>, %arg14: memref<1x4x1xf32, #tpu.memory_space<vmem>>) attributes {dimension_semantics = [#tpu.dimension_semantics<parallel>], iteration_bounds = array<i64: 2>, scalar_prefetch = 0 : i64, scratch_operands = 0 : i64, tpu.core_type = #tpu.core_type<tc>, window_params = [{transform_indices = @transform_0, window_bounds = array<i64: 1, 8, 400>}, {pipeline_mode = #tpu.pipeline_mode<synchronous>, transform_indices = @transform_1, window_bounds = array<i64: 16, 64>}, {pipeline_mode = #tpu.pipeline_mode<synchronous>, transform_indices = @transform_2, window_bounds = array<i64: 16, 128>}, {pipeline_mode = #tpu.pipeline_mode<synchronous>, transform_indices = @transform_3, window_bounds = array<i64: 16, 128>}, {pipeline_mode = #tpu.pipeline_mode<synchronous>, transform_indices = @transform_4, window_bounds = array<i64: 16, 128>}, {pipeline_mode = #tpu.pipeline_mode<synchronous>, transform_indices = @transform_5, window_bounds = array<i64: 16, 8>}, {pipeline_mode = #tpu.pipeline_mode<synchronous>, transform_indices = @transform_6, window_bounds = array<i64: 386, 49>}, {pipeline_mode = #tpu.pipeline_mode<synchronous>, transform_indices = @transform_7, window_bounds = array<i64: 25, 7>}, {pipeline_mode = #tpu.pipeline_mode<synchronous>, transform_indices = @transform_8, window_bounds = array<i64: 128, 16>}, {pipeline_mode = #tpu.pipeline_mode<synchronous>, transform_indices = @transform_9, window_bounds = array<i64: 128, 32>}, {pipeline_mode = #tpu.pipeline_mode<synchronous>, transform_indices = @transform_10, window_bounds = array<i64: 128, 1>}, {pipeline_mode = #tpu.pipeline_mode<synchronous>, transform_indices = @transform_11, window_bounds = array<i64: 4, 32>}, {pipeline_mode = #tpu.pipeline_mode<synchronous>, transform_indices = @transform_12, window_bounds = array<i64: 4, 1>}, {transform_indices = @transform_13, window_bounds = array<i64: 1, 4, 1>}]} {
    %c0 = arith.constant 0 : index
    %c0_0 = arith.constant 0 : index
    %0 = vector.load %arg6[%c0, %c0_0] : memref<16x8xf32, #tpu.memory_space<vmem>>, vector<16x8xf32>
    %1 = vector.extract_strided_slice %0 {offsets = [0, 0], sizes = [16, 1], strides = [1, 1]} : vector<16x8xf32> to vector<16x1xf32>
    %2 = vector.extract_strided_slice %0 {offsets = [0, 2], sizes = [16, 1], strides = [1, 1]} : vector<16x8xf32> to vector<16x1xf32>
    %3 = vector.extract_strided_slice %0 {offsets = [0, 4], sizes = [16, 1], strides = [1, 1]} : vector<16x8xf32> to vector<16x1xf32>
    %4 = vector.extract_strided_slice %0 {offsets = [0, 6], sizes = [16, 1], strides = [1, 1]} : vector<16x8xf32> to vector<16x1xf32>
    %5 = vector.extract_strided_slice %0 {offsets = [0, 1], sizes = [16, 1], strides = [1, 1]} : vector<16x8xf32> to vector<16x1xf32>
    %6 = vector.extract_strided_slice %0 {offsets = [0, 3], sizes = [16, 1], strides = [1, 1]} : vector<16x8xf32> to vector<16x1xf32>
    %7 = vector.extract_strided_slice %0 {offsets = [0, 5], sizes = [16, 1], strides = [1, 1]} : vector<16x8xf32> to vector<16x1xf32>
    %8 = vector.extract_strided_slice %0 {offsets = [0, 7], sizes = [16, 1], strides = [1, 1]} : vector<16x8xf32> to vector<16x1xf32>
    %c0_1 = arith.constant 0 : index
    %c0_2 = arith.constant 0 : index
    %c0_3 = arith.constant 0 : index
    %9 = vector.load %arg1[%c0_1, %c0_2, %c0_3] : memref<1x8x400xf32, #tpu.memory_space<vmem>>, vector<1x8x400xf32>
    %10 = vector.shape_cast %9 : vector<1x8x400xf32> to vector<8x400xf32>
    %c0_4 = arith.constant 0 : index
    %c0_5 = arith.constant 0 : index
    %11 = vector.load %arg2[%c0_4, %c0_5] : memref<16x64xf32, #tpu.memory_space<vmem>>, vector<16x64xf32>
    %12 = vector.extract_strided_slice %10 {offsets = [0, 0], sizes = [8, 393], strides = [1, 1]} : vector<8x400xf32> to vector<8x393xf32>
    %13 = vector.extract_strided_slice %10 {offsets = [0, 1], sizes = [8, 393], strides = [1, 1]} : vector<8x400xf32> to vector<8x393xf32>
    %14 = vector.extract_strided_slice %10 {offsets = [0, 2], sizes = [8, 393], strides = [1, 1]} : vector<8x400xf32> to vector<8x393xf32>
    %15 = vector.extract_strided_slice %10 {offsets = [0, 3], sizes = [8, 393], strides = [1, 1]} : vector<8x400xf32> to vector<8x393xf32>
    %16 = vector.extract_strided_slice %10 {offsets = [0, 4], sizes = [8, 393], strides = [1, 1]} : vector<8x400xf32> to vector<8x393xf32>
    %17 = vector.extract_strided_slice %10 {offsets = [0, 5], sizes = [8, 393], strides = [1, 1]} : vector<8x400xf32> to vector<8x393xf32>
    %18 = vector.extract_strided_slice %10 {offsets = [0, 6], sizes = [8, 393], strides = [1, 1]} : vector<8x400xf32> to vector<8x393xf32>
    %19 = vector.extract_strided_slice %10 {offsets = [0, 7], sizes = [8, 393], strides = [1, 1]} : vector<8x400xf32> to vector<8x393xf32>
    %20 = tpu.concatenate %12, %13, %14, %15, %16, %17, %18, %19 in 0 : vector<8x393xf32>, vector<8x393xf32>, vector<8x393xf32>, vector<8x393xf32>, vector<8x393xf32>, vector<8x393xf32>, vector<8x393xf32>, vector<8x393xf32> -> vector<64x393xf32>
    %cst = arith.constant dense<0.000000e+00> : vector<16x393xf32>
    %21 = tpu.matmul %11, %20, %cst {dimension_numbers = #tpu.dot_dimension_numbers<[1], [0], [0], [1], [0, 0, 1, 1], [], []>} : vector<16x64xf32>, vector<64x393xf32>, vector<16x393xf32> -> vector<16x393xf32>
    %22 = vector.broadcast %1 : vector<16x1xf32> to vector<16x393xf32>
    %23 = arith.mulf %21, %22 : vector<16x393xf32>
    %24 = vector.broadcast %5 : vector<16x1xf32> to vector<16x393xf32>
    %25 = arith.addf %23, %24 : vector<16x393xf32>
    %cst_6 = arith.constant 0.000000e+00 : f32
    %26 = vector.broadcast %cst_6 : f32 to vector<16x393xf32>
    %27 = arith.maximumf %25, %26 : vector<16x393xf32>
    %c0_7 = arith.constant 0 : index
    %c0_8 = arith.constant 0 : index
    %28 = vector.load %arg7[%c0_7, %c0_8] : memref<386x49xf32, #tpu.memory_space<vmem>>, vector<386x49xf32>
    %29 = vector.extract_strided_slice %27 {offsets = [0, 0], sizes = [16, 386], strides = [1, 1]} : vector<16x393xf32> to vector<16x386xf32>
    %30 = vector.extract_strided_slice %27 {offsets = [0, 1], sizes = [16, 386], strides = [1, 1]} : vector<16x393xf32> to vector<16x386xf32>
    %31 = arith.maximumf %29, %30 : vector<16x386xf32>
    %32 = vector.extract_strided_slice %27 {offsets = [0, 2], sizes = [16, 386], strides = [1, 1]} : vector<16x393xf32> to vector<16x386xf32>
    %33 = arith.maximumf %31, %32 : vector<16x386xf32>
    %34 = vector.extract_strided_slice %27 {offsets = [0, 3], sizes = [16, 386], strides = [1, 1]} : vector<16x393xf32> to vector<16x386xf32>
    %35 = arith.maximumf %33, %34 : vector<16x386xf32>
    %36 = vector.extract_strided_slice %27 {offsets = [0, 4], sizes = [16, 386], strides = [1, 1]} : vector<16x393xf32> to vector<16x386xf32>
    %37 = arith.maximumf %35, %36 : vector<16x386xf32>
    %38 = vector.extract_strided_slice %27 {offsets = [0, 5], sizes = [16, 386], strides = [1, 1]} : vector<16x393xf32> to vector<16x386xf32>
    %39 = arith.maximumf %37, %38 : vector<16x386xf32>
    %40 = vector.extract_strided_slice %27 {offsets = [0, 6], sizes = [16, 386], strides = [1, 1]} : vector<16x393xf32> to vector<16x386xf32>
    %41 = arith.maximumf %39, %40 : vector<16x386xf32>
    %42 = vector.extract_strided_slice %27 {offsets = [0, 7], sizes = [16, 386], strides = [1, 1]} : vector<16x393xf32> to vector<16x386xf32>
    %43 = arith.maximumf %41, %42 : vector<16x386xf32>
    %cst_9 = arith.constant dense<0.000000e+00> : vector<16x49xf32>
    %44 = tpu.matmul %43, %28, %cst_9 {dimension_numbers = #tpu.dot_dimension_numbers<[1], [0], [0], [1], [0, 0, 1, 1], [], []>, precision = #tpu.contract_precision<fp32>} : vector<16x386xf32>, vector<386x49xf32>, vector<16x49xf32> -> vector<16x49xf32>
    %c0_10 = arith.constant 0 : index
    %c0_11 = arith.constant 0 : index
    %45 = vector.load %arg3[%c0_10, %c0_11] : memref<16x128xf32, #tpu.memory_space<vmem>>, vector<16x128xf32>
    %46 = vector.extract_strided_slice %44 {offsets = [0, 0], sizes = [16, 42], strides = [1, 1]} : vector<16x49xf32> to vector<16x42xf32>
    %47 = vector.extract_strided_slice %44 {offsets = [0, 1], sizes = [16, 42], strides = [1, 1]} : vector<16x49xf32> to vector<16x42xf32>
    %48 = vector.extract_strided_slice %44 {offsets = [0, 2], sizes = [16, 42], strides = [1, 1]} : vector<16x49xf32> to vector<16x42xf32>
    %49 = vector.extract_strided_slice %44 {offsets = [0, 3], sizes = [16, 42], strides = [1, 1]} : vector<16x49xf32> to vector<16x42xf32>
    %50 = vector.extract_strided_slice %44 {offsets = [0, 4], sizes = [16, 42], strides = [1, 1]} : vector<16x49xf32> to vector<16x42xf32>
    %51 = vector.extract_strided_slice %44 {offsets = [0, 5], sizes = [16, 42], strides = [1, 1]} : vector<16x49xf32> to vector<16x42xf32>
    %52 = vector.extract_strided_slice %44 {offsets = [0, 6], sizes = [16, 42], strides = [1, 1]} : vector<16x49xf32> to vector<16x42xf32>
    %53 = vector.extract_strided_slice %44 {offsets = [0, 7], sizes = [16, 42], strides = [1, 1]} : vector<16x49xf32> to vector<16x42xf32>
    %54 = tpu.concatenate %46, %47, %48, %49, %50, %51, %52, %53 in 0 : vector<16x42xf32>, vector<16x42xf32>, vector<16x42xf32>, vector<16x42xf32>, vector<16x42xf32>, vector<16x42xf32>, vector<16x42xf32>, vector<16x42xf32> -> vector<128x42xf32>
    %cst_12 = arith.constant dense<0.000000e+00> : vector<16x42xf32>
    %55 = tpu.matmul %45, %54, %cst_12 {dimension_numbers = #tpu.dot_dimension_numbers<[1], [0], [0], [1], [0, 0, 1, 1], [], []>} : vector<16x128xf32>, vector<128x42xf32>, vector<16x42xf32> -> vector<16x42xf32>
    %56 = vector.broadcast %2 : vector<16x1xf32> to vector<16x42xf32>
    %57 = arith.mulf %55, %56 : vector<16x42xf32>
    %58 = vector.broadcast %6 : vector<16x1xf32> to vector<16x42xf32>
    %59 = arith.addf %57, %58 : vector<16x42xf32>
    %cst_13 = arith.constant 0.000000e+00 : f32
    %60 = vector.broadcast %cst_13 : f32 to vector<16x42xf32>
    %61 = arith.maximumf %59, %60 : vector<16x42xf32>
    %c0_14 = arith.constant 0 : index
    %c0_15 = arith.constant 0 : index
    %62 = vector.load %arg4[%c0_14, %c0_15] : memref<16x128xf32, #tpu.memory_space<vmem>>, vector<16x128xf32>
    %63 = vector.extract_strided_slice %61 {offsets = [0, 0], sizes = [16, 35], strides = [1, 1]} : vector<16x42xf32> to vector<16x35xf32>
    %64 = vector.extract_strided_slice %61 {offsets = [0, 1], sizes = [16, 35], strides = [1, 1]} : vector<16x42xf32> to vector<16x35xf32>
    %65 = vector.extract_strided_slice %61 {offsets = [0, 2], sizes = [16, 35], strides = [1, 1]} : vector<16x42xf32> to vector<16x35xf32>
    %66 = vector.extract_strided_slice %61 {offsets = [0, 3], sizes = [16, 35], strides = [1, 1]} : vector<16x42xf32> to vector<16x35xf32>
    %67 = vector.extract_strided_slice %61 {offsets = [0, 4], sizes = [16, 35], strides = [1, 1]} : vector<16x42xf32> to vector<16x35xf32>
    %68 = vector.extract_strided_slice %61 {offsets = [0, 5], sizes = [16, 35], strides = [1, 1]} : vector<16x42xf32> to vector<16x35xf32>
    %69 = vector.extract_strided_slice %61 {offsets = [0, 6], sizes = [16, 35], strides = [1, 1]} : vector<16x42xf32> to vector<16x35xf32>
    %70 = vector.extract_strided_slice %61 {offsets = [0, 7], sizes = [16, 35], strides = [1, 1]} : vector<16x42xf32> to vector<16x35xf32>
    %71 = tpu.concatenate %63, %64, %65, %66, %67, %68, %69, %70 in 0 : vector<16x35xf32>, vector<16x35xf32>, vector<16x35xf32>, vector<16x35xf32>, vector<16x35xf32>, vector<16x35xf32>, vector<16x35xf32>, vector<16x35xf32> -> vector<128x35xf32>
    %cst_16 = arith.constant dense<0.000000e+00> : vector<16x35xf32>
    %72 = tpu.matmul %62, %71, %cst_16 {dimension_numbers = #tpu.dot_dimension_numbers<[1], [0], [0], [1], [0, 0, 1, 1], [], []>} : vector<16x128xf32>, vector<128x35xf32>, vector<16x35xf32> -> vector<16x35xf32>
    %73 = vector.broadcast %3 : vector<16x1xf32> to vector<16x35xf32>
    %74 = arith.mulf %72, %73 : vector<16x35xf32>
    %75 = vector.broadcast %7 : vector<16x1xf32> to vector<16x35xf32>
    %76 = arith.addf %74, %75 : vector<16x35xf32>
    %cst_17 = arith.constant 0.000000e+00 : f32
    %77 = vector.broadcast %cst_17 : f32 to vector<16x35xf32>
    %78 = arith.maximumf %76, %77 : vector<16x35xf32>
    %c0_18 = arith.constant 0 : index
    %c0_19 = arith.constant 0 : index
    %79 = vector.load %arg5[%c0_18, %c0_19] : memref<16x128xf32, #tpu.memory_space<vmem>>, vector<16x128xf32>
    %80 = vector.extract_strided_slice %78 {offsets = [0, 0], sizes = [16, 28], strides = [1, 1]} : vector<16x35xf32> to vector<16x28xf32>
    %81 = vector.extract_strided_slice %78 {offsets = [0, 1], sizes = [16, 28], strides = [1, 1]} : vector<16x35xf32> to vector<16x28xf32>
    %82 = vector.extract_strided_slice %78 {offsets = [0, 2], sizes = [16, 28], strides = [1, 1]} : vector<16x35xf32> to vector<16x28xf32>
    %83 = vector.extract_strided_slice %78 {offsets = [0, 3], sizes = [16, 28], strides = [1, 1]} : vector<16x35xf32> to vector<16x28xf32>
    %84 = vector.extract_strided_slice %78 {offsets = [0, 4], sizes = [16, 28], strides = [1, 1]} : vector<16x35xf32> to vector<16x28xf32>
    %85 = vector.extract_strided_slice %78 {offsets = [0, 5], sizes = [16, 28], strides = [1, 1]} : vector<16x35xf32> to vector<16x28xf32>
    %86 = vector.extract_strided_slice %78 {offsets = [0, 6], sizes = [16, 28], strides = [1, 1]} : vector<16x35xf32> to vector<16x28xf32>
    %87 = vector.extract_strided_slice %78 {offsets = [0, 7], sizes = [16, 28], strides = [1, 1]} : vector<16x35xf32> to vector<16x28xf32>
    %88 = tpu.concatenate %80, %81, %82, %83, %84, %85, %86, %87 in 0 : vector<16x28xf32>, vector<16x28xf32>, vector<16x28xf32>, vector<16x28xf32>, vector<16x28xf32>, vector<16x28xf32>, vector<16x28xf32>, vector<16x28xf32> -> vector<128x28xf32>
    %cst_20 = arith.constant dense<0.000000e+00> : vector<16x28xf32>
    %89 = tpu.matmul %79, %88, %cst_20 {dimension_numbers = #tpu.dot_dimension_numbers<[1], [0], [0], [1], [0, 0, 1, 1], [], []>} : vector<16x128xf32>, vector<128x28xf32>, vector<16x28xf32> -> vector<16x28xf32>
    %90 = vector.broadcast %4 : vector<16x1xf32> to vector<16x28xf32>
    %91 = arith.mulf %89, %90 : vector<16x28xf32>
    %92 = vector.broadcast %8 : vector<16x1xf32> to vector<16x28xf32>
    %93 = arith.addf %91, %92 : vector<16x28xf32>
    %cst_21 = arith.constant 0.000000e+00 : f32
    %94 = vector.broadcast %cst_21 : f32 to vector<16x28xf32>
    %95 = arith.maximumf %93, %94 : vector<16x28xf32>
    %c0_22 = arith.constant 0 : index
    %c0_23 = arith.constant 0 : index
    %96 = vector.load %arg8[%c0_22, %c0_23] : memref<25x7xf32, #tpu.memory_space<vmem>>, vector<25x7xf32>
    %97 = vector.extract_strided_slice %95 {offsets = [0, 0], sizes = [16, 25], strides = [1, 1]} : vector<16x28xf32> to vector<16x25xf32>
    %98 = vector.extract_strided_slice %95 {offsets = [0, 1], sizes = [16, 25], strides = [1, 1]} : vector<16x28xf32> to vector<16x25xf32>
    %99 = arith.maximumf %97, %98 : vector<16x25xf32>
    %100 = vector.extract_strided_slice %95 {offsets = [0, 2], sizes = [16, 25], strides = [1, 1]} : vector<16x28xf32> to vector<16x25xf32>
    %101 = arith.maximumf %99, %100 : vector<16x25xf32>
    %102 = vector.extract_strided_slice %95 {offsets = [0, 3], sizes = [16, 25], strides = [1, 1]} : vector<16x28xf32> to vector<16x25xf32>
    %103 = arith.maximumf %101, %102 : vector<16x25xf32>
    %cst_24 = arith.constant dense<0.000000e+00> : vector<16x7xf32>
    %104 = tpu.matmul %103, %96, %cst_24 {dimension_numbers = #tpu.dot_dimension_numbers<[1], [0], [0], [1], [0, 0, 1, 1], [], []>, precision = #tpu.contract_precision<fp32>} : vector<16x25xf32>, vector<25x7xf32>, vector<16x7xf32> -> vector<16x7xf32>
    %c0_25 = arith.constant 0 : index
    %c0_26 = arith.constant 0 : index
    %105 = vector.load %arg9[%c0_25, %c0_26] : memref<128x16xf32, #tpu.memory_space<vmem>>, vector<128x16xf32>
    %cst_27 = arith.constant dense<0.000000e+00> : vector<128x7xf32>
    %106 = tpu.matmul %105, %104, %cst_27 {dimension_numbers = #tpu.dot_dimension_numbers<[1], [0], [0], [1], [0, 0, 1, 1], [], []>} : vector<128x16xf32>, vector<16x7xf32>, vector<128x7xf32> -> vector<128x7xf32>
    %c0_28 = arith.constant 0 : index
    %c0_29 = arith.constant 0 : index
    %107 = vector.load %arg11[%c0_28, %c0_29] : memref<128x1xf32, #tpu.memory_space<vmem>>, vector<128x1xf32>
    %108 = vector.broadcast %107 : vector<128x1xf32> to vector<128x7xf32>
    %109 = arith.addf %106, %108 : vector<128x7xf32>
    %c0_30 = arith.constant 0 : index
    %c0_31 = arith.constant 0 : index
    %110 = vector.load %arg10[%c0_30, %c0_31] : memref<128x32xf32, #tpu.memory_space<vmem>>, vector<128x32xf32>
    %cst_32 = arith.constant 0.000000e+00 : f32
    %111 = vector.broadcast %cst_32 : f32 to vector<32x1xf32>
    %cst_33 = arith.constant 0.000000e+00 : f32
    %112 = vector.broadcast %cst_33 : f32 to vector<32x1xf32>
    %113 = vector.extract_strided_slice %109 {offsets = [0, 0], sizes = [128, 1], strides = [1, 1]} : vector<128x7xf32> to vector<128x1xf32>
    %cst_34 = arith.constant dense<0.000000e+00> : vector<128x1xf32>
    %114 = tpu.matmul %110, %111, %cst_34 {dimension_numbers = #tpu.dot_dimension_numbers<[1], [0], [0], [1], [0, 0, 1, 1], [], []>} : vector<128x32xf32>, vector<32x1xf32>, vector<128x1xf32> -> vector<128x1xf32>
    %115 = arith.addf %113, %114 : vector<128x1xf32>
    %116 = vector.extract_strided_slice %115 {offsets = [0, 0], sizes = [32, 1], strides = [1, 1]} : vector<128x1xf32> to vector<32x1xf32>
    %117 = arith.negf %116 : vector<32x1xf32>
    %118 = math.exp %117 : vector<32x1xf32>
    %cst_35 = arith.constant 1.000000e+00 : f32
    %119 = vector.broadcast %cst_35 : f32 to vector<32x1xf32>
    %120 = arith.addf %119, %118 : vector<32x1xf32>
    %121 = arith.divf %119, %120 : vector<32x1xf32>
    %122 = vector.extract_strided_slice %115 {offsets = [32, 0], sizes = [32, 1], strides = [1, 1]} : vector<128x1xf32> to vector<32x1xf32>
    %123 = arith.negf %122 : vector<32x1xf32>
    %124 = math.exp %123 : vector<32x1xf32>
    %cst_36 = arith.constant 1.000000e+00 : f32
    %125 = vector.broadcast %cst_36 : f32 to vector<32x1xf32>
    %126 = arith.addf %125, %124 : vector<32x1xf32>
    %127 = arith.divf %125, %126 : vector<32x1xf32>
    %128 = vector.extract_strided_slice %115 {offsets = [64, 0], sizes = [32, 1], strides = [1, 1]} : vector<128x1xf32> to vector<32x1xf32>
    %129 = math.tanh %128 : vector<32x1xf32>
    %130 = vector.extract_strided_slice %115 {offsets = [96, 0], sizes = [32, 1], strides = [1, 1]} : vector<128x1xf32> to vector<32x1xf32>
    %131 = arith.negf %130 : vector<32x1xf32>
    %132 = math.exp %131 : vector<32x1xf32>
    %cst_37 = arith.constant 1.000000e+00 : f32
    %133 = vector.broadcast %cst_37 : f32 to vector<32x1xf32>
    %134 = arith.addf %133, %132 : vector<32x1xf32>
    %135 = arith.divf %133, %134 : vector<32x1xf32>
    %136 = arith.mulf %127, %112 : vector<32x1xf32>
    %137 = arith.mulf %121, %129 : vector<32x1xf32>
    %138 = arith.addf %136, %137 : vector<32x1xf32>
    %139 = math.tanh %138 : vector<32x1xf32>
    %140 = arith.mulf %135, %139 : vector<32x1xf32>
    %141 = vector.extract_strided_slice %109 {offsets = [0, 1], sizes = [128, 1], strides = [1, 1]} : vector<128x7xf32> to vector<128x1xf32>
    %cst_38 = arith.constant dense<0.000000e+00> : vector<128x1xf32>
    %142 = tpu.matmul %110, %140, %cst_38 {dimension_numbers = #tpu.dot_dimension_numbers<[1], [0], [0], [1], [0, 0, 1, 1], [], []>} : vector<128x32xf32>, vector<32x1xf32>, vector<128x1xf32> -> vector<128x1xf32>
    %143 = arith.addf %141, %142 : vector<128x1xf32>
    %144 = vector.extract_strided_slice %143 {offsets = [0, 0], sizes = [32, 1], strides = [1, 1]} : vector<128x1xf32> to vector<32x1xf32>
    %145 = arith.negf %144 : vector<32x1xf32>
    %146 = math.exp %145 : vector<32x1xf32>
    %cst_39 = arith.constant 1.000000e+00 : f32
    %147 = vector.broadcast %cst_39 : f32 to vector<32x1xf32>
    %148 = arith.addf %147, %146 : vector<32x1xf32>
    %149 = arith.divf %147, %148 : vector<32x1xf32>
    %150 = vector.extract_strided_slice %143 {offsets = [32, 0], sizes = [32, 1], strides = [1, 1]} : vector<128x1xf32> to vector<32x1xf32>
    %151 = arith.negf %150 : vector<32x1xf32>
    %152 = math.exp %151 : vector<32x1xf32>
    %cst_40 = arith.constant 1.000000e+00 : f32
    %153 = vector.broadcast %cst_40 : f32 to vector<32x1xf32>
    %154 = arith.addf %153, %152 : vector<32x1xf32>
    %155 = arith.divf %153, %154 : vector<32x1xf32>
    %156 = vector.extract_strided_slice %143 {offsets = [64, 0], sizes = [32, 1], strides = [1, 1]} : vector<128x1xf32> to vector<32x1xf32>
    %157 = math.tanh %156 : vector<32x1xf32>
    %158 = vector.extract_strided_slice %143 {offsets = [96, 0], sizes = [32, 1], strides = [1, 1]} : vector<128x1xf32> to vector<32x1xf32>
    %159 = arith.negf %158 : vector<32x1xf32>
    %160 = math.exp %159 : vector<32x1xf32>
    %cst_41 = arith.constant 1.000000e+00 : f32
    %161 = vector.broadcast %cst_41 : f32 to vector<32x1xf32>
    %162 = arith.addf %161, %160 : vector<32x1xf32>
    %163 = arith.divf %161, %162 : vector<32x1xf32>
    %164 = arith.mulf %155, %138 : vector<32x1xf32>
    %165 = arith.mulf %149, %157 : vector<32x1xf32>
    %166 = arith.addf %164, %165 : vector<32x1xf32>
    %167 = math.tanh %166 : vector<32x1xf32>
    %168 = arith.mulf %163, %167 : vector<32x1xf32>
    %169 = vector.extract_strided_slice %109 {offsets = [0, 2], sizes = [128, 1], strides = [1, 1]} : vector<128x7xf32> to vector<128x1xf32>
    %cst_42 = arith.constant dense<0.000000e+00> : vector<128x1xf32>
    %170 = tpu.matmul %110, %168, %cst_42 {dimension_numbers = #tpu.dot_dimension_numbers<[1], [0], [0], [1], [0, 0, 1, 1], [], []>} : vector<128x32xf32>, vector<32x1xf32>, vector<128x1xf32> -> vector<128x1xf32>
    %171 = arith.addf %169, %170 : vector<128x1xf32>
    %172 = vector.extract_strided_slice %171 {offsets = [0, 0], sizes = [32, 1], strides = [1, 1]} : vector<128x1xf32> to vector<32x1xf32>
    %173 = arith.negf %172 : vector<32x1xf32>
    %174 = math.exp %173 : vector<32x1xf32>
    %cst_43 = arith.constant 1.000000e+00 : f32
    %175 = vector.broadcast %cst_43 : f32 to vector<32x1xf32>
    %176 = arith.addf %175, %174 : vector<32x1xf32>
    %177 = arith.divf %175, %176 : vector<32x1xf32>
    %178 = vector.extract_strided_slice %171 {offsets = [32, 0], sizes = [32, 1], strides = [1, 1]} : vector<128x1xf32> to vector<32x1xf32>
    %179 = arith.negf %178 : vector<32x1xf32>
    %180 = math.exp %179 : vector<32x1xf32>
    %cst_44 = arith.constant 1.000000e+00 : f32
    %181 = vector.broadcast %cst_44 : f32 to vector<32x1xf32>
    %182 = arith.addf %181, %180 : vector<32x1xf32>
    %183 = arith.divf %181, %182 : vector<32x1xf32>
    %184 = vector.extract_strided_slice %171 {offsets = [64, 0], sizes = [32, 1], strides = [1, 1]} : vector<128x1xf32> to vector<32x1xf32>
    %185 = math.tanh %184 : vector<32x1xf32>
    %186 = vector.extract_strided_slice %171 {offsets = [96, 0], sizes = [32, 1], strides = [1, 1]} : vector<128x1xf32> to vector<32x1xf32>
    %187 = arith.negf %186 : vector<32x1xf32>
    %188 = math.exp %187 : vector<32x1xf32>
    %cst_45 = arith.constant 1.000000e+00 : f32
    %189 = vector.broadcast %cst_45 : f32 to vector<32x1xf32>
    %190 = arith.addf %189, %188 : vector<32x1xf32>
    %191 = arith.divf %189, %190 : vector<32x1xf32>
    %192 = arith.mulf %183, %166 : vector<32x1xf32>
    %193 = arith.mulf %177, %185 : vector<32x1xf32>
    %194 = arith.addf %192, %193 : vector<32x1xf32>
    %195 = math.tanh %194 : vector<32x1xf32>
    %196 = arith.mulf %191, %195 : vector<32x1xf32>
    %197 = vector.extract_strided_slice %109 {offsets = [0, 3], sizes = [128, 1], strides = [1, 1]} : vector<128x7xf32> to vector<128x1xf32>
    %cst_46 = arith.constant dense<0.000000e+00> : vector<128x1xf32>
    %198 = tpu.matmul %110, %196, %cst_46 {dimension_numbers = #tpu.dot_dimension_numbers<[1], [0], [0], [1], [0, 0, 1, 1], [], []>} : vector<128x32xf32>, vector<32x1xf32>, vector<128x1xf32> -> vector<128x1xf32>
    %199 = arith.addf %197, %198 : vector<128x1xf32>
    %200 = vector.extract_strided_slice %199 {offsets = [0, 0], sizes = [32, 1], strides = [1, 1]} : vector<128x1xf32> to vector<32x1xf32>
    %201 = arith.negf %200 : vector<32x1xf32>
    %202 = math.exp %201 : vector<32x1xf32>
    %cst_47 = arith.constant 1.000000e+00 : f32
    %203 = vector.broadcast %cst_47 : f32 to vector<32x1xf32>
    %204 = arith.addf %203, %202 : vector<32x1xf32>
    %205 = arith.divf %203, %204 : vector<32x1xf32>
    %206 = vector.extract_strided_slice %199 {offsets = [32, 0], sizes = [32, 1], strides = [1, 1]} : vector<128x1xf32> to vector<32x1xf32>
    %207 = arith.negf %206 : vector<32x1xf32>
    %208 = math.exp %207 : vector<32x1xf32>
    %cst_48 = arith.constant 1.000000e+00 : f32
    %209 = vector.broadcast %cst_48 : f32 to vector<32x1xf32>
    %210 = arith.addf %209, %208 : vector<32x1xf32>
    %211 = arith.divf %209, %210 : vector<32x1xf32>
    %212 = vector.extract_strided_slice %199 {offsets = [64, 0], sizes = [32, 1], strides = [1, 1]} : vector<128x1xf32> to vector<32x1xf32>
    %213 = math.tanh %212 : vector<32x1xf32>
    %214 = vector.extract_strided_slice %199 {offsets = [96, 0], sizes = [32, 1], strides = [1, 1]} : vector<128x1xf32> to vector<32x1xf32>
    %215 = arith.negf %214 : vector<32x1xf32>
    %216 = math.exp %215 : vector<32x1xf32>
    %cst_49 = arith.constant 1.000000e+00 : f32
    %217 = vector.broadcast %cst_49 : f32 to vector<32x1xf32>
    %218 = arith.addf %217, %216 : vector<32x1xf32>
    %219 = arith.divf %217, %218 : vector<32x1xf32>
    %220 = arith.mulf %211, %194 : vector<32x1xf32>
    %221 = arith.mulf %205, %213 : vector<32x1xf32>
    %222 = arith.addf %220, %221 : vector<32x1xf32>
    %223 = math.tanh %222 : vector<32x1xf32>
    %224 = arith.mulf %219, %223 : vector<32x1xf32>
    %225 = vector.extract_strided_slice %109 {offsets = [0, 4], sizes = [128, 1], strides = [1, 1]} : vector<128x7xf32> to vector<128x1xf32>
    %cst_50 = arith.constant dense<0.000000e+00> : vector<128x1xf32>
    %226 = tpu.matmul %110, %224, %cst_50 {dimension_numbers = #tpu.dot_dimension_numbers<[1], [0], [0], [1], [0, 0, 1, 1], [], []>} : vector<128x32xf32>, vector<32x1xf32>, vector<128x1xf32> -> vector<128x1xf32>
    %227 = arith.addf %225, %226 : vector<128x1xf32>
    %228 = vector.extract_strided_slice %227 {offsets = [0, 0], sizes = [32, 1], strides = [1, 1]} : vector<128x1xf32> to vector<32x1xf32>
    %229 = arith.negf %228 : vector<32x1xf32>
    %230 = math.exp %229 : vector<32x1xf32>
    %cst_51 = arith.constant 1.000000e+00 : f32
    %231 = vector.broadcast %cst_51 : f32 to vector<32x1xf32>
    %232 = arith.addf %231, %230 : vector<32x1xf32>
    %233 = arith.divf %231, %232 : vector<32x1xf32>
    %234 = vector.extract_strided_slice %227 {offsets = [32, 0], sizes = [32, 1], strides = [1, 1]} : vector<128x1xf32> to vector<32x1xf32>
    %235 = arith.negf %234 : vector<32x1xf32>
    %236 = math.exp %235 : vector<32x1xf32>
    %cst_52 = arith.constant 1.000000e+00 : f32
    %237 = vector.broadcast %cst_52 : f32 to vector<32x1xf32>
    %238 = arith.addf %237, %236 : vector<32x1xf32>
    %239 = arith.divf %237, %238 : vector<32x1xf32>
    %240 = vector.extract_strided_slice %227 {offsets = [64, 0], sizes = [32, 1], strides = [1, 1]} : vector<128x1xf32> to vector<32x1xf32>
    %241 = math.tanh %240 : vector<32x1xf32>
    %242 = vector.extract_strided_slice %227 {offsets = [96, 0], sizes = [32, 1], strides = [1, 1]} : vector<128x1xf32> to vector<32x1xf32>
    %243 = arith.negf %242 : vector<32x1xf32>
    %244 = math.exp %243 : vector<32x1xf32>
    %cst_53 = arith.constant 1.000000e+00 : f32
    %245 = vector.broadcast %cst_53 : f32 to vector<32x1xf32>
    %246 = arith.addf %245, %244 : vector<32x1xf32>
    %247 = arith.divf %245, %246 : vector<32x1xf32>
    %248 = arith.mulf %239, %222 : vector<32x1xf32>
    %249 = arith.mulf %233, %241 : vector<32x1xf32>
    %250 = arith.addf %248, %249 : vector<32x1xf32>
    %251 = math.tanh %250 : vector<32x1xf32>
    %252 = arith.mulf %247, %251 : vector<32x1xf32>
    %253 = vector.extract_strided_slice %109 {offsets = [0, 5], sizes = [128, 1], strides = [1, 1]} : vector<128x7xf32> to vector<128x1xf32>
    %cst_54 = arith.constant dense<0.000000e+00> : vector<128x1xf32>
    %254 = tpu.matmul %110, %252, %cst_54 {dimension_numbers = #tpu.dot_dimension_numbers<[1], [0], [0], [1], [0, 0, 1, 1], [], []>} : vector<128x32xf32>, vector<32x1xf32>, vector<128x1xf32> -> vector<128x1xf32>
    %255 = arith.addf %253, %254 : vector<128x1xf32>
    %256 = vector.extract_strided_slice %255 {offsets = [0, 0], sizes = [32, 1], strides = [1, 1]} : vector<128x1xf32> to vector<32x1xf32>
    %257 = arith.negf %256 : vector<32x1xf32>
    %258 = math.exp %257 : vector<32x1xf32>
    %cst_55 = arith.constant 1.000000e+00 : f32
    %259 = vector.broadcast %cst_55 : f32 to vector<32x1xf32>
    %260 = arith.addf %259, %258 : vector<32x1xf32>
    %261 = arith.divf %259, %260 : vector<32x1xf32>
    %262 = vector.extract_strided_slice %255 {offsets = [32, 0], sizes = [32, 1], strides = [1, 1]} : vector<128x1xf32> to vector<32x1xf32>
    %263 = arith.negf %262 : vector<32x1xf32>
    %264 = math.exp %263 : vector<32x1xf32>
    %cst_56 = arith.constant 1.000000e+00 : f32
    %265 = vector.broadcast %cst_56 : f32 to vector<32x1xf32>
    %266 = arith.addf %265, %264 : vector<32x1xf32>
    %267 = arith.divf %265, %266 : vector<32x1xf32>
    %268 = vector.extract_strided_slice %255 {offsets = [64, 0], sizes = [32, 1], strides = [1, 1]} : vector<128x1xf32> to vector<32x1xf32>
    %269 = math.tanh %268 : vector<32x1xf32>
    %270 = vector.extract_strided_slice %255 {offsets = [96, 0], sizes = [32, 1], strides = [1, 1]} : vector<128x1xf32> to vector<32x1xf32>
    %271 = arith.negf %270 : vector<32x1xf32>
    %272 = math.exp %271 : vector<32x1xf32>
    %cst_57 = arith.constant 1.000000e+00 : f32
    %273 = vector.broadcast %cst_57 : f32 to vector<32x1xf32>
    %274 = arith.addf %273, %272 : vector<32x1xf32>
    %275 = arith.divf %273, %274 : vector<32x1xf32>
    %276 = arith.mulf %267, %250 : vector<32x1xf32>
    %277 = arith.mulf %261, %269 : vector<32x1xf32>
    %278 = arith.addf %276, %277 : vector<32x1xf32>
    %279 = math.tanh %278 : vector<32x1xf32>
    %280 = arith.mulf %275, %279 : vector<32x1xf32>
    %281 = vector.extract_strided_slice %109 {offsets = [0, 6], sizes = [128, 1], strides = [1, 1]} : vector<128x7xf32> to vector<128x1xf32>
    %cst_58 = arith.constant dense<0.000000e+00> : vector<128x1xf32>
    %282 = tpu.matmul %110, %280, %cst_58 {dimension_numbers = #tpu.dot_dimension_numbers<[1], [0], [0], [1], [0, 0, 1, 1], [], []>} : vector<128x32xf32>, vector<32x1xf32>, vector<128x1xf32> -> vector<128x1xf32>
    %283 = arith.addf %281, %282 : vector<128x1xf32>
    %284 = vector.extract_strided_slice %283 {offsets = [0, 0], sizes = [32, 1], strides = [1, 1]} : vector<128x1xf32> to vector<32x1xf32>
    %285 = arith.negf %284 : vector<32x1xf32>
    %286 = math.exp %285 : vector<32x1xf32>
    %cst_59 = arith.constant 1.000000e+00 : f32
    %287 = vector.broadcast %cst_59 : f32 to vector<32x1xf32>
    %288 = arith.addf %287, %286 : vector<32x1xf32>
    %289 = arith.divf %287, %288 : vector<32x1xf32>
    %290 = vector.extract_strided_slice %283 {offsets = [32, 0], sizes = [32, 1], strides = [1, 1]} : vector<128x1xf32> to vector<32x1xf32>
    %291 = arith.negf %290 : vector<32x1xf32>
    %292 = math.exp %291 : vector<32x1xf32>
    %cst_60 = arith.constant 1.000000e+00 : f32
    %293 = vector.broadcast %cst_60 : f32 to vector<32x1xf32>
    %294 = arith.addf %293, %292 : vector<32x1xf32>
    %295 = arith.divf %293, %294 : vector<32x1xf32>
    %296 = vector.extract_strided_slice %283 {offsets = [64, 0], sizes = [32, 1], strides = [1, 1]} : vector<128x1xf32> to vector<32x1xf32>
    %297 = math.tanh %296 : vector<32x1xf32>
    %298 = vector.extract_strided_slice %283 {offsets = [96, 0], sizes = [32, 1], strides = [1, 1]} : vector<128x1xf32> to vector<32x1xf32>
    %299 = arith.negf %298 : vector<32x1xf32>
    %300 = math.exp %299 : vector<32x1xf32>
    %cst_61 = arith.constant 1.000000e+00 : f32
    %301 = vector.broadcast %cst_61 : f32 to vector<32x1xf32>
    %302 = arith.addf %301, %300 : vector<32x1xf32>
    %303 = arith.divf %301, %302 : vector<32x1xf32>
    %304 = arith.mulf %295, %278 : vector<32x1xf32>
    %305 = arith.mulf %289, %297 : vector<32x1xf32>
    %306 = arith.addf %304, %305 : vector<32x1xf32>
    %307 = math.tanh %306 : vector<32x1xf32>
    %308 = arith.mulf %303, %307 : vector<32x1xf32>
    %c0_62 = arith.constant 0 : index
    %c0_63 = arith.constant 0 : index
    %309 = vector.load %arg12[%c0_62, %c0_63] : memref<4x32xf32, #tpu.memory_space<vmem>>, vector<4x32xf32>
    %cst_64 = arith.constant dense<0.000000e+00> : vector<4x1xf32>
    %310 = tpu.matmul %309, %308, %cst_64 {dimension_numbers = #tpu.dot_dimension_numbers<[1], [0], [0], [1], [0, 0, 1, 1], [], []>} : vector<4x32xf32>, vector<32x1xf32>, vector<4x1xf32> -> vector<4x1xf32>
    %c0_65 = arith.constant 0 : index
    %c0_66 = arith.constant 0 : index
    %311 = vector.load %arg13[%c0_65, %c0_66] : memref<4x1xf32, #tpu.memory_space<vmem>>, vector<4x1xf32>
    %312 = arith.addf %310, %311 : vector<4x1xf32>
    %c0_67 = arith.constant 0 : index
    %c0_68 = arith.constant 0 : index
    %c0_69 = arith.constant 0 : index
    %313 = vector.load %arg14[%c0_67, %c0_68, %c0_69] : memref<1x4x1xf32, #tpu.memory_space<vmem>>, vector<1x4x1xf32>
    %314 = vector.shape_cast %313 : vector<1x4x1xf32> to vector<4x1xf32>
    %315 = vector.shape_cast %312 : vector<4x1xf32> to vector<1x4x1xf32>
    tpu.vector_store %arg14[%c0_67, %c0_68, %c0_69], %315 {strides = array<i32>} : memref<1x4x1xf32, #tpu.memory_space<vmem>>, vector<1x4x1xf32>,
    return
  }
  func.func @transform_0(%arg0: i32) -> (i32, i32, i32) {
    %c0_i32 = arith.constant 0 : i32
    %c0_i32_0 = arith.constant 0 : i32
    %c0_i32_1 = arith.constant 0 : i32
    return %arg0, %c0_i32, %c0_i32_0 : i32, i32, i32
  }
  func.func @transform_1(%arg0: i32) -> (i32, i32) {
    %c0_i32 = arith.constant 0 : i32
    %c0_i32_0 = arith.constant 0 : i32
    %c0_i32_1 = arith.constant 0 : i32
    return %c0_i32, %c0_i32_0 : i32, i32
  }
  func.func @transform_2(%arg0: i32) -> (i32, i32) {
    %c0_i32 = arith.constant 0 : i32
    %c0_i32_0 = arith.constant 0 : i32
    %c0_i32_1 = arith.constant 0 : i32
    return %c0_i32, %c0_i32_0 : i32, i32
  }
  func.func @transform_3(%arg0: i32) -> (i32, i32) {
    %c0_i32 = arith.constant 0 : i32
    %c0_i32_0 = arith.constant 0 : i32
    %c0_i32_1 = arith.constant 0 : i32
    return %c0_i32, %c0_i32_0 : i32, i32
  }
  func.func @transform_4(%arg0: i32) -> (i32, i32) {
    %c0_i32 = arith.constant 0 : i32
    %c0_i32_0 = arith.constant 0 : i32
    %c0_i32_1 = arith.constant 0 : i32
    return %c0_i32, %c0_i32_0 : i32, i32
  }
  func.func @transform_5(%arg0: i32) -> (i32, i32) {
    %c0_i32 = arith.constant 0 : i32
    %c0_i32_0 = arith.constant 0 : i32
    %c0_i32_1 = arith.constant 0 : i32
    return %c0_i32, %c0_i32_0 : i32, i32
  }
  func.func @transform_6(%arg0: i32) -> (i32, i32) {
    %c0_i32 = arith.constant 0 : i32
    %c0_i32_0 = arith.constant 0 : i32
    %c0_i32_1 = arith.constant 0 : i32
    return %c0_i32, %c0_i32_0 : i32, i32
  }
  func.func @transform_7(%arg0: i32) -> (i32, i32) {
    %c0_i32 = arith.constant 0 : i32
    %c0_i32_0 = arith.constant 0 : i32
    %c0_i32_1 = arith.constant 0 : i32
    return %c0_i32, %c0_i32_0 : i32, i32
  }
  func.func @transform_8(%arg0: i32) -> (i32, i32) {
    %c0_i32 = arith.constant 0 : i32
    %c0_i32_0 = arith.constant 0 : i32
    %c0_i32_1 = arith.constant 0 : i32
    return %c0_i32, %c0_i32_0 : i32, i32
  }
  func.func @transform_9(%arg0: i32) -> (i32, i32) {
    %c0_i32 = arith.constant 0 : i32
    %c0_i32_0 = arith.constant 0 : i32
    %c0_i32_1 = arith.constant 0 : i32
    return %c0_i32, %c0_i32_0 : i32, i32
  }
  func.func @transform_10(%arg0: i32) -> (i32, i32) {
    %c0_i32 = arith.constant 0 : i32
    %c0_i32_0 = arith.constant 0 : i32
    %c0_i32_1 = arith.constant 0 : i32
    return %c0_i32, %c0_i32_0 : i32, i32
  }
  func.func @transform_11(%arg0: i32) -> (i32, i32) {
    %c0_i32 = arith.constant 0 : i32
    %c0_i32_0 = arith.constant 0 : i32
    %c0_i32_1 = arith.constant 0 : i32
    return %c0_i32, %c0_i32_0 : i32, i32
  }
  func.func @transform_12(%arg0: i32) -> (i32, i32) {
    %c0_i32 = arith.constant 0 : i32
    %c0_i32_0 = arith.constant 0 : i32
    %c0_i32_1 = arith.constant 0 : i32
    return %c0_i32, %c0_i32_0 : i32, i32
  }
  func.func @transform_13(%arg0: i32) -> (i32, i32, i32) {
    %c0_i32 = arith.constant 0 : i32
    %c0_i32_0 = arith.constant 0 : i32
    %c0_i32_1 = arith.constant 0 : i32
    return %arg0, %c0_i32, %c0_i32_0 : i32, i32, i32
  }
}

</mosaic_0001>

<bundles_post_ra>
// kernel: tinysleepnet_forward.1
= control target key start
LH: loop header
LB: loop body
LE: loop exit
PB: predicated region body
PF: predicated region fallthrough
CT: control target
= control target key end

     0   :  { %s7246_s25 = smov 0   ;;  %s11781_s0 = inlined_call_operand.vmem [shape: f32[2,8,400], index: 0, kind: input, shape index: {}]   ;;  %s11782_s1 = inlined_call_operand.vmem [shape: f32[16,64], index: 1, kind: input, shape index: {}]   ;;  %s11783_s2 = inlined_call_operand.vmem [shape: f32[16,128], index: 2, kind: input, shape index: {}]   ;;  %s11784_s3 = inlined_call_operand.vmem [shape: f32[16,128], index: 3, kind: input, shape index: {}]   ;;  %s11785_s4 = inlined_call_operand.vmem [shape: f32[16,128], index: 4, kind: input, shape index: {}]   ;;  %s11786_s5 = inlined_call_operand.vmem [shape: f32[16,8], index: 5, kind: input, shape index: {}]   ;;  %s11787_s6 = inlined_call_operand.vmem [shape: f32[386,49], index: 6, kind: input, shape index: {}]   ;;  %s11788_s7 = inlined_call_operand.vmem [shape: f32[25,7], index: 7, kind: input, shape index: {}]   ;;  %s11789_s8 = inlined_call_operand.vmem [shape: f32[128,16], index: 8, kind: input, shape index: {}]   ;;  %s11790_s9 = inlined_call_operand.vmem [shape: f32[128,32], index: 9, kind: input, shape index: {}]   ;;  %s11791_s10 = inlined_call_operand.vmem [shape: f32[128,1], index: 10, kind: input, shape index: {}]   ;;  %s11792_s11 = inlined_call_operand.vmem [shape: f32[4,32], index: 11, kind: input, shape index: {}]   ;;  %s11793_s12 = inlined_call_operand.vmem [shape: f32[4,1], index: 12, kind: input, shape index: {}]   ;;  %s11794_s13 = inlined_call_operand.vmem [shape: f32[2,4,1], index: 13, kind: output, shape index: {}]  }
   0x1 LB: > { %s6139_s26 = sadd.s32 4294967295, %s7152_s25   ;;  %p6143_p0 = scmp.ge.s32.totalorder %s7152_s25, 1  ;;  %s7152_s25 = sphi %s7246_s25, %s23_s25  }
   0x2   : > { %p387_p1 = scmp.lt.s32.totalorder %s7152_s25, 3 }
   0x4   : > { %p388_p2 = pnand %p6143_p0, %p387_p1 }
   0x6   : > { %391 = sbr.rel (%p388_p2) target bundleno = 5477 (0x1565), region = 72 }
   0xb   : > { %p430_p3 = scmp.lt.s32.totalorder %s6139_s26, 1  ;;  %s7154_s14 = smov 122   ;;  %vm555_vm0 = vcmask 990208   ;;  %vm539_vm1 = vcmask 998400   ;;  %vm523_vm2 = vcmask 1006592   ;;  %v439_v34 = vld [vmem:[%s11786_s5] sm:$0xff] }
   0xc   : > { %s7155_s15 = smov 121   ;;  %s7156_s16 = smov 123   ;;  %v11795_v38 = vmov 0   ;;  %vm507_vm3 = vcmask 1014784   ;;  %vm491_vm4 = vcmask 1022976   ;;  %v7162_v45 = vmov 1  }
   0xd   : > { %s12189_s26 = smov (!%p430_p3, %s6139_s26), 1  ;;  %s7157_s17 = smov 124   ;;  %6465 = vset.pattern.permute.xlu1 %v11795_v38  ;;  %6466 = vset.pattern.permute.xlu2 %v7162_v45  ;;  %v440_v50 = vld [vmem:[%s11786_s5 + $0x8] sm:$0xff]  ;;  %vm475_vm5 = vcmask 1031168   ;;  %vm459_vm6 = vcmask 1039360   ;;  %vm563_vm7 = vcmask 523264  }
   0xe   : > { %s6370_s27 = sshll.u32 %s12189_s26, 5  ;;  %s7158_s18 = smov 125   ;;  %6467 = vset.pattern.permute.xlu0 %v11795_v38  ;;  %vm1034_vm8 = vcmask 1041408   ;;  %vm1027_vm9 = vcmask 15360   ;;  %vm2641_vm10 = vcmask 1040384   ;;  %vm2634_vm11 = vcmask 203776  }
   0xf   : > { %s434_s30 = scalar_lea.vmem %s11781_s0, %s6370_s27  ;;  %s7159_s19 = smov 126   ;;  %vm3103_vm12 = vcmask 261120   ;;  %vm2973_vm13 = vcmask 130048  }
  0x10   : > { %v7260_v0 = vld [vmem:[%s434_s30] sm:$0xff]  ;;  %v7262_v1 = vld [vmem:[%s434_s30 + $0x8] sm:$0xff]  ;;  %v7268_v3 = vld [vmem:[%s434_s30 + $0x10] sm:$0xff]  ;;  %s7160_s20 = smov 127   ;;  %s7171_s23 = smov 2  }
  0x11   : > { %v6415_v2 = vpack.i.bf16 %v7262_v1, %v7260_v0  ;;  %v7270_v4 = vld [vmem:[%s434_s30 + $0x18] sm:$0xff]  ;;  %s7175_s30 = smov 6  }
  0x12   : > { %v6420_v5 = vpack.i.bf16 %v7270_v4, %v7268_v3 }
  0x13   : > { %6416 = vrot.lane.b32.xlu1 %v6415_v2, %s7154_s14  ;;  %6406 = vrot.lane.b32.xlu0 %v6415_v2, %s7155_s15 }
  0x14   : > { %6426 = vrot.lane.b32.xlu2 %v6415_v2, %s7156_s16 }
  0x1b   : > { %6421 = vrot.lane.b32.xlu1 %v6420_v5, %s7154_s14  ;;  %6411 = vrot.lane.b32.xlu0 %v6420_v5, %s7155_s15 }
  0x1c   : > { %6431 = vrot.lane.b32.xlu2 %v6420_v5, %s7156_s16 }
  0x23   : > { %6441 = vrot.lane.b32.xlu1 %v6420_v5, %s7157_s17  ;;  %6436 = vrot.lane.b32.xlu0 %v6415_v2, %s7157_s17 }
  0x24   : > { %6446 = vrot.lane.b32.xlu2 %v6415_v2, %s7158_s18 }
  0x2b   : > { %6451 = vrot.lane.b32.xlu0 %v6420_v5, %s7158_s18  ;;  %6456 = vrot.lane.b32.xlu1 %v6415_v2, %s7159_s19 }
  0x2c   : > { %471 = vrot.lane.b32.xlu2 %v7268_v3, %s7159_s19 }
  0x33   : > { %6461 = vrot.lane.b32.xlu0 %v6415_v2, %s7160_s20  ;;  %455 = vrot.lane.b32.xlu1 %v7268_v3, %s7160_s20 }
  0x34   : > { %473 = vrot.lane.b32.xlu2 %v7270_v4, %s7159_s19 }
  0x3b   : > { %457 = vrot.lane.b32.xlu0 %v7270_v4, %s7160_s20  ;;  %664 = vperm.xlu1 %6465, %v439_v34  }
  0x3c   : > { %681 = vperm.xlu2 %6466, %v439_v34   ;;  %v719_v34 = vld [vmem:[%s11787_s6 + $0x78] sm:$0xff] }
  0x43   : > { %669 = vperm.xlu0 %6467, %v440_v50   ;;  %6468 = vset.pattern.permute.xlu1 %v7162_v45 }
  0x44   : > { %685 = vperm.xlu1 %6468, %v440_v50  }
  0x6e   : > { %v6427_v6 = vpop.permute.xlu2 %6426 }
  0x6f   : > { %v6429_v8 = vunpack.i.h.bf16 %v6427_v6  ;;  %v6428_v9 = vunpack.i.l.bf16 %v6427_v6 }
  0x71   : > { %v524_v19 = vsel %vm523_vm2, %v6428_v9, %v6429_v8  ;;  %v445_v9 = vld [vmem:[%s11782_s1] sm:$0xff] }
  0x76   : > { %v6432_v7 = vpop.permute.xlu2 %6431 }
  0x77   : > { %v6434_v22 = vunpack.i.h.bf16 %v6432_v7  ;;  %v6433_v27 = vunpack.i.l.bf16 %v6432_v7 }
  0x79   : > { %v526_v32 = vsel %vm523_vm2, %v6433_v27, %v6434_v22  ;;  %v525_v37 = vsel %vm523_vm2, %v6429_v8, %v6433_v27 }
  0x7e   : > { %v7294_v18 = vpop.permute.xlu2 %6446 }
  0x7f   : > { %v6449_v35 = vunpack.i.h.bf16 %v7294_v18  ;;  %v6448_v36 = vunpack.i.l.bf16 %v7294_v18 }
  0x81   : > { %v492_v49 = vsel %vm491_vm4, %v6448_v36, %v6449_v35 }
  0x85   : > { %v6417_v10 = vpop.permute.xlu1 %6416  ;;  %v6407_v11 = vpop.permute.xlu0 %6406 }
  0x86   : > { %v6419_v12 = vunpack.i.h.bf16 %v6417_v10  ;;  %v6418_v13 = vunpack.i.l.bf16 %v6417_v10  ;;  %v6409_v14 = vunpack.i.h.bf16 %v6407_v11  ;;  %v6408_v15 = vunpack.i.l.bf16 %v6407_v11  ;;  %v472_v33 = vpop.permute.xlu2 %471 }
  0x88   : > { %v556_v16 = vsel %vm555_vm0, %v6408_v15, %v6409_v14  ;;  %v540_v17 = vsel %vm539_vm1, %v6418_v13, %v6419_v12 }
  0x89   : > { %578 = vmatpush.msra.mxu0 %v556_v16 }
  0x8b   : > { %579 = vmatpush.msra.mxu0 %v540_v17 }
  0x8d   : > { %v6422_v20 = vpop.permute.xlu1 %6421  ;;  %v6412_v21 = vpop.permute.xlu0 %6411  ;;  %580 = vmatpush.msra.mxu0 %v524_v19 }
  0x8e   : > { %v6423_v23 = vunpack.i.l.bf16 %v6422_v20  ;;  %v6413_v24 = vunpack.i.l.bf16 %v6412_v21  ;;  %v6414_v25 = vunpack.i.h.bf16 %v6412_v21  ;;  %v6424_v26 = vunpack.i.h.bf16 %v6422_v20  ;;  %v474_v51 = vpop.permute.xlu2 %473 }
  0x8f   : > { %v478_v58 = vsel %vm475_vm5, %v472_v33, %v474_v51 }
  0x90   : > { %647 = vmatpush.msra.mxu3 %v6414_v25  ;;  %v557_v28 = vsel %vm555_vm0, %v6409_v14, %v6413_v24  ;;  %v558_v29 = vsel %vm555_vm0, %v6413_v24, %v6414_v25  ;;  %v542_v30 = vsel %vm539_vm1, %v6423_v23, %v6424_v26  ;;  %v541_v31 = vsel %vm539_vm1, %v6419_v12, %v6423_v23 }
  0x91   : > { %601 = vmatpush.msra.mxu1 %v557_v28  ;;  %624 = vmatpush.msra.mxu2 %v558_v29 }
  0x92   : > { %648 = vmatpush.msra.mxu3 %v6424_v26 }
  0x93   : > { %602 = vmatpush.msra.mxu1 %v541_v31  ;;  %625 = vmatpush.msra.mxu2 %v542_v30 }
  0x94   : > { %649 = vmatpush.msra.mxu3 %v6434_v22 }
  0x95   : > { %v6442_v39 = vpop.permute.xlu1 %6441  ;;  %v6437_v40 = vpop.permute.xlu0 %6436  ;;  %603 = vmatpush.msra.mxu1 %v525_v37  ;;  %626 = vmatpush.msra.mxu2 %v526_v32  ;;  %v718_v37 = vld [vmem:[%s11787_s6 + $0x70] sm:$0xff] }
  0x96   : > { %v6443_v41 = vunpack.i.l.bf16 %v6442_v39  ;;  %v6439_v42 = vunpack.i.h.bf16 %v6437_v40  ;;  %v6438_v43 = vunpack.i.l.bf16 %v6437_v40  ;;  %v6444_v44 = vunpack.i.h.bf16 %v6442_v39 }
  0x97   : > { %v7443_v40 = vand.u32 4294901760, %v718_v37 }
  0x98   : > { %v508_v46 = vsel %vm507_vm3, %v6438_v43, %v6439_v42  ;;  %v509_v47 = vsel %vm507_vm3, %v6439_v42, %v6443_v41  ;;  %650 = vmatpush.msra.mxu3 %v6444_v44  ;;  %v510_v48 = vsel %vm507_vm3, %v6443_v41, %v6444_v44  ;;  %v717_v41 = vld [vmem:[%s11787_s6 + $0x68] sm:$0xff] }
  0x99   : > { %581 = vmatpush.msra.mxu0 %v508_v46  ;;  %604 = vmatpush.msra.mxu1 %v509_v47  ;;  %v7456_v43 = vsub.f32 %v718_v37, %v7443_v40  ;;  %v7458_v44 = vand.u32 4294901760, %v717_v41  ;;  %v716_v46 = vld [vmem:[%s11787_s6 + $0x60] sm:$0xff] }
  0x9a   : > { %627 = vmatpush.msra.mxu2 %v510_v48  ;;  %v7474_v50 = vand.u32 4294901760, %v716_v46 }
  0x9b   : > { %582 = vmatpush.msra.mxu0 %v492_v49  ;;  %v1095_v48 = vand.u32 4294901760, %v7456_v43  ;;  %v7472_v49 = vsub.f32 %v717_v41, %v7458_v44 }
  0x9d   : > { %v6452_v52 = vpop.permute.xlu0 %6451  ;;  %v6457_v53 = vpop.permute.xlu1 %6456 }
  0x9e   : > { %v6453_v54 = vunpack.i.l.bf16 %v6452_v52  ;;  %v6459_v55 = vunpack.i.h.bf16 %v6457_v53  ;;  %v6458_v56 = vunpack.i.l.bf16 %v6457_v53  ;;  %v6454_v57 = vunpack.i.h.bf16 %v6452_v52 }
  0x9f   : > { %v1096_v53 = vsub.f32 %v7456_v43, %v1095_v48 }
  0xa0   : > { %651 = vmatpush.msra.mxu3 %v6454_v57  ;;  %v493_v59 = vsel %vm491_vm4, %v6449_v35, %v6453_v54  ;;  %v494_v60 = vsel %vm491_vm4, %v6453_v54, %v6454_v57  ;;  %v476_v61 = vsel %vm475_vm5, %v6458_v56, %v6459_v55  ;;  %v477_v62 = vsel %vm475_vm5, %v6459_v55, %v472_v33 }
  0xa1   : > { %605 = vmatpush.msra.mxu1 %v493_v59  ;;  %628 = vmatpush.msra.mxu2 %v494_v60  ;;  %v7434_v35 = vand.u32 4294901760, %v719_v34  ;;  %v1101_v54 = vand.u32 4294901760, %v7472_v49  ;;  %v7487_v55 = vsub.f32 %v716_v46, %v7474_v50  ;;  %v1097_v59 = vand.u32 4294901760, %v1096_v53 }
  0xa2   : > { %583 = vmatpush.msra.mxu0 %v476_v61  ;;  %652 = vmatpush.msra.mxu3 %v474_v51  ;;  %v715_v51 = vld [vmem:[%s11787_s6 + $0x58] sm:$0xff] }
  0xa3   : > { %606 = vmatpush.msra.mxu1 %v477_v62  ;;  %629 = vmatpush.msra.mxu2 %v478_v58  ;;  %v7441_v39 = vsub.f32 %v719_v34, %v7434_v35  ;;  %v7493_v57 = vand.u32 4294901760, %v715_v51  ;;  %v714_v58 = vld [vmem:[%s11787_s6 + $0x50] sm:$0xff]  ;;  %v1102_v60 = vsub.f32 %v7472_v49, %v1101_v54  ;;  %v1107_v61 = vand.u32 4294901760, %v7487_v55 }
  0xa4   : > { %v7503_v62 = vand.u32 4294901760, %v714_v58 }
  0xa5   : > { %v6462_v63 = vpop.permute.xlu0 %6461  ;;  %v456_v2 = vpop.permute.xlu1 %455  ;;  %v1089_v42 = vand.u32 4294901760, %v7441_v39 }
  0xa6   : > { %v6464_v5 = vunpack.i.h.bf16 %v6462_v63  ;;  %v6463_v6 = vunpack.i.l.bf16 %v6462_v63  ;;  %v7507_v63 = vsub.f32 %v715_v51, %v7493_v57 }
  0xa7   : > { %v1090_v47 = vsub.f32 %v7441_v39, %v1089_v42 }
  0xa8   : > { %v460_v7 = vsel %vm459_vm6, %v6463_v6, %v6464_v5  ;;  %v461_v8 = vsel %vm459_vm6, %v6464_v5, %v456_v2  ;;  %v1103_v5 = vand.u32 4294901760, %v1102_v60  ;;  %v1108_v6 = vsub.f32 %v7487_v55, %v1107_v61 }
  0xa9   : > { %584 = vmatpush.msra.mxu0 %v460_v7  ;;  %607 = vmatpush.msra.mxu1 %v461_v8  ;;  %v1091_v52 = vand.u32 4294901760, %v1090_v47  ;;  %v7522_v7 = vsub.f32 %v714_v58, %v7503_v62 }
  0xab   : > { %585 = vmatpush.msra.mxu0 %v7260_v0  ;;  %608 = vmatpush.msra.mxu1 %v7262_v1  ;;  %v446_v0 = vld [vmem:[%s11782_s1 + $0x8] sm:$0xff] }
  0xac   : > { %6147 = vmatmul.msk.f32.vlgmr.msra.gmra.mxu0 %vm563_vm7, %v445_v9  ;;  %6149 = vmatmul.msk.f32.vlgmr.msra.gmra.mxu1 %vm563_vm7, %v445_v9 }
  0xad   : > { %v458_v10 = vpop.permute.xlu0 %457  ;;  %v7343_v1 = vpop.permute.xlu1 %664  ;;  %1039 = vmatpush.msrb.mxu0 %v7434_v35  ;;  %1092 = vmatpush.msrb.mxu1 %v1091_v52  ;;  %v708_v52 = vld [vmem:[%s11787_s6 + $0x20] sm:$0xff] }
  0xae   : > { %653 = vmatpush.msra.mxu3 %v458_v10  ;;  %v462_v11 = vsel %vm459_vm6, %v456_v2, %v458_v10  ;;  %v713_v2 = vld [vmem:[%s11787_s6 + $0x48] sm:$0xff]  ;;  %v712_v10 = vld [vmem:[%s11787_s6 + $0x40] sm:$0xff] }
  0xaf   : > { %630 = vmatpush.msra.mxu2 %v462_v11  ;;  %1041 = vmatpush.msrb.mxu0 %v7443_v40  ;;  %v7524_v8 = vand.u32 4294901760, %v713_v2 }
  0xb0   : > { %654 = vmatpush.msra.mxu3 %v7270_v4  ;;  %v7345_v4 = vpop.permute.xlu2 %681  ;;  %1098 = vmatpush.msrb.mxu1 %v1097_v59 }
  0xb1   : > { %631 = vmatpush.msra.mxu2 %v7268_v3  ;;  %6153 = vmatmul.msk.f32.vlgmr.msra.gmra.mxu3 %vm563_vm7, %v445_v9 }
  0xb2   : > { %6151 = vmatmul.msk.f32.vlgmr.msra.gmra.mxu2 %vm563_vm7, %v445_v9  ;;  %1252 = vmatpush.msrb.mxu3 %v7434_v35  ;;  %v1113_v9 = vand.u32 4294901760, %v7507_v63 }
  0xb3   : > { %1194 = vmatpush.msrb.mxu2 %v7441_v39  ;;  %1043 = vmatpush.msrb.mxu0 %v7458_v44 }
  0xb4   : > { %6150 = vmatmul.msk.f32.gmra.mxu1 %vm563_vm7, %v446_v0  ;;  %6148 = vmatmul.msk.f32.gmra.mxu0 %vm563_vm7, %v446_v0 }
  0xb5   : > { %v7389_v23 = vpop.permute.xlu0 %669  ;;  %1254 = vmatpush.msrb.mxu3 %v7443_v40  ;;  %1197 = vmatpush.msrb.mxu2 %v7456_v43 }
  0xb6   : > { %v7392_v26 = vpop.permute.xlu1 %685  ;;  %1045 = vmatpush.msrb.mxu0 %v7474_v50  ;;  %1104 = vmatpush.msrb.mxu1 %v1103_v5  ;;  %v707_v5 = vld [vmem:[%s11787_s6 + $0x18] sm:$0xff] }
  0xb7   : > { %1256 = vmatpush.msrb.mxu3 %v7458_v44  ;;  %1200 = vmatpush.msrb.mxu2 %v7472_v49 }
  0xb8   : > { %1047 = vmatpush.msrb.mxu0 %v7493_v57 }
  0xb9   : > { %6154 = vmatmul.msk.f32.gmra.mxu3 %vm563_vm7, %v446_v0  ;;  %1203 = vmatpush.msrb.mxu2 %v7487_v55 }
  0xba   : > { %6152 = vmatmul.msk.f32.gmra.mxu2 %vm563_vm7, %v446_v0  ;;  %1258 = vmatpush.msrb.mxu3 %v7474_v50  ;;  %v1109_v0 = vand.u32 4294901760, %v1108_v6 }
  0xbb   : > { %1206 = vmatpush.msrb.mxu2 %v7507_v63  ;;  %1049 = vmatpush.msrb.mxu0 %v7503_v62 }
  0xbc   : > { %1260 = vmatpush.msrb.mxu3 %v7493_v57  ;;  %1110 = vmatpush.msrb.mxu1 %v1109_v0  ;;  %v7621_v0 = vand.u32 4294901760, %v707_v5 }
  0xbd   : > { %1209 = vmatpush.msrb.mxu2 %v7522_v7  ;;  %1051 = vmatpush.msrb.mxu0 %v7524_v8 }
  0xbe   : > { %1262 = vmatpush.msrb.mxu3 %v7503_v62 }
  0xc0   : > { %1264 = vmatpush.msrb.mxu3 %v7524_v8 }
 0x129   : > { %v587_v3 = vpop.f32.mrf.mxu0  ;;  %v610_v12 = vpop.f32.mrf.mxu1 }
 0x12a   : > { %v672_v13 = vmul.f32 %v7343_v1, %v587_v3  ;;  %v673_v14 = vmul.f32 %v7343_v1, %v610_v12  ;;  %v1119_v3 = vand.u32 4294901760, %v7522_v7  ;;  %v7534_v12 = vsub.f32 %v713_v2, %v7524_v8 }
 0x12c   : > { %v688_v15 = vadd.f32 %v7345_v4, %v672_v13  ;;  %v689_v16 = vadd.f32 %v7345_v4, %v673_v14  ;;  %v7536_v13 = vand.u32 4294901760, %v712_v10  ;;  %1212 = vmatpush.msrb.mxu2 %v7534_v12 }
 0x12e   : > { %v7351_v17 = vmax.f32 %v688_v15, 0.0  ;;  %v7353_v18 = vmax.f32 %v689_v16, 0.0  ;;  %v1114_v15 = vsub.f32 %v7507_v63, %v1113_v9  ;;  %v711_v16 = vld [vmem:[%s11787_s6 + $0x38] sm:$0xff]  ;;  %1053 = vmatpush.msrb.mxu0 %v7536_v13  ;;  %1266 = vmatpush.msrb.mxu3 %v7536_v13  ;;  %v729_v63 = vld [vmem:[%s11787_s6 + $0xc8] sm:$0xff] }
 0x130   : > { %801 = vrot.lane.b32.xlu0 %v7353_v18, %s7159_s19  ;;  %763 = vrot.lane.b32.xlu1 %v7353_v18, %s7160_s20 }
 0x131   : > { %761 = vrot.lane.b32.xlu2 %v7351_v17, %s7160_s20  ;;  %v613_v24 = vpop.f32.mrf.mxu1  ;;  %v590_v28 = vpop.f32.mrf.mxu0 }
 0x132   : > { %v677_v25 = vmul.f32 %v7389_v23, %v613_v24  ;;  %v676_v30 = vmul.f32 %v7389_v23, %v590_v28  ;;  %v7556_v24 = vand.u32 4294901760, %v711_v16  ;;  %v710_v28 = vld [vmem:[%s11787_s6 + $0x30] sm:$0xff] }
 0x134   : > { %v693_v27 = vadd.f32 %v7392_v26, %v677_v25  ;;  %v692_v31 = vadd.f32 %v7392_v26, %v676_v30  ;;  %v656_v11 = vpop.f32.mrf.mxu3  ;;  %v7570_v34 = vsub.f32 %v711_v16, %v7556_v24  ;;  %1055 = vmatpush.msrb.mxu0 %v7556_v24  ;;  %1268 = vmatpush.msrb.mxu3 %v7556_v24 }
 0x135   : > { %v633_v19 = vpop.f32.mrf.mxu2  ;;  %v675_v25 = vmul.f32 %v7343_v1, %v656_v11 }
 0x136   : > { %v674_v20 = vmul.f32 %v7343_v1, %v633_v19  ;;  %v7401_v29 = vmax.f32 %v693_v27, 0.0  ;;  %v7411_v32 = vmax.f32 %v692_v31, 0.0  ;;  %v1120_v19 = vsub.f32 %v7522_v7, %v1119_v3  ;;  %v728_v7 = vld [vmem:[%s11787_s6 + $0xc0] sm:$0xff] }
 0x137   : > { %v1115_v27 = vand.u32 4294901760, %v1114_v15  ;;  %v7574_v1 = vand.u32 4294901760, %v710_v28  ;;  %v691_v47 = vadd.f32 %v7345_v4, %v675_v25 }
 0x138   : > { %875 = vrot.lane.b32.xlu0 %v7351_v17, %s7157_s17  ;;  %837 = vrot.lane.b32.xlu1 %v7351_v17, %s7158_s18  ;;  %v690_v21 = vadd.f32 %v7345_v4, %v674_v20  ;;  %v1125_v20 = vand.u32 4294901760, %v7534_v12  ;;  %v1121_v30 = vand.u32 4294901760, %v1120_v19  ;;  %v7606_v4 = vand.u32 4294901760, %v708_v52  ;;  %v706_v19 = vld [vmem:[%s11787_s6 + $0x10] sm:$0xff] }
 0x139   : > { %799 = vrot.lane.b32.xlu2 %v7351_v17, %s7159_s19  ;;  %1116 = vmatpush.msrb.mxu1 %v1115_v27  ;;  %v7594_v51 = vsub.f32 %v710_v28, %v7574_v1  ;;  %v7624_v15 = vmax.f32 %v691_v47, 0.0  ;;  %v7638_v28 = vsub.f32 %v707_v5, %v7621_v0 }
 0x13a   : > { %v7381_v22 = vmax.f32 %v690_v21, 0.0  ;;  %v7554_v21 = vsub.f32 %v712_v10, %v7536_v13  ;;  %v1126_v31 = vsub.f32 %v7534_v12, %v1125_v20  ;;  %v7618_v11 = vsub.f32 %v708_v52, %v7606_v4  ;;  %1057 = vmatpush.msrb.mxu0 %v7574_v1  ;;  %1270 = vmatpush.msrb.mxu3 %v7574_v1  ;;  %v727_v12 = vld [vmem:[%s11787_s6 + $0xb8] sm:$0xff] }
 0x13b   : > { %1122 = vmatpush.msrb.mxu1 %v1121_v30  ;;  %v11805_v2 = vand.u32 4294901760, %v7594_v51  ;;  %11878 = vst [vmem:[#allocation4_spill] sm:$0xff] %v7624_v15  ;;  %v7641_v30 = vand.u32 4294901760, %v706_v19  ;;  %v11797_v47 = vand.u32 4294901760, %v7638_v28 }
 0x13c   : > { %11876 = vst [vmem:[#allocation2_spill] sm:$0xff] %v7381_v22  ;;  %v1127_v37 = vand.u32 4294901760, %v1126_v31  ;;  %1215 = vmatpush.msrb.mxu2 %v7554_v21  ;;  %v11798_v27 = vand.u32 4294901760, %v7618_v11 }
 0x13d   : > { %v636_v33 = vpop.f32.mrf.mxu2  ;;  %v1144_v16 = vsub.f32 %v7594_v51, %v11805_v2  ;;  %v7657_v52 = vsub.f32 %v706_v19, %v7641_v30 }
 0x13e   : > { %v678_v36 = vmul.f32 %v7389_v23, %v636_v33  ;;  %v11807_v33 = vand.u32 4294901760, %v7554_v21  ;;  %1128 = vmatpush.msrb.mxu1 %v1127_v37  ;;  %1218 = vmatpush.msrb.mxu2 %v7570_v34 }
 0x13f   : > { %v1145_v31 = vand.u32 4294901760, %v1144_v16  ;;  %v11801_v16 = vand.u32 4294901760, %v7657_v52 }
 0x140   : > { %951 = vrot.lane.b32.xlu0 %v7351_v17, %s7154_s14  ;;  %877 = vrot.lane.b32.xlu1 %v7353_v18, %s7157_s17  ;;  %v694_v45 = vadd.f32 %v7392_v26, %v678_v36  ;;  %v709_v36 = vld [vmem:[%s11787_s6 + $0x28] sm:$0xff]  ;;  %v1132_v41 = vsub.f32 %v7554_v21, %v11807_v33 }
 0x141   : > { %839 = vrot.lane.b32.xlu2 %v7353_v18, %s7158_s18  ;;  %v7588_v46 = vand.u32 4294901760, %v709_v36  ;;  %1221 = vmatpush.msrb.mxu2 %v7594_v51 }
 0x142   : > { %v7491_v56 = vmax.f32 %v694_v45, 0.0  ;;  %v11806_v45 = vand.u32 4294901760, %v7570_v34  ;;  %v1133_v53 = vand.u32 4294901760, %v1132_v41  ;;  %v1156_v41 = vsub.f32 %v7618_v11, %v11798_v27 }
 0x143   : > { %v7603_v59 = vsub.f32 %v709_v36, %v7588_v46  ;;  %v705_v36 = vld [vmem:[%s11787_s6 + $0x8] sm:$0xff]  ;;  %1059 = vmatpush.msrb.mxu0 %v7588_v46  ;;  %1272 = vmatpush.msrb.mxu3 %v7588_v46 }
 0x144   : > { %11877 = vst [vmem:[#allocation3_spill] sm:$0xff] %v7491_v56  ;;  %v1138_v58 = vsub.f32 %v7570_v34, %v11806_v45  ;;  %1134 = vmatpush.msrb.mxu1 %v1133_v53  ;;  %v7661_v53 = vand.u32 4294901760, %v705_v36  ;;  %v1157_v5 = vand.u32 4294901760, %v1156_v41 }
 0x145   : > { %v11799_v10 = vand.u32 4294901760, %v7603_v59  ;;  %1224 = vmatpush.msrb.mxu2 %v7603_v59  ;;  %1061 = vmatpush.msrb.mxu0 %v7606_v4 }
 0x146   : > { %v1139_v6 = vand.u32 4294901760, %v1138_v58  ;;  %v704_v58 = vld [vmem:[%s11787_s6] sm:$0xff]  ;;  %v7677_v38 = vsub.f32 %v705_v36, %v7661_v53  ;;  %1274 = vmatpush.msrb.mxu3 %v7606_v4 }
 0x147   : > { %v1150_v25 = vsub.f32 %v7603_v59, %v11799_v10  ;;  %v7672_v19 = vand.u32 4294901760, %v704_v58  ;;  %1227 = vmatpush.msrb.mxu2 %v7618_v11  ;;  %1063 = vmatpush.msrb.mxu0 %v7621_v0 }
 0x148   : > { %991 = vrot.lane.b32.xlu0 %v7353_v18, %s7155_s15  ;;  %913 = vrot.lane.b32.xlu1 %v7351_v17, %s7156_s16 }
 0x149   : > { %915 = vrot.lane.b32.xlu2 %v7353_v18, %s7156_s16  ;;  %1140 = vmatpush.msrb.mxu1 %v1139_v6  ;;  %v1151_v37 = vand.u32 4294901760, %v1150_v25  ;;  %v1162_v6 = vsub.f32 %v7638_v28, %v11797_v47  ;;  %v659_v25 = vpop.f32.mrf.mxu3  ;;  %v1168_v47 = vsub.f32 %v7657_v52, %v11801_v16  ;;  %v7685_v27 = vsub.f32 %v704_v58, %v7672_v19 }
 0x14a   : > { %v679_v36 = vmul.f32 %v7389_v23, %v659_v25  ;;  %1230 = vmatpush.msrb.mxu2 %v7638_v28  ;;  %1276 = vmatpush.msrb.mxu3 %v7621_v0 }
 0x14b   : > { %1146 = vmatpush.msrb.mxu1 %v1145_v31  ;;  %v1163_v41 = vand.u32 4294901760, %v1162_v6  ;;  %v1169_v10 = vand.u32 4294901760, %v1168_v47  ;;  %v11803_v6 = vand.u32 4294901760, %v7685_v27  ;;  %1065 = vmatpush.msrb.mxu0 %v7641_v30 }
 0x14c   : > { %1233 = vmatpush.msrb.mxu2 %v7657_v52  ;;  %1278 = vmatpush.msrb.mxu3 %v7641_v30 }
 0x14d   : > { %1152 = vmatpush.msrb.mxu1 %v1151_v37  ;;  %v11800_v37 = vand.u32 4294901760, %v7677_v38  ;;  %v1180_v23 = vsub.f32 %v7685_v27, %v11803_v6  ;;  %1067 = vmatpush.msrb.mxu0 %v7661_v53 }
 0x14e   : > { %1236 = vmatpush.msrb.mxu2 %v7677_v38  ;;  %1280 = vmatpush.msrb.mxu3 %v7661_v53 }
 0x14f   : > { %1158 = vmatpush.msrb.mxu1 %v1157_v5  ;;  %v1174_v58 = vsub.f32 %v7677_v38, %v11800_v37  ;;  %v695_v5 = vadd.f32 %v7392_v26, %v679_v36  ;;  %v1181_v37 = vand.u32 4294901760, %v1180_v23  ;;  %1069 = vmatpush.msrb.mxu0 %v7672_v19 }
 0x150   : > { %765 = vrot.lane.b32.xlu0 %v7381_v22, %s7160_s20  ;;  %953 = vrot.lane.b32.xlu1 %v7353_v18, %s7154_s14 }
 0x151   : > { %989 = vrot.lane.b32.xlu2 %v7351_v17, %s7155_s15  ;;  %1164 = vmatpush.msrb.mxu1 %v1163_v41  ;;  %v1175_v47 = vand.u32 4294901760, %v1174_v58  ;;  %v7720_v26 = vmax.f32 %v695_v5, 0.0 }
 0x152   : > { %1239 = vmatpush.msrb.mxu2 %v7685_v27  ;;  %1299 = vmatpush.msra.mxu0 %v1089_v42 }
 0x153   : > { %1170 = vmatpush.msrb.mxu1 %v1169_v10  ;;  %11879 = vst [vmem:[#allocation5_spill] sm:$0xff] %v7720_v26  ;;  %v735_v10 = vld [vmem:[%s11787_s6 + $0xf8] sm:$0xff]  ;;  %1282 = vmatpush.msrb.mxu3 %v7672_v19 }
 0x154   : > { %1303 = vmatpush.msra.mxu0 %v1095_v48 }
 0x155   : > { %1176 = vmatpush.msrb.mxu1 %v1175_v47 }
 0x156   : > { %1307 = vmatpush.msra.mxu0 %v1101_v54 }
 0x157   : > { %1182 = vmatpush.msrb.mxu1 %v1181_v37  ;;  %v7734_v37 = vand.u32 4294901760, %v735_v10 }
 0x158   : > { %955 = vrot.lane.b32.xlu0 %v7381_v22, %s7154_s14  ;;  %841 = vrot.lane.b32.xlu1 %v7381_v22, %s7158_s18 }
 0x159   : > { %803 = vrot.lane.b32.xlu2 %v7381_v22, %s7159_s19  ;;  %1370 = vmatpush.msra.mxu1 %v7434_v35  ;;  %v734_v35 = vld [vmem:[%s11787_s6 + $0xf0] sm:$0xff]  ;;  %v7750_v36 = vsub.f32 %v735_v10, %v7734_v37 }
 0x15a   : > { %v7752_v58 = vand.u32 4294901760, %v734_v35  ;;  %1411 = vmatpush.msra.mxu2 %v7734_v37  ;;  %1311 = vmatpush.msra.mxu0 %v1107_v61 }
 0x15b   : > { %1372 = vmatpush.msra.mxu1 %v7443_v40  ;;  %v733_v40 = vld [vmem:[%s11787_s6 + $0xe8] sm:$0xff]  ;;  %v11802_v43 = vand.u32 4294901760, %v7750_v36 }
 0x15c   : > { %v7765_v48 = vsub.f32 %v734_v35, %v7752_v58  ;;  %v7767_v47 = vand.u32 4294901760, %v733_v40  ;;  %1413 = vmatpush.msra.mxu2 %v7752_v58  ;;  %1315 = vmatpush.msra.mxu0 %v1113_v9 }
 0x15d   : > { %1374 = vmatpush.msra.mxu1 %v7458_v44  ;;  %v732_v44 = vld [vmem:[%s11787_s6 + $0xe0] sm:$0xff]  ;;  %v1462_v49 = vsub.f32 %v7750_v36, %v11802_v43 }
 0x15e   : > { %v11804_v54 = vand.u32 4294901760, %v7765_v48  ;;  %v7781_v5 = vsub.f32 %v733_v40, %v7767_v47  ;;  %v7783_v10 = vand.u32 4294901760, %v732_v44  ;;  %1415 = vmatpush.msra.mxu2 %v7767_v47  ;;  %1319 = vmatpush.msra.mxu0 %v1119_v3 }
 0x15f   : > { %1376 = vmatpush.msra.mxu1 %v7474_v50  ;;  %v731_v50 = vld [vmem:[%s11787_s6 + $0xd8] sm:$0xff]  ;;  %v1463_v55 = vand.u32 4294901760, %v1462_v49  ;;  %v730_v49 = vld [vmem:[%s11787_s6 + $0xd0] sm:$0xff] }
 0x160   : > { %771 = vrot.lane.b32.xlu0 %v7401_v29, %s7160_s20  ;;  %879 = vrot.lane.b32.xlu1 %v7381_v22, %s7157_s17  ;;  %v1468_v61 = vsub.f32 %v7765_v48, %v11804_v54  ;;  %v11810_v35 = vand.u32 4294901760, %v7781_v5  ;;  %v7804_v40 = vand.u32 4294901760, %v731_v50  ;;  %v7819_v2 = vand.u32 4294901760, %v730_v49 }
 0x161   : > { %917 = vrot.lane.b32.xlu2 %v7381_v22, %s7156_s16  ;;  %1378 = vmatpush.msra.mxu1 %v7493_v57  ;;  %v7799_v57 = vsub.f32 %v732_v44, %v7783_v10 }
 0x162   : > { %1464 = vmatpush.msra.mxu3 %v1463_v55  ;;  %v1469_v54 = vand.u32 4294901760, %v1468_v61  ;;  %v1474_v44 = vsub.f32 %v7781_v5, %v11810_v35  ;;  %v7825_v33 = vsub.f32 %v731_v50, %v7804_v40  ;;  %1417 = vmatpush.msra.mxu2 %v7783_v10  ;;  %v7842_v61 = vsub.f32 %v730_v49, %v7819_v2 }
 0x163   : > { %1380 = vmatpush.msra.mxu1 %v7503_v62  ;;  %v11809_v62 = vand.u32 4294901760, %v7799_v57  ;;  %1323 = vmatpush.msra.mxu0 %v1125_v20 }
 0x164   : > { %1470 = vmatpush.msra.mxu3 %v1469_v54  ;;  %v1475_v9 = vand.u32 4294901760, %v1474_v44  ;;  %v11808_v50 = vand.u32 4294901760, %v7825_v33  ;;  %1419 = vmatpush.msra.mxu2 %v7804_v40  ;;  %v7845_v54 = vand.u32 4294901760, %v729_v63  ;;  %v11811_v49 = vand.u32 4294901760, %v7842_v61 }
 0x165   : > { %1382 = vmatpush.msra.mxu1 %v7524_v8  ;;  %v1480_v55 = vsub.f32 %v7799_v57, %v11809_v62  ;;  %v11880_v62 = vand.u32 4294901760, %v7554_v21 }
 0x166   : > { %1476 = vmatpush.msra.mxu3 %v1475_v9  ;;  %v7860_v44 = vsub.f32 %v729_v63, %v7845_v54  ;;  %1421 = vmatpush.msra.mxu2 %v7819_v2  ;;  %v7874_v9 = vand.u32 4294901760, %v727_v12 }
 0x167   : > { %1384 = vmatpush.msra.mxu1 %v7536_v13  ;;  %v1481_v3 = vand.u32 4294901760, %v1480_v55  ;;  %v1486_v13 = vsub.f32 %v7825_v33, %v11808_v50  ;;  %1327 = vmatpush.msra.mxu0 %v11880_v62 }
 0x168   : > { %845 = vrot.lane.b32.xlu0 %v7411_v32, %s7158_s18  ;;  %807 = vrot.lane.b32.xlu1 %v7411_v32, %s7159_s19  ;;  %v11881_v62 = vand.u32 4294901760, %v7860_v44 }
 0x169   : > { %769 = vrot.lane.b32.xlu2 %v7411_v32, %s7160_s20  ;;  %1386 = vmatpush.msra.mxu1 %v7556_v24  ;;  %v1487_v63 = vand.u32 4294901760, %v1486_v13  ;;  %v7892_v13 = vsub.f32 %v727_v12, %v7874_v9  ;;  %v725_v12 = vld [vmem:[%s11787_s6 + $0xa8] sm:$0xff] }
 0x16a   : > { %1482 = vmatpush.msra.mxu3 %v1481_v3  ;;  %v1498_v3 = vsub.f32 %v7860_v44, %v11881_v62  ;;  %1423 = vmatpush.msra.mxu2 %v7845_v54 }
 0x16b   : > { %1388 = vmatpush.msra.mxu1 %v7574_v1  ;;  %v11882_v1 = vand.u32 4294901760, %v7570_v34  ;;  %v7926_v34 = vand.u32 4294901760, %v725_v12 }
 0x16c   : > { %1488 = vmatpush.msra.mxu3 %v1487_v63 }
 0x16d   : > { %1390 = vmatpush.msra.mxu1 %v7588_v46  ;;  %1331 = vmatpush.msra.mxu0 %v11882_v1  ;;  %v11884_v1 = vand.u32 4294901760, %v7594_v51  ;;  %v723_v51 = vld [vmem:[%s11787_s6 + $0x98] sm:$0xff] }
 0x16f   : > { %1392 = vmatpush.msra.mxu1 %v7606_v4  ;;  %1335 = vmatpush.msra.mxu0 %v11884_v1  ;;  %v11885_v1 = vand.u32 4294901760, %v7603_v59 }
 0x170   : > { %885 = vrot.lane.b32.xlu0 %v7401_v29, %s7157_s17  ;;  %847 = vrot.lane.b32.xlu1 %v7401_v29, %s7158_s18 }
 0x171   : > { %809 = vrot.lane.b32.xlu2 %v7401_v29, %s7159_s19  ;;  %1394 = vmatpush.msra.mxu1 %v7621_v0  ;;  %v7954_v0 = vand.u32 4294901760, %v723_v51 }
 0x172   : > { %1339 = vmatpush.msra.mxu0 %v11885_v1  ;;  %v11886_v1 = vand.u32 4294901760, %v7618_v11 }
 0x173   : > { %1396 = vmatpush.msra.mxu1 %v7641_v30 }
 0x174   : > { %1343 = vmatpush.msra.mxu0 %v11886_v1  ;;  %v11887_v1 = vand.u32 4294901760, %v7638_v28  ;;  %v11888_v28 = vand.u32 4294901760, %v7657_v52 }
 0x175   : > { %1398 = vmatpush.msra.mxu1 %v7661_v53 }
 0x176   : > { %1347 = vmatpush.msra.mxu0 %v11887_v1 }
 0x177   : > { %1400 = vmatpush.msra.mxu1 %v7672_v19 }
 0x178   : > { %923 = vrot.lane.b32.xlu0 %v7401_v29, %s7156_s16  ;;  %961 = vrot.lane.b32.xlu1 %v7401_v29, %s7154_s14 }
 0x179   : > { %883 = vrot.lane.b32.xlu2 %v7411_v32, %s7157_s17  ;;  %1351 = vmatpush.msra.mxu0 %v11888_v28 }
 0x180   : > { %959 = vrot.lane.b32.xlu0 %v7411_v32, %s7154_s14  ;;  %997 = vrot.lane.b32.xlu1 %v7411_v32, %s7155_s15 }
 0x181   : > { %921 = vrot.lane.b32.xlu2 %v7411_v32, %s7156_s16 }
 0x188   : > { %849 = vrot.lane.b32.xlu0 %v7491_v56, %s7158_s18  ;;  %773 = vrot.lane.b32.xlu1 %v7491_v56, %s7160_s20 }
 0x189   : > { %999 = vrot.lane.b32.xlu2 %v7401_v29, %s7155_s15 }
 0x18b   : > { %v7540_v14 = vpop.permute.xlu2 %761 }
 0x190   : > { %925 = vrot.lane.b32.xlu0 %v7491_v56, %s7156_s16  ;;  %993 = vrot.lane.b32.xlu1 %v7381_v22, %s7155_s15 }
 0x191   : > { %811 = vrot.lane.b32.xlu2 %v7491_v56, %s7159_s19 }
 0x193   : > { %v7609_v60 = vpop.permute.xlu2 %799 }
 0x198   : > { %767 = vrot.lane.b32.xlu0 %v7624_v15, %s7160_s20  ;;  %963 = vrot.lane.b32.xlu1 %v7491_v56, %s7154_s14 }
 0x199   : > { %887 = vrot.lane.b32.xlu2 %v7491_v56, %s7157_s17 }
 0x19b   : > { %v7674_v31 = vpop.permute.xlu2 %839 }
 0x1a0   : > { %881 = vrot.lane.b32.xlu0 %v7624_v15, %s7157_s17  ;;  %805 = vrot.lane.b32.xlu1 %v7624_v15, %s7159_s19 }
 0x1a1   : > { %1001 = vrot.lane.b32.xlu2 %v7491_v56, %s7155_s15 }
 0x1a2   : > { %v7708_v25 = vpop.permute.xlu0 %801  ;;  %v7710_v41 = vpop.permute.xlu1 %763 }
 0x1a3   : > { %v7714_v16 = vpop.permute.xlu2 %915  ;;  %v777_v8 = vsel %vm459_vm6, %v7540_v14, %v7710_v41  ;;  %v7852_v14 = vand.u32 4294901760, %v728_v7 }
 0x1a4   : > { %v791_v20 = vmax.f32 %v7351_v17, %v777_v8  ;;  %v1492_v17 = vsub.f32 %v7842_v61, %v11811_v49  ;;  %v726_v8 = vld [vmem:[%s11787_s6 + $0xb0] sm:$0xff]  ;;  %v815_v49 = vsel %vm475_vm5, %v7609_v60, %v7708_v25 }
 0x1a5   : > { %v7872_v24 = vsub.f32 %v728_v7, %v7852_v14  ;;  %v7894_v35 = vand.u32 4294901760, %v726_v8  ;;  %1425 = vmatpush.msra.mxu2 %v7852_v14 }
 0x1a6   : > { %v1493_v21 = vand.u32 4294901760, %v1492_v17  ;;  %v829_v60 = vmax.f32 %v791_v20, %v815_v49  ;;  %v11815_v17 = vand.u32 4294901760, %v7892_v13  ;;  %v724_v20 = vld [vmem:[%s11787_s6 + $0xa0] sm:$0xff] }
 0x1a7   : > { %v7924_v49 = vsub.f32 %v726_v8, %v7894_v35  ;;  %1427 = vmatpush.msra.mxu2 %v7874_v9 }
 0x1a8   : > { %813 = vrot.lane.b32.xlu0 %v7720_v26, %s7159_s19  ;;  %775 = vrot.lane.b32.xlu1 %v7720_v26, %s7160_s20  ;;  %v1510_v4 = vsub.f32 %v7892_v13, %v11815_v17 }
 0x1a9   : > { %843 = vrot.lane.b32.xlu2 %v7624_v15, %s7158_s18  ;;  %1494 = vmatpush.msra.mxu3 %v1493_v21 }
 0x1aa   : > { %v7742_v39 = vpop.permute.xlu0 %875  ;;  %v7744_v42 = vpop.permute.xlu1 %837  ;;  %1429 = vmatpush.msra.mxu2 %v7894_v35 }
 0x1ab   : > { %v7754_v23 = vpop.permute.xlu2 %989  ;;  %v853_v55 = vsel %vm491_vm4, %v7744_v42, %v7674_v31  ;;  %v11883_v42 = vand.u32 4294901760, %v7872_v24 }
 0x1ac   : > { %v867_v63 = vmax.f32 %v829_v60, %v853_v55  ;;  %v7944_v55 = vsub.f32 %v725_v12, %v7926_v34  ;;  %v1511_v60 = vand.u32 4294901760, %v1510_v4  ;;  %v7974_v4 = vsub.f32 %v723_v51, %v7954_v0  ;;  %1431 = vmatpush.msra.mxu2 %v7926_v34 }
 0x1ad   : > { %v1504_v46 = vsub.f32 %v7872_v24, %v11883_v42  ;;  %v11814_v42 = vand.u32 4294901760, %v7924_v49 }
 0x1af   : > { %v1516_v12 = vsub.f32 %v7924_v49, %v11814_v42 }
 0x1b0   : > { %995 = vrot.lane.b32.xlu0 %v7624_v15, %s7155_s15  ;;  %957 = vrot.lane.b32.xlu1 %v7624_v15, %s7154_s14 }
 0x1b1   : > { %919 = vrot.lane.b32.xlu2 %v7624_v15, %s7156_s16  ;;  %v1499_v15 = vand.u32 4294901760, %v1498_v3  ;;  %v7936_v3 = vand.u32 4294901760, %v724_v20 }
 0x1b2   : > { %v7809_v43 = vpop.permute.xlu0 %951  ;;  %v7811_v6 = vpop.permute.xlu1 %877 }
 0x1b3   : > { %v7821_v45 = vpop.permute.xlu2 %803  ;;  %v891_v62 = vsel %vm507_vm3, %v7742_v39, %v7811_v6  ;;  %v1505_v39 = vand.u32 4294901760, %v1504_v46  ;;  %1500 = vmatpush.msra.mxu3 %v1499_v15  ;;  %v11816_v46 = vand.u32 4294901760, %v7944_v55  ;;  %v722_v15 = vld [vmem:[%s11787_s6 + $0x90] sm:$0xff]  ;;  %1433 = vmatpush.msra.mxu2 %v7936_v3 }
 0x1b4   : > { %v905_v21 = vmax.f32 %v867_v63, %v891_v62  ;;  %v7976_v42 = vand.u32 4294901760, %v722_v15 }
 0x1b5   : > { %1506 = vmatpush.msra.mxu3 %v1505_v39  ;;  %v1522_v59 = vsub.f32 %v7944_v55, %v11816_v46  ;;  %v721_v39 = vld [vmem:[%s11787_s6 + $0x88] sm:$0xff]  ;;  %1435 = vmatpush.msra.mxu2 %v7954_v0 }
 0x1b6   : > { %v8005_v11 = vand.u32 4294901760, %v721_v39 }
 0x1b7   : > { %1512 = vmatpush.msra.mxu3 %v1511_v60  ;;  %v1523_v46 = vand.u32 4294901760, %v1522_v59  ;;  %v720_v60 = vld [vmem:[%s11787_s6 + $0x80] sm:$0xff]  ;;  %1437 = vmatpush.msra.mxu2 %v7976_v42 }
 0x1b8   : > { %965 = vrot.lane.b32.xlu0 %v7720_v26, %s7154_s14  ;;  %889 = vrot.lane.b32.xlu1 %v7720_v26, %s7157_s17  ;;  %v8018_v59 = vsub.f32 %v721_v39, %v8005_v11 }
 0x1b9   : > { %851 = vrot.lane.b32.xlu2 %v7720_v26, %s7158_s18  ;;  %1439 = vmatpush.msra.mxu2 %v8005_v11 }
 0x1ba   : > { %v7886_v7 = vpop.permute.xlu0 %991  ;;  %v914_v50 = vpop.permute.xlu1 %913 }
 0x1bb   : > { %v7902_v56 = vpop.permute.xlu2 %917  ;;  %v929_v8 = vsel %vm523_vm2, %v914_v50, %v7714_v16  ;;  %v7952_v50 = vsub.f32 %v724_v20, %v7936_v3 }
 0x1bc   : > { %v943_v62 = vmax.f32 %v905_v21, %v929_v8  ;;  %v1517_v21 = vand.u32 4294901760, %v1516_v12  ;;  %v1005_v12 = vsel %vm555_vm0, %v7754_v23, %v7886_v7 }
 0x1bd   : > { %v11817_v30 = vand.u32 4294901760, %v7952_v50 }
 0x1be   : > { %1518 = vmatpush.msra.mxu3 %v1517_v21 }
 0x1bf   : > { %v1528_v53 = vsub.f32 %v7952_v50, %v11817_v30  ;;  %v8020_v30 = vand.u32 4294901760, %v720_v60 }
 0x1c0   : > { %1003 = vrot.lane.b32.xlu1 %v7720_v26, %s7155_s15  ;;  %1524 = vmatpush.msra.mxu3 %v1523_v46 }
 0x1c1   : > { %927 = vrot.lane.b32.xlu2 %v7720_v26, %s7156_s16  ;;  %v1529_v23 = vand.u32 4294901760, %v1528_v53  ;;  %v1545_v53 = vand.u32 4294901760, %v8018_v59  ;;  %v8032_v39 = vsub.f32 %v720_v60, %v8020_v30  ;;  %1441 = vmatpush.msra.mxu2 %v8020_v30 }
 0x1c2   : > { %v7966_v20 = vpop.permute.xlu0 %765  ;;  %v7968_v63 = vpop.permute.xlu1 %953 }
 0x1c3   : > { %v967_v17 = vsel %vm539_vm1, %v7809_v43, %v7968_v63  ;;  %v7981_v8 = vpop.permute.xlu2 %769  ;;  %v11820_v43 = vand.u32 4294901760, %v7974_v4  ;;  %1530 = vmatpush.msra.mxu3 %v1529_v23  ;;  %v1546_v60 = vsub.f32 %v8018_v59, %v1545_v53 }
 0x1c4   : > { %v981_v51 = vmax.f32 %v943_v62, %v967_v17  ;;  %v8003_v17 = vsub.f32 %v722_v15, %v7976_v42 }
 0x1c5   : > { %v1534_v19 = vsub.f32 %v7974_v4, %v11820_v43  ;;  %v1551_v43 = vand.u32 4294901760, %v8032_v39  ;;  %v1547_v23 = vand.u32 4294901760, %v1546_v60 }
 0x1c6   : > { %v1019_v62 = vmax.f32 %v981_v51, %v1005_v12  ;;  %v11819_v15 = vand.u32 4294901760, %v8003_v17 }
 0x1c7   : > { %v1535_v21 = vand.u32 4294901760, %v1534_v19  ;;  %v11889_v19 = vand.u32 4294901760, %v7677_v38  ;;  %v1552_v38 = vsub.f32 %v8032_v39, %v1551_v43 }
 0x1c8   : > { %v8022_v26 = vand.u32 4294901760, %v1019_v62  ;;  %v1540_v51 = vsub.f32 %v8003_v17, %v11819_v15 }
 0x1c9   : > { %1355 = vmatpush.msra.mxu0 %v11889_v19  ;;  %1536 = vmatpush.msra.mxu3 %v1535_v21 }
 0x1ca   : > { %v8034_v12 = vpop.permute.xlu0 %955  ;;  %v8036_v1 = vpop.permute.xlu1 %841  ;;  %1184 = vmatmul.f32.vlgmr.msrb.gmra.mxu1 %v8022_v26  ;;  %v1071_v52 = vsub.f32 %v1019_v62, %v8022_v26  ;;  %v1541_v28 = vand.u32 4294901760, %v1540_v51  ;;  %v11890_v62 = vand.u32 4294901760, %v7685_v27  ;;  %v1553_v51 = vand.u32 4294901760, %v1552_v38 }
 0x1cb   : > { %v8040_v46 = vpop.permute.xlu2 %809  ;;  %1624 = vmatpush.msrb.mxu1 %v7734_v37  ;;  %v11904_v38 = vand.u32 4294901760, %v8003_v17 }
 0x1cc   : > { %1242 = vmatmul.f32.vlgmr.msrb.gmra.mxu2 %v1071_v52  ;;  %v1072_v15 = vand.u32 4294901760, %v1071_v52  ;;  %1359 = vmatpush.msra.mxu0 %v11890_v62  ;;  %v11903_v62 = vand.u32 4294901760, %v7974_v4 }
 0x1cd   : > { %1626 = vmatpush.msrb.mxu1 %v7752_v58  ;;  %1542 = vmatpush.msra.mxu3 %v1541_v28  ;;  %v11893_v28 = vand.u32 4294901760, %v7781_v5 }
 0x1ce   : > { %1286 = vmatmul.f32.vlgmr.msrb.gmra.mxu3 %v1072_v15  ;;  %v1073_v22 = vsub.f32 %v1071_v52, %v1072_v15  ;;  %v11892_v52 = vand.u32 4294901760, %v7765_v48 }
 0x1cf   : > { %1628 = vmatpush.msrb.mxu1 %v7767_v47  ;;  %1548 = vmatpush.msra.mxu3 %v1547_v23 }
 0x1d0   : > { %v1074_v21 = vand.u32 4294901760, %v1073_v22  ;;  %v11891_v22 = vand.u32 4294901760, %v7750_v36 }
 0x1d1   : > { %1630 = vmatpush.msrb.mxu1 %v7783_v10  ;;  %1554 = vmatpush.msra.mxu3 %v1553_v51 }
 0x1d2   : > { %v8059_v27 = vpop.permute.xlu0 %771  ;;  %v8061_v19 = vpop.permute.xlu1 %879  ;;  %1075 = vmatmul.f32.vlgmr.msrb.gmra.mxu0 %v1074_v21  ;;  %1671 = vmatpush.msrb.mxu2 %v11891_v22 }
 0x1d3   : > { %v8064_v15 = vpop.permute.xlu2 %883  ;;  %1566 = vmatpush.msrb.mxu0 %v7750_v36  ;;  %1632 = vmatpush.msrb.mxu1 %v7804_v40 }
 0x1d4   : > { %1742 = vmatpush.msrb.mxu3 %v7734_v37  ;;  %1675 = vmatpush.msrb.mxu2 %v11892_v52  ;;  %v11894_v37 = vand.u32 4294901760, %v7799_v57 }
 0x1d5   : > { %1569 = vmatpush.msrb.mxu0 %v7765_v48  ;;  %1634 = vmatpush.msrb.mxu1 %v7819_v2 }
 0x1d6   : > { %1744 = vmatpush.msrb.mxu3 %v7752_v58  ;;  %1679 = vmatpush.msrb.mxu2 %v11893_v28  ;;  %v11895_v58 = vand.u32 4294901760, %v7825_v33 }
 0x1d7   : > { %1572 = vmatpush.msrb.mxu0 %v7781_v5  ;;  %1636 = vmatpush.msrb.mxu1 %v7845_v54  ;;  %v11897_v5 = vand.u32 4294901760, %v7860_v44 }
 0x1d8   : > { %1746 = vmatpush.msrb.mxu3 %v7767_v47  ;;  %1683 = vmatpush.msrb.mxu2 %v11894_v37  ;;  %v11896_v47 = vand.u32 4294901760, %v7842_v61 }
 0x1d9   : > { %1575 = vmatpush.msrb.mxu0 %v7799_v57  ;;  %1638 = vmatpush.msrb.mxu1 %v7852_v14  ;;  %v11898_v57 = vand.u32 4294901760, %v7872_v24 }
 0x1da   : > { %v846_v36 = vpop.permute.xlu0 %845  ;;  %v808_v60 = vpop.permute.xlu1 %807  ;;  %1748 = vmatpush.msrb.mxu3 %v7783_v10  ;;  %1687 = vmatpush.msrb.mxu2 %v11895_v58 }
 0x1db   : > { %v922_v48 = vpop.permute.xlu2 %921  ;;  %1578 = vmatpush.msrb.mxu0 %v7825_v33  ;;  %1640 = vmatpush.msrb.mxu1 %v7874_v9 }
 0x1dc   : > { %1750 = vmatpush.msrb.mxu3 %v7804_v40  ;;  %1691 = vmatpush.msrb.mxu2 %v11896_v47 }
 0x1dd   : > { %1581 = vmatpush.msrb.mxu0 %v7842_v61  ;;  %1642 = vmatpush.msrb.mxu1 %v7894_v35  ;;  %v780_v61 = vsel %vm459_vm6, %v7981_v8, %v8059_v27 }
 0x1de   : > { %1752 = vmatpush.msrb.mxu3 %v7819_v2  ;;  %1695 = vmatpush.msrb.mxu2 %v11897_v5  ;;  %v11899_v2 = vand.u32 4294901760, %v7892_v13 }
 0x1df   : > { %1584 = vmatpush.msrb.mxu0 %v7860_v44  ;;  %1644 = vmatpush.msrb.mxu1 %v7926_v34  ;;  %v818_v44 = vsel %vm475_vm5, %v808_v60, %v8040_v46  ;;  %v747_v60 = vld [vmem:[%s11787_s6 + $0x158] sm:$0xff] }
 0x1e0   : > { %1754 = vmatpush.msrb.mxu3 %v7845_v54  ;;  %1699 = vmatpush.msrb.mxu2 %v11898_v57  ;;  %v11900_v54 = vand.u32 4294901760, %v7924_v49  ;;  %v8222_v57 = vand.u32 4294901760, %v747_v60 }
 0x1e1   : > { %1587 = vmatpush.msrb.mxu0 %v7872_v24  ;;  %1646 = vmatpush.msrb.mxu1 %v7936_v3  ;;  %v11901_v24 = vand.u32 4294901760, %v7944_v55 }
 0x1e2   : > { %v8102_v33 = vpop.permute.xlu0 %885  ;;  %v8104_v10 = vpop.permute.xlu1 %847  ;;  %1756 = vmatpush.msrb.mxu3 %v7852_v14  ;;  %1703 = vmatpush.msrb.mxu2 %v11899_v2  ;;  %v795_v14 = vmax.f32 %v7411_v32, %v780_v61  ;;  %v11902_v32 = vand.u32 4294901760, %v7952_v50 }
 0x1e3   : > { %v8109_v40 = vpop.permute.xlu2 %999  ;;  %1590 = vmatpush.msrb.mxu0 %v7892_v13  ;;  %1648 = vmatpush.msrb.mxu1 %v7954_v0 }
 0x1e4   : > { %1758 = vmatpush.msrb.mxu3 %v7874_v9  ;;  %1707 = vmatpush.msrb.mxu2 %v11900_v54  ;;  %v856_v9 = vsel %vm491_vm4, %v846_v36, %v8104_v10  ;;  %v833_v13 = vmax.f32 %v795_v14, %v818_v44  ;;  %v748_v36 = vld [vmem:[%s11787_s6 + $0x160] sm:$0xff]  ;;  %v745_v44 = vld [vmem:[%s11787_s6 + $0x148] sm:$0xff] }
 0x1e5   : > { %1593 = vmatpush.msrb.mxu0 %v7924_v49  ;;  %1650 = vmatpush.msrb.mxu1 %v7976_v42  ;;  %v8208_v37 = vand.u32 4294901760, %v748_v36 }
 0x1e6   : > { %1760 = vmatpush.msrb.mxu3 %v7894_v35  ;;  %1711 = vmatpush.msrb.mxu2 %v11901_v24  ;;  %v751_v35 = vld [vmem:[%s11787_s6 + $0x178] sm:$0xff] }
 0x1e7   : > { %1596 = vmatpush.msrb.mxu0 %v7944_v55  ;;  %1652 = vmatpush.msrb.mxu1 %v8005_v11  ;;  %v871_v55 = vmax.f32 %v833_v13, %v856_v9  ;;  %v8231_v14 = vsub.f32 %v748_v36, %v8208_v37 }
 0x1e8   : > { %1762 = vmatpush.msrb.mxu3 %v7926_v34  ;;  %1715 = vmatpush.msrb.mxu2 %v11902_v32  ;;  %v750_v34 = vld [vmem:[%s11787_s6 + $0x170] sm:$0xff] }
 0x1e9   : > { %1599 = vmatpush.msrb.mxu0 %v7952_v50  ;;  %1654 = vmatpush.msrb.mxu1 %v8020_v30  ;;  %v8156_v50 = vand.u32 4294901760, %v751_v35  ;;  %v8170_v22 = vand.u32 4294901760, %v750_v34 }
 0x1ea   : > { %v8136_v49 = vpop.permute.xlu0 %923  ;;  %v8138_v8 = vpop.permute.xlu1 %961  ;;  %1764 = vmatpush.msrb.mxu3 %v7936_v3  ;;  %1719 = vmatpush.msrb.mxu2 %v11903_v62  ;;  %v778_v3 = vsel %vm459_vm6, %v7710_v41, %v7966_v20 }
 0x1eb   : > { %1602 = vmatpush.msrb.mxu0 %v7974_v4  ;;  %v8150_v23 = vpop.permute.xlu2 %811  ;;  %v894_v4 = vsel %vm507_vm3, %v8064_v15, %v8102_v33  ;;  %v932_v21 = vsel %vm523_vm2, %v922_v48, %v8136_v49  ;;  %v792_v41 = vmax.f32 %v7353_v18, %v778_v3  ;;  %v8181_v28 = vsub.f32 %v751_v35, %v8156_v50 }
 0x1ec   : > { %1766 = vmatpush.msrb.mxu3 %v7954_v0  ;;  %1723 = vmatpush.msrb.mxu2 %v11904_v38  ;;  %v909_v51 = vmax.f32 %v871_v55, %v894_v4  ;;  %v749_v0 = vld [vmem:[%s11787_s6 + $0x168] sm:$0xff]  ;;  %v744_v55 = vld [vmem:[%s11787_s6 + $0x140] sm:$0xff]  ;;  %v8252_v38 = vsub.f32 %v747_v60, %v8222_v57  ;;  %v8254_v3 = vand.u32 4294901760, %v745_v44  ;;  %v930_v4 = vsel %vm523_vm2, %v7714_v16, %v7902_v56 }
 0x1ed   : > { %1605 = vmatpush.msrb.mxu0 %v8003_v17  ;;  %v11829_v47 = vand.u32 4294901760, %v8181_v28 }
 0x1ee   : > { %1768 = vmatpush.msrb.mxu3 %v7976_v42  ;;  %1727 = vmatpush.msrb.mxu2 %v1545_v53  ;;  %v947_v17 = vmax.f32 %v909_v51, %v932_v21  ;;  %v8194_v53 = vsub.f32 %v750_v34, %v8170_v22  ;;  %11906 = vst [vmem:[#allocation7_spill] sm:$0xff] %v8254_v3 }
 0x1ef   : > { %1608 = vmatpush.msrb.mxu0 %v8018_v59  ;;  %v8191_v59 = vand.u32 4294901760, %v749_v0  ;;  %v1834_v35 = vsub.f32 %v8181_v28, %v11829_v47  ;;  %v8280_v60 = vsub.f32 %v745_v44, %v8254_v3 }
 0x1f0   : > { %1770 = vmatpush.msrb.mxu3 %v8005_v11  ;;  %1731 = vmatpush.msrb.mxu2 %v1551_v43  ;;  %v816_v11 = vsel %vm475_vm5, %v7708_v25, %v7821_v45  ;;  %v854_v43 = vsel %vm491_vm4, %v7674_v31, %v8036_v1  ;;  %v892_v25 = vsel %vm507_vm3, %v7811_v6, %v8061_v19  ;;  %v11828_v54 = vand.u32 4294901760, %v8194_v53 }
 0x1f1   : > { %1611 = vmatpush.msrb.mxu0 %v8032_v39  ;;  %v830_v48 = vmax.f32 %v792_v41, %v816_v11  ;;  %v8220_v31 = vsub.f32 %v749_v0, %v8191_v59  ;;  %v11826_v41 = vand.u32 4294901760, %v8231_v14  ;;  %v742_v11 = vld [vmem:[%s11787_s6 + $0x130] sm:$0xff] }
 0x1f2   : > { %v960_v15 = vpop.permute.xlu0 %959  ;;  %v998_v52 = vpop.permute.xlu1 %997  ;;  %1772 = vmatpush.msrb.mxu3 %v8020_v30  ;;  %v746_v30 = vld [vmem:[%s11787_s6 + $0x150] sm:$0xff]  ;;  %v1840_v0 = vsub.f32 %v8194_v53, %v11828_v54 }
 0x1f3   : > { %v970_v42 = vsel %vm539_vm1, %v960_v15, %v8138_v8  ;;  %v1008_v39 = vsel %vm555_vm0, %v998_v52, %v8109_v40  ;;  %v8217_v5 = vpop.permute.xlu2 %887  ;;  %11905 = vst [vmem:[#allocation6_spill] sm:$0xff] %v8220_v31  ;;  %v868_v2 = vmax.f32 %v830_v48, %v854_v43  ;;  %v8233_v6 = vand.u32 4294901760, %v746_v30 }
 0x1f4   : > { %v985_v18 = vmax.f32 %v947_v17, %v970_v42  ;;  %v11827_v34 = vand.u32 4294901760, %v8220_v31  ;;  %v8270_v15 = vand.u32 4294901760, %v744_v55  ;;  %v1835_v42 = vand.u32 4294901760, %v1834_v35 }
 0x1f5   : > { %v906_v24 = vmax.f32 %v868_v2, %v892_v25  ;;  %v8268_v17 = vsub.f32 %v746_v30, %v8233_v6  ;;  %v968_v43 = vsel %vm539_vm1, %v7968_v63, %v8034_v12  ;;  %v1841_v48 = vand.u32 4294901760, %v1840_v0  ;;  %v741_v63 = vld [vmem:[%s11787_s6 + $0x128] sm:$0xff] }
 0x1f6   : > { %v1023_v58 = vmax.f32 %v985_v18, %v1008_v39  ;;  %v11824_v18 = vand.u32 4294901760, %v8252_v38  ;;  %v1852_v2 = vsub.f32 %v8231_v14, %v11826_v41  ;;  %v11822_v0 = vand.u32 4294901760, %v8280_v60 }
 0x1f7   : > { %v944_v16 = vmax.f32 %v906_v24, %v930_v4  ;;  %v11823_v44 = vand.u32 4294901760, %v8268_v17  ;;  %v8300_v24 = vsub.f32 %v744_v55, %v8270_v15  ;;  %v8310_v4 = vand.u32 4294901760, %v742_v11 }
 0x1f8   : > { %v8224_v61 = vand.u32 4294901760, %v1023_v58 }
 0x1fa   : > { %v8235_v9 = vpop.permute.xlu0 %849  ;;  %v8237_v13 = vpop.permute.xlu1 %773  ;;  %1188 = vmatmul.f32.gmra.mxu1 %v8224_v61  ;;  %v1079_v32 = vsub.f32 %v1023_v58, %v8224_v61 }
 0x1fb   : > { %v781_v62 = vsel %vm459_vm6, %v8059_v27, %v8237_v13  ;;  %v819_v27 = vsel %vm475_vm5, %v8040_v46, %v8150_v23  ;;  %v1846_v46 = vsub.f32 %v8220_v31, %v11827_v34  ;;  %v857_v30 = vsel %vm491_vm4, %v8104_v10, %v8235_v9  ;;  %v8293_v25 = vpop.permute.xlu2 %1001 }
 0x1fc   : > { %v796_v21 = vmax.f32 %v7401_v29, %v781_v62  ;;  %1247 = vmatmul.f32.gmra.mxu2 %v1079_v32  ;;  %v1080_v51 = vand.u32 4294901760, %v1079_v32  ;;  %v743_v29 = vld [vmem:[%s11787_s6 + $0x138] sm:$0xff]  ;;  %11907 = vst [vmem:[#allocation8_spill] sm:$0xff] %v8293_v25  ;;  %v982_v62 = vmax.f32 %v944_v16, %v968_v43  ;;  %v11825_v43 = vand.u32 4294901760, %v8300_v24 }
 0x1fd   : > { %v8288_v58 = vand.u32 4294901760, %v743_v29 }
 0x1fe   : > { %v834_v52 = vmax.f32 %v796_v21, %v819_v27  ;;  %1292 = vmatmul.f32.gmra.mxu3 %v1080_v51  ;;  %v1081_v36 = vsub.f32 %v1079_v32, %v1080_v51  ;;  %v1847_v21 = vand.u32 4294901760, %v1846_v46  ;;  %v1858_v51 = vsub.f32 %v8252_v38, %v11824_v18  ;;  %v740_v27 = vld [vmem:[%s11787_s6 + $0x120] sm:$0xff] }
 0x1ff   : > { %v1864_v46 = vsub.f32 %v8268_v17, %v11823_v44 }
 0x200   : > { %v1082_v39 = vand.u32 4294901760, %v1081_v36  ;;  %v872_v35 = vmax.f32 %v834_v52, %v857_v30  ;;  %v8323_v52 = vsub.f32 %v743_v29, %v8288_v58  ;;  %v8325_v36 = vand.u32 4294901760, %v741_v63 }
 0x201   : > { %v8337_v29 = vsub.f32 %v742_v11, %v8310_v4 }
 0x202   : > { %v8305_v32 = vpop.permute.xlu0 %925  ;;  %v8307_v10 = vpop.permute.xlu1 %993  ;;  %1083 = vmatmul.f32.gmra.mxu0 %v1082_v39  ;;  %1402 = vmatmul.f32.vlgmr.msra.gmra.mxu1 %v8022_v26  ;;  %v11830_v11 = vand.u32 4294901760, %v8323_v52 }
 0x203   : > { %11908 = vst [vmem:[#allocation9_spill] sm:$0xff] %v8305_v32  ;;  %v1006_v55 = vsel %vm555_vm0, %v7886_v7, %v8307_v10  ;;  %1836 = vmatpush.msra.mxu1 %v1835_v42  ;;  %v895_v7 = vsel %vm507_vm3, %v8102_v33, %v8217_v5  ;;  %v1853_v42 = vand.u32 4294901760, %v1852_v2  ;;  %v739_v33 = vld [vmem:[%s11787_s6 + $0x118] sm:$0xff]  ;;  %v1859_v2 = vand.u32 4294901760, %v1858_v51  ;;  %v8387_v41 = vpop.permute.xlu2 %843 }
 0x204   : > { %v1020_v16 = vmax.f32 %v982_v62, %v1006_v55  ;;  %v910_v39 = vmax.f32 %v872_v35, %v895_v7  ;;  %v8339_v62 = vand.u32 4294901760, %v740_v27  ;;  %v1870_v35 = vsub.f32 %v8280_v60, %v11822_v0 }
 0x205   : > { %1842 = vmatpush.msra.mxu1 %v1841_v48  ;;  %v933_v48 = vsel %vm523_vm2, %v8136_v49, %v8305_v32  ;;  %v8356_v7 = vsub.f32 %v741_v63, %v8325_v36  ;;  %v738_v49 = vld [vmem:[%s11787_s6 + $0x110] sm:$0xff]  ;;  %v1876_v51 = vsub.f32 %v8300_v24, %v11825_v43  ;;  %v737_v43 = vld [vmem:[%s11787_s6 + $0x108] sm:$0xff]  ;;  %v1882_v54 = vsub.f32 %v8323_v52, %v11830_v11 }
 0x206   : > { %v8334_v30 = vand.u32 4294901760, %v1020_v16  ;;  %v948_v0 = vmax.f32 %v910_v39, %v933_v48  ;;  %v8385_v48 = vand.u32 4294901760, %v738_v49  ;;  %v11910_v47 = vand.u32 4294901760, %v8337_v29 }
 0x207   : > { %1848 = vmatpush.msra.mxu1 %v1847_v21  ;;  %v1865_v21 = vand.u32 4294901760, %v1864_v46  ;;  %v8376_v46 = vsub.f32 %v740_v27, %v8339_v62 }
 0x208   : > { %v8351_v55 = vsub.f32 %v1020_v16, %v8334_v30  ;;  %1556 = vmatmul.f32.vlgmr.msra.gmra.mxu3 %v8334_v30  ;;  %v8365_v16 = vand.u32 4294901760, %v739_v33 }
 0x209   : > { %1854 = vmatpush.msra.mxu1 %v1853_v42  ;;  %1996 = vmatpush.msra.mxu3 %v8156_v50  ;;  %v11833_v32 = vand.u32 4294901760, %v8376_v46 }
 0x20a   : > { %v8367_v44 = vpop.permute.xlu0 %767  ;;  %v8369_v18 = vpop.permute.xlu1 %963  ;;  %1361 = vmatmul.f32.vlgmr.msra.gmra.mxu0 %v8022_v26  ;;  %1406 = vmatmul.f32.gmra.mxu1 %v8224_v61  ;;  %v1444_v63 = vand.u32 4294901760, %v8351_v55  ;;  %v1871_v26 = vand.u32 4294901760, %v1870_v35  ;;  %v8403_v35 = vsub.f32 %v739_v33, %v8365_v16 }
 0x20b   : > { %11909 = vst [vmem:[#allocation10_spill] sm:$0xff] %v8369_v18  ;;  %v971_v39 = vsel %vm539_vm1, %v8138_v8, %v8369_v18  ;;  %1783 = vmatpush.msra.mxu0 %v8156_v50  ;;  %1860 = vmatpush.msra.mxu1 %v1859_v2  ;;  %v736_v8 = vld [vmem:[%s11787_s6 + $0x100] sm:$0xff]  ;;  %v1009_v2 = vsel %vm555_vm0, %v8109_v40, %v8293_v25 }
 0x20c   : > { %v986_v34 = vmax.f32 %v948_v0, %v971_v39  ;;  %v1445_v27 = vsub.f32 %v8351_v55, %v1444_v63  ;;  %1998 = vmatpush.msra.mxu3 %v8170_v22  ;;  %v1877_v0 = vand.u32 4294901760, %v1876_v51  ;;  %v8405_v39 = vand.u32 4294901760, %v737_v43 }
 0x20d   : > { %1785 = vmatpush.msra.mxu0 %v8170_v22  ;;  %1866 = vmatpush.msra.mxu1 %v1865_v21  ;;  %v1888_v18 = vsub.f32 %v8337_v29, %v11910_v47  ;;  %v8414_v40 = vsub.f32 %v738_v49, %v8385_v48  ;;  %v8416_v33 = vand.u32 4294901760, %v736_v8  ;;  %v11911_v51 = vand.u32 4294901760, %v8356_v7  ;;  %v11912_v49 = vld [vmem:[#allocation2_spill] sm:$0xff] }
 0x20e   : > { %v1024_v11 = vmax.f32 %v986_v34, %v1009_v2  ;;  %v1446_v42 = vand.u32 4294901760, %v1445_v27  ;;  %2000 = vmatpush.msra.mxu3 %v8191_v59  ;;  %v1883_v34 = vand.u32 4294901760, %v1882_v54  ;;  %v779_v27 = vsel %vm459_vm6, %v7966_v20, %v8367_v44 }
 0x20f   : > { %1787 = vmatpush.msra.mxu0 %v8191_v59  ;;  %1872 = vmatpush.msra.mxu1 %v1871_v26  ;;  %v1894_v47 = vsub.f32 %v8356_v7, %v11911_v51  ;;  %v1889_v2 = vand.u32 4294901760, %v1888_v18  ;;  %v1900_v20 = vsub.f32 %v8376_v46, %v11833_v32  ;;  %v793_v18 = vmax.f32 %v11912_v49, %v779_v27 }
 0x210   : > { %1447 = vmatmul.f32.vlgmr.msra.gmra.mxu2 %v1446_v42  ;;  %v8418_v21 = vand.u32 4294901760, %v1024_v11  ;;  %2002 = vmatpush.msra.mxu3 %v8208_v37  ;;  %v8430_v42 = vsub.f32 %v737_v43, %v8405_v39  ;;  %v11914_v27 = vand.u32 4294901760, %v8414_v40 }
 0x211   : > { %1789 = vmatpush.msra.mxu0 %v8208_v37  ;;  %1878 = vmatpush.msra.mxu1 %v1877_v0  ;;  %v1895_v32 = vand.u32 4294901760, %v1894_v47 }
 0x212   : > { %v8432_v26 = vpop.permute.xlu0 %881  ;;  %v806_v54 = vpop.permute.xlu1 %805  ;;  %1365 = vmatmul.f32.gmra.mxu0 %v8224_v61  ;;  %1560 = vmatmul.f32.gmra.mxu3 %v8418_v21  ;;  %v8440_v51 = vsub.f32 %v1024_v11, %v8418_v21  ;;  %v8447_v61 = vsub.f32 %v736_v8, %v8416_v33  ;;  %v1917_v43 = vand.u32 4294901760, %v8430_v42  ;;  %v1912_v49 = vsub.f32 %v8414_v40, %v11914_v27 }
 0x213   : > { %v817_v0 = vsel %vm475_vm5, %v7821_v45, %v806_v54  ;;  %1658 = vmatmul.f32.vlgmr.msrb.gmra.mxu1 %v1444_v63  ;;  %1791 = vmatpush.msra.mxu0 %v8222_v57  ;;  %v11913_v45 = vand.u32 4294901760, %v8403_v35  ;;  %v8458_v8 = vpop.permute.xlu2 %919 }
 0x214   : > { %1884 = vmatpush.msra.mxu1 %v1883_v34  ;;  %1938 = vmatpush.msra.mxu2 %v8181_v28  ;;  %v1452_v11 = vand.u32 4294901760, %v8440_v51  ;;  %v831_v25 = vmax.f32 %v793_v18, %v817_v0  ;;  %v1901_v34 = vand.u32 4294901760, %v1900_v20  ;;  %v1918_v18 = vsub.f32 %v8430_v42, %v1917_v43 }
 0x215   : > { %1793 = vmatpush.msra.mxu0 %v8233_v6  ;;  %2004 = vmatpush.msra.mxu3 %v8222_v57  ;;  %v1906_v63 = vsub.f32 %v8403_v35, %v11913_v45 }
 0x216   : > { %1890 = vmatpush.msra.mxu1 %v1889_v2  ;;  %1941 = vmatpush.msra.mxu2 %v8194_v53  ;;  %v1453_v47 = vsub.f32 %v8440_v51, %v1452_v11  ;;  %v855_v2 = vsel %vm491_vm4, %v8036_v1, %v8387_v41  ;;  %v1913_v1 = vand.u32 4294901760, %v1912_v49 }
 0x217   : > { %1795 = vmatpush.msra.mxu0 %v8254_v3  ;;  %2006 = vmatpush.msra.mxu3 %v8233_v6  ;;  %v1907_v20 = vand.u32 4294901760, %v1906_v63  ;;  %v869_v27 = vmax.f32 %v831_v25, %v855_v2  ;;  %v11916_v63 = vand.u32 4294901760, %v8447_v61  ;;  %v893_v25 = vsel %vm507_vm3, %v8061_v19, %v8432_v26  ;;  %v752_v19 = vld [vmem:[%s11787_s6 + $0x180] sm:$0x3] }
 0x218   : > { %1896 = vmatpush.msra.mxu1 %v1895_v32  ;;  %1944 = vmatpush.msra.mxu2 %v8220_v31  ;;  %v1454_v0 = vand.u32 4294901760, %v1453_v47  ;;  %v11915_v47 = vld [vmem:[#allocation4_spill] sm:$0xff] }
 0x219   : > { %1797 = vmatpush.msra.mxu0 %v8270_v15  ;;  %2008 = vmatpush.msra.mxu3 %v8254_v3  ;;  %v794_v31 = vmax.f32 %v11915_v47, %v8367_v44  ;;  %v1924_v3 = vsub.f32 %v8447_v61, %v11916_v63  ;;  %v1919_v44 = vand.u32 4294901760, %v1918_v18 }
 0x21a   : > { %1902 = vmatpush.msra.mxu1 %v1901_v34  ;;  %1947 = vmatpush.msra.mxu2 %v8231_v14  ;;  %v814_v32 = vpop.permute.xlu0 %813  ;;  %v776_v45 = vpop.permute.xlu1 %775 }
 0x21b   : > { %1455 = vmatmul.f32.gmra.mxu2 %v1454_v0  ;;  %1614 = vmatmul.f32.vlgmr.msrb.gmra.mxu0 %v8351_v55  ;;  %v832_v34 = vmax.f32 %v794_v31, %v806_v54  ;;  %v907_v55 = vmax.f32 %v869_v27, %v893_v25  ;;  %v782_v49 = vsel %vm459_vm6, %v8237_v13, %v776_v45  ;;  %v8494_v0 = vpop.permute.xlu2 %851  ;;  %v11918_v27 = vld [vmem:[#allocation5_spill] sm:$0xff] }
 0x21c   : > { %1664 = vmatmul.f32.gmra.mxu1 %v1452_v11  ;;  %1774 = vmatmul.f32.vlgmr.msrb.gmra.mxu3 %v8334_v30  ;;  %v1925_v11 = vand.u32 4294901760, %v1924_v3  ;;  %v931_v31 = vsel %vm523_vm2, %v7902_v56, %v8458_v8  ;;  %v11917_v3 = vld [vmem:[#allocation3_spill] sm:$0xff]  ;;  %v798_v47 = vmax.f32 %v11918_v27, %v776_v45  ;;  %v820_v63 = vsel %vm475_vm5, %v8150_v23, %v814_v32 }
 0x21d   : > { %1799 = vmatpush.msra.mxu0 %v8288_v58  ;;  %1908 = vmatpush.msra.mxu1 %v1907_v20  ;;  %v870_v13 = vmax.f32 %v832_v34, %v8387_v41  ;;  %v797_v54 = vmax.f32 %v11917_v3, %v782_v49  ;;  %v945_v18 = vmax.f32 %v907_v55, %v931_v31  ;;  %v1036_v41 = vsel %vm1034_vm8, %v752_v19, 0  ;;  %v11919_v19 = vld [vmem:[#allocation9_spill] sm:$0xff] }
 0x21e   : > { %1950 = vmatpush.msra.mxu2 %v8252_v38  ;;  %2010 = vmatpush.msra.mxu3 %v8270_v15  ;;  %v11920_v3 = vand.u32 4294901760, %v8181_v28  ;;  %v11921_v28 = vld [vmem:[#allocation10_spill] sm:$0xff]  ;;  %v11922_v27 = vand.u32 4294901760, %v8194_v53  ;;  %v11926_v53 = vld [vmem:[#allocation8_spill] sm:$0xff] }
 0x21f   : > { %1801 = vmatpush.msra.mxu0 %v8310_v4  ;;  %1914 = vmatpush.msra.mxu1 %v1913_v1  ;;  %v908_v45 = vmax.f32 %v870_v13, %v8432_v26 }
 0x220   : > { %1953 = vmatpush.msra.mxu2 %v8268_v17  ;;  %2012 = vmatpush.msra.mxu3 %v8288_v58 }
 0x221   : > { %1803 = vmatpush.msra.mxu0 %v8325_v36  ;;  %1920 = vmatpush.msra.mxu1 %v1919_v44  ;;  %v836_v44 = vmax.f32 %v798_v47, %v814_v32 }
 0x222   : > { %1956 = vmatpush.msra.mxu2 %v8280_v60  ;;  %2014 = vmatpush.msra.mxu3 %v8310_v4  ;;  %v8509_v2 = vpop.permute.xlu0 %995  ;;  %v958_v20 = vpop.permute.xlu1 %957 }
 0x223   : > { %1805 = vmatpush.msra.mxu0 %v8339_v62  ;;  %1926 = vmatpush.msra.mxu1 %v1925_v11  ;;  %v969_v56 = vsel %vm539_vm1, %v8034_v12, %v958_v20  ;;  %v1007_v25 = vsel %vm555_vm0, %v8307_v10, %v8509_v2  ;;  %v835_v12 = vmax.f32 %v797_v54, %v820_v63  ;;  %v928_v26 = vpop.permute.xlu2 %927  ;;  %v11925_v63 = vld [vmem:[#allocation7_spill] sm:$0xff] }
 0x224   : > { %1959 = vmatpush.msra.mxu2 %v8300_v24  ;;  %v983_v1 = vmax.f32 %v945_v18, %v969_v56  ;;  %1619 = vmatmul.f32.gmra.mxu0 %v8440_v51  ;;  %v858_v10 = vsel %vm491_vm4, %v8235_v9, %v8494_v0  ;;  %v874_v9 = vmax.f32 %v836_v44, %v8494_v0 }
 0x225   : > { %2114 = vmatpush.msrb.mxu1 %v8156_v50  ;;  %1733 = vmatmul.f32.vlgmr.msrb.gmra.mxu2 %v8334_v30  ;;  %v8527_v50 = vand.u32 4294901760, %v1036_v41  ;;  %v946_v30 = vmax.f32 %v908_v45, %v8458_v8  ;;  %v873_v51 = vmax.f32 %v835_v12, %v858_v10  ;;  %v934_v31 = vsel %vm523_vm2, %v11919_v19, %v928_v26 }
 0x226   : > { %v1021_v34 = vmax.f32 %v983_v1, %v1007_v25  ;;  %1778 = vmatmul.f32.gmra.mxu3 %v8418_v21  ;;  %1807 = vmatpush.msra.mxu0 %v8365_v16  ;;  %v11927_v12 = vand.u32 4294901760, %v8231_v14  ;;  %v11929_v14 = vand.u32 4294901760, %v8268_v17  ;;  %v11931_v17 = vand.u32 4294901760, %v8300_v24 }
 0x227   : > { %1962 = vmatpush.msra.mxu2 %v8323_v52  ;;  %2016 = vmatpush.msra.mxu3 %v8325_v36  ;;  %v8545_v55 = vsub.f32 %v1036_v41, %v8527_v50  ;;  %v984_v49 = vmax.f32 %v946_v30, %v958_v20  ;;  %v11923_v41 = vld [vmem:[#allocation6_spill] sm:$0xff] }
 0x228   : > { %2116 = vmatpush.msrb.mxu1 %v8170_v22  ;;  %1809 = vmatpush.msra.mxu0 %v8385_v48  ;;  %v8533_v23 = vand.u32 4294901760, %v1021_v34  ;;  %v11924_v1 = vand.u32 4294901760, %v11923_v41 }
 0x229   : > { %1965 = vmatpush.msra.mxu2 %v8337_v29  ;;  %2018 = vmatpush.msra.mxu3 %v8339_v62  ;;  %v2205_v54 = vand.u32 4294901760, %v8545_v55  ;;  %v1022_v20 = vmax.f32 %v984_v49, %v8509_v2 }
 0x22a   : > { %2118 = vmatpush.msrb.mxu1 %v8191_v59  ;;  %1811 = vmatpush.msra.mxu0 %v8405_v39  ;;  %v890_v22 = vpop.permute.xlu1 %889  ;;  %v1815_v32 = vsub.f32 %v1021_v34, %v8533_v23 }
 0x22b   : > { %1968 = vmatpush.msra.mxu2 %v8356_v7  ;;  %2020 = vmatpush.msra.mxu3 %v8365_v16  ;;  %v896_v8 = vsel %vm507_vm3, %v8217_v5, %v890_v22  ;;  %v912_v13 = vmax.f32 %v874_v9, %v890_v22  ;;  %v966_v5 = vpop.permute.xlu0 %965  ;;  %v2206_v56 = vsub.f32 %v8545_v55, %v2205_v54 }
 0x22c   : > { %2120 = vmatpush.msrb.mxu1 %v8208_v37  ;;  %1813 = vmatpush.msra.mxu0 %v8416_v33  ;;  %v911_v59 = vmax.f32 %v873_v51, %v896_v8  ;;  %v1816_v11 = vand.u32 4294901760, %v1815_v32  ;;  %v972_v18 = vsel %vm539_vm1, %v11921_v28, %v966_v5 }
 0x22d   : > { %1971 = vmatpush.msra.mxu2 %v8376_v46  ;;  %2022 = vmatpush.msra.mxu3 %v8385_v48  ;;  %v2207_v30 = vand.u32 4294901760, %v2206_v56 }
 0x22e   : > { %2043 = vmatpush.msrb.mxu0 %v11920_v3  ;;  %2122 = vmatpush.msrb.mxu1 %v8222_v57  ;;  %v949_v0 = vmax.f32 %v911_v59, %v934_v31  ;;  %v1817_v37 = vsub.f32 %v1815_v32, %v1816_v11  ;;  %v950_v57 = vmax.f32 %v912_v13, %v928_v26  ;;  %v11928_v26 = vand.u32 4294901760, %v8252_v38 }
 0x22f   : > { %1737 = vmatmul.f32.gmra.mxu2 %v8418_v21  ;;  %1928 = vmatmul.f32.vlgmr.msra.gmra.mxu1 %v8533_v23  ;;  %v11930_v38 = vand.u32 4294901760, %v8280_v60  ;;  %v11932_v59 = vand.u32 4294901760, %v8323_v52  ;;  %v11933_v60 = vand.u32 4294901760, %v8337_v29  ;;  %v11935_v52 = vand.u32 4294901760, %v8376_v46 }
 0x230   : > { %1974 = vmatpush.msra.mxu2 %v8403_v35  ;;  %2024 = vmatpush.msra.mxu3 %v8405_v39  ;;  %v987_v2 = vmax.f32 %v949_v0, %v972_v18  ;;  %v1818_v47 = vand.u32 4294901760, %v1817_v37  ;;  %v988_v34 = vmax.f32 %v950_v57, %v966_v5  ;;  %v11938_v46 = vand.u32 4294901760, %v8447_v61 }
 0x231   : > { %2047 = vmatpush.msrb.mxu0 %v11922_v27  ;;  %2124 = vmatpush.msrb.mxu1 %v8233_v6  ;;  %v1029_v6 = vsel %vm1027_vm9, %v1022_v20, 0 }
 0x232   : > { %1977 = vmatpush.msra.mxu2 %v8414_v40  ;;  %2026 = vmatpush.msra.mxu3 %v8416_v33  ;;  %v1004_v21 = vpop.permute.xlu1 %1003  ;;  %v2171_v10 = vand.u32 4294901760, %v1029_v6 }
 0x233   : > { %2051 = vmatpush.msrb.mxu0 %v11924_v1  ;;  %2126 = vmatpush.msrb.mxu1 %v11925_v63  ;;  %v1010_v25 = vsel %vm555_vm0, %v11926_v53, %v1004_v21  ;;  %v1026_v22 = vmax.f32 %v988_v34, %v1004_v21 }
 0x234   : > { %2030 = vmatmul.f32.vlgmr.msra.gmra.mxu3 %v1816_v11  ;;  %1980 = vmatpush.msra.mxu2 %v8430_v42  ;;  %v1025_v45 = vmax.f32 %v987_v2, %v1010_v25  ;;  %v11936_v11 = vand.u32 4294901760, %v8403_v35 }
 0x235   : > { %2055 = vmatpush.msrb.mxu0 %v11927_v12  ;;  %2128 = vmatpush.msrb.mxu1 %v8270_v15  ;;  %v2172_v15 = vsub.f32 %v1029_v6, %v2171_v10  ;;  %v1032_v9 = vsel %vm1027_vm9, %v1026_v22, 0 }
 0x236   : > { %1983 = vmatpush.msra.mxu2 %v8447_v61  ;;  %v1822_v44 = vand.u32 4294901760, %v1025_v45  ;;  %1819 = vmatmul.f32.vlgmr.msra.gmra.mxu0 %v1818_v47 }
 0x237   : > { %2059 = vmatpush.msrb.mxu0 %v11928_v26  ;;  %2130 = vmatpush.msrb.mxu1 %v8288_v58  ;;  %v2173_v8 = vand.u32 4294901760, %v2172_v15 }
 0x238   : > { %1986 = vmatmul.f32.vlgmr.msra.gmra.mxu2 %v1815_v32  ;;  %1932 = vmatmul.f32.gmra.mxu1 %v1822_v44  ;;  %v1823_v51 = vsub.f32 %v1025_v45, %v1822_v44 }
 0x239   : > { %2063 = vmatpush.msrb.mxu0 %v11929_v14  ;;  %2132 = vmatpush.msrb.mxu1 %v8310_v4  ;;  %v2179_v4 = vand.u32 4294901760, %v1032_v9  ;;  %v2174_v24 = vsub.f32 %v2172_v15, %v2173_v8 }
 0x23a   : > { %v1824_v49 = vand.u32 4294901760, %v1823_v51  ;;  %2170 = vmatpush.msrb.mxu2 %v8527_v50  ;;  %2208 = vmatpush.msrb.mxu3 %v2207_v30 }
 0x23b   : > { %2067 = vmatpush.msrb.mxu0 %v11930_v38  ;;  %2134 = vmatpush.msrb.mxu1 %v8325_v36  ;;  %v2180_v36 = vsub.f32 %v1032_v9, %v2179_v4 }
 0x23c   : > { %2036 = vmatmul.f32.gmra.mxu3 %v1824_v49  ;;  %v1825_v58 = vsub.f32 %v1823_v51, %v1824_v49  ;;  %2235 = vmatpush.msra.mxu2 %v8545_v55 }
 0x23d   : > { %2071 = vmatpush.msrb.mxu0 %v11931_v17  ;;  %2136 = vmatpush.msrb.mxu1 %v8339_v62  ;;  %v11934_v62 = vand.u32 4294901760, %v8356_v7  ;;  %v2181_v29 = vand.u32 4294901760, %v2180_v36  ;;  %v11937_v7 = vand.u32 4294901760, %v8414_v40 }
 0x23e   : > { %v1826_v32 = vand.u32 4294901760, %v1825_v58  ;;  %2263 = vmatpush.msra.mxu3 %v8527_v50 }
 0x23f   : > { %2075 = vmatpush.msrb.mxu0 %v11932_v59  ;;  %2138 = vmatpush.msrb.mxu1 %v8365_v16  ;;  %v2175_v16 = vand.u32 4294901760, %v2174_v24 }
 0x240   : > { %1991 = vmatmul.f32.gmra.mxu2 %v1823_v51  ;;  %1827 = vmatmul.f32.gmra.mxu0 %v1826_v32 }
 0x241   : > { %2079 = vmatpush.msrb.mxu0 %v11933_v60  ;;  %2140 = vmatpush.msrb.mxu1 %v8385_v48  ;;  %v2182_v48 = vsub.f32 %v2180_v36, %v2181_v29 }
 0x243   : > { %2083 = vmatpush.msrb.mxu0 %v11934_v62  ;;  %2142 = vmatpush.msrb.mxu1 %v8405_v39  ;;  %v2183_v39 = vand.u32 4294901760, %v2182_v48 }
 0x244   : > { %2210 = vmatmul.f32.vlgmr.msrb.gmra.mxu3 %v2171_v10 }
 0x245   : > { %2087 = vmatpush.msrb.mxu0 %v11935_v52  ;;  %2144 = vmatpush.msrb.mxu1 %v8416_v33 }
 0x246   : > { %2146 = vmatmul.f32.vlgmr.msrb.gmra.mxu1 %v8533_v23 }
 0x247   : > { %2091 = vmatpush.msrb.mxu0 %v11936_v11  ;;  %2321 = vmatpush.msra.mxu1 %v8527_v50  ;;  %v1185_v40 = vpop.f32.mrf.mxu1 }
 0x248   : > { %2176 = vmatmul.f32.vlgmr.msrb.gmra.mxu2 %v2175_v16 }
 0x249   : > { %2095 = vmatpush.msrb.mxu0 %v11937_v7 }
 0x24b   : > { %2099 = vmatpush.msrb.mxu0 %v1917_v43 }
 0x24c   : > { %2214 = vmatmul.f32.gmra.mxu3 %v2179_v4 }
 0x24d   : > { %2103 = vmatpush.msrb.mxu0 %v11938_v46 }
 0x24e   : > { %2105 = vmatmul.f32.vlgmr.msrb.gmra.mxu0 %v8533_v23  ;;  %2150 = vmatmul.f32.gmra.mxu1 %v1822_v44 }
 0x24f   : > { %2295 = vmatpush.msra.mxu0 %v2205_v54  ;;  %v1076_v35 = vpop.f32.mrf.mxu0  ;;  %v1243_v42 = vpop.f32.mrf.mxu2 }
 0x250   : > { %2184 = vmatmul.f32.gmra.mxu2 %v2183_v39  ;;  %v1186_v54 = vadd.f32 %v1185_v40, %v1076_v35 }
 0x251   : > { %v1287_v33 = vpop.f32.mrf.mxu3 }
 0x252   : > { %v1244_v20 = vadd.f32 %v1243_v42, %v1186_v54 }
 0x254   : > { %2267 = vmatmul.f32.vlgmr.msra.gmra.mxu3 %v2173_v8  ;;  %v1288_v2 = vadd.f32 %v1287_v33, %v1244_v20 }
 0x256   : > { %2109 = vmatmul.f32.gmra.mxu0 %v1822_v44  ;;  %2323 = vmatmul.f32.vlgmr.msra.gmra.mxu1 %v2171_v10 }
 0x258   : > { %2238 = vmatmul.f32.vlgmr.msra.gmra.mxu2 %v2172_v15 }
 0x25c   : > { %2273 = vmatmul.f32.gmra.mxu3 %v2181_v29 }
 0x25e   : > { %2297 = vmatmul.f32.vlgmr.msra.gmra.mxu0 %v2171_v10  ;;  %2327 = vmatmul.f32.gmra.mxu1 %v2179_v4 }
 0x260   : > { %2243 = vmatmul.f32.gmra.mxu2 %v2180_v36 }
 0x266   : > { %2301 = vmatmul.f32.gmra.mxu0 %v2179_v4 }
 0x277   : > { %v1189_v61 = vpop.f32.mrf.mxu1 }
 0x27f   : > { %v1084_v43 = vpop.f32.mrf.mxu0  ;;  %v1248_v23 = vpop.f32.mrf.mxu2 }
 0x280   : > { %v1403_v31 = vpop.f32.mrf.mxu1  ;;  %v1190_v28 = vadd.f32 %v1189_v61, %v1084_v43 }
 0x281   : > { %v1293_v50 = vpop.f32.mrf.mxu3 }
 0x282   : > { %v1249_v47 = vadd.f32 %v1248_v23, %v1190_v28 }
 0x284   : > { %v1294_v41 = vadd.f32 %v1293_v50, %v1249_v47 }
 0x287   : > { %v1362_v55 = vpop.f32.mrf.mxu0 }
 0x288   : > { %v1407_v0 = vpop.f32.mrf.mxu1  ;;  %v1363_v56 = vadd.f32 %v1362_v55, %v1288_v2 }
 0x28a   : > { %v1404_v63 = vadd.f32 %v1403_v31, %v1363_v56 }
 0x28b   : > { %v1557_v19 = vpop.f32.mrf.mxu3 }
 0x28f   : > { %v1366_v5 = vpop.f32.mrf.mxu0 }
 0x290   : > { %v1659_v27 = vpop.f32.mrf.mxu1  ;;  %v1367_v1 = vadd.f32 %v1366_v5, %v1294_v41 }
 0x292   : > { %v1408_v34 = vadd.f32 %v1407_v0, %v1367_v1 }
 0x293   : > { %v1448_v13 = vpop.f32.mrf.mxu2 }
 0x294   : > { %v1449_v25 = vadd.f32 %v1448_v13, %v1404_v63 }
 0x295   : > { %v1561_v3 = vpop.f32.mrf.mxu3 }
 0x296   : > { %v1558_v44 = vadd.f32 %v1557_v19, %v1449_v25 }
 0x298   : > { %v1615_v57 = vpop.f32.mrf.mxu0 }
 0x299   : > { %v1665_v45 = vpop.f32.mrf.mxu1  ;;  %v1616_v26 = vadd.f32 %v1615_v57, %v1558_v44 }
 0x29b   : > { %v1660_v9 = vadd.f32 %v1659_v27, %v1616_v26 }
 0x29e   : > { %v1456_v37 = vpop.f32.mrf.mxu2 }
 0x29f   : > { %v1775_v18 = vpop.f32.mrf.mxu3  ;;  %v1457_v10 = vadd.f32 %v1456_v37, %v1408_v34 }
 0x2a1   : > { %v1620_v6 = vpop.f32.mrf.mxu0  ;;  %v1562_v22 = vadd.f32 %v1561_v3, %v1457_v10 }
 0x2a3   : > { %v1621_v49 = vadd.f32 %v1620_v6, %v1562_v22 }
 0x2a5   : > { %v1666_v17 = vadd.f32 %v1665_v45, %v1621_v49 }
 0x2a8   : > { %v1734_v21 = vpop.f32.mrf.mxu2 }
 0x2a9   : > { %v1779_v53 = vpop.f32.mrf.mxu3  ;;  %v1735_v38 = vadd.f32 %v1734_v21, %v1660_v9  ;;  %v8645_v9 = vld [vmem:[%s11786_s5 + $0x8] sm:$0xff] }
 0x2ab   : > { %v1776_v59 = vadd.f32 %v1775_v18, %v1735_v38 }
 0x2ac   : > { %v1929_v14 = vpop.f32.mrf.mxu1 }
 0x2b2   : > { %v1738_v12 = vpop.f32.mrf.mxu2 }
 0x2b3   : > { %v1820_v51 = vpop.f32.mrf.mxu0  ;;  %v1739_v8 = vadd.f32 %v1738_v12, %v1666_v17 }
 0x2b4   : > { %v1821_v24 = vadd.f32 %v1820_v51, %v1776_v59 }
 0x2b5   : > { %v1933_v32 = vpop.f32.mrf.mxu1  ;;  %v1780_v36 = vadd.f32 %v1779_v53, %v1739_v8 }
 0x2b6   : > { %v1930_v52 = vadd.f32 %v1929_v14, %v1821_v24  ;;  %v7163_v14 = vmov 2  }
 0x2b7   : > { %v2031_v30 = vpop.f32.mrf.mxu3  ;;  %6505 = vset.pattern.permute.xlu1 %v7163_v14  ;;  %6504 = vset.pattern.permute.xlu0 %v7163_v14 }
 0x2bb   : > { %v1987_v15 = vpop.f32.mrf.mxu2 }
 0x2bc   : > { %v1988_v29 = vadd.f32 %v1987_v15, %v1930_v52  ;;  %v8639_v15 = vld [vmem:[%s11786_s5] sm:$0xff] }
 0x2bd   : > { %v1828_v4 = vpop.f32.mrf.mxu0  ;;  %v2331_v52 = vld [vmem:[%s11783_s2] sm:$0xff] }
 0x2be   : > { %v1829_v16 = vadd.f32 %v1828_v4, %v1780_v36  ;;  %v2032_v39 = vadd.f32 %v2031_v30, %v1988_v29 }
 0x2bf   : > { %v2037_v58 = vpop.f32.mrf.mxu3 }
 0x2c0   : > { %v1934_v46 = vadd.f32 %v1933_v32, %v1829_v16  ;;  %v2332_v16 = vld [vmem:[%s11783_s2 + $0x8] sm:$0xff] }
 0x2c3   : > { %v1992_v60 = vpop.f32.mrf.mxu2  ;;  %v2147_v7 = vpop.f32.mrf.mxu1 }
 0x2c4   : > { %v1993_v40 = vadd.f32 %v1992_v60, %v1934_v46 }
 0x2c6   : > { %v2038_v61 = vadd.f32 %v2037_v58, %v1993_v40  ;;  %v7164_v58 = vmov 3  }
 0x2c7   : > { %v2211_v62 = vpop.f32.mrf.mxu3  ;;  %6506 = vset.pattern.permute.xlu2 %v7164_v58 }
 0x2cb   : > { %v2106_v11 = vpop.f32.mrf.mxu0  ;;  %v2177_v48 = vpop.f32.mrf.mxu2 }
 0x2cc   : > { %v2107_v33 = vadd.f32 %v2106_v11, %v2032_v39  ;;  %v2151_v23 = vpop.f32.mrf.mxu1 }
 0x2ce   : > { %v2148_v50 = vadd.f32 %v2147_v7, %v2107_v33 }
 0x2cf   : > { %v2215_v35 = vpop.f32.mrf.mxu3 }
 0x2d0   : > { %v2178_v19 = vadd.f32 %v2177_v48, %v2148_v50 }
 0x2d2   : > { %v2212_v5 = vadd.f32 %v2211_v62, %v2178_v19 }
 0x2d3   : > { %v2110_v42 = vpop.f32.mrf.mxu0  ;;  %v2185_v43 = vpop.f32.mrf.mxu2 }
 0x2d4   : > { %v2111_v55 = vadd.f32 %v2110_v42, %v2038_v61  ;;  %v2324_v20 = vpop.f32.mrf.mxu1 }
 0x2d6   : > { %v2152_v13 = vadd.f32 %v2151_v23, %v2111_v55 }
 0x2d7   : > { %v2268_v31 = vpop.f32.mrf.mxu3 }
 0x2d8   : > { %v2186_v37 = vadd.f32 %v2185_v43, %v2152_v13 }
 0x2da   : > { %v2216_v28 = vadd.f32 %v2215_v35, %v2186_v37 }
 0x2db   : > { %v2239_v3 = vpop.f32.mrf.mxu2  ;;  %v2298_v0 = vpop.f32.mrf.mxu0 }
 0x2dc   : > { %v2240_v54 = vadd.f32 %v2239_v3, %v2212_v5  ;;  %v2328_v1 = vpop.f32.mrf.mxu1 }
 0x2de   : > { %v2269_v18 = vadd.f32 %v2268_v31, %v2240_v54 }
 0x2df   : > { %v2274_v27 = vpop.f32.mrf.mxu3 }
 0x2e0   : > { %v2299_v2 = vadd.f32 %v2298_v0, %v2269_v18 }
 0x2e2   : > { %v2325_v63 = vadd.f32 %v2324_v20, %v2299_v2  ;;  %v7165_v20 = vmov 4  }
 0x2e3   : > { %v2244_v57 = vpop.f32.mrf.mxu2  ;;  %v2302_v56 = vpop.f32.mrf.mxu0 }
 0x2e4   : > { %v2245_v21 = vadd.f32 %v2244_v57, %v2216_v28  ;;  %v7166_v57 = vmov 5  }
 0x2e6   : > { %v2275_v47 = vadd.f32 %v2274_v27, %v2245_v21 }
 0x2e8   : > { %v2303_v41 = vadd.f32 %v2302_v56, %v2275_v47 }
 0x2ea   : > { %v2329_v53 = vadd.f32 %v2328_v1, %v2303_v41 }
 0x2ec   : > { %v6479_v25 = vpack.i.bf16 %v2325_v63, %v2329_v53 }
 0x2ee   : > { %6480 = vrot.lane.b32.xlu1 %v6479_v25, %s7156_s16  ;;  %6475 = vrot.lane.b32.xlu0 %v6479_v25, %s7154_s14 }
 0x2ef   : > { %6470 = vrot.lane.b32.xlu2 %v6479_v25, %s7155_s15 }
 0x2f6   : > { %6495 = vrot.lane.b32.xlu1 %v6479_v25, %s7159_s19  ;;  %6490 = vrot.lane.b32.xlu0 %v6479_v25, %s7158_s18 }
 0x2f7   : > { %6485 = vrot.lane.b32.xlu2 %v6479_v25, %s7157_s17 }
 0x2fe   : > { %2401 = vperm.xlu1 %6505, %v8639_v15   ;;  %2405 = vperm.xlu0 %6504, %v8645_v9  }
 0x2ff   : > { %6500 = vrot.lane.b32.xlu2 %v6479_v25, %s7160_s20  ;;  %v2422_v25 = vld [vmem:[%s11784_s3] sm:$0xff] }
 0x306   : > { %6507 = vset.pattern.permute.xlu1 %v7164_v58  ;;  %6543 = vset.pattern.permute.xlu0 %v7165_v20 }
 0x307   : > { %2415 = vperm.xlu2 %6506, %v8645_v9   ;;  %2411 = vperm.xlu1 %6507, %v8639_v15  }
 0x30f   : > { %6544 = vset.pattern.permute.xlu1 %v7165_v20  ;;  %6545 = vset.pattern.permute.xlu2 %v7166_v57 }
 0x349   : > { %v6471_v6 = vpop.permute.xlu2 %6470 }
 0x34a   : > { %v6472_v45 = vunpack.i.l.bf16 %v6471_v6  ;;  %v6473_v12 = vunpack.i.h.bf16 %v6471_v6  ;;  %v2423_v6 = vld [vmem:[%s11784_s3 + $0x8] sm:$0xff] }
 0x34c   : > { %2377 = vmatpush.msrb.mxu2 %v6472_v45 }
 0x34e   : > { %2378 = vmatpush.msrb.mxu2 %v6473_v12 }
 0x351   : > { %v6486_v22 = vpop.permute.xlu2 %6485 }
 0x352   : > { %v6487_v49 = vunpack.i.l.bf16 %v6486_v22  ;;  %v6488_v17 = vunpack.i.h.bf16 %v6486_v22 }
 0x359   : > { %v6501_v60 = vpop.permute.xlu2 %6500 }
 0x35a   : > { %v6502_v36 = vunpack.i.l.bf16 %v6501_v60  ;;  %v6503_v62 = vunpack.i.h.bf16 %v6501_v60 }
 0x360   : > { %v6476_v34 = vpop.permute.xlu0 %6475  ;;  %v6481_v10 = vpop.permute.xlu1 %6480 }
 0x361   : > { %v6477_v44 = vunpack.i.l.bf16 %v6476_v34  ;;  %v6478_v30 = vunpack.i.h.bf16 %v6476_v34  ;;  %v6482_v26 = vunpack.i.l.bf16 %v6481_v10  ;;  %v6483_v51 = vunpack.i.h.bf16 %v6481_v10  ;;  %v2416_v35 = vpop.permute.xlu2 %2415 }
 0x363   : > { %2379 = vmatpush.msrb.mxu2 %v6477_v44 }
 0x365   : > { %2380 = vmatpush.msrb.mxu2 %v6478_v30 }
 0x367   : > { %2381 = vmatpush.msrb.mxu2 %v6482_v26 }
 0x368   : > { %v6491_v38 = vpop.permute.xlu0 %6490  ;;  %v6496_v32 = vpop.permute.xlu1 %6495 }
 0x369   : > { %2382 = vmatpush.msrb.mxu2 %v6483_v51  ;;  %v6492_v4 = vunpack.i.l.bf16 %v6491_v38  ;;  %v6493_v8 = vunpack.i.h.bf16 %v6491_v38  ;;  %v6497_v59 = vunpack.i.l.bf16 %v6496_v32  ;;  %v6498_v24 = vunpack.i.h.bf16 %v6496_v32 }
 0x36b   : > { %2383 = vmatpush.msrb.mxu2 %v6487_v49 }
 0x36d   : > { %2384 = vmatpush.msrb.mxu2 %v6488_v17 }
 0x36f   : > { %2385 = vmatpush.msrb.mxu2 %v6492_v4 }
 0x370   : > { %v2402_v29 = vpop.permute.xlu1 %2401  ;;  %v2406_v46 = vpop.permute.xlu0 %2405 }
 0x371   : > { %2386 = vmatpush.msrb.mxu2 %v6493_v8  ;;  %v7167_v8 = vmov 7  }
 0x373   : > { %2387 = vmatpush.msrb.mxu2 %v6497_v59 }
 0x375   : > { %2388 = vmatpush.msrb.mxu2 %v6498_v24 }
 0x377   : > { %2389 = vmatpush.msrb.mxu2 %v6502_v36 }
 0x379   : > { %2390 = vmatpush.msrb.mxu2 %v6503_v62  ;;  %v2412_v48 = vpop.permute.xlu1 %2411 }
 0x37b   : > { %2391 = vmatpush.msrb.mxu2 %v2329_v53 }
 0x37d   : > { %2392 = vmatpush.msrb.mxu2 %v2325_v63 }
 0x37e   : > { %2393 = vmatmul.f32.vlgmr.msrb.gmra.mxu2 %v2331_v52 }
 0x386   : > { %2396 = vmatmul.f32.gmra.mxu2 %v2332_v16 }
 0x401   : > { %v2394_v11 = vpop.f32.mrf.mxu2 }
 0x402   : > { %v2408_v7 = vmul.f32 %v2402_v29, %v2394_v11  ;;  %v7168_v29 = vmov 6  }
 0x404   : > { %v2418_v40 = vadd.f32 %v2412_v48, %v2408_v7 }
 0x406   : > { %v2420_v43 = vmax.f32 %v2418_v40, 0.0  ;;  %v11939_v40 = vmov 0  }
 0x409   : > { %v2397_v39 = vpop.f32.mrf.mxu2 }
 0x40a   : > { %v2409_v33 = vmul.f32 %v2406_v46, %v2397_v39 }
 0x40c   : > { %v2419_v42 = vadd.f32 %v2416_v35, %v2409_v33 }
 0x40e   : > { %v2421_v61 = vmax.f32 %v2419_v42, 0.0 }
 0x410   : > { %v6518_v50 = vpack.i.bf16 %v2420_v43, %v2421_v61 }
 0x412   : > { %6519 = vrot.lane.b32.xlu1 %v6518_v50, %s7156_s16  ;;  %6514 = vrot.lane.b32.xlu0 %v6518_v50, %s7154_s14 }
 0x413   : > { %6509 = vrot.lane.b32.xlu2 %v6518_v50, %s7155_s15 }
 0x41a   : > { %6534 = vrot.lane.b32.xlu1 %v6518_v50, %s7159_s19  ;;  %6529 = vrot.lane.b32.xlu0 %v6518_v50, %s7158_s18 }
 0x41b   : > { %6524 = vrot.lane.b32.xlu2 %v6518_v50, %s7157_s17 }
 0x422   : > { %2492 = vperm.xlu1 %6544, %v8639_v15   ;;  %2496 = vperm.xlu0 %6543, %v8645_v9  }
 0x423   : > { %6539 = vrot.lane.b32.xlu2 %v6518_v50, %s7160_s20  ;;  %v2514_v50 = vld [vmem:[%s11785_s4 + $0x8] sm:$0xff] }
 0x42a   : > { %6546 = vset.pattern.permute.xlu1 %v7166_v57  ;;  %6582 = vset.pattern.permute.xlu0 %v7168_v29 }
 0x42b   : > { %2506 = vperm.xlu2 %6545, %v8645_v9   ;;  %2502 = vperm.xlu1 %6546, %v8639_v15  }
 0x433   : > { %6583 = vset.pattern.permute.xlu1 %v7167_v8  ;;  %6584 = vset.pattern.permute.xlu2 %v7168_v29 }
 0x46d   : > { %v6510_v23 = vpop.permute.xlu2 %6509 }
 0x46e   : > { %v6511_v55 = vunpack.i.l.bf16 %v6510_v23  ;;  %v6512_v19 = vunpack.i.h.bf16 %v6510_v23 }
 0x470   : > { %2468 = vmatpush.msrb.mxu3 %v6511_v55 }
 0x472   : > { %2469 = vmatpush.msrb.mxu3 %v6512_v19 }
 0x475   : > { %v6525_v37 = vpop.permute.xlu2 %6524 }
 0x476   : > { %v6526_v28 = vunpack.i.l.bf16 %v6525_v37  ;;  %v6527_v27 = vunpack.i.h.bf16 %v6525_v37 }
 0x47d   : > { %v6540_v41 = vpop.permute.xlu2 %6539 }
 0x47e   : > { %v6541_v63 = vunpack.i.l.bf16 %v6540_v41  ;;  %v6542_v53 = vunpack.i.h.bf16 %v6540_v41 }
 0x484   : > { %v6515_v31 = vpop.permute.xlu0 %6514  ;;  %v6520_v3 = vpop.permute.xlu1 %6519 }
 0x485   : > { %v6516_v13 = vunpack.i.l.bf16 %v6515_v31  ;;  %v6517_v5 = vunpack.i.h.bf16 %v6515_v31  ;;  %v6521_v0 = vunpack.i.l.bf16 %v6520_v3  ;;  %v6522_v54 = vunpack.i.h.bf16 %v6520_v3  ;;  %v2507_v26 = vpop.permute.xlu2 %2506 }
 0x487   : > { %2470 = vmatpush.msrb.mxu3 %v6516_v13 }
 0x489   : > { %2471 = vmatpush.msrb.mxu3 %v6517_v5 }
 0x48b   : > { %2472 = vmatpush.msrb.mxu3 %v6521_v0 }
 0x48c   : > { %v6530_v18 = vpop.permute.xlu0 %6529  ;;  %v6535_v2 = vpop.permute.xlu1 %6534 }
 0x48d   : > { %2473 = vmatpush.msrb.mxu3 %v6522_v54  ;;  %v6531_v21 = vunpack.i.l.bf16 %v6530_v18  ;;  %v6532_v47 = vunpack.i.h.bf16 %v6530_v18  ;;  %v6536_v56 = vunpack.i.l.bf16 %v6535_v2  ;;  %v6537_v1 = vunpack.i.h.bf16 %v6535_v2  ;;  %v2607_v18 = vld [vmem:[%s11788_s7 + $0x18] sm:$0x1] }
 0x48e   : > { %v2643_v57 = vsel %vm2641_vm10, %v2607_v18, 0  ;;  %v2877_v18 = vld [vmem:[%s11791_s10] sm:$0xff] }
 0x48f   : > { %2474 = vmatpush.msrb.mxu3 %v6526_v28 }
 0x491   : > { %2475 = vmatpush.msrb.mxu3 %v6527_v27  ;;  %v8712_v27 = vand.u32 4294901760, %v2643_v57 }
 0x493   : > { %2476 = vmatpush.msrb.mxu3 %v6531_v21  ;;  %v2606_v21 = vld [vmem:[%s11788_s7 + $0x10] sm:$0xff]  ;;  %v2695_v2 = vsub.f32 %v2643_v57, %v8712_v27  ;;  %2658 = vmatpush.msrb.mxu1 %v8712_v27 }
 0x494   : > { %v2493_v45 = vpop.permute.xlu1 %2492  ;;  %v2497_v10 = vpop.permute.xlu0 %2496  ;;  %v8769_v57 = vld [vmem:[%s11790_s9 + $0x10] sm:$0xff] }
 0x495   : > { %2477 = vmatpush.msrb.mxu3 %v6532_v47  ;;  %v8718_v47 = vand.u32 4294901760, %v2606_v21  ;;  %v2696_v41 = vand.u32 4294901760, %v2695_v2  ;;  %2741 = vmatpush.msra.mxu2 %v2695_v2 }
 0x497   : > { %2478 = vmatpush.msrb.mxu3 %v6536_v56  ;;  %v2605_v56 = vld [vmem:[%s11788_s7 + $0x8] sm:$0xff]  ;;  %2660 = vmatpush.msrb.mxu1 %v8718_v47 }
 0x499   : > { %2479 = vmatpush.msrb.mxu3 %v6537_v1  ;;  %v2701_v1 = vsub.f32 %v2606_v21, %v8718_v47 }
 0x49b   : > { %2480 = vmatpush.msrb.mxu3 %v6541_v63  ;;  %v8726_v63 = vand.u32 4294901760, %v2605_v56  ;;  %2744 = vmatpush.msra.mxu2 %v2701_v1 }
 0x49d   : > { %2481 = vmatpush.msrb.mxu3 %v6542_v53  ;;  %v2503_v44 = vpop.permute.xlu1 %2502  ;;  %v2604_v53 = vld [vmem:[%s11788_s7] sm:$0xff]  ;;  %2662 = vmatpush.msrb.mxu1 %v8726_v63 }
 0x49f   : > { %2482 = vmatpush.msrb.mxu3 %v2421_v61  ;;  %v2513_v61 = vld [vmem:[%s11785_s4] sm:$0xff] }
 0x4a1   : > { %2483 = vmatpush.msrb.mxu3 %v2420_v43 }
 0x4a2   : > { %2484 = vmatmul.f32.vlgmr.msrb.gmra.mxu3 %v2422_v25  ;;  %v2702_v25 = vand.u32 4294901760, %v2701_v1 }
 0x4a3   : > { %2775 = vmatpush.msra.mxu3 %v8712_v27 }
 0x4a5   : > { %2777 = vmatpush.msra.mxu3 %v8718_v47 }
 0x4a7   : > { %2779 = vmatpush.msra.mxu3 %v8726_v63 }
 0x4aa   : > { %2487 = vmatmul.f32.gmra.mxu3 %v2423_v6  ;;  %v2707_v6 = vsub.f32 %v2605_v56, %v8726_v63 }
 0x4ac   : > { %2747 = vmatpush.msra.mxu2 %v2707_v6 }
 0x525   : > { %v2485_v12 = vpop.f32.mrf.mxu3 }
 0x526   : > { %v2499_v34 = vmul.f32 %v2493_v45, %v2485_v12  ;;  %v2663_v45 = vand.u32 4294901760, %v2604_v53  ;;  %v2708_v12 = vand.u32 4294901760, %v2707_v6 }
 0x528   : > { %v2509_v22 = vadd.f32 %v2503_v44, %v2499_v34  ;;  %v2713_v34 = vsub.f32 %v2604_v53, %v2663_v45  ;;  %2781 = vmatpush.msra.mxu3 %v2663_v45  ;;  %2664 = vmatpush.msrb.mxu1 %v2663_v45 }
 0x52a   : > { %v2511_v49 = vmax.f32 %v2509_v22, 0.0  ;;  %v2714_v44 = vand.u32 4294901760, %v2713_v34  ;;  %2750 = vmatpush.msra.mxu2 %v2713_v34  ;;  %6371 = vmatpush.msrb.mxu3 %v2696_v41 }
 0x52c   : > { %6372 = vmatpush.msrb.mxu3 %v2702_v25 }
 0x52d   : > { %v2488_v30 = vpop.f32.mrf.mxu3 }
 0x52e   : > { %v2500_v51 = vmul.f32 %v2497_v10, %v2488_v30  ;;  %6373 = vmatpush.msrb.mxu3 %v2708_v12  ;;  %v2697_v10 = vsub.f32 %v2695_v2, %v2696_v41 }
 0x530   : > { %v2510_v14 = vadd.f32 %v2507_v26, %v2500_v51  ;;  %6374 = vmatpush.msrb.mxu3 %v2714_v44  ;;  %v2698_v30 = vand.u32 4294901760, %v2697_v10  ;;  %v2703_v26 = vsub.f32 %v2701_v1, %v2702_v25  ;;  %v2878_v1 = vld [vmem:[%s11791_s10 + $0x8] sm:$0xff]  ;;  %v8790_v10 = vld [vmem:[%s11790_s9 + $0x20] sm:$0xff] }
 0x532   : > { %v2512_v38 = vmax.f32 %v2510_v14, 0.0  ;;  %2699 = vmatpush.msra.mxu1 %v2698_v30  ;;  %v2704_v51 = vand.u32 4294901760, %v2703_v26  ;;  %v2709_v14 = vsub.f32 %v2707_v6, %v2708_v12  ;;  %v2862_v30 = vld [vmem:[%s11789_s8 + $0x8] sm:$0xff] }
 0x533   : > { %v8801_v26 = vld [vmem:[%s11790_s9 + $0x28] sm:$0xff] }
 0x534   : > { %v6557_v58 = vpack.i.bf16 %v2511_v49, %v2512_v38  ;;  %2705 = vmatpush.msra.mxu1 %v2704_v51  ;;  %v2881_v51 = vld [vmem:[%s11791_s10 + $0x20] sm:$0xff] }
 0x536   : > { %6558 = vrot.lane.b32.xlu1 %v6557_v58, %s7156_s16  ;;  %6553 = vrot.lane.b32.xlu0 %v6557_v58, %s7154_s14 }
 0x537   : > { %6548 = vrot.lane.b32.xlu2 %v6557_v58, %s7155_s15  ;;  %s7170_s15 = smov 1  }
 0x53e   : > { %6573 = vrot.lane.b32.xlu1 %v6557_v58, %s7159_s19  ;;  %6568 = vrot.lane.b32.xlu0 %v6557_v58, %s7158_s18 }
 0x53f   : > { %6563 = vrot.lane.b32.xlu2 %v6557_v58, %s7157_s17 }
 0x546   : > { %2593 = vperm.xlu1 %6583, %v8639_v15   ;;  %2583 = vperm.xlu0 %6582, %v8639_v15  }
 0x547   : > { %6578 = vrot.lane.b32.xlu2 %v6557_v58, %s7160_s20 }
 0x54e   : > { %2597 = vperm.xlu1 %6583, %v8645_v9   ;;  %6586 = vset.pattern.permute.xlu0 %v11939_v40 }
 0x54f   : > { %2587 = vperm.xlu2 %6584, %v8645_v9  }
 0x556   : > { %6587 = vset.pattern.permute.xlu1 %v11939_v40 }
 0x557   : > { %6585 = vset.pattern.permute.xlu2 %v11939_v40 }
 0x591   : > { %v6549_v17 = vpop.permute.xlu2 %6548 }
 0x592   : > { %v6550_v4 = vunpack.i.l.bf16 %v6549_v17  ;;  %v6551_v32 = vunpack.i.h.bf16 %v6549_v17 }
 0x594   : > { %2559 = vmatpush.msrb.mxu0 %v6550_v4 }
 0x596   : > { %2560 = vmatpush.msrb.mxu0 %v6551_v32 }
 0x599   : > { %v6564_v52 = vpop.permute.xlu2 %6563 }
 0x59a   : > { %v6565_v11 = vunpack.i.l.bf16 %v6564_v52  ;;  %v6566_v48 = vunpack.i.h.bf16 %v6564_v52 }
 0x5a1   : > { %v6579_v33 = vpop.permute.xlu2 %6578 }
 0x5a2   : > { %v6580_v43 = vunpack.i.l.bf16 %v6579_v33  ;;  %v6581_v9 = vunpack.i.h.bf16 %v6579_v33 }
 0x5a8   : > { %v6554_v59 = vpop.permute.xlu0 %6553  ;;  %v6559_v24 = vpop.permute.xlu1 %6558 }
 0x5a9   : > { %v6555_v60 = vunpack.i.l.bf16 %v6554_v59  ;;  %v6556_v36 = vunpack.i.h.bf16 %v6554_v59  ;;  %v6560_v62 = vunpack.i.l.bf16 %v6559_v24  ;;  %v6561_v16 = vunpack.i.h.bf16 %v6559_v24  ;;  %v2588_v5 = vpop.permute.xlu2 %2587 }
 0x5ab   : > { %2561 = vmatpush.msrb.mxu0 %v6555_v60 }
 0x5ad   : > { %2562 = vmatpush.msrb.mxu0 %v6556_v36 }
 0x5af   : > { %2563 = vmatpush.msrb.mxu0 %v6560_v62 }
 0x5b0   : > { %v6569_v7 = vpop.permute.xlu0 %6568  ;;  %v6574_v39 = vpop.permute.xlu1 %6573 }
 0x5b1   : > { %2564 = vmatpush.msrb.mxu0 %v6561_v16  ;;  %v6570_v46 = vunpack.i.l.bf16 %v6569_v7  ;;  %v6571_v35 = vunpack.i.h.bf16 %v6569_v7  ;;  %v6575_v15 = vunpack.i.l.bf16 %v6574_v39  ;;  %v6576_v42 = vunpack.i.h.bf16 %v6574_v39 }
 0x5b3   : > { %2565 = vmatpush.msrb.mxu0 %v6565_v11 }
 0x5b5   : > { %2566 = vmatpush.msrb.mxu0 %v6566_v48 }
 0x5b7   : > { %2567 = vmatpush.msrb.mxu0 %v6570_v46 }
 0x5b8   : > { %v2584_v23 = vpop.permute.xlu0 %2583  ;;  %v2594_v55 = vpop.permute.xlu1 %2593 }
 0x5b9   : > { %2568 = vmatpush.msrb.mxu0 %v6571_v35 }
 0x5bb   : > { %2569 = vmatpush.msrb.mxu0 %v6575_v15 }
 0x5bd   : > { %2570 = vmatpush.msrb.mxu0 %v6576_v42 }
 0x5bf   : > { %2571 = vmatpush.msrb.mxu0 %v6580_v43 }
 0x5c0   : > { %v2598_v54 = vpop.permute.xlu1 %2597 }
 0x5c1   : > { %2572 = vmatpush.msrb.mxu0 %v6581_v9 }
 0x5c3   : > { %2573 = vmatpush.msrb.mxu0 %v2512_v38  ;;  %v2715_v38 = vsub.f32 %v2713_v34, %v2714_v44 }
 0x5c5   : > { %2574 = vmatpush.msrb.mxu0 %v2511_v49  ;;  %v2710_v49 = vand.u32 4294901760, %v2709_v14  ;;  %v2716_v58 = vand.u32 4294901760, %v2715_v38  ;;  %v8815_v14 = vld [vmem:[%s11790_s9 + $0x30] sm:$0xff]  ;;  %v8826_v38 = vld [vmem:[%s11790_s9 + $0x38] sm:$0xff] }
 0x5c6   : > { %2575 = vmatmul.f32.vlgmr.msrb.gmra.mxu0 %v2513_v61 }
 0x5c7   : > { %2810 = vmatpush.msra.mxu0 %v2696_v41  ;;  %2711 = vmatpush.msra.mxu1 %v2710_v49  ;;  %v2864_v49 = vld [vmem:[%s11789_s8 + $0x18] sm:$0xff] }
 0x5c9   : > { %2814 = vmatpush.msra.mxu0 %v2702_v25  ;;  %2717 = vmatpush.msra.mxu1 %v2716_v58  ;;  %v2865_v58 = vld [vmem:[%s11789_s8 + $0x20] sm:$0xff] }
 0x5cb   : > { %2818 = vmatpush.msra.mxu0 %v2708_v12 }
 0x5cd   : > { %2822 = vmatpush.msra.mxu0 %v2714_v44  ;;  %v2861_v44 = vld [vmem:[%s11789_s8] sm:$0xff] }
 0x5ce   : > { %2578 = vmatmul.f32.gmra.mxu0 %v2514_v50  ;;  %v8746_v50 = vld [vmem:[%s11790_s9] sm:$0xff] }
 0x643   : > { %v2576_v19 = vpop.f32.mrf.mxu0 }
 0x644   : > { %v2590_v31 = vmul.f32 %v2584_v23, %v2576_v19  ;;  %v7169_v23 = vmov 0.0  }
 0x646   : > { %v2600_v13 = vadd.f32 %v2594_v55, %v2590_v31 }
 0x648   : > { %v8693_v3 = vmax.f32 %v2600_v13, 0.0  ;;  %v2884_v13 = vld [vmem:[%s11791_s10 + $0x38] sm:$0xff] }
 0x64a   : > { %2626 = vrot.lane.b32.xlu1 %v8693_v3, %s7158_s18  ;;  %2618 = vrot.lane.b32.xlu0 %v8693_v3, %s7159_s19 }
 0x64b   : > { %2610 = vrot.lane.b32.xlu2 %v8693_v3, %s7160_s20  ;;  %v2579_v0 = vpop.f32.mrf.mxu0 }
 0x64c   : > { %v2591_v37 = vmul.f32 %v2588_v5, %v2579_v0 }
 0x64e   : > { %v2601_v20 = vadd.f32 %v2598_v54, %v2591_v37 }
 0x650   : > { %v8701_v28 = vmax.f32 %v2601_v20, 0.0 }
 0x652   : > { %2628 = vrot.lane.b32.xlu1 %v8701_v28, %s7158_s18  ;;  %2620 = vrot.lane.b32.xlu0 %v8701_v28, %s7159_s19 }
 0x653   : > { %2612 = vrot.lane.b32.xlu2 %v8701_v28, %s7160_s20 }
 0x65a   : > { %2930 = vperm.xlu0 %6586, %v2884_v13   ;;  %v2875_v13 = vld [vmem:[%s11789_s8 + $0x70] sm:$0xff] }
 0x662   : > { %2895 = vperm.xlu0 %6586, %v2877_v18  }
 0x6a5   : > { %v2611_v22 = vpop.permute.xlu2 %2610 }
 0x6a6   : > { %v2616_v17 = vmax.f32 %v8693_v3, %v2611_v22  ;;  %v8756_v3 = vld [vmem:[%s11790_s9 + $0x8] sm:$0xff]  ;;  %v2863_v22 = vld [vmem:[%s11789_s8 + $0x10] sm:$0xff] }
 0x6ad   : > { %v2613_v60 = vpop.permute.xlu2 %2612 }
 0x6ae   : > { %v2617_v62 = vmax.f32 %v8701_v28, %v2613_v60  ;;  %v2879_v28 = vld [vmem:[%s11791_s10 + $0x10] sm:$0xff] }
 0x6af   : > { %2905 = vperm.xlu1 %6587, %v2879_v28   ;;  %v2883_v60 = vld [vmem:[%s11791_s10 + $0x30] sm:$0xff] }
 0x6b7   : > { %2900 = vperm.xlu1 %6587, %v2878_v1  }
 0x6bc   : > { %v2627_v4 = vpop.permute.xlu1 %2626  ;;  %v2619_v32 = vpop.permute.xlu0 %2618 }
 0x6bd   : > { %v2624_v8 = vmax.f32 %v2616_v17, %v2619_v32  ;;  %v2891_v17 = vld [vmem:[%s11791_s10 + $0x70] sm:$0xff]  ;;  %v8843_v32 = vld [vmem:[%s11790_s9 + $0x40] sm:$0xff] }
 0x6be   : > { %2965 = vperm.xlu0 %6586, %v2891_v17  }
 0x6bf   : > { %v2632_v59 = vmax.f32 %v2624_v8, %v2627_v4  ;;  %2915 = vperm.xlu1 %6587, %v2881_v51   ;;  %v2880_v4 = vld [vmem:[%s11791_s10 + $0x18] sm:$0xff]  ;;  %v2866_v8 = vld [vmem:[%s11789_s8 + $0x28] sm:$0xff] }
 0x6c0   : > { %2910 = vperm.xlu2 %6585, %v2880_v4  }
 0x6c1   : > { %v2636_v24 = vsel %vm2634_vm11, %v2632_v59, 0  ;;  %v2888_v59 = vld [vmem:[%s11791_s10 + $0x58] sm:$0xff] }
 0x6c2   : > { %v2665_v36 = vand.u32 4294901760, %v2636_v24 }
 0x6c4   : > { %v2666_v52 = vsub.f32 %v2636_v24, %v2665_v36  ;;  %2824 = vmatmul.f32.vlgmr.msra.gmra.mxu0 %v2665_v36  ;;  %v2621_v16 = vpop.permute.xlu0 %2620  ;;  %v2629_v11 = vpop.permute.xlu1 %2628  ;;  %v8860_v24 = vld [vmem:[%s11790_s9 + $0x48] sm:$0xff] }
 0x6c5   : > { %v2625_v29 = vmax.f32 %v2617_v62, %v2621_v16  ;;  %v2885_v62 = vld [vmem:[%s11791_s10 + $0x40] sm:$0xff]  ;;  %v8877_v16 = vld [vmem:[%s11790_s9 + $0x50] sm:$0xff] }
 0x6c6   : > { %2753 = vmatmul.f32.vlgmr.msra.gmra.mxu2 %v2666_v52  ;;  %v2667_v7 = vand.u32 4294901760, %v2666_v52  ;;  %2950 = vperm.xlu0 %6586, %v2888_v59  }
 0x6c7   : > { %v2633_v48 = vmax.f32 %v2625_v29, %v2629_v11  ;;  %v2868_v29 = vld [vmem:[%s11789_s8 + $0x38] sm:$0xff]  ;;  %v2890_v11 = vld [vmem:[%s11791_s10 + $0x68] sm:$0xff] }
 0x6c8   : > { %2785 = vmatmul.f32.vlgmr.msra.gmra.mxu3 %v2667_v7  ;;  %v2668_v46 = vsub.f32 %v2666_v52, %v2667_v7  ;;  %2925 = vperm.xlu2 %6585, %v2883_v60   ;;  %v2882_v52 = vld [vmem:[%s11791_s10 + $0x28] sm:$0xff]  ;;  %v8891_v7 = vld [vmem:[%s11790_s9 + $0x58] sm:$0xff] }
 0x6c9   : > { %v2639_v39 = vsel %vm2634_vm11, %v2633_v48, 0  ;;  %3167 = vmatpush.msra.mxu3 %v7169_v23  ;;  %2960 = vperm.xlu1 %6587, %v2890_v11   ;;  %v2869_v48 = vld [vmem:[%s11789_s8 + $0x40] sm:$0xff]  ;;  %v8947_v23 = vld [vmem:[%s11790_s9 + $0x78] sm:$0xff] }
 0x6ca   : > { %v2669_v35 = vand.u32 4294901760, %v2668_v46  ;;  %v2673_v40 = vand.u32 4294901760, %v2639_v39  ;;  %v2887_v46 = vld [vmem:[%s11791_s10 + $0x50] sm:$0xff] }
 0x6cc   : > { %2670 = vmatmul.f32.vlgmr.msrb.gmra.mxu1 %v2669_v35  ;;  %v2674_v15 = vsub.f32 %v2639_v39, %v2673_v40  ;;  %v2892_v39 = vld [vmem:[%s11791_s10 + $0x78] sm:$0xff]  ;;  %v8908_v35 = vld [vmem:[%s11790_s9 + $0x60] sm:$0xff] }
 0x6cd   : > { %2845 = vmatpush.msrb.mxu1 %v8712_v27 }
 0x6ce   : > { %2758 = vmatmul.f32.gmra.mxu2 %v2674_v15  ;;  %v2675_v33 = vand.u32 4294901760, %v2674_v15  ;;  %2935 = vperm.xlu0 %6586, %v2885_v62  }
 0x6cf   : > { %2847 = vmatpush.msrb.mxu1 %v8718_v47 }
 0x6d0   : > { %2791 = vmatmul.f32.gmra.mxu3 %v2675_v33  ;;  %v2676_v42 = vsub.f32 %v2674_v15, %v2675_v33  ;;  %2920 = vperm.xlu2 %6585, %v2882_v52   ;;  %v2889_v15 = vld [vmem:[%s11791_s10 + $0x60] sm:$0xff]  ;;  %v8922_v33 = vld [vmem:[%s11790_s9 + $0x68] sm:$0xff] }
 0x6d1   : > { %2849 = vmatpush.msrb.mxu1 %v8726_v63  ;;  %v8779_v63 = vld [vmem:[%s11790_s9 + $0x18] sm:$0xff]  ;;  %2945 = vperm.xlu1 %6587, %v2887_v46  }
 0x6d2   : > { %v2677_v43 = vand.u32 4294901760, %v2676_v42  ;;  %v2871_v42 = vld [vmem:[%s11789_s8 + $0x50] sm:$0xff] }
 0x6d3   : > { %2851 = vmatpush.msrb.mxu1 %v2663_v45 }
 0x6d4   : > { %2678 = vmatmul.f32.gmra.mxu1 %v2677_v43  ;;  %v2886_v43 = vld [vmem:[%s11791_s10 + $0x48] sm:$0xff] }
 0x6d8   : > { %2828 = vmatmul.f32.vlgmr.msrb.gmra.mxu3 %v2673_v40  ;;  %2970 = vperm.xlu2 %6585, %v2892_v39  }
 0x6dc   : > { %2719 = vmatmul.f32.vlgmr.msra.gmra.mxu1 %v2665_v36 }
 0x6e0   : > { %6171 = vmatmul.msk.f32.vlgmr.msra.gmra.mxu3 %vm3103_vm12, %v8746_v50  ;;  %2955 = vperm.xlu2 %6585, %v2889_v15  }
 0x6e4   : > { %2723 = vmatmul.f32.gmra.mxu1 %v2673_v40 }
 0x6e8   : > { %6172 = vmatmul.msk.f32.gmra.mxu3 %vm3103_vm12, %v8756_v3  ;;  %2940 = vperm.xlu2 %6585, %v2886_v43  }
 0x6ec   : > { %2853 = vmatmul.f32.vlgmr.msrb.gmra.mxu1 %v2665_v36  ;;  %v2867_v36 = vld [vmem:[%s11789_s8 + $0x30] sm:$0xff] }
 0x6f0   : > { %6173 = vmatmul.msk.f32.gmra.mxu3 %vm3103_vm12, %v8769_v57 }
 0x6f4   : > { %2857 = vmatmul.f32.gmra.mxu1 %v2673_v40  ;;  %v2870_v40 = vld [vmem:[%s11789_s8 + $0x48] sm:$0xff] }
 0x6f8   : > { %6174 = vmatmul.msk.f32.gmra.mxu3 %vm3103_vm12, %v8779_v63 }
 0x700   : > { %6175 = vmatmul.msk.f32.gmra.mxu3 %vm3103_vm12, %v8790_v10 }
 0x708   : > { %6176 = vmatmul.msk.f32.gmra.mxu3 %vm3103_vm12, %v8801_v26 }
 0x710   : > { %6177 = vmatmul.msk.f32.gmra.mxu3 %vm3103_vm12, %v8815_v14 }
 0x718   : > { %6178 = vmatmul.msk.f32.gmra.mxu3 %vm3103_vm12, %v8826_v38 }
 0x720   : > { %6179 = vmatmul.msk.f32.gmra.mxu3 %vm3103_vm12, %v8843_v32 }
 0x728   : > { %6180 = vmatmul.msk.f32.gmra.mxu3 %vm3103_vm12, %v8860_v24 }
 0x730   : > { %6181 = vmatmul.msk.f32.gmra.mxu3 %vm3103_vm12, %v8877_v16 }
 0x738   : > { %6182 = vmatmul.msk.f32.gmra.mxu3 %vm3103_vm12, %v8891_v7 }
 0x740   : > { %6183 = vmatmul.msk.f32.gmra.mxu3 %vm3103_vm12, %v8908_v35 }
 0x741   : > { %v2825_v25 = vpop.f32.mrf.mxu0 }
 0x748   : > { %6184 = vmatmul.msk.f32.gmra.mxu3 %vm3103_vm12, %v8922_v33 }
 0x749   : > { %v2671_v9 = vpop.f32.mrf.mxu1  ;;  %v2754_v31 = vpop.f32.mrf.mxu2 }
 0x74b   : > { %v2786_v19 = vpop.f32.mrf.mxu3 }
 0x751   : > { %v2679_v61 = vpop.f32.mrf.mxu1  ;;  %v2759_v20 = vpop.f32.mrf.mxu2 }
 0x753   : > { %v2792_v37 = vpop.f32.mrf.mxu3 }
 0x759   : > { %v2720_v55 = vpop.f32.mrf.mxu1 }
 0x75a   : > { %v2721_v54 = vadd.f32 %v2720_v55, %v2671_v9  ;;  %v8936_v9 = vld [vmem:[%s11790_s9 + $0x70] sm:$0xff]  ;;  %v2873_v55 = vld [vmem:[%s11789_s8 + $0x60] sm:$0xff] }
 0x75b   : > { %v2829_v41 = vpop.f32.mrf.mxu3  ;;  %6185 = vmatmul.msk.f32.gmra.mxu3 %vm3103_vm12, %v8936_v9 }
 0x75c   : > { %v2755_v2 = vadd.f32 %v2754_v31, %v2721_v54 }
 0x75e   : > { %v2787_v56 = vadd.f32 %v2786_v19, %v2755_v2  ;;  %v2874_v19 = vld [vmem:[%s11789_s8 + $0x68] sm:$0xff] }
 0x760   : > { %v2826_v45 = vadd.f32 %v2825_v25, %v2787_v56 }
 0x761   : > { %v2724_v5 = vpop.f32.mrf.mxu1 }
 0x762   : > { %v2725_v0 = vadd.f32 %v2724_v5, %v2679_v61  ;;  %v2872_v61 = vld [vmem:[%s11789_s8 + $0x58] sm:$0xff] }
 0x763   : > { %6186 = vmatmul.msk.f32.gmra.mxu3 %vm3103_vm12, %v8947_v23  ;;  %v3169_v31 = vpop.f32.mrf.mxu3 }
 0x764   : > { %v2760_v27 = vadd.f32 %v2759_v20, %v2725_v0  ;;  %v2876_v0 = vld [vmem:[%s11789_s8 + $0x78] sm:$0xff] }
 0x766   : > { %v2793_v47 = vadd.f32 %v2792_v37, %v2760_v27 }
 0x768   : > { %v2830_v53 = vadd.f32 %v2829_v41, %v2793_v47 }
 0x769   : > { %v2854_v21 = vpop.f32.mrf.mxu1 }
 0x76a   : > { %v2855_v34 = vadd.f32 %v2854_v21, %v2826_v45 }
 0x76b   : > { %v3172_v5 = vpop.f32.mrf.mxu3 }
 0x771   : > { %v2858_v6 = vpop.f32.mrf.mxu1 }
 0x772   : > { %v2859_v12 = vadd.f32 %v2858_v6, %v2830_v53  ;;  %v2931_v53 = vpop.permute.xlu0 %2930  ;;  %v2906_v6 = vpop.permute.xlu1 %2905 }
 0x773   : > { %v3175_v37 = vpop.f32.mrf.mxu3 }
 0x774   : > { %3036 = vmatpush.msrb.mxu2 %v2859_v12 }
 0x776   : > { %3037 = vmatpush.msrb.mxu2 %v2855_v34  ;;  %v2911_v34 = vpop.permute.xlu2 %2910 }
 0x777   : > { %6155 = vmatmul.msk.f32.vlgmr.msrb.gmra.mxu2 %vm2973_vm13, %v2861_v44 }
 0x77a   : > { %v2896_v44 = vpop.permute.xlu0 %2895 }
 0x77b   : > { %v3178_v20 = vpop.f32.mrf.mxu3 }
 0x77e   : > { %v2926_v59 = vpop.permute.xlu2 %2925 }
 0x77f   : > { %6156 = vmatmul.msk.f32.gmra.mxu2 %vm2973_vm13, %v2862_v30  ;;  %v2901_v30 = vpop.permute.xlu1 %2900 }
 0x783   : > { %v3181_v18 = vpop.f32.mrf.mxu3 }
 0x786   : > { %v2921_v39 = vpop.permute.xlu2 %2920 }
 0x787   : > { %6157 = vmatmul.msk.f32.gmra.mxu2 %vm2973_vm13, %v2863_v22  ;;  %v2916_v15 = vpop.permute.xlu1 %2915 }
 0x78b   : > { %v3184_v21 = vpop.f32.mrf.mxu3 }
 0x78f   : > { %6158 = vmatmul.msk.f32.gmra.mxu2 %vm2973_vm13, %v2864_v49 }
 0x793   : > { %v3187_v47 = vpop.f32.mrf.mxu3 }
 0x797   : > { %6159 = vmatmul.msk.f32.gmra.mxu2 %vm2973_vm13, %v2865_v58 }
 0x79b   : > { %v3190_v1 = vpop.f32.mrf.mxu3 }
 0x79f   : > { %6160 = vmatmul.msk.f32.gmra.mxu2 %vm2973_vm13, %v2866_v8 }
 0x7a3   : > { %v8967_v45 = vpop.f32.mrf.mxu3 }
 0x7a7   : > { %6161 = vmatmul.msk.f32.gmra.mxu2 %vm2973_vm13, %v2867_v36 }
 0x7ab   : > { %v8969_v22 = vpop.f32.mrf.mxu3 }
 0x7af   : > { %6162 = vmatmul.msk.f32.gmra.mxu2 %vm2973_vm13, %v2868_v29 }
 0x7b3   : > { %v8982_v62 = vpop.f32.mrf.mxu3 }
 0x7b7   : > { %6163 = vmatmul.msk.f32.gmra.mxu2 %vm2973_vm13, %v2869_v48 }
 0x7bf   : > { %6164 = vmatmul.msk.f32.gmra.mxu2 %vm2973_vm13, %v2870_v40 }
 0x7c7   : > { %6165 = vmatmul.msk.f32.gmra.mxu2 %vm2973_vm13, %v2871_v42 }
 0x7cf   : > { %6166 = vmatmul.msk.f32.gmra.mxu2 %vm2973_vm13, %v2872_v61 }
 0x7d7   : > { %6167 = vmatmul.msk.f32.gmra.mxu2 %vm2973_vm13, %v2873_v55  ;;  %v8993_v55 = vpop.f32.mrf.mxu3 }
 0x7df   : > { %6168 = vmatmul.msk.f32.gmra.mxu2 %vm2973_vm13, %v2874_v19 }
 0x7e7   : > { %6169 = vmatmul.msk.f32.gmra.mxu2 %vm2973_vm13, %v2875_v13 }
 0x7ef   : > { %6170 = vmatmul.msk.f32.gmra.mxu2 %vm2973_vm13, %v2876_v0 }
 0x7fa   : > { %v3039_v54 = vpop.f32.mrf.mxu2 }
 0x7fb   : > { %v8971_v51 = vadd.f32 %v3039_v54, %v2896_v44 }
 0x7fd   : > { %11940 = vst [vmem:[#allocation2_spill] sm:$0xff] %v8971_v51  ;;  %v3217_v17 = vadd.f32 %v3169_v31, %v8971_v51 }
 0x7ff   : > { %v6187_v60 = vmul.f32 -1.442695, %v3217_v17 }
 0x801   : > { %6648 = vpow2.f32 %v6187_v60 }
 0x802   : > { %v3042_v28 = vpop.f32.mrf.mxu2 }
 0x803   : > { %v8973_v49 = vadd.f32 %v3042_v28, %v2901_v30 }
 0x805   : > { %v3218_v8 = vadd.f32 %v3172_v5, %v8973_v49 }
 0x807   : > { %v6188_v52 = vmul.f32 -1.442695, %v3218_v8  ;;  %v6649_v40 = vpop.eup %6648 }
 0x808   : > { %v8997_v13 = vadd.f32 1.0, %v6649_v40 }
 0x809   : > { %6650 = vpow2.f32 %v6188_v52 }
 0x80a   : > { %v3045_v27 = vpop.f32.mrf.mxu2  ;;  %vm3254_vm15 = vweird.f32 %v8997_v13 }
 0x80b   : > { %v8978_v4 = vadd.f32 %v3045_v27, %v2906_v6  ;;  %v9015_v6 = vpop.permute.xlu2 %2970 }
 0x80d   : > { %11941 = vst [vmem:[#allocation4_spill] sm:$0xff] %v8978_v4  ;;  %v3219_v36 = vadd.f32 %v3175_v37, %v8978_v4 }
 0x80f   : > { %v6189_v48 = vmul.f32 -1.442695, %v3219_v36  ;;  %v6651_v19 = vpop.eup %6650 }
 0x810   : > { %v9003_v54 = vadd.f32 1.0, %v6651_v19 }
 0x811   : > { %6652 = vpow2.f32 %v6189_v48  ;;  %v2966_v48 = vpop.permute.xlu0 %2965 }
 0x812   : > { %v3048_v2 = vpop.f32.mrf.mxu2  ;;  %vm3269_vm2 = vweird.f32 %v9003_v54 }
 0x813   : > { %v8984_v29 = vadd.f32 %v3048_v2, %v2911_v34  ;;  %v3205_v34 = vpop.f32.mrf.mxu3 }
 0x815   : > { %11942 = vst [vmem:[#allocation3_spill] sm:$0xff] %v8984_v29  ;;  %v3220_v46 = vadd.f32 %v3178_v20, %v8984_v29 }
 0x817   : > { %v6190_v42 = vmul.f32 -1.442695, %v3220_v46  ;;  %v6653_v37 = vpop.eup %6652  ;;  %v2956_v46 = vpop.permute.xlu2 %2955 }
 0x818   : > { %v9009_v2 = vadd.f32 1.0, %v6653_v37 }
 0x819   : > { %6654 = vpow2.f32 %v6190_v42 }
 0x81a   : > { %v3051_v56 = vpop.f32.mrf.mxu2  ;;  %6656 = vrcp.f32 %v8997_v13  ;;  %vm3284_vm5 = vweird.f32 %v9009_v2 }
 0x81b   : > { %v9001_v0 = vadd.f32 %v3051_v56, %v2916_v15  ;;  %6658 = vrcp.f32 %v9003_v54  ;;  %v3208_v15 = vpop.f32.mrf.mxu3 }
 0x81c   : > { %6660 = vrcp.f32 %v9009_v2 }
 0x81d   : > { %11946 = vst [vmem:[#allocation6_spill] sm:$0xff] %v9001_v0 }
 0x822   : > { %v3054_v41 = vpop.f32.mrf.mxu2 }
 0x823   : > { %v8989_v43 = vadd.f32 %v3054_v41, %v2921_v39  ;;  %v3221_v41 = vadd.f32 %v3181_v18, %v9001_v0 }
 0x825   : > { %11943 = vst [vmem:[#allocation5_spill] sm:$0xff] %v8989_v43  ;;  %v3222_v20 = vadd.f32 %v3184_v21, %v8989_v43 }
 0x827   : > { %v6192_v56 = vmul.f32 -1.442695, %v3222_v20 }
 0x829   : > { %6662 = vpow2.f32 %v6192_v56 }
 0x82a   : > { %v3057_v25 = vpop.f32.mrf.mxu2 }
 0x82b   : > { %v8995_v31 = vadd.f32 %v3057_v25, %v2926_v59 }
 0x82d   : > { %11944 = vst [vmem:[#allocation9_spill] sm:$0xff] %v8995_v31  ;;  %v3223_v28 = vadd.f32 %v3187_v47, %v8995_v31  ;;  %v6191_v47 = vmul.f32 -1.442695, %v3221_v41 }
 0x82f   : > { %v6193_v25 = vmul.f32 -1.442695, %v3223_v28  ;;  %v2961_v28 = vpop.permute.xlu1 %2960 }
 0x831   : > { %6664 = vpow2.f32 %v6193_v25 }
 0x832   : > { %v3060_v12 = vpop.f32.mrf.mxu2 }
 0x833   : > { %v8999_v5 = vadd.f32 %v3060_v12, %v2931_v53  ;;  %v6655_v12 = vpop.eup %6654 }
 0x834   : > { %v9018_v44 = vpop.eup %6656 }
 0x835   : > { %11945 = vst [vmem:[#allocation10_spill] sm:$0xff] %v8999_v5  ;;  %v3224_v27 = vadd.f32 %v3190_v1, %v8999_v5  ;;  %v9020_v1 = vadd.f32 1.0, %v6655_v12  ;;  %v9022_v18 = vpop.eup %6658  ;;  %v3250_v30 = vmul.f32 %v9018_v44, %v8997_v13  ;;  %vm3255_vm14 = vweird.f32 %v9018_v44 }
 0x836   : > { %v9026_v8 = vpop.eup %6660  ;;  %v3265_v59 = vmul.f32 %v9022_v18, %v9003_v54  ;;  %vm3270_vm0 = vweird.f32 %v9022_v18  ;;  %vm9069_vm1 = vmor %vm3254_vm15, %vm3255_vm14 }
 0x837   : > { %v6194_v21 = vmul.f32 -1.442695, %v3224_v27  ;;  %v6663_v60 = vpop.eup %6662  ;;  %v3251_v52 = vsub.f32 1.0, %v3250_v30  ;;  %v3280_v25 = vmul.f32 %v9026_v8, %v9009_v2  ;;  %vm9090_vm4 = vmor %vm3269_vm2, %vm3270_vm0  ;;  %vm3285_vm6 = vweird.f32 %v9026_v8 }
 0x838   : > { %v6665_v36 = vpop.eup %6664  ;;  %v3266_v19 = vsub.f32 1.0, %v3265_v59  ;;  %v9033_v37 = vadd.f32 1.0, %v6663_v60  ;;  %v3273_v60 = vand.u32 2147483647, %v9003_v54  ;;  %vm3299_vm7 = vweird.f32 %v9020_v1  ;;  %vm9150_vm9 = vmor %vm3284_vm5, %vm3285_vm6 }
 0x839   : > { %6666 = vpow2.f32 %v6194_v21  ;;  %v9035_v20 = vadd.f32 1.0, %v6665_v36  ;;  %v3252_v56 = vmul.f32 %v9018_v44, %v3251_v52  ;;  %v3275_v36 = vand.u32 2147483648, %v9003_v54 }
 0x83a   : > { %v8975_v58 = vpop.f32.mrf.mxu2  ;;  %6668 = vpow2.f32 %v6191_v47  ;;  %v3267_v30 = vmul.f32 %v9022_v18, %v3266_v19  ;;  %vm9082_vm3 = vcmp.eq.f32.partialorder %v3273_v60, 8.507059e+37  ;;  %v3288_v54 = vand.u32 2147483647, %v9009_v2 }
 0x83b   : > { %6670 = vrcp.f32 %v9020_v1  ;;  %v3276_v31 = vor.u32 1.1754944e-38, %v3275_v36  ;;  %vm3345_vm0 = vweird.f32 %v9033_v37  ;;  %vm3360_vm5 = vweird.f32 %v9035_v20 }
 0x83c   : > { %6672 = vrcp.f32 %v9033_v37  ;;  %v3268_v19 = vadd.f32 %v9022_v18, %v3267_v30  ;;  %vm9178_vm13 = vcmp.eq.f32.partialorder %v3288_v54, 8.507059e+37 }
 0x83d   : > { %6674 = vrcp.f32 %v9035_v20 }
 0x83e   : > { %v3272_v36 = vsel %vm9090_vm4, %v9022_v18, %v3268_v19 }
 0x83f   : > { %v6667_v39 = vpop.eup %6666 }
 0x840   : > { %v6669_v42 = vpop.eup %6668  ;;  %v9039_v41 = vadd.f32 1.0, %v6667_v39 }
 0x841   : > { %v9037_v27 = vpop.eup %6670  ;;  %v9044_v12 = vadd.f32 1.0, %v6669_v42  ;;  %v2951_v42 = vpop.permute.xlu0 %2950 }
 0x842   : > { %v8986_v11 = vpop.f32.mrf.mxu2  ;;  %v3295_v59 = vmul.f32 %v9037_v27, %v9020_v1  ;;  %6676 = vrcp.f32 %v9039_v41  ;;  %vm3300_vm8 = vweird.f32 %v9037_v27 }
 0x843   : > { %6678 = vrcp.f32 %v9044_v12  ;;  %vm9168_vm11 = vmor %vm3299_vm7, %vm3300_vm8  ;;  %vm3330_vm14 = vweird.f32 %v9044_v12  ;;  %vm3375_vm7 = vweird.f32 %v9039_v41 }
 0x84a   : > { %v8991_v61 = vpop.f32.mrf.mxu2 }
 0x852   : > { %v9013_v53 = vpop.f32.mrf.mxu2 }
 0x85a   : > { %v3075_v17 = vpop.f32.mrf.mxu2 }
 0x85b   : > { %v9031_v40 = vadd.f32 %v3075_v17, %v2956_v46  ;;  %v3281_v46 = vsub.f32 1.0, %v3280_v25  ;;  %v2946_v25 = vpop.permute.xlu1 %2945 }
 0x85c   : > { %v9118_v19 = vadd.f32 %v8991_v61, %v2946_v25  ;;  %v3303_v25 = vand.u32 2147483647, %v9020_v1 }
 0x85d   : > { %11947 = vst [vmem:[#allocation7_spill] sm:$0xff] %v9031_v40  ;;  %v3229_v21 = vadd.f32 %v3205_v34, %v9031_v40  ;;  %v9058_v34 = vadd.f32 %v9018_v44, %v3252_v56  ;;  %v3296_v56 = vsub.f32 1.0, %v3295_v59  ;;  %v3282_v43 = vmul.f32 %v9026_v8, %v3281_v46 }
 0x85e   : > { %11957 = vst [vmem:[#allocation13_spill] sm:$0xff] %v9118_v19  ;;  %vm9193_vm15 = vcmp.eq.f32.partialorder %v3303_v25, 8.507059e+37 }
 0x85f   : > { %v6195_v39 = vmul.f32 -1.442695, %v3229_v21  ;;  %v3211_v21 = vpop.f32.mrf.mxu3 }
 0x861   : > { %6680 = vpow2.f32 %v6195_v39  ;;  %v3297_v39 = vmul.f32 %v9037_v27, %v3296_v56  ;;  %v9132_v56 = vadd.f32 %v9013_v53, %v2951_v42  ;;  %v2936_v42 = vpop.permute.xlu0 %2935 }
 0x862   : > { %v3078_v47 = vpop.f32.mrf.mxu2 }
 0x863   : > { %v9049_v17 = vadd.f32 %v3078_v47, %v2961_v28  ;;  %v3290_v28 = vand.u32 2147483648, %v9009_v2  ;;  %11958 = vst [vmem:[#allocation14_spill] sm:$0xff] %v9132_v56  ;;  %v9141_v59 = vadd.f32 %v9037_v27, %v3297_v39  ;;  %v3336_v39 = vand.u32 2147483648, %v9044_v12 }
 0x865   : > { %11948 = vst [vmem:[#allocation8_spill] sm:$0xff] %v9049_v17  ;;  %v3230_v52 = vadd.f32 %v3208_v15, %v9049_v17  ;;  %v9075_v17 = vpop.eup %6672  ;;  %v9102_v5 = vor.u32 1.1754944e-38, %v3290_v28  ;;  %v9129_v15 = vadd.f32 %v9026_v8, %v3282_v43 }
 0x866   : > { %v9086_v0 = vpop.eup %6674  ;;  %v3341_v46 = vmul.f32 %v9075_v17, %v9033_v37  ;;  %vm3346_vm2 = vweird.f32 %v9075_v17 }
 0x867   : > { %v6196_v47 = vmul.f32 -1.442695, %v3230_v52  ;;  %v2941_v52 = vpop.permute.xlu2 %2940  ;;  %v9097_v30 = vpop.eup %6676  ;;  %v3356_v18 = vmul.f32 %v9086_v0, %v9035_v20  ;;  %vm9224_vm6 = vmor %vm3345_vm0, %vm3346_vm2 }
 0x868   : > { %v9106_v4 = vpop.eup %6678  ;;  %v9111_v51 = vadd.f32 %v8986_v11, %v2941_v52  ;;  %v9126_v11 = vsel %vm9082_vm3, %v3276_v31, %v3272_v36  ;;  %v3227_v36 = vadd.f32 %v8982_v62, %v9118_v19  ;;  %v3228_v62 = vadd.f32 %v8993_v55, %v9132_v56  ;;  %v3214_v2 = vpop.f32.mrf.mxu3 }
 0x869   : > { %6682 = vpow2.f32 %v6196_v47  ;;  %v3371_v47 = vmul.f32 %v9097_v30, %v9039_v41  ;;  %v3326_v61 = vmul.f32 %v9106_v4, %v9044_v12  ;;  %v6681_v52 = vpop.eup %6680  ;;  %v3357_v53 = vsub.f32 1.0, %v3356_v18 }
 0x86a   : > { %v3081_v60 = vpop.f32.mrf.mxu2  ;;  %11956 = vst [vmem:[#allocation12_spill] sm:$0xff] %v9111_v51  ;;  %v3226_v31 = vadd.f32 %v8969_v22, %v9111_v51  ;;  %v3287_v18 = vsel %vm9150_vm9, %v9026_v8, %v9129_v15  ;;  %vm3331_vm10 = vweird.f32 %v9106_v4  ;;  %vm3361_vm3 = vweird.f32 %v9086_v0 }
 0x86b   : > { %v9104_v29 = vadd.f32 %v3081_v60, %v2966_v48  ;;  %v3305_v48 = vand.u32 2147483648, %v9020_v1  ;;  %v3342_v60 = vsub.f32 1.0, %v3341_v46  ;;  %v3327_v19 = vsub.f32 1.0, %v3326_v61  ;;  %vm9236_vm8 = vmor %vm3360_vm5, %vm3361_vm3 }
 0x86c   : > { %v3302_v1 = vsel %vm9168_vm11, %v9037_v27, %v9141_v59  ;;  %v3351_v27 = vand.u32 2147483648, %v9033_v37  ;;  %vm3376_vm4 = vweird.f32 %v9097_v30  ;;  %vm9261_vm11 = vmor %vm3330_vm14, %vm3331_vm10 }
 0x86d   : > { %11955 = vst [vmem:[#allocation11_spill] sm:$0xff] %v9104_v29  ;;  %v3231_v28 = vadd.f32 %v3211_v21, %v9104_v29  ;;  %v9154_v22 = vor.u32 1.1754944e-38, %v3305_v48  ;;  %v3343_v55 = vmul.f32 %v9075_v17, %v3342_v60  ;;  %v3364_v48 = vand.u32 2147483647, %v9035_v20  ;;  %vm9251_vm9 = vmor %vm3375_vm7, %vm3376_vm4 }
 0x86f   : > { %v6197_v21 = vmul.f32 -1.442695, %v3231_v28  ;;  %v6683_v43 = vpop.eup %6682  ;;  %v3372_v28 = vsub.f32 1.0, %v3371_v47  ;;  %v9172_v47 = vadd.f32 1.0, %v6681_v52  ;;  %v3344_v59 = vadd.f32 %v9075_v17, %v3343_v55 }
 0x870   : > { %v9186_v61 = vadd.f32 1.0, %v6683_v43  ;;  %vm3365_vm10 = vcmp.eq.f32.partialorder %v3364_v48, 8.507059e+37 }
 0x871   : > { %6684 = vpow2.f32 %v6197_v21  ;;  %v3358_v21 = vmul.f32 %v9086_v0, %v3357_v53  ;;  %v3373_v52 = vmul.f32 %v9097_v30, %v3372_v28 }
 0x872   : > { %v3084_v51 = vpop.f32.mrf.mxu2  ;;  %6686 = vtanh.f32 %v3226_v31  ;;  %v3328_v31 = vmul.f32 %v9106_v4, %v3327_v19  ;;  %vm3425_vm7 = vweird.f32 %v9186_v61 }
 0x873   : > { %v9175_v8 = vadd.f32 %v3084_v51, %v9015_v6  ;;  %v9191_v51 = vadd.f32 %v8975_v58, %v2936_v42  ;;  %6688 = vtanh.f32 %v3227_v36  ;;  %v3349_v58 = vand.u32 2147483647, %v9033_v37 }
 0x874   : > { %6690 = vtanh.f32 %v3228_v62  ;;  %v3359_v42 = vadd.f32 %v9086_v0, %v3358_v21  ;;  %v3366_v36 = vand.u32 2147483648, %v9035_v20  ;;  %v3374_v46 = vadd.f32 %v9097_v30, %v3373_v52 }
 0x875   : > { %11963 = vst [vmem:[#allocation15_spill] sm:$0xff] %v9175_v8  ;;  %v3232_v54 = vadd.f32 %v3214_v2, %v9175_v8  ;;  %6692 = vrcp.f32 %v9172_v47  ;;  %v3225_v53 = vadd.f32 %v8967_v45, %v9191_v51  ;;  %v3381_v62 = vand.u32 2147483648, %v9039_v41 }
 0x876   : > { %6694 = vrcp.f32 %v9186_v61  ;;  %v3329_v45 = vadd.f32 %v9106_v4, %v3328_v31  ;;  %v3334_v21 = vand.u32 2147483647, %v9044_v12  ;;  %v3379_v37 = vand.u32 2147483647, %v9039_v41 }
 0x877   : > { %v6685_v60 = vpop.eup %6684  ;;  %v6198_v25 = vmul.f32 -1.442695, %v3232_v54  ;;  %v3348_v54 = vsel %vm9224_vm6, %v9075_v17, %v3344_v59  ;;  %v3352_v20 = vor.u32 1.1754944e-38, %v3351_v27  ;;  %v3292_v31 = vsel %vm9178_vm13, %v9102_v5, %v3287_v18 }
 0x878   : > { %v9207_v43 = vadd.f32 1.0, %v6685_v60  ;;  %v6687_v19 = vpop.eup %6686  ;;  %v3363_v17 = vsel %vm9236_vm8, %v9086_v0, %v3359_v42  ;;  %vm3350_vm13 = vcmp.eq.f32.partialorder %v3349_v58, 8.507059e+37  ;;  %v3367_v5 = vor.u32 1.1754944e-38, %v3366_v36 }
 0x879   : > { %6696 = vpow2.f32 %v6198_v25  ;;  %v6689_v28 = vpop.eup %6688  ;;  %v3307_v0 = vsel %vm9193_vm15, %v9154_v22, %v3302_v1  ;;  %v3378_v18 = vsel %vm9251_vm9, %v9097_v30, %v3374_v46  ;;  %v3333_v27 = vsel %vm9261_vm11, %v9106_v4, %v3329_v45 }
 0x87a   : > { %6698 = vrcp.f32 %v9207_v43  ;;  %v6691_v55 = vpop.eup %6690  ;;  %v3382_v42 = vor.u32 1.1754944e-38, %v3381_v62  ;;  %v3470_v58 = vmul.f32 %v6687_v19, %v9126_v11  ;;  %v3368_v36 = vsel %vm3365_vm10, %v3367_v5, %v3363_v17 }
 0x87b   : > { %v9241_v60 = vpop.eup %6692  ;;  %6700 = vtanh.f32 %v3225_v53  ;;  %v3353_v53 = vsel %vm3350_vm13, %v3352_v20, %v3348_v54  ;;  %vm3380_vm14 = vcmp.eq.f32.partialorder %v3379_v37, 8.507059e+37  ;;  %v3471_v22 = vmul.f32 %v6689_v28, %v3292_v31 }
 0x87c   : > { %v9255_v59 = vpop.eup %6694  ;;  %v3383_v1 = vsel %vm3380_vm14, %v3382_v42, %v3378_v18  ;;  %v3466_v4 = vmul.f32 0.0, %v3353_v53  ;;  %v3472_v45 = vmul.f32 %v6691_v55, %v3307_v0  ;;  %v3406_v62 = vmul.f32 %v9241_v60, %v9172_v47 }
 0x87d   : > { %v3421_v30 = vmul.f32 %v9255_v59, %v9186_v61  ;;  %v11976_v19 = vand.u32 2147483648, %v8997_v13  ;;  %v3337_v28 = vor.u32 1.1754944e-38, %v3336_v39  ;;  %v3467_v54 = vmul.f32 0.0, %v3368_v36 }
 0x87e   : > { %v11977_v37 = vand.u32 2147483647, %v8997_v13  ;;  %vm3335_vm0 = vcmp.eq.f32.partialorder %v3334_v21, 8.507059e+37  ;;  %v9292_v20 = vadd.f32 %v3470_v58, %v3466_v4  ;;  %v3468_v55 = vmul.f32 0.0, %v3383_v1 }
 0x87f   : > { %v6697_v15 = vpop.eup %6696  ;;  %v3261_v48 = vor.u32 1.1754944e-38, %v11976_v19  ;;  %v11978_v31 = vsel %vm9069_vm1, %v9018_v44, %v9058_v34  ;;  %v3338_v25 = vsel %vm3335_vm0, %v3337_v28, %v3333_v27  ;;  %v9299_v41 = vadd.f32 %v3471_v22, %v3467_v54 }
 0x880   : > { %v9274_v2 = vpop.eup %6698  ;;  %v9277_v6 = vadd.f32 1.0, %v6697_v15  ;;  %vm3259_vm15 = vcmp.eq.f32.partialorder %v11977_v37, 8.507059e+37  ;;  %v3422_v12 = vsub.f32 1.0, %v3421_v30  ;;  %v9301_v5 = vadd.f32 %v3472_v45, %v3468_v55 }
 0x881   : > { %v3436_v46 = vmul.f32 %v9274_v2, %v9207_v43  ;;  %v6701_v11 = vpop.eup %6700  ;;  %v3262_v17 = vsel %vm3259_vm15, %v3261_v48, %v11978_v31  ;;  %v3407_v0 = vsub.f32 1.0, %v3406_v62  ;;  %v3465_v18 = vmul.f32 0.0, %v3338_v25 }
 0x882   : > { %6702 = vrcp.f32 %v9277_v6  ;;  %v3469_v39 = vmul.f32 %v6701_v11, %v3262_v17  ;;  %v3423_v44 = vmul.f32 %v9255_v59, %v3422_v12  ;;  %vm3410_vm1 = vweird.f32 %v9172_v47 }
 0x883   : > { %v3437_v52 = vsub.f32 1.0, %v3436_v46  ;;  %6704 = vtanh.f32 %v9292_v20  ;;  %v3408_v15 = vmul.f32 %v9241_v60, %v3407_v0  ;;  %vm3441_vm2 = vweird.f32 %v9274_v2 }
 0x884   : > { %6706 = vtanh.f32 %v9299_v41  ;;  %v9308_v34 = vadd.f32 %v3469_v39, %v3465_v18  ;;  %vm3426_vm3 = vweird.f32 %v9255_v59  ;;  %v3461_v42 = vand.u32 2147483648, %v9277_v6 }
 0x885   : > { %v3438_v13 = vmul.f32 %v9274_v2, %v3437_v52  ;;  %6708 = vtanh.f32 %v9301_v5  ;;  %vm3440_vm4 = vweird.f32 %v9207_v43  ;;  %v3444_v58 = vand.u32 2147483647, %v9207_v43  ;;  %vm9336_vm11 = vmor %vm3425_vm7, %vm3426_vm3 }
 0x886   : > { %v3446_v36 = vand.u32 2147483648, %v9207_v43  ;;  %v3459_v1 = vand.u32 2147483647, %v9277_v6  ;;  %v3424_v30 = vadd.f32 %v9255_v59, %v3423_v44  ;;  %vm9322_vm6 = vmor %vm3440_vm4, %vm3441_vm2  ;;  %v3429_v45 = vand.u32 2147483647, %v9186_v61 }
 0x887   : > { %v3439_v53 = vadd.f32 %v9274_v2, %v3438_v13  ;;  %v3431_v62 = vand.u32 2147483648, %v9186_v61  ;;  %vm3411_vm8 = vweird.f32 %v9241_v60  ;;  %vm3455_vm9 = vweird.f32 %v9277_v6 }
 0x888   : > { %v6703_v21 = vpop.eup %6702  ;;  %v3409_v28 = vadd.f32 %v9241_v60, %v3408_v15  ;;  %v3462_v61 = vor.u32 1.1754944e-38, %v3461_v42  ;;  %v3447_v52 = vor.u32 1.1754944e-38, %v3446_v36  ;;  %v3414_v37 = vand.u32 2147483647, %v9172_v47  ;;  %vm3412_vm15 = vmor %vm3410_vm1, %vm3411_vm8  ;;  %v11983_v15 = vld [vmem:[#allocation2_spill] sm:$0xff] }
 0x889   : > { %v3451_v40 = vmul.f32 %v6703_v21, %v9277_v6  ;;  %vm3456_vm5 = vweird.f32 %v6703_v21  ;;  %v6705_v46 = vpop.eup %6704  ;;  %v3443_v19 = vsel %vm9322_vm6, %v9274_v2, %v3439_v53  ;;  %v3416_v6 = vand.u32 2147483648, %v9172_v47 }
 0x88a   : > { %v6707_v43 = vpop.eup %6706  ;;  %vm3457_vm13 = vmor %vm3455_vm9, %vm3456_vm5  ;;  %vm3460_vm10 = vcmp.eq.f32.partialorder %v3459_v1, 8.507059e+37  ;;  %vm3445_vm14 = vcmp.eq.f32.partialorder %v3444_v58, 8.507059e+37  ;;  %v3428_v2 = vsel %vm9336_vm11, %v9255_v59, %v3424_v30  ;;  %v3432_v25 = vor.u32 1.1754944e-38, %v3431_v62  ;;  %v11984_v58 = vld [vmem:[#allocation4_spill] sm:$0xff]  ;;  %v11985_v30 = vld [vmem:[#allocation3_spill] sm:$0xff] }
 0x88b   : > { %v3452_v27 = vsub.f32 1.0, %v3451_v40  ;;  %v6709_v54 = vpop.eup %6708  ;;  %v3448_v17 = vsel %vm3445_vm14, %v3447_v52, %v3443_v19  ;;  %6710 = vtanh.f32 %v9308_v34  ;;  %vm3430_vm0 = vcmp.eq.f32.partialorder %v3429_v45, 8.507059e+37 }
 0x88c   : > { %v3413_v39 = vsel %vm3412_vm15, %v9241_v60, %v3409_v28  ;;  %v3433_v0 = vsel %vm3430_vm0, %v3432_v25, %v3428_v2  ;;  %v3417_v13 = vor.u32 1.1754944e-38, %v3416_v6  ;;  %vm3415_vm2 = vcmp.eq.f32.partialorder %v3414_v37, 8.507059e+37  ;;  %v11987_v37 = vld [vmem:[#allocation5_spill] sm:$0xff] }
 0x88d   : > { %v3453_v22 = vmul.f32 %v6703_v21, %v3452_v27  ;;  %v3482_v18 = vmul.f32 %v6705_v46, %v3433_v0 }
 0x88e   : > { %v3418_v59 = vsel %vm3415_vm2, %v3417_v13, %v3413_v39 }
 0x88f   : > { %v3454_v11 = vadd.f32 %v6703_v21, %v3453_v22 }
 0x891   : > { %v3458_v55 = vsel %vm3457_vm13, %v6703_v21, %v3454_v11  ;;  %v3483_v21 = vmul.f32 %v6707_v43, %v3448_v17  ;;  %v6711_v40 = vpop.eup %6710  ;;  %v11986_v11 = vld [vmem:[#allocation10_spill] sm:$0xff] }
 0x892   : > { %v3463_v31 = vsel %vm3460_vm10, %v3462_v61, %v3458_v55  ;;  %v3481_v44 = vmul.f32 %v6711_v40, %v3418_v59  ;;  %v11988_v55 = vld [vmem:[#allocation6_spill] sm:$0xff] }
 0x893   : > { %v3484_v12 = vmul.f32 %v6709_v54, %v3463_v31  ;;  %v11989_v31 = vld [vmem:[#allocation9_spill] sm:$0xff] }
 0x895   : > { %3497 = vmatpush.msrb.mxu0 %v3484_v12 }
 0x897   : > { %3498 = vmatpush.msrb.mxu0 %v3483_v21 }
 0x899   : > { %3499 = vmatpush.msrb.mxu0 %v3482_v18 }
 0x89b   : > { %3500 = vmatpush.msrb.mxu0 %v3481_v44 }
 0x89c   : > { %6199 = vmatmul.msk.f32.vlgmr.msrb.gmra.mxu0 %vm3103_vm12, %v8746_v50 }
 0x8a4   : > { %6200 = vmatmul.msk.f32.gmra.mxu0 %vm3103_vm12, %v8756_v3 }
 0x8ac   : > { %6201 = vmatmul.msk.f32.gmra.mxu0 %vm3103_vm12, %v8769_v57 }
 0x8b4   : > { %6202 = vmatmul.msk.f32.gmra.mxu0 %vm3103_vm12, %v8779_v63 }
 0x8bc   : > { %6203 = vmatmul.msk.f32.gmra.mxu0 %vm3103_vm12, %v8790_v10 }
 0x8c4   : > { %6204 = vmatmul.msk.f32.gmra.mxu0 %vm3103_vm12, %v8801_v26 }
 0x8cc   : > { %6205 = vmatmul.msk.f32.gmra.mxu0 %vm3103_vm12, %v8815_v14 }
 0x8d4   : > { %6206 = vmatmul.msk.f32.gmra.mxu0 %vm3103_vm12, %v8826_v38 }
 0x8dc   : > { %6207 = vmatmul.msk.f32.gmra.mxu0 %vm3103_vm12, %v8843_v32 }
 0x8e4   : > { %6208 = vmatmul.msk.f32.gmra.mxu0 %vm3103_vm12, %v8860_v24 }
 0x8ec   : > { %6209 = vmatmul.msk.f32.gmra.mxu0 %vm3103_vm12, %v8877_v16 }
 0x8f4   : > { %6210 = vmatmul.msk.f32.gmra.mxu0 %vm3103_vm12, %v8891_v7 }
 0x8fc   : > { %6211 = vmatmul.msk.f32.gmra.mxu0 %vm3103_vm12, %v8908_v35 }
 0x904   : > { %6212 = vmatmul.msk.f32.gmra.mxu0 %vm3103_vm12, %v8922_v33 }
 0x90c   : > { %6213 = vmatmul.msk.f32.gmra.mxu0 %vm3103_vm12, %v8936_v9 }
 0x914   : > { %6214 = vmatmul.msk.f32.gmra.mxu0 %vm3103_vm12, %v8947_v23 }
 0x919   : > { %v3502_v50 = vpop.f32.mrf.mxu0 }
 0x91a   : > { %3566 = vrot.lane.b32.xlu1 %v3502_v50, %s7170_s15 }
 0x921   : > { %v3505_v3 = vpop.f32.mrf.mxu0 }
 0x922   : > { %3568 = vrot.lane.b32.xlu2 %v3505_v3, %s7170_s15 }
 0x929   : > { %v3508_v57 = vpop.f32.mrf.mxu0 }
 0x92a   : > { %3570 = vrot.lane.b32.xlu0 %v3508_v57, %s7170_s15 }
 0x931   : > { %v3511_v63 = vpop.f32.mrf.mxu0 }
 0x932   : > { %3572 = vrot.lane.b32.xlu1 %v3511_v63, %s7170_s15  ;;  %v11990_v63 = vld [vmem:[#allocation8_spill] sm:$0xff] }
 0x939   : > { %v3514_v10 = vpop.f32.mrf.mxu0 }
 0x941   : > { %v3517_v26 = vpop.f32.mrf.mxu0 }
 0x942   : > { %3576 = vrot.lane.b32.xlu0 %v3517_v26, %s7170_s15 }
 0x949   : > { %v3520_v14 = vpop.f32.mrf.mxu0 }
 0x94a   : > { %3578 = vrot.lane.b32.xlu1 %v3520_v14, %s7170_s15 }
 0x951   : > { %v3523_v38 = vpop.f32.mrf.mxu0 }
 0x952   : > { %3580 = vrot.lane.b32.xlu2 %v3523_v38, %s7170_s15 }
 0x959   : > { %v3526_v32 = vpop.f32.mrf.mxu0 }
 0x95a   : > { %3574 = vrot.lane.b32.xlu2 %v3514_v10, %s7170_s15 }
 0x961   : > { %v3529_v24 = vpop.f32.mrf.mxu0 }
 0x969   : > { %v3532_v16 = vpop.f32.mrf.mxu0 }
 0x971   : > { %v3535_v7 = vpop.f32.mrf.mxu0 }
 0x979   : > { %v3538_v35 = vpop.f32.mrf.mxu0 }
 0x97c   : > { %v3569_v47 = vpop.permute.xlu2 %3568 }
 0x981   : > { %v3541_v33 = vpop.f32.mrf.mxu0 }
 0x982   : > { %3592 = vrot.lane.b32.xlu2 %v3541_v33, %s7170_s15 }
 0x989   : > { %v3544_v9 = vpop.f32.mrf.mxu0 }
 0x98a   : > { %3586 = vrot.lane.b32.xlu2 %v3532_v16, %s7170_s15  ;;  %3594 = vrot.lane.b32.xlu1 %v3544_v9, %s7170_s15 }
 0x98c   : > { %v3567_v60 = vpop.permute.xlu1 %3566 }
 0x98d   : > { %v3614_v27 = vadd.f32 %v3567_v60, %v11983_v15 }
 0x991   : > { %v3547_v23 = vpop.f32.mrf.mxu0 }
 0x992   : > { %3872 = vrot.lane.b32.xlu2 %v9301_v5, %s7170_s15  ;;  %3588 = vrot.lane.b32.xlu1 %v3535_v7, %s7170_s15  ;;  %v3615_v5 = vadd.f32 %v3569_v47, %v8973_v49 }
 0x993   : > { %3596 = vrot.lane.b32.xlu0 %v3547_v23, %s7170_s15 }
 0x994   : > { %v6216_v53 = vmul.f32 -1.442695, %v3615_v5 }
 0x996   : > { %6712 = vpow2.f32 %v6216_v53 }
 0x99a   : > { %3866 = vrot.lane.b32.xlu2 %v9308_v34, %s7170_s15  ;;  %3582 = vrot.lane.b32.xlu1 %v3526_v32, %s7170_s15  ;;  %v6215_v34 = vmul.f32 -1.442695, %v3614_v27 }
 0x99b   : > { %3590 = vrot.lane.b32.xlu0 %v3538_v35, %s7170_s15 }
 0x99c   : > { %v3571_v42 = vpop.permute.xlu0 %3570  ;;  %6714 = vpow2.f32 %v6215_v34  ;;  %v6713_v4 = vpop.eup %6712 }
 0x99d   : > { %v3616_v36 = vadd.f32 %v3571_v42, %v11984_v58  ;;  %v9413_v62 = vadd.f32 1.0, %v6713_v4 }
 0x99f   : > { %v6217_v1 = vmul.f32 -1.442695, %v3616_v36  ;;  %vm3666_vm1 = vweird.f32 %v9413_v62 }
 0x9a1   : > { %6716 = vpow2.f32 %v6217_v1 }
 0x9a2   : > { %3868 = vrot.lane.b32.xlu1 %v9292_v20, %s7170_s15 }
 0x9a3   : > { %3584 = vrot.lane.b32.xlu0 %v3529_v24, %s7170_s15 }
 0x9a4   : > { %v3573_v22 = vpop.permute.xlu1 %3572 }
 0x9a5   : > { %v3617_v46 = vadd.f32 %v3573_v22, %v11985_v30 }
 0x9a7   : > { %v6218_v45 = vmul.f32 -1.442695, %v3617_v46  ;;  %v3672_v46 = vand.u32 2147483648, %v9413_v62 }
 0x9a9   : > { %6718 = vpow2.f32 %v6218_v45 }
 0x9aa   : > { %6720 = vrcp.f32 %v9413_v62 }
 0x9ab   : > { %3870 = vrot.lane.b32.xlu0 %v9299_v41, %s7170_s15  ;;  %v6715_v41 = vpop.eup %6714 }
 0x9ac   : > { %v3581_v20 = vpop.permute.xlu2 %3580  ;;  %v9415_v43 = vadd.f32 1.0, %v6715_v41  ;;  %v6717_v61 = vpop.eup %6716 }
 0x9ad   : > { %v3621_v19 = vadd.f32 %v3581_v20, %v11986_v11  ;;  %v9423_v25 = vadd.f32 1.0, %v6717_v61 }
 0x9ae   : > { %6722 = vrcp.f32 %v9415_v43  ;;  %v3657_v1 = vand.u32 2147483648, %v9415_v43  ;;  %vm3651_vm5 = vweird.f32 %v9415_v43  ;;  %v3655_v41 = vand.u32 2147483647, %v9415_v43 }
 0x9af   : > { %v6222_v52 = vmul.f32 -1.442695, %v3621_v19  ;;  %v6719_v12 = vpop.eup %6718  ;;  %v3670_v19 = vand.u32 2147483647, %v9413_v62  ;;  %vm3681_vm11 = vweird.f32 %v9423_v25 }
 0x9b0   : > { %v9425_v0 = vpop.eup %6720  ;;  %v9430_v18 = vadd.f32 1.0, %v6719_v12  ;;  %vm3656_vm8 = vcmp.eq.f32.partialorder %v3655_v41, 8.507059e+37 }
 0x9b1   : > { %6724 = vpow2.f32 %v6222_v52  ;;  %v3662_v40 = vmul.f32 %v9425_v0, %v9413_v62  ;;  %vm3667_vm3 = vweird.f32 %v9425_v0  ;;  %vm3671_vm9 = vcmp.eq.f32.partialorder %v3670_v19, 8.507059e+37 }
 0x9b2   : > { %6726 = vrcp.f32 %v9423_v25  ;;  %vm9476_vm6 = vmor %vm3666_vm1, %vm3667_vm3  ;;  %vm3696_vm0 = vweird.f32 %v9430_v18 }
 0x9b3   : > { %v3663_v57 = vsub.f32 1.0, %v3662_v40 }
 0x9b4   : > { %v3577_v48 = vpop.permute.xlu0 %3576  ;;  %v3575_v28 = vpop.permute.xlu2 %3574 }
 0x9b5   : > { %v3619_v6 = vadd.f32 %v3577_v48, %v11987_v37  ;;  %v3618_v2 = vadd.f32 %v3575_v28, %v11988_v55  ;;  %v9427_v21 = vpop.eup %6722  ;;  %v3664_v35 = vmul.f32 %v9425_v0, %v3663_v57 }
 0x9b6   : > { %v3647_v44 = vmul.f32 %v9427_v21, %v9415_v43  ;;  %vm3652_vm4 = vweird.f32 %v9427_v21 }
 0x9b7   : > { %v6220_v39 = vmul.f32 -1.442695, %v3619_v6  ;;  %v6219_v13 = vmul.f32 -1.442695, %v3618_v2  ;;  %v6725_v3 = vpop.eup %6724  ;;  %v3665_v42 = vadd.f32 %v9425_v0, %v3664_v35  ;;  %vm9481_vm7 = vmor %vm3651_vm5, %vm3652_vm4  ;;  %v3658_v6 = vor.u32 1.1754944e-38, %v3657_v1 }
 0x9b8   : > { %v9438_v26 = vpop.eup %6726  ;;  %v3648_v14 = vsub.f32 1.0, %v3647_v44  ;;  %v9440_v38 = vadd.f32 1.0, %v6725_v3  ;;  %v3673_v2 = vor.u32 1.1754944e-38, %v3672_v46 }
 0x9b9   : > { %6728 = vpow2.f32 %v6220_v39  ;;  %v3677_v9 = vmul.f32 %v9438_v26, %v9423_v25  ;;  %vm3682_vm13 = vweird.f32 %v9438_v26 }
 0x9ba   : > { %6730 = vpow2.f32 %v6219_v13  ;;  %v3649_v47 = vmul.f32 %v9427_v21, %v3648_v14  ;;  %vm9529_vm15 = vmor %vm3681_vm11, %vm3682_vm13  ;;  %vm3772_vm3 = vweird.f32 %v9440_v38 }
 0x9bb   : > { %v3678_v22 = vsub.f32 1.0, %v3677_v9 }
 0x9bc   : > { %v3579_v54 = vpop.permute.xlu1 %3578  ;;  %v3650_v36 = vadd.f32 %v9427_v21, %v3649_v47 }
 0x9bd   : > { %v3620_v17 = vadd.f32 %v3579_v54, %v11989_v31  ;;  %v3669_v54 = vsel %vm9476_vm6, %v9425_v0, %v3665_v42  ;;  %v3679_v61 = vmul.f32 %v9438_v26, %v3678_v22  ;;  %v3776_v22 = vand.u32 2147483647, %v9440_v38 }
 0x9be   : > { %v3654_v43 = vsel %vm9481_vm7, %v9427_v21, %v3650_v36  ;;  %v9502_v40 = vsel %vm3671_vm9, %v3673_v2, %v3669_v54 }
 0x9bf   : > { %v6221_v59 = vmul.f32 -1.442695, %v3620_v17  ;;  %v6729_v32 = vpop.eup %6728  ;;  %v3685_v17 = vand.u32 2147483647, %v9423_v25  ;;  %v3680_v57 = vadd.f32 %v9438_v26, %v3679_v61  ;;  %v12003_v61 = vld [vmem:[#allocation13_spill] sm:$0xff]  ;;  %vm9565_vm5 = vcmp.eq.f32.partialorder %v3776_v22, 8.507059e+37 }
 0x9c0   : > { %v6731_v24 = vpop.eup %6730  ;;  %v9448_v23 = vadd.f32 1.0, %v6729_v32 }
 0x9c1   : > { %6732 = vpow2.f32 %v6221_v59  ;;  %v9451_v60 = vadd.f32 1.0, %v6731_v24  ;;  %v9500_v59 = vsel %vm3656_vm8, %v3658_v6, %v3654_v43  ;;  %v3700_v24 = vand.u32 2147483647, %v9430_v18  ;;  %v12004_v6 = vld [vmem:[#allocation7_spill] sm:$0xff] }
 0x9c2   : > { %6734 = vrcp.f32 %v9430_v18  ;;  %vm9513_vm10 = vcmp.eq.f32.partialorder %v3685_v17, 8.507059e+37  ;;  %vm3742_vm6 = vweird.f32 %v9448_v23 }
 0x9c3   : > { %6736 = vrcp.f32 %v9440_v38  ;;  %vm9552_vm1 = vcmp.eq.f32.partialorder %v3700_v24, 8.507059e+37  ;;  %vm3727_vm8 = vweird.f32 %v9451_v60 }
 0x9c7   : > { %v6733_v16 = vpop.eup %6732 }
 0x9c8   : > { %v9443_v33 = vpop.eup %6734  ;;  %v9453_v5 = vadd.f32 1.0, %v6733_v16 }
 0x9c9   : > { %v3692_v53 = vmul.f32 %v9443_v33, %v9430_v18  ;;  %v9467_v4 = vpop.eup %6736  ;;  %vm3697_vm14 = vweird.f32 %v9443_v33 }
 0x9ca   : > { %v3768_v62 = vmul.f32 %v9467_v4, %v9440_v38  ;;  %vm9545_vm2 = vmor %vm3696_vm0, %vm3697_vm14  ;;  %vm3773_vm4 = vweird.f32 %v9467_v4  ;;  %vm3757_vm0 = vweird.f32 %v9453_v5 }
 0x9cb   : > { %v3693_v48 = vsub.f32 1.0, %v3692_v53  ;;  %vm9585_vm7 = vmor %vm3772_vm3, %vm3773_vm4 }
 0x9cc   : > { %v3769_v32 = vsub.f32 1.0, %v3768_v62 }
 0x9cd   : > { %v3694_v21 = vmul.f32 %v9443_v33, %v3693_v48 }
 0x9ce   : > { %v3770_v1 = vmul.f32 %v9467_v4, %v3769_v32 }
 0x9cf   : > { %v3695_v53 = vadd.f32 %v9443_v33, %v3694_v21 }
 0x9dc   : > { %v3593_v50 = vpop.permute.xlu2 %3592 }
 0x9dd   : > { %v3627_v10 = vadd.f32 %v3593_v50, %v11990_v63 }
 0x9df   : > { %v6224_v7 = vmul.f32 -1.442695, %v3627_v10 }
 0x9e1   : > { %6738 = vpow2.f32 %v6224_v7  ;;  %v3687_v7 = vand.u32 2147483648, %v9423_v25  ;;  %v3778_v25 = vand.u32 2147483648, %v9440_v38 }
 0x9e2   : > { %6740 = vrcp.f32 %v9448_v23 }
 0x9e3   : > { %6742 = vrcp.f32 %v9451_v60  ;;  %v3779_v21 = vor.u32 1.1754944e-38, %v3778_v25 }
 0x9e4   : > { %6744 = vrcp.f32 %v9453_v5  ;;  %v3587_v14 = vpop.permute.xlu2 %3586 }
 0x9e7   : > { %v6739_v52 = vpop.eup %6738 }
 0x9e8   : > { %v9495_v12 = vpop.eup %6740  ;;  %v9507_v50 = vadd.f32 1.0, %v6739_v52  ;;  %v3624_v52 = vadd.f32 %v3587_v14, %v12003_v61 }
 0x9e9   : > { %v9497_v13 = vpop.eup %6742  ;;  %vm3743_vm11 = vweird.f32 %v9495_v12 }
 0x9ea   : > { %v9505_v44 = vpop.eup %6744  ;;  %v3723_v35 = vmul.f32 %v9497_v13, %v9451_v60  ;;  %vm3728_vm9 = vweird.f32 %v9497_v13  ;;  %vm3822_vm4 = vweird.f32 %v9507_v50 }
 0x9eb   : > { %v3753_v36 = vmul.f32 %v9505_v44, %v9453_v5  ;;  %vm3758_vm13 = vweird.f32 %v9505_v44  ;;  %vm9621_vm14 = vmor %vm3727_vm8, %vm3728_vm9 }
 0x9ec   : > { %v3724_v41 = vsub.f32 1.0, %v3723_v35  ;;  %v3873_v24 = vpop.permute.xlu2 %3872 }
 0x9ed   : > { %v3754_v54 = vsub.f32 1.0, %v3753_v36 }
 0x9ef   : > { %v3755_v35 = vmul.f32 %v9505_v44, %v3754_v54 }
 0x9f1   : > { %v3756_v25 = vadd.f32 %v9505_v44, %v3755_v35 }
 0x9fc   : > { %v3595_v27 = vpop.permute.xlu1 %3594 }
 0x9fd   : > { %v3628_v34 = vadd.f32 %v3595_v27, %v9104_v29  ;;  %v3738_v27 = vmul.f32 %v9495_v12, %v9448_v23 }
 0x9ff   : > { %v6225_v20 = vmul.f32 -1.442695, %v3628_v34  ;;  %v3702_v34 = vand.u32 2147483648, %v9430_v18  ;;  %v3739_v19 = vsub.f32 1.0, %v3738_v27  ;;  %v3688_v18 = vor.u32 1.1754944e-38, %v3687_v7 }
 0xa00   : > { %v3746_v7 = vand.u32 2147483647, %v9448_v23 }
 0xa01   : > { %6746 = vpow2.f32 %v6225_v20  ;;  %v3684_v20 = vsel %vm9529_vm15, %v9438_v26, %v3680_v57  ;;  %v3699_v26 = vsel %vm9545_vm2, %v9443_v33, %v3695_v53  ;;  %v3703_v28 = vor.u32 1.1754944e-38, %v3702_v34  ;;  %vm9638_vm2 = vmor %vm3757_vm0, %vm3758_vm13 }
 0xa02   : > { %6748 = vrcp.f32 %v9507_v50  ;;  %v9561_v17 = vsel %vm9513_vm10, %v3688_v18, %v3684_v20  ;;  %v3771_v33 = vadd.f32 %v9467_v4, %v3770_v1  ;;  %v3740_v14 = vmul.f32 %v9495_v12, %v3739_v19  ;;  %vm9611_vm10 = vmor %vm3742_vm6, %vm3743_vm11  ;;  %v12011_v19 = vld [vmem:[#allocation12_spill] sm:$0xff] }
 0xa03   : > { %v3704_v57 = vsel %vm9552_vm1, %v3703_v28, %v3699_v26  ;;  %v3748_v34 = vand.u32 2147483648, %v9448_v23  ;;  %v3763_v26 = vand.u32 2147483648, %v9453_v5  ;;  %vm9625_vm15 = vcmp.eq.f32.partialorder %v3746_v7, 8.507059e+37  ;;  %v3867_v7 = vpop.permute.xlu2 %3866 }
 0xa04   : > { %v3589_v39 = vpop.permute.xlu1 %3588  ;;  %v3775_v42 = vsel %vm9585_vm7, %v9467_v4, %v3771_v33  ;;  %v3741_v36 = vadd.f32 %v9495_v12, %v3740_v14 }
 0xa05   : > { %v3597_v0 = vpop.permute.xlu0 %3596  ;;  %v3625_v46 = vadd.f32 %v3589_v39, %v9132_v56  ;;  %v3749_v23 = vor.u32 1.1754944e-38, %v3748_v34 }
 0xa06   : > { %v3629_v3 = vadd.f32 %v3597_v0, %v9175_v8 }
 0xa07   : > { %v6747_v10 = vpop.eup %6746 }
 0xa08   : > { %v9520_v9 = vadd.f32 1.0, %v6747_v10  ;;  %v6226_v47 = vmul.f32 -1.442695, %v3629_v3  ;;  %v9569_v0 = vpop.eup %6748  ;;  %v3725_v3 = vmul.f32 %v9497_v13, %v3724_v41  ;;  %v3733_v41 = vand.u32 2147483648, %v9451_v60 }
 0xa09   : > { %v3818_v20 = vmul.f32 %v9569_v0, %v9507_v50  ;;  %vm3823_vm13 = vweird.f32 %v9569_v0 }
 0xa0a   : > { %6750 = vpow2.f32 %v6226_v47  ;;  %v3726_v38 = vadd.f32 %v9497_v13, %v3725_v3  ;;  %vm3837_vm9 = vweird.f32 %v9520_v9  ;;  %vm9711_vm0 = vmor %vm3822_vm4, %vm3823_vm13 }
 0xa0b   : > { %6752 = vrcp.f32 %v9520_v9  ;;  %v3819_v3 = vsub.f32 1.0, %v3818_v20 }
 0xa0c   : > { %v3583_v62 = vpop.permute.xlu1 %3582  ;;  %6754 = vtanh.f32 %v3625_v46  ;;  %v3731_v46 = vand.u32 2147483647, %v9451_v60  ;;  %v3745_v60 = vsel %vm9611_vm10, %v9495_v12, %v3741_v36 }
 0xa0d   : > { %v3591_v43 = vpop.permute.xlu0 %3590  ;;  %v3622_v16 = vadd.f32 %v3583_v62, %v9191_v51  ;;  %6756 = vtanh.f32 %v3624_v52  ;;  %v3780_v52 = vsel %vm9565_vm5, %v3779_v21, %v3775_v42  ;;  %v3760_v21 = vsel %vm9638_vm2, %v9505_v44, %v3756_v25 }
 0xa0e   : > { %v3626_v2 = vadd.f32 %v3591_v43, %v12004_v6  ;;  %v3761_v43 = vand.u32 2147483647, %v9453_v5  ;;  %v3730_v5 = vsel %vm9621_vm14, %v9497_v13, %v3726_v38  ;;  %v3881_v12 = vmul.f32 %v3873_v24, %v3780_v52  ;;  %v9745_v52 = vld [vmem:[%s11790_s9 + $0x18] sm:$0xff] }
 0xa0f   : > { %vm3732_vm1 = vcmp.eq.f32.partialorder %v3731_v46, 8.507059e+37  ;;  %v3750_v13 = vsel %vm9625_vm15, %v3749_v23, %v3745_v60  ;;  %v3820_v42 = vmul.f32 %v9569_v0, %v3819_v3 }
 0xa10   : > { %v6223_v10 = vmul.f32 -1.442695, %v3626_v2  ;;  %v6751_v32 = vpop.eup %6750  ;;  %vm3762_vm3 = vcmp.eq.f32.partialorder %v3761_v43, 8.507059e+37  ;;  %v3841_v2 = vand.u32 2147483647, %v9520_v9 }
 0xa11   : > { %v9579_v47 = vpop.eup %6752  ;;  %v9590_v53 = vadd.f32 1.0, %v6751_v32  ;;  %v3764_v32 = vor.u32 1.1754944e-38, %v3763_v26 }
 0xa12   : > { %6758 = vpow2.f32 %v6223_v10  ;;  %v6755_v22 = vpop.eup %6754  ;;  %v3833_v4 = vmul.f32 %v9579_v47, %v9520_v9  ;;  %v3734_v10 = vor.u32 1.1754944e-38, %v3733_v41  ;;  %vm3838_vm5 = vweird.f32 %v9579_v47 }
 0xa13   : > { %6760 = vrcp.f32 %v9590_v53  ;;  %v6757_v54 = vpop.eup %6756  ;;  %v3885_v62 = vmul.f32 %v6755_v22, %v3704_v57  ;;  %v3765_v24 = vsel %vm3762_vm3, %v3764_v32, %v3760_v21  ;;  %vm3852_vm7 = vweird.f32 %v9590_v53  ;;  %vm9696_vm11 = vmor %vm3837_vm9, %vm3838_vm5 }
 0xa14   : > { %6762 = vtanh.f32 %v3622_v16  ;;  %v3834_v39 = vsub.f32 1.0, %v3833_v4  ;;  %v3735_v27 = vsel %vm3732_vm1, %v3734_v10, %v3730_v5  ;;  %v3869_v44 = vpop.permute.xlu1 %3868  ;;  %v3884_v36 = vmul.f32 %v6757_v54, %v9561_v17 }
 0xa15   : > { %v3585_v1 = vpop.permute.xlu0 %3584  ;;  %v9656_v34 = vadd.f32 %v3885_v62, %v3881_v12  ;;  %v3879_v41 = vmul.f32 %v3869_v44, %v3750_v13  ;;  %v3858_v26 = vand.u32 2147483648, %v9590_v53  ;;  %v3843_v54 = vand.u32 2147483648, %v9520_v9 }
 0xa16   : > { %v3623_v18 = vadd.f32 %v3585_v1, %v12011_v19  ;;  %v3835_v20 = vmul.f32 %v9579_v47, %v3834_v39  ;;  %v3878_v1 = vmul.f32 %v3867_v7, %v3735_v27  ;;  %v3826_v62 = vand.u32 2147483647, %v9507_v50 }
 0xa17   : > { %v3859_v3 = vor.u32 1.1754944e-38, %v3858_v26  ;;  %v3821_v5 = vadd.f32 %v9569_v0, %v3820_v42  ;;  %v3828_v21 = vand.u32 2147483648, %v9507_v50  ;;  %v3844_v12 = vor.u32 1.1754944e-38, %v3843_v54  ;;  %v9738_v54 = vld [vmem:[%s11790_s9 + $0x10] sm:$0xff] }
 0xa18   : > { %6764 = vtanh.f32 %v3623_v18  ;;  %v6759_v33 = vpop.eup %6758  ;;  %vm3842_vm14 = vcmp.eq.f32.partialorder %v3841_v2, 8.507059e+37  ;;  %vm3827_vm4 = vcmp.eq.f32.partialorder %v3826_v62, 8.507059e+37  ;;  %v9752_v62 = vld [vmem:[%s11790_s9 + $0x20] sm:$0xff]  ;;  %v9766_v2 = vld [vmem:[%s11790_s9 + $0x30] sm:$0xff] }
 0xa19   : > { %v9648_v57 = vpop.eup %6760  ;;  %v9650_v14 = vadd.f32 1.0, %v6759_v33  ;;  %v3825_v27 = vsel %vm9711_vm0, %v9569_v0, %v3821_v5  ;;  %v9780_v33 = vld [vmem:[%s11790_s9 + $0x40] sm:$0xff]  ;;  %v9794_v5 = vld [vmem:[%s11790_s9 + $0x50] sm:$0xff] }
 0xa1a   : > { %v6763_v16 = vpop.eup %6762  ;;  %v3848_v35 = vmul.f32 %v9648_v57, %v9590_v53  ;;  %vm3853_vm6 = vweird.f32 %v9648_v57 }
 0xa1b   : > { %6766 = vrcp.f32 %v9650_v14  ;;  %v3882_v25 = vmul.f32 %v6763_v16, %v9500_v59  ;;  %v3836_v59 = vadd.f32 %v9579_v47, %v3835_v20  ;;  %vm9682_vm8 = vmor %vm3852_vm7, %vm3853_vm6  ;;  %v3813_v32 = vand.u32 2147483648, %v9650_v14 }
 0xa1c   : > { %v3849_v38 = vsub.f32 1.0, %v3848_v35  ;;  %6768 = vtanh.f32 %v9656_v34  ;;  %v3811_v7 = vand.u32 2147483647, %v9650_v14  ;;  %vm3807_vm2 = vweird.f32 %v9650_v14 }
 0xa1d   : > { %v3871_v22 = vpop.permute.xlu0 %3870  ;;  %v9678_v43 = vadd.f32 %v3882_v25, %v3878_v1  ;;  %v3840_v9 = vsel %vm9696_vm11, %v9579_v47, %v3836_v59 }
 0xa1e   : > { %v6765_v4 = vpop.eup %6764  ;;  %v3880_v46 = vmul.f32 %v3871_v22, %v3765_v24  ;;  %v3850_v18 = vmul.f32 %v9648_v57, %v3849_v38  ;;  %v3845_v13 = vsel %vm3842_vm14, %v3844_v12, %v3840_v9  ;;  %v3829_v22 = vor.u32 1.1754944e-38, %v3828_v21  ;;  %v9808_v9 = vld [vmem:[%s11790_s9 + $0x60] sm:$0xff]  ;;  %v9815_v21 = vld [vmem:[%s11790_s9 + $0x68] sm:$0xff]  ;;  %v9829_v12 = vld [vmem:[%s11790_s9 + $0x78] sm:$0xff] }
 0xa1f   : > { %v3883_v45 = vmul.f32 %v6765_v4, %v9502_v40  ;;  %v3856_v40 = vand.u32 2147483647, %v9590_v53  ;;  %vm3812_vm3 = vcmp.eq.f32.partialorder %v3811_v7, 8.507059e+37 }
 0xa20   : > { %v9669_v17 = vadd.f32 %v3884_v36, %v3880_v46  ;;  %v3851_v28 = vadd.f32 %v9648_v57, %v3850_v18  ;;  %v3814_v36 = vor.u32 1.1754944e-38, %v3813_v32  ;;  %v3830_v25 = vsel %vm3827_vm4, %v3829_v22, %v3825_v27 }
 0xa21   : > { %v9673_v48 = vadd.f32 %v3883_v45, %v3879_v41  ;;  %v6767_v23 = vpop.eup %6766  ;;  %vm3857_vm10 = vcmp.eq.f32.partialorder %v3856_v40, 8.507059e+37  ;;  %v9724_v40 = vld [vmem:[%s11790_s9] sm:$0xff] }
 0xa22   : > { %6770 = vtanh.f32 %v9669_v17  ;;  %v3803_v60 = vmul.f32 %v6767_v23, %v9650_v14  ;;  %v3855_v53 = vsel %vm9682_vm8, %v9648_v57, %v3851_v28  ;;  %v6769_v57 = vpop.eup %6768  ;;  %vm3808_vm15 = vweird.f32 %v6767_v23 }
 0xa23   : > { %6772 = vtanh.f32 %v9673_v48  ;;  %v3860_v10 = vsel %vm3857_vm10, %v3859_v3, %v3855_v53  ;;  %vm3809_vm1 = vmor %vm3807_vm2, %vm3808_vm15  ;;  %v9773_v53 = vld [vmem:[%s11790_s9 + $0x38] sm:$0xff]  ;;  %v9787_v3 = vld [vmem:[%s11790_s9 + $0x48] sm:$0xff] }
 0xa24   : > { %v3804_v39 = vsub.f32 1.0, %v3803_v60  ;;  %6774 = vtanh.f32 %v9678_v43  ;;  %v3897_v24 = vmul.f32 %v6769_v57, %v3860_v10  ;;  %v9759_v60 = vld [vmem:[%s11790_s9 + $0x28] sm:$0xff]  ;;  %v9822_v57 = vld [vmem:[%s11790_s9 + $0x70] sm:$0xff] }
 0xa26   : > { %v3805_v16 = vmul.f32 %v6767_v23, %v3804_v39  ;;  %v9801_v39 = vld [vmem:[%s11790_s9 + $0x58] sm:$0xff] }
 0xa28   : > { %v6771_v47 = vpop.eup %6770  ;;  %v3806_v42 = vadd.f32 %v6767_v23, %v3805_v16 }
 0xa29   : > { %v3896_v44 = vmul.f32 %v6771_v47, %v3845_v13  ;;  %v6773_v38 = vpop.eup %6772 }
 0xa2a   : > { %v3810_v20 = vsel %vm3809_vm1, %v6767_v23, %v3806_v42  ;;  %v6775_v4 = vpop.eup %6774  ;;  %v3895_v0 = vmul.f32 %v6773_v38, %v3830_v25  ;;  %v9731_v23 = vld [vmem:[%s11790_s9 + $0x8] sm:$0xff] }
 0xa2b   : > { %v6588_v50 = vpack.i.bf16 %v3896_v44, %v3897_v24  ;;  %v3815_v1 = vsel %vm3812_vm3, %v3814_v36, %v3810_v20 }
 0xa2c   : > { %v3894_v46 = vmul.f32 %v6775_v4, %v3815_v1 }
 0xa2d   : > { %6589 = vrot.lane.b32.xlu0 %v6588_v50, %s7160_s20 }
 0xa2e   : > { %v6593_v41 = vpack.i.bf16 %v3894_v46, %v3895_v0 }
 0xa30   : > { %6594 = vrot.lane.b32.xlu1 %v6593_v41, %s7160_s20  ;;  %s6146_s20 = sshll.u32 %s12189_s26, 2 }
 0xa9f   : > { %v6590_v14 = vpop.permute.xlu0 %6589 }
 0xaa0   : > { %v6591_v45 = vunpack.i.l.bf16 %v6590_v14  ;;  %v6592_v18 = vunpack.i.h.bf16 %v6590_v14 }
 0xaa2   : > { %3926 = vmatpush.msra.mxu1 %v6591_v45  ;;  %v6595_v26 = vpop.permute.xlu1 %6594 }
 0xaa3   : > { %v6596_v59 = vunpack.i.l.bf16 %v6595_v26  ;;  %v6597_v28 = vunpack.i.h.bf16 %v6595_v26 }
 0xaa4   : > { %3927 = vmatpush.msra.mxu1 %v6592_v18 }
 0xaa6   : > { %3928 = vmatpush.msra.mxu1 %v6596_v59 }
 0xaa8   : > { %3929 = vmatpush.msra.mxu1 %v6597_v28 }
 0xaa9   : > { %6227 = vmatmul.msk.f32.vlgmr.msra.gmra.mxu1 %vm3103_vm12, %v9724_v40 }
 0xab1   : > { %6228 = vmatmul.msk.f32.gmra.mxu1 %vm3103_vm12, %v9731_v23 }
 0xab9   : > { %6229 = vmatmul.msk.f32.gmra.mxu1 %vm3103_vm12, %v9738_v54 }
 0xac1   : > { %6230 = vmatmul.msk.f32.gmra.mxu1 %vm3103_vm12, %v9745_v52 }
 0xac9   : > { %6231 = vmatmul.msk.f32.gmra.mxu1 %vm3103_vm12, %v9752_v62 }
 0xad1   : > { %6232 = vmatmul.msk.f32.gmra.mxu1 %vm3103_vm12, %v9759_v60 }
 0xad9   : > { %6233 = vmatmul.msk.f32.gmra.mxu1 %vm3103_vm12, %v9766_v2 }
 0xae1   : > { %6234 = vmatmul.msk.f32.gmra.mxu1 %vm3103_vm12, %v9773_v53 }
 0xae9   : > { %6235 = vmatmul.msk.f32.gmra.mxu1 %vm3103_vm12, %v9780_v33 }
 0xaf1   : > { %6236 = vmatmul.msk.f32.gmra.mxu1 %vm3103_vm12, %v9787_v3 }
 0xaf9   : > { %6237 = vmatmul.msk.f32.gmra.mxu1 %vm3103_vm12, %v9794_v5 }
 0xb01   : > { %6238 = vmatmul.msk.f32.gmra.mxu1 %vm3103_vm12, %v9801_v39 }
 0xb09   : > { %6239 = vmatmul.msk.f32.gmra.mxu1 %vm3103_vm12, %v9808_v9 }
 0xb11   : > { %6240 = vmatmul.msk.f32.gmra.mxu1 %vm3103_vm12, %v9815_v21 }
 0xb19   : > { %6241 = vmatmul.msk.f32.gmra.mxu1 %vm3103_vm12, %v9822_v57 }
 0xb21   : > { %6242 = vmatmul.msk.f32.gmra.mxu1 %vm3103_vm12, %v9829_v12 }
 0xb26   : > { %v3931_v10 = vpop.f32.mrf.mxu1 }
 0xb27   : > { %3995 = vrot.lane.b32.xlu2 %v3931_v10, %s7171_s23 }
 0xb2e   : > { %v3934_v32 = vpop.f32.mrf.mxu1 }
 0xb2f   : > { %3997 = vrot.lane.b32.xlu0 %v3934_v32, %s7171_s23 }
 0xb36   : > { %v3937_v16 = vpop.f32.mrf.mxu1 }
 0xb37   : > { %3999 = vrot.lane.b32.xlu1 %v3937_v16, %s7171_s23 }
 0xb3e   : > { %v3940_v7 = vpop.f32.mrf.mxu1 }
 0xb3f   : > { %4001 = vrot.lane.b32.xlu2 %v3940_v7, %s7171_s23 }
 0xb46   : > { %v3943_v35 = vpop.f32.mrf.mxu1 }
 0xb4e   : > { %v3946_v47 = vpop.f32.mrf.mxu1 }
 0xb4f   : > { %4005 = vrot.lane.b32.xlu1 %v3946_v47, %s7171_s23 }
 0xb56   : > { %v3949_v13 = vpop.f32.mrf.mxu1 }
 0xb57   : > { %4007 = vrot.lane.b32.xlu2 %v3949_v13, %s7171_s23 }
 0xb5e   : > { %v3952_v27 = vpop.f32.mrf.mxu1 }
 0xb5f   : > { %4009 = vrot.lane.b32.xlu0 %v3952_v27, %s7171_s23 }
 0xb66   : > { %v3955_v44 = vpop.f32.mrf.mxu1 }
 0xb67   : > { %4003 = vrot.lane.b32.xlu0 %v3943_v35, %s7171_s23 }
 0xb6e   : > { %v3958_v24 = vpop.f32.mrf.mxu1 }
 0xb76   : > { %v3961_v42 = vpop.f32.mrf.mxu1 }
 0xb7e   : > { %v3964_v38 = vpop.f32.mrf.mxu1 }
 0xb86   : > { %v3967_v36 = vpop.f32.mrf.mxu1 }
 0xb8e   : > { %v3970_v22 = vpop.f32.mrf.mxu1 }
 0xb8f   : > { %4021 = vrot.lane.b32.xlu0 %v3970_v22, %s7171_s23 }
 0xb96   : > { %v3973_v50 = vpop.f32.mrf.mxu1 }
 0xb97   : > { %4015 = vrot.lane.b32.xlu0 %v3961_v42, %s7171_s23  ;;  %4023 = vrot.lane.b32.xlu2 %v3973_v50, %s7171_s23 }
 0xb9e   : > { %v3976_v20 = vpop.f32.mrf.mxu1 }
 0xb9f   : > { %4301 = vrot.lane.b32.xlu0 %v9656_v34, %s7170_s15  ;;  %4017 = vrot.lane.b32.xlu2 %v3964_v38, %s7171_s23  ;;  %v3996_v34 = vpop.permute.xlu2 %3995 }
 0xba0   : > { %4025 = vrot.lane.b32.xlu1 %v3976_v20, %s7171_s23  ;;  %v4043_v4 = vadd.f32 %v3996_v34, %v11983_v15 }
 0xba1   : > { %v3998_v46 = vpop.permute.xlu0 %3997 }
 0xba2   : > { %v6243_v1 = vmul.f32 -1.442695, %v4043_v4 }
 0xba4   : > { %6776 = vpow2.f32 %v6243_v1 }
 0xba7   : > { %4295 = vrot.lane.b32.xlu0 %v9678_v43, %s7170_s15  ;;  %4011 = vrot.lane.b32.xlu2 %v3955_v44, %s7171_s23  ;;  %v4002_v25 = vpop.permute.xlu2 %4001 }
 0xba8   : > { %4019 = vrot.lane.b32.xlu1 %v3967_v36, %s7171_s23  ;;  %v4046_v43 = vadd.f32 %v4002_v25, %v11985_v30 }
 0xba9   : > { %v4000_v41 = vpop.permute.xlu1 %3999 }
 0xbaa   : > { %v6246_v0 = vmul.f32 -1.442695, %v4046_v43  ;;  %v6777_v18 = vpop.eup %6776  ;;  %v4045_v26 = vadd.f32 %v4000_v41, %v11984_v58 }
 0xbab   : > { %v9862_v59 = vadd.f32 1.0, %v6777_v18 }
 0xbac   : > { %6778 = vpow2.f32 %v6246_v0  ;;  %v6245_v10 = vmul.f32 -1.442695, %v4045_v26 }
 0xbad   : > { %6780 = vrcp.f32 %v9862_v59  ;;  %vm4080_vm6 = vweird.f32 %v9862_v59 }
 0xbaf   : > { %4297 = vrot.lane.b32.xlu2 %v9673_v48, %s7170_s15  ;;  %v4044_v48 = vadd.f32 %v3998_v46, %v8973_v49 }
 0xbb0   : > { %4013 = vrot.lane.b32.xlu1 %v3958_v24, %s7171_s23 }
 0xbb1   : > { %v4008_v14 = vpop.permute.xlu2 %4007  ;;  %v6244_v28 = vmul.f32 -1.442695, %v4044_v48 }
 0xbb2   : > { %v6779_v16 = vpop.eup %6778 }
 0xbb3   : > { %6782 = vpow2.f32 %v6244_v28  ;;  %v9866_v13 = vadd.f32 1.0, %v6779_v16  ;;  %v9870_v42 = vpop.eup %6780 }
 0xbb4   : > { %6784 = vpow2.f32 %v6245_v10  ;;  %v4076_v4 = vmul.f32 %v9870_v42, %v9862_v59  ;;  %vm4081_vm5 = vweird.f32 %v9870_v42 }
 0xbb5   : > { %vm9918_vm7 = vmor %vm4080_vm6, %vm4081_vm5  ;;  %vm4125_vm11 = vweird.f32 %v9866_v13 }
 0xbb8   : > { %4299 = vrot.lane.b32.xlu1 %v9669_v17, %s7170_s15  ;;  %v4049_v17 = vadd.f32 %v4008_v14, %v11989_v31  ;;  %v4077_v14 = vsub.f32 1.0, %v4076_v4 }
 0xbb9   : > { %v6783_v38 = vpop.eup %6782 }
 0xbba   : > { %v6249_v32 = vmul.f32 -1.442695, %v4049_v17  ;;  %v6785_v22 = vpop.eup %6784  ;;  %v9873_v34 = vadd.f32 1.0, %v6783_v38  ;;  %v4078_v10 = vmul.f32 %v9870_v42, %v4077_v14 }
 0xbbb   : > { %v9877_v1 = vadd.f32 1.0, %v6785_v22  ;;  %v4084_v22 = vand.u32 2147483647, %v9862_v59 }
 0xbbc   : > { %6786 = vpow2.f32 %v6249_v32  ;;  %v4079_v38 = vadd.f32 %v9870_v42, %v4078_v10  ;;  %vm4095_vm10 = vweird.f32 %v9873_v34 }
 0xbbd   : > { %6788 = vrcp.f32 %v9866_v13  ;;  %vm4085_vm8 = vcmp.eq.f32.partialorder %v4084_v22, 8.507059e+37  ;;  %vm4110_vm3 = vweird.f32 %v9877_v1 }
 0xbc1   : > { %v4006_v7 = vpop.permute.xlu1 %4005 }
 0xbc2   : > { %v4048_v27 = vadd.f32 %v4006_v7, %v11987_v37  ;;  %v6787_v50 = vpop.eup %6786 }
 0xbc3   : > { %v9879_v25 = vadd.f32 1.0, %v6787_v50  ;;  %v9881_v43 = vpop.eup %6788  ;;  %v4086_v50 = vand.u32 2147483648, %v9862_v59  ;;  %v4083_v59 = vsel %vm9918_vm7, %v9870_v42, %v4079_v38 }
 0xbc4   : > { %v6248_v36 = vmul.f32 -1.442695, %v4048_v27  ;;  %v4121_v18 = vmul.f32 %v9881_v43, %v9866_v13  ;;  %vm4126_vm9 = vweird.f32 %v9881_v43 }
 0xbc5   : > { %vm9948_vm14 = vmor %vm4125_vm11, %vm4126_vm9  ;;  %vm4186_vm5 = vweird.f32 %v9879_v25 }
 0xbd1   : > { %v4010_v45 = vpop.permute.xlu0 %4009 }
 0xbd2   : > { %v4050_v35 = vadd.f32 %v4010_v45, %v11986_v11  ;;  %v4116_v11 = vand.u32 2147483648, %v9877_v1 }
 0xbd4   : > { %v6250_v44 = vmul.f32 -1.442695, %v4050_v35 }
 0xbd6   : > { %6790 = vpow2.f32 %v6250_v44 }
 0xbd7   : > { %6792 = vpow2.f32 %v6248_v36 }
 0xbd9   : > { %v4004_v47 = vpop.permute.xlu0 %4003 }
 0xbda   : > { %v4047_v24 = vadd.f32 %v4004_v47, %v11988_v55  ;;  %v4122_v47 = vsub.f32 1.0, %v4121_v18  ;;  %v4131_v18 = vand.u32 2147483648, %v9866_v13  ;;  %v4114_v55 = vand.u32 2147483647, %v9877_v1 }
 0xbdc   : > { %v6247_v20 = vmul.f32 -1.442695, %v4047_v24  ;;  %v6791_v0 = vpop.eup %6790  ;;  %v4123_v4 = vmul.f32 %v9881_v43, %v4122_v47  ;;  %v4132_v38 = vor.u32 1.1754944e-38, %v4131_v18  ;;  %vm10028_vm9 = vcmp.eq.f32.partialorder %v4114_v55, 8.507059e+37 }
 0xbdd   : > { %v6793_v45 = vpop.eup %6792  ;;  %v9889_v48 = vadd.f32 1.0, %v6791_v0  ;;  %v4101_v0 = vand.u32 2147483648, %v9873_v34 }
 0xbde   : > { %6794 = vpow2.f32 %v6247_v20  ;;  %v9894_v16 = vadd.f32 1.0, %v6793_v45  ;;  %v4129_v45 = vand.u32 2147483647, %v9866_v13  ;;  %v4124_v10 = vadd.f32 %v9881_v43, %v4123_v4 }
 0xbdf   : > { %6796 = vrcp.f32 %v9873_v34  ;;  %v4205_v55 = vand.u32 2147483647, %v9889_v48 }
 0xbe0   : > { %6798 = vrcp.f32 %v9877_v1  ;;  %vm9938_vm13 = vcmp.eq.f32.partialorder %v4129_v45, 8.507059e+37  ;;  %vm4171_vm7 = vweird.f32 %v9894_v16 }
 0xbe1   : > { %6800 = vrcp.f32 %v9879_v25 }
 0xbe2   : > { %6802 = vrcp.f32 %v9889_v48 }
 0xbe4   : > { %v6795_v17 = vpop.eup %6794 }
 0xbe5   : > { %v9892_v32 = vpop.eup %6796  ;;  %v9902_v44 = vadd.f32 1.0, %v6795_v17 }
 0xbe6   : > { %v9896_v7 = vpop.eup %6798  ;;  %v4091_v24 = vmul.f32 %v9892_v32, %v9873_v34  ;;  %vm4096_vm15 = vweird.f32 %v9892_v32 }
 0xbe7   : > { %v9900_v27 = vpop.eup %6800  ;;  %v4106_v36 = vmul.f32 %v9896_v7, %v9877_v1  ;;  %vm4111_vm0 = vweird.f32 %v9896_v7  ;;  %vm9988_vm1 = vmor %vm4095_vm10, %vm4096_vm15  ;;  %vm4201_vm10 = vweird.f32 %v9889_v48 }
 0xbe8   : > { %v4092_v14 = vsub.f32 1.0, %v4091_v24  ;;  %vm4187_vm2 = vweird.f32 %v9900_v27  ;;  %vm10002_vm4 = vmor %vm4110_vm3, %vm4111_vm0  ;;  %vm4206_vm0 = vcmp.eq.f32.partialorder %v4205_v55, 8.507059e+37 }
 0xbe9   : > { %v4107_v17 = vsub.f32 1.0, %v4106_v36  ;;  %vm10017_vm6 = vmor %vm4186_vm5, %vm4187_vm2 }
 0xbea   : > { %v4093_v36 = vmul.f32 %v9892_v32, %v4092_v14 }
 0xbeb   : > { %v4108_v45 = vmul.f32 %v9896_v7, %v4107_v17 }
 0xbec   : > { %v9968_v30 = vadd.f32 %v9892_v32, %v4093_v36 }
 0xbee   : > { %v4098_v1 = vsel %vm9988_vm1, %v9892_v32, %v9968_v30  ;;  %vm4156_vm1 = vweird.f32 %v9902_v44 }
 0xbf1   : > { %v4024_v46 = vpop.permute.xlu2 %4023 }
 0xbf2   : > { %v4057_v41 = vadd.f32 %v4024_v46, %v9104_v29  ;;  %v4182_v46 = vmul.f32 %v9900_v27, %v9879_v25 }
 0xbf4   : > { %v6253_v28 = vmul.f32 -1.442695, %v4057_v41  ;;  %v9922_v41 = vpop.eup %6802 }
 0xbf5   : > { %v4197_v24 = vmul.f32 %v9922_v41, %v9889_v48 }
 0xbf6   : > { %6804 = vpow2.f32 %v6253_v28 }
 0xbf7   : > { %6806 = vrcp.f32 %v9894_v16 }
 0xbf8   : > { %6808 = vrcp.f32 %v9902_v44 }
 0xbfc   : > { %v6805_v28 = vpop.eup %6804 }
 0xbfd   : > { %v9931_v47 = vpop.eup %6806 }
 0xbfe   : > { %v9944_v22 = vpop.eup %6808  ;;  %v4167_v14 = vmul.f32 %v9931_v47, %v9894_v16  ;;  %vm4172_vm15 = vweird.f32 %v9931_v47 }
 0xbff   : > { %v4152_v37 = vmul.f32 %v9944_v22, %v9902_v44  ;;  %vm4157_vm2 = vweird.f32 %v9944_v22  ;;  %vm10080_vm3 = vmor %vm4171_vm7, %vm4172_vm15 }
 0xc01   : > { %v4022_v26 = vpop.permute.xlu0 %4021 }
 0xc02   : > { %v4056_v35 = vadd.f32 %v4022_v26, %v11990_v63  ;;  %v4087_v26 = vor.u32 1.1754944e-38, %v4086_v50  ;;  %v9946_v50 = vadd.f32 1.0, %v6805_v28  ;;  %v4198_v63 = vsub.f32 1.0, %v4197_v24 }
 0xc03   : > { %v4168_v24 = vsub.f32 1.0, %v4167_v14 }
 0xc04   : > { %v6252_v20 = vmul.f32 -1.442695, %v4056_v35  ;;  %v4183_v35 = vsub.f32 1.0, %v4182_v46  ;;  %v9936_v29 = vsel %vm4085_vm8, %v4087_v26, %v4083_v59  ;;  %v4099_v46 = vand.u32 2147483647, %v9873_v34 }
 0xc05   : > { %v4128_v59 = vsel %vm9948_vm14, %v9881_v43, %v4124_v10  ;;  %v9973_v43 = vadd.f32 %v9896_v7, %v4108_v45  ;;  %v4190_v10 = vand.u32 2147483647, %v9879_v25  ;;  %v4175_v45 = vand.u32 2147483647, %v9894_v16 }
 0xc06   : > { %6810 = vpow2.f32 %v6252_v20  ;;  %v4018_v20 = vpop.permute.xlu2 %4017  ;;  %v4184_v28 = vmul.f32 %v9900_v27, %v4183_v35  ;;  %v4192_v35 = vand.u32 2147483648, %v9879_v25  ;;  %v9998_v14 = vsel %vm9938_vm13, %v4132_v38, %v4128_v59 }
 0xc07   : > { %6812 = vrcp.f32 %v9946_v50  ;;  %v4113_v42 = vsel %vm10002_vm4, %v9896_v7, %v9973_v43  ;;  %v4169_v25 = vmul.f32 %v9931_v47, %v4168_v24  ;;  %vm10024_vm8 = vcmp.eq.f32.partialorder %v4099_v46, 8.507059e+37  ;;  %vm10085_vm4 = vmor %vm4156_vm1, %vm4157_vm2 }
 0xc08   : > { %v9978_v13 = vadd.f32 %v9900_v27, %v4184_v28  ;;  %v4153_v28 = vsub.f32 1.0, %v4152_v37  ;;  %v4117_v37 = vor.u32 1.1754944e-38, %v4116_v11  ;;  %vm10036_vm11 = vcmp.eq.f32.partialorder %v4190_v10, 8.507059e+37 }
 0xc09   : > { %v4016_v18 = vpop.permute.xlu0 %4015  ;;  %vm4202_vm13 = vweird.f32 %v9922_v41  ;;  %vm4176_vm5 = vcmp.eq.f32.partialorder %v4175_v45, 8.507059e+37  ;;  %vm4266_vm7 = vweird.f32 %v9946_v50  ;;  %v4270_v45 = vand.u32 2147483647, %v9946_v50 }
 0xc0a   : > { %v4189_v11 = vsel %vm10017_vm6, %v9900_v27, %v9978_v13  ;;  %v4154_v10 = vmul.f32 %v9944_v22, %v4153_v28  ;;  %v4053_v13 = vadd.f32 %v4016_v18, %v12003_v61  ;;  %vm10059_vm14 = vmor %vm4201_vm10, %vm4202_vm13  ;;  %v4170_v18 = vadd.f32 %v9931_v47, %v4169_v25 }
 0xc0b   : > { %v4160_v25 = vand.u32 2147483647, %v9902_v44  ;;  %vm4271_vm1 = vcmp.eq.f32.partialorder %v4270_v45, 8.507059e+37 }
 0xc0c   : > { %v6811_v17 = vpop.eup %6810 }
 0xc0d   : > { %v9981_v36 = vadd.f32 1.0, %v6811_v17  ;;  %v10040_v59 = vpop.eup %6812  ;;  %vm4161_vm6 = vcmp.eq.f32.partialorder %v4160_v25, 8.507059e+37  ;;  %v4272_v25 = vand.u32 2147483648, %v9946_v50 }
 0xc0e   : > { %v4012_v46 = vpop.permute.xlu2 %4011 }
 0xc11   : > { %v4302_v27 = vpop.permute.xlu0 %4301 }
 0xc12   : > { %v4026_v4 = vpop.permute.xlu1 %4025 }
 0xc13   : > { %v4058_v26 = vadd.f32 %v4026_v4, %v9175_v8  ;;  %v4199_v4 = vmul.f32 %v9922_v41, %v4198_v63 }
 0xc15   : > { %v6254_v31 = vmul.f32 -1.442695, %v4058_v26  ;;  %v9992_v26 = vor.u32 1.1754944e-38, %v4101_v0  ;;  %v4200_v17 = vadd.f32 %v9922_v41, %v4199_v4  ;;  %v4262_v4 = vmul.f32 %v10040_v59, %v9946_v50 }
 0xc16   : > { %v4298_v32 = vpop.permute.xlu2 %4297 }
 0xc17   : > { %6814 = vpow2.f32 %v6254_v31  ;;  %v4054_v31 = vadd.f32 %v4018_v20, %v9132_v56  ;;  %v4193_v20 = vor.u32 1.1754944e-38, %v4192_v35  ;;  %v4207_v35 = vand.u32 2147483648, %v9889_v48 }
 0xc18   : > { %6816 = vrcp.f32 %v9981_v36  ;;  %v4204_v48 = vsel %vm10059_vm14, %v9922_v41, %v4200_v17  ;;  %v4263_v41 = vsub.f32 1.0, %v4262_v4  ;;  %v4118_v4 = vsel %vm10028_vm9, %v4117_v37, %v4113_v42 }
 0xc19   : > { %6818 = vtanh.f32 %v4054_v31  ;;  %v4177_v31 = vand.u32 2147483648, %v9894_v16  ;;  %v4208_v38 = vor.u32 1.1754944e-38, %v4207_v35  ;;  %v4194_v16 = vsel %vm10036_vm11, %v4193_v20, %v4189_v11  ;;  %v4296_v11 = vpop.permute.xlu0 %4295 }
 0xc1a   : > { %v4020_v34 = vpop.permute.xlu1 %4019  ;;  %v4264_v30 = vmul.f32 %v10040_v59, %v4263_v41  ;;  %vm4251_vm14 = vweird.f32 %v9981_v36 }
 0xc1b   : > { %v4055_v0 = vadd.f32 %v4020_v34, %v12004_v6  ;;  %v4051_v34 = vadd.f32 %v4012_v46, %v9191_v51  ;;  %v4209_v55 = vsel %vm4206_vm0, %v4208_v38, %v4204_v48 }
 0xc1d   : > { %v6815_v43 = vpop.eup %6814  ;;  %v6251_v24 = vmul.f32 -1.442695, %v4055_v0  ;;  %v4155_v0 = vadd.f32 %v9944_v22, %v4154_v10  ;;  %v4310_v10 = vmul.f32 %v4302_v27, %v4209_v55  ;;  %v4174_v27 = vsel %vm10080_vm3, %v9931_v47, %v4170_v18 }
 0xc1e   : > { %v10051_v63 = vadd.f32 1.0, %v6815_v43  ;;  %v10071_v46 = vpop.eup %6816  ;;  %v4162_v43 = vand.u32 2147483648, %v9902_v44  ;;  %v4103_v44 = vsel %vm10024_vm8, %v9992_v26, %v4098_v1  ;;  %v4178_v1 = vor.u32 1.1754944e-38, %v4177_v31 }
 0xc1f   : > { %6820 = vpow2.f32 %v6251_v24  ;;  %v6819_v28 = vpop.eup %6818  ;;  %v4247_v48 = vmul.f32 %v10071_v46, %v9981_v36  ;;  %v4159_v38 = vsel %vm10085_vm4, %v9944_v22, %v4155_v0  ;;  %vm4267_vm8 = vweird.f32 %v10040_v59 }
 0xc20   : > { %6822 = vrcp.f32 %v10051_v63  ;;  %v4314_v42 = vmul.f32 %v6819_v28, %v9998_v14  ;;  %v4163_v37 = vor.u32 1.1754944e-38, %v4162_v43  ;;  %v4179_v22 = vsel %vm4176_vm5, %v4178_v1, %v4174_v27  ;;  %vm10138_vm13 = vmor %vm4266_vm7, %vm4267_vm8 }
 0xc21   : > { %6824 = vtanh.f32 %v4053_v13  ;;  %v4248_v31 = vsub.f32 1.0, %v4247_v48  ;;  %v4265_v13 = vadd.f32 %v10040_v59, %v4264_v30  ;;  %vm4281_vm11 = vweird.f32 %v10051_v63 }
 0xc22   : > { %v4014_v24 = vpop.permute.xlu1 %4013  ;;  %6826 = vtanh.f32 %v4051_v34  ;;  %v10112_v18 = vadd.f32 %v4314_v42, %v4310_v10  ;;  %v4164_v0 = vsel %vm4161_vm6, %v4163_v37, %v4159_v38  ;;  %v4287_v42 = vand.u32 2147483648, %v10051_v63 }
 0xc23   : > { %v4052_v35 = vadd.f32 %v4014_v24, %v12011_v19  ;;  %v4308_v24 = vmul.f32 %v4298_v32, %v4179_v22  ;;  %v4307_v28 = vmul.f32 %v4296_v11, %v4164_v0  ;;  %v4249_v27 = vmul.f32 %v10071_v46, %v4248_v31 }
 0xc24   : > { %v4269_v32 = vsel %vm10138_vm13, %v10040_v59, %v4265_v13  ;;  %v4288_v22 = vor.u32 1.1754944e-38, %v4287_v42  ;;  %vm4252_vm15 = vweird.f32 %v10071_v46  ;;  %v4257_v31 = vand.u32 2147483648, %v9981_v36 }
 0xc25   : > { %v6821_v34 = vpop.eup %6820  ;;  %6828 = vtanh.f32 %v4052_v35  ;;  %v4250_v59 = vadd.f32 %v10071_v46, %v4249_v27  ;;  %vm10168_vm3 = vmor %vm4251_vm14, %vm4252_vm15 }
 0xc26   : > { %v10104_v26 = vpop.eup %6822  ;;  %v10107_v20 = vadd.f32 1.0, %v6821_v34 }
 0xc27   : > { %v4277_v47 = vmul.f32 %v10104_v26, %v10051_v63  ;;  %v6825_v7 = vpop.eup %6824  ;;  %vm4282_vm9 = vweird.f32 %v10104_v26 }
 0xc28   : > { %6830 = vrcp.f32 %v10107_v20  ;;  %v6827_v14 = vpop.eup %6826  ;;  %v4313_v35 = vmul.f32 %v6825_v7, %v4118_v4  ;;  %vm10150_vm10 = vmor %vm4281_vm11, %vm4282_vm9  ;;  %vm4236_vm4 = vweird.f32 %v10107_v20 }
 0xc29   : > { %v4278_v43 = vsub.f32 1.0, %v4277_v47  ;;  %6832 = vtanh.f32 %v10112_v18  ;;  %v4311_v34 = vmul.f32 %v6827_v14, %v9936_v29  ;;  %v4273_v47 = vor.u32 1.1754944e-38, %v4272_v25 }
 0xc2a   : > { %v4300_v41 = vpop.permute.xlu1 %4299  ;;  %v4242_v14 = vand.u32 2147483648, %v10107_v20 }
 0xc2b   : > { %v6829_v17 = vpop.eup %6828  ;;  %v4279_v55 = vmul.f32 %v10104_v26, %v4278_v43  ;;  %v4309_v10 = vmul.f32 %v4300_v41, %v4194_v16  ;;  %v10130_v4 = vadd.f32 %v4311_v34, %v4307_v28  ;;  %v4274_v25 = vsel %vm4271_vm1, %v4273_v47, %v4269_v32 }
 0xc2c   : > { %v4312_v48 = vmul.f32 %v6829_v17, %v4103_v44  ;;  %v4285_v44 = vand.u32 2147483647, %v10051_v63  ;;  %v4255_v63 = vand.u32 2147483647, %v9981_v36  ;;  %v4243_v45 = vor.u32 1.1754944e-38, %v4242_v14 }
 0xc2d   : > { %v10125_v38 = vadd.f32 %v4313_v35, %v4309_v10  ;;  %v4280_v1 = vadd.f32 %v10104_v26, %v4279_v55  ;;  %v4254_v55 = vsel %vm10168_vm3, %v10071_v46, %v4250_v59  ;;  %v4258_v34 = vor.u32 1.1754944e-38, %v4257_v31 }
 0xc2e   : > { %v6831_v37 = vpop.eup %6830  ;;  %v10132_v16 = vadd.f32 %v4312_v48, %v4308_v24  ;;  %vm4286_vm0 = vcmp.eq.f32.partialorder %v4285_v44, 8.507059e+37  ;;  %vm4256_vm7 = vcmp.eq.f32.partialorder %v4255_v63, 8.507059e+37 }
 0xc2f   : > { %v4232_v30 = vmul.f32 %v6831_v37, %v10107_v20  ;;  %6834 = vtanh.f32 %v10125_v38  ;;  %v4284_v50 = vsel %vm10150_vm10, %v10104_v26, %v4280_v1  ;;  %v6833_v0 = vpop.eup %6832  ;;  %vm4237_vm2 = vweird.f32 %v6831_v37 }
 0xc30   : > { %6836 = vtanh.f32 %v10132_v16  ;;  %v4289_v24 = vsel %vm4286_vm0, %v4288_v22, %v4284_v50  ;;  %v4240_v26 = vand.u32 2147483647, %v10107_v20  ;;  %vm4238_vm5 = vmor %vm4236_vm4, %vm4237_vm2  ;;  %v4259_v42 = vsel %vm4256_vm7, %v4258_v34, %v4254_v55 }
 0xc31   : > { %v4233_v7 = vsub.f32 1.0, %v4232_v30  ;;  %6838 = vtanh.f32 %v10130_v4  ;;  %v4326_v13 = vmul.f32 %v6833_v0, %v4289_v24 }
 0xc32   : > { %vm4241_vm6 = vcmp.eq.f32.partialorder %v4240_v26, 8.507059e+37 }
 0xc33   : > { %v4234_v43 = vmul.f32 %v6831_v37, %v4233_v7 }
 0xc35   : > { %v6835_v41 = vpop.eup %6834  ;;  %v4235_v17 = vadd.f32 %v6831_v37, %v4234_v43 }
 0xc36   : > { %v6837_v35 = vpop.eup %6836  ;;  %v4325_v10 = vmul.f32 %v6835_v41, %v4274_v25 }
 0xc37   : > { %v4239_v36 = vsel %vm4238_vm5, %v6831_v37, %v4235_v17  ;;  %v6839_v48 = vpop.eup %6838  ;;  %v4324_v29 = vmul.f32 %v6837_v35, %v4259_v42  ;;  %v12055_v17 = vld [vmem:[#allocation5_spill] sm:$0xff] }
 0xc38   : > { %v6598_v27 = vpack.i.bf16 %v4325_v10, %v4326_v13  ;;  %v4244_v1 = vsel %vm4241_vm6, %v4243_v45, %v4239_v36  ;;  %v12056_v45 = vld [vmem:[#allocation9_spill] sm:$0xff]  ;;  %v12057_v36 = vld [vmem:[#allocation10_spill] sm:$0xff] }
 0xc39   : > { %v4323_v20 = vmul.f32 %v6839_v48, %v4244_v1 }
 0xc3a   : > { %6599 = vrot.lane.b32.xlu1 %v6598_v27, %s7159_s19 }
 0xc3b   : > { %v6603_v44 = vpack.i.bf16 %v4323_v20, %v4324_v29 }
 0xc3d   : > { %6604 = vrot.lane.b32.xlu2 %v6603_v44, %s7159_s19  ;;  %s7172_s19 = smov 3   ;;  %v12058_v44 = vld [vmem:[#allocation6_spill] sm:$0xff] }
 0xc97   : > { %v6605_v32 = vpop.permute.xlu2 %6604 }
 0xc98   : > { %v6606_v11 = vunpack.i.l.bf16 %v6605_v32  ;;  %v6607_v37 = vunpack.i.h.bf16 %v6605_v32 }
 0xcac   : > { %v6600_v46 = vpop.permute.xlu1 %6599 }
 0xcad   : > { %v6601_v30 = vunpack.i.l.bf16 %v6600_v46  ;;  %v6602_v47 = vunpack.i.h.bf16 %v6600_v46 }
 0xcaf   : > { %4355 = vmatpush.msra.mxu2 %v6601_v30 }
 0xcb1   : > { %4356 = vmatpush.msra.mxu2 %v6602_v47 }
 0xcb3   : > { %4357 = vmatpush.msra.mxu2 %v6606_v11 }
 0xcb5   : > { %4358 = vmatpush.msra.mxu2 %v6607_v37 }
 0xcb6   : > { %6255 = vmatmul.msk.f32.vlgmr.msra.gmra.mxu2 %vm3103_vm12, %v9724_v40 }
 0xcbe   : > { %6256 = vmatmul.msk.f32.gmra.mxu2 %vm3103_vm12, %v9731_v23 }
 0xcc6   : > { %6257 = vmatmul.msk.f32.gmra.mxu2 %vm3103_vm12, %v9738_v54 }
 0xcce   : > { %6258 = vmatmul.msk.f32.gmra.mxu2 %vm3103_vm12, %v9745_v52 }
 0xcd6   : > { %6259 = vmatmul.msk.f32.gmra.mxu2 %vm3103_vm12, %v9752_v62 }
 0xcde   : > { %6260 = vmatmul.msk.f32.gmra.mxu2 %vm3103_vm12, %v9759_v60 }
 0xce6   : > { %6261 = vmatmul.msk.f32.gmra.mxu2 %vm3103_vm12, %v9766_v2 }
 0xcee   : > { %6262 = vmatmul.msk.f32.gmra.mxu2 %vm3103_vm12, %v9773_v53 }
 0xcf6   : > { %6263 = vmatmul.msk.f32.gmra.mxu2 %vm3103_vm12, %v9780_v33 }
 0xcfe   : > { %6264 = vmatmul.msk.f32.gmra.mxu2 %vm3103_vm12, %v9787_v3 }
 0xd06   : > { %6265 = vmatmul.msk.f32.gmra.mxu2 %vm3103_vm12, %v9794_v5 }
 0xd0e   : > { %6266 = vmatmul.msk.f32.gmra.mxu2 %vm3103_vm12, %v9801_v39 }
 0xd16   : > { %6267 = vmatmul.msk.f32.gmra.mxu2 %vm3103_vm12, %v9808_v9 }
 0xd1e   : > { %6268 = vmatmul.msk.f32.gmra.mxu2 %vm3103_vm12, %v9815_v21 }
 0xd26   : > { %6269 = vmatmul.msk.f32.gmra.mxu2 %vm3103_vm12, %v9822_v57 }
 0xd2e   : > { %6270 = vmatmul.msk.f32.gmra.mxu2 %vm3103_vm12, %v9829_v12 }
 0xd39   : > { %v4360_v40 = vpop.f32.mrf.mxu2 }
 0xd3a   : > { %4424 = vrot.lane.b32.xlu0 %v4360_v40, %s7172_s19 }
 0xd41   : > { %v4363_v23 = vpop.f32.mrf.mxu2 }
 0xd42   : > { %4426 = vrot.lane.b32.xlu1 %v4363_v23, %s7172_s19 }
 0xd49   : > { %v4366_v54 = vpop.f32.mrf.mxu2 }
 0xd4a   : > { %4428 = vrot.lane.b32.xlu2 %v4366_v54, %s7172_s19 }
 0xd51   : > { %v4369_v52 = vpop.f32.mrf.mxu2 }
 0xd52   : > { %4430 = vrot.lane.b32.xlu0 %v4369_v52, %s7172_s19 }
 0xd59   : > { %v4372_v62 = vpop.f32.mrf.mxu2 }
 0xd61   : > { %v4375_v60 = vpop.f32.mrf.mxu2 }
 0xd62   : > { %4434 = vrot.lane.b32.xlu2 %v4375_v60, %s7172_s19 }
 0xd69   : > { %v4378_v2 = vpop.f32.mrf.mxu2 }
 0xd6a   : > { %4436 = vrot.lane.b32.xlu0 %v4378_v2, %s7172_s19 }
 0xd71   : > { %v4381_v53 = vpop.f32.mrf.mxu2 }
 0xd72   : > { %4438 = vrot.lane.b32.xlu1 %v4381_v53, %s7172_s19 }
 0xd79   : > { %v4384_v33 = vpop.f32.mrf.mxu2 }
 0xd7a   : > { %4432 = vrot.lane.b32.xlu1 %v4372_v62, %s7172_s19 }
 0xd81   : > { %v4387_v3 = vpop.f32.mrf.mxu2 }
 0xd89   : > { %v4390_v5 = vpop.f32.mrf.mxu2 }
 0xd91   : > { %v4393_v39 = vpop.f32.mrf.mxu2 }
 0xd99   : > { %v4396_v9 = vpop.f32.mrf.mxu2 }
 0xda1   : > { %v4399_v21 = vpop.f32.mrf.mxu2 }
 0xda2   : > { %4450 = vrot.lane.b32.xlu1 %v4399_v21, %s7172_s19 }
 0xda9   : > { %v4402_v57 = vpop.f32.mrf.mxu2 }
 0xdaa   : > { %4444 = vrot.lane.b32.xlu1 %v4390_v5, %s7172_s19  ;;  %4452 = vrot.lane.b32.xlu0 %v4402_v57, %s7172_s19 }
 0xdac   : > { %v4425_v50 = vpop.permute.xlu0 %4424 }
 0xdad   : > { %v4472_v7 = vadd.f32 %v4425_v50, %v11983_v15 }
 0xdaf   : > { %v6271_v0 = vmul.f32 -1.442695, %v4472_v7 }
 0xdb1   : > { %v4405_v12 = vpop.f32.mrf.mxu2 }
 0xdb2   : > { %4730 = vrot.lane.b32.xlu1 %v10112_v18, %s7170_s15  ;;  %4446 = vrot.lane.b32.xlu0 %v4393_v39, %s7172_s19  ;;  %v4429_v18 = vpop.permute.xlu2 %4428 }
 0xdb3   : > { %4454 = vrot.lane.b32.xlu2 %v4405_v12, %s7172_s19  ;;  %v4474_v63 = vadd.f32 %v4429_v18, %v11984_v58 }
 0xdb4   : > { %v4427_v22 = vpop.permute.xlu1 %4426 }
 0xdb5   : > { %v4473_v59 = vadd.f32 %v4427_v22, %v8973_v49 }
 0xdb7   : > { %v6272_v31 = vmul.f32 -1.442695, %v4473_v59 }
 0xdba   : > { %4724 = vrot.lane.b32.xlu1 %v10130_v4, %s7170_s15  ;;  %4440 = vrot.lane.b32.xlu0 %v4384_v33, %s7172_s19  ;;  %v6273_v4 = vmul.f32 -1.442695, %v4474_v63 }
 0xdbb   : > { %4448 = vrot.lane.b32.xlu2 %v4396_v9, %s7172_s19 }
 0xdbc   : > { %6840 = vpow2.f32 %v6273_v4  ;;  %v4435_v24 = vpop.permute.xlu2 %4434 }
 0xdbd   : > { %6842 = vpow2.f32 %v6271_v0  ;;  %v4477_v55 = vadd.f32 %v4435_v24, %v12055_v17 }
 0xdbe   : > { %6844 = vpow2.f32 %v6272_v31 }
 0xdbf   : > { %v6276_v27 = vmul.f32 -1.442695, %v4477_v55 }
 0xdc2   : > { %4726 = vrot.lane.b32.xlu0 %v10132_v16, %s7170_s15  ;;  %v6841_v43 = vpop.eup %6840 }
 0xdc3   : > { %4442 = vrot.lane.b32.xlu2 %v4387_v3, %s7172_s19  ;;  %v6843_v28 = vpop.eup %6842  ;;  %v10238_v25 = vadd.f32 1.0, %v6841_v43  ;;  %s7173_s19 = smov 4  }
 0xdc4   : > { %v4431_v14 = vpop.permute.xlu0 %4430  ;;  %v6845_v10 = vpop.eup %6844  ;;  %v10241_v13 = vadd.f32 1.0, %v6843_v28 }
 0xdc5   : > { %6846 = vrcp.f32 %v10238_v25  ;;  %v10246_v42 = vadd.f32 1.0, %v6845_v10  ;;  %v4543_v18 = vand.u32 2147483647, %v10238_v25  ;;  %v4545_v50 = vand.u32 2147483648, %v10238_v25 }
 0xdc6   : > { %vm4539_vm9 = vweird.f32 %v10238_v25  ;;  %vm4509_vm14 = vweird.f32 %v10241_v13 }
 0xdc7   : > { %vm10292_vm11 = vcmp.eq.f32.partialorder %v4543_v18, 8.507059e+37  ;;  %vm4524_vm1 = vweird.f32 %v10246_v42 }
 0xdcb   : > { %4728 = vrot.lane.b32.xlu2 %v10125_v38, %s7170_s15  ;;  %v12054_v38 = vld [vmem:[#allocation3_spill] sm:$0xff]  ;;  %v10251_v30 = vpop.eup %6846 }
 0xdcc   : > { %v4475_v26 = vadd.f32 %v4431_v14, %v12054_v38  ;;  %v4535_v37 = vmul.f32 %v10251_v30, %v10238_v25  ;;  %vm4540_vm8 = vweird.f32 %v10251_v30  ;;  %v4513_v14 = vand.u32 2147483647, %v10241_v13 }
 0xdcd   : > { %vm10299_vm10 = vmor %vm4539_vm9, %vm4540_vm8 }
 0xdce   : > { %v6274_v35 = vmul.f32 -1.442695, %v4475_v26  ;;  %v4536_v53 = vsub.f32 1.0, %v4535_v37  ;;  %vm10311_vm15 = vcmp.eq.f32.partialorder %v4513_v14, 8.507059e+37 }
 0xdd0   : > { %6848 = vpow2.f32 %v6274_v35  ;;  %v4537_v57 = vmul.f32 %v10251_v30, %v4536_v53  ;;  %v12063_v35 = vld [vmem:[#allocation8_spill] sm:$0xff] }
 0xdd1   : > { %6850 = vrcp.f32 %v10241_v13 }
 0xdd2   : > { %6852 = vpow2.f32 %v6276_v27  ;;  %v4538_v0 = vadd.f32 %v10251_v30, %v4537_v57 }
 0xdd3   : > { %6854 = vrcp.f32 %v10246_v42 }
 0xdd6   : > { %v6849_v32 = vpop.eup %6848 }
 0xdd7   : > { %v10253_v11 = vpop.eup %6850  ;;  %v10257_v23 = vadd.f32 1.0, %v6849_v32  ;;  %v4528_v32 = vand.u32 2147483647, %v10246_v42 }
 0xdd8   : > { %v6853_v40 = vpop.eup %6852  ;;  %v4505_v52 = vmul.f32 %v10253_v11, %v10241_v13  ;;  %vm4510_vm13 = vweird.f32 %v10253_v11 }
 0xdd9   : > { %v10259_v54 = vpop.eup %6854  ;;  %v10263_v2 = vadd.f32 1.0, %v6853_v40  ;;  %vm10321_vm0 = vmor %vm4509_vm14, %vm4510_vm13  ;;  %vm10359_vm4 = vcmp.eq.f32.partialorder %v4528_v32, 8.507059e+37  ;;  %vm4554_vm8 = vweird.f32 %v10257_v23 }
 0xdda   : > { %v4506_v33 = vsub.f32 1.0, %v4505_v52  ;;  %v4520_v5 = vmul.f32 %v10259_v54, %v10246_v42  ;;  %vm4525_vm2 = vweird.f32 %v10259_v54 }
 0xddb   : > { %vm10355_vm3 = vmor %vm4524_vm1, %vm4525_vm2  ;;  %vm4600_vm5 = vweird.f32 %v10263_v2  ;;  %v4604_v43 = vand.u32 2147483647, %v10263_v2 }
 0xddc   : > { %v4437_v41 = vpop.permute.xlu0 %4436  ;;  %v4507_v63 = vmul.f32 %v10253_v11, %v4506_v33  ;;  %v4521_v59 = vsub.f32 1.0, %v4520_v5  ;;  %v4606_v33 = vand.u32 2147483648, %v10263_v2 }
 0xddd   : > { %v4478_v34 = vadd.f32 %v4437_v41, %v12056_v45  ;;  %v4546_v41 = vor.u32 1.1754944e-38, %v4545_v50 }
 0xdde   : > { %v4508_v24 = vadd.f32 %v10253_v11, %v4507_v63  ;;  %v4522_v25 = vmul.f32 %v10259_v54, %v4521_v59 }
 0xddf   : > { %v6277_v20 = vmul.f32 -1.442695, %v4478_v34 }
 0xde0   : > { %v4523_v53 = vadd.f32 %v10259_v54, %v4522_v25  ;;  %v4558_v25 = vand.u32 2147483647, %v10257_v23 }
 0xde1   : > { %6856 = vpow2.f32 %v6277_v20 }
 0xde4   : > { %v4439_v16 = vpop.permute.xlu1 %4438 }
 0xde5   : > { %v4479_v48 = vadd.f32 %v4439_v16, %v12057_v36 }
 0xde7   : > { %v6278_v29 = vmul.f32 -1.442695, %v4479_v48  ;;  %v6857_v62 = vpop.eup %6856  ;;  %v4542_v48 = vsel %vm10299_vm10, %v10251_v30, %v4538_v0  ;;  %v4530_v30 = vand.u32 2147483648, %v10246_v42 }
 0xde8   : > { %v10266_v3 = vadd.f32 1.0, %v6857_v62 }
 0xde9   : > { %6858 = vpow2.f32 %v6278_v29  ;;  %v4531_v59 = vor.u32 1.1754944e-38, %v4530_v30 }
 0xdec   : > { %v4433_v1 = vpop.permute.xlu1 %4432 }
 0xded   : > { %v4476_v46 = vadd.f32 %v4433_v1, %v12058_v44  ;;  %v4515_v1 = vand.u32 2147483648, %v10241_v13  ;;  %v4512_v13 = vsel %vm10321_vm0, %v10253_v11, %v4508_v24  ;;  %v10368_v24 = vor.u32 1.1754944e-38, %v4606_v33 }
 0xdee   : > { %vm10434_vm0 = vcmp.eq.f32.partialorder %v4604_v43, 8.507059e+37 }
 0xdef   : > { %v6275_v47 = vmul.f32 -1.442695, %v4476_v46  ;;  %v6859_v60 = vpop.eup %6858  ;;  %v4516_v11 = vor.u32 1.1754944e-38, %v4515_v1 }
 0xdf0   : > { %v10270_v39 = vadd.f32 1.0, %v6859_v60 }
 0xdf1   : > { %6860 = vpow2.f32 %v6275_v47  ;;  %v10351_v50 = vsel %vm10311_vm15, %v4516_v11, %v4512_v13  ;;  %v4621_v11 = vand.u32 2147483648, %v10266_v3  ;;  %vm4615_vm15 = vweird.f32 %v10266_v3 }
 0xdf2   : > { %6862 = vrcp.f32 %v10257_v23  ;;  %vm4630_vm2 = vweird.f32 %v10270_v39 }
 0xdf3   : > { %6864 = vrcp.f32 %v10263_v2 }
 0xdf4   : > { %6866 = vrcp.f32 %v10266_v3 }
 0xdf5   : > { %6868 = vrcp.f32 %v10270_v39 }
 0xdf7   : > { %v6861_v9 = vpop.eup %6860 }
 0xdf8   : > { %v10279_v7 = vpop.eup %6862  ;;  %v10282_v22 = vadd.f32 1.0, %v6861_v9  ;;  %v10341_v9 = vsel %vm10292_vm11, %v4546_v41, %v4542_v48  ;;  %vm10396_vm11 = vcmp.eq.f32.partialorder %v4558_v25, 8.507059e+37 }
 0xdf9   : > { %v10288_v31 = vpop.eup %6864  ;;  %v4550_v16 = vmul.f32 %v10279_v7, %v10257_v23  ;;  %vm4555_vm6 = vweird.f32 %v10279_v7 }
 0xdfa   : > { %v10305_v55 = vpop.eup %6866  ;;  %v4596_v47 = vmul.f32 %v10288_v31, %v10263_v2  ;;  %vm4601_vm7 = vweird.f32 %v10288_v31  ;;  %vm10392_vm9 = vmor %vm4554_vm8, %vm4555_vm6 }
 0xdfb   : > { %v10316_v20 = vpop.eup %6868  ;;  %v4551_v37 = vsub.f32 1.0, %v4550_v16  ;;  %v4611_v60 = vmul.f32 %v10305_v55, %v10266_v3  ;;  %v4527_v16 = vsel %vm10355_vm3, %v10259_v54, %v4523_v53  ;;  %v4560_v54 = vand.u32 2147483648, %v10257_v23  ;;  %vm10423_vm14 = vmor %vm4600_vm5, %vm4601_vm7 }
 0xdfc   : > { %v4626_v5 = vmul.f32 %v10316_v20, %v10270_v39  ;;  %vm4631_vm13 = vweird.f32 %v10316_v20  ;;  %vm4616_vm10 = vweird.f32 %v10305_v55  ;;  %vm4585_vm7 = vweird.f32 %v10282_v22 }
 0xdfd   : > { %v4552_v18 = vmul.f32 %v10279_v7, %v4551_v37  ;;  %v4612_v14 = vsub.f32 1.0, %v4611_v60  ;;  %v10387_v37 = vsel %vm10359_vm4, %v4531_v59, %v4527_v16  ;;  %v4561_v23 = vor.u32 1.1754944e-38, %v4560_v54  ;;  %vm10445_vm1 = vmor %vm4615_vm15, %vm4616_vm10 }
 0xdfe   : > { %v4627_v41 = vsub.f32 1.0, %v4626_v5  ;;  %v4619_v5 = vand.u32 2147483647, %v10266_v3  ;;  %v4636_v16 = vand.u32 2147483648, %v10270_v39  ;;  %vm10453_vm3 = vmor %vm4630_vm2, %vm4631_vm13  ;;  %v4622_v54 = vor.u32 1.1754944e-38, %v4621_v11 }
 0xdff   : > { %v4553_v46 = vadd.f32 %v10279_v7, %v4552_v18 }
 0xe00   : > { %v4628_v13 = vmul.f32 %v10316_v20, %v4627_v41  ;;  %vm4620_vm4 = vcmp.eq.f32.partialorder %v4619_v5, 8.507059e+37 }
 0xe01   : > { %v4557_v33 = vsel %vm10392_vm9, %v10279_v7, %v4553_v46 }
 0xe02   : > { %v4629_v59 = vadd.f32 %v10316_v20, %v4628_v13 }
 0xe0d   : > { %v4455_v21 = vpop.permute.xlu2 %4454 }
 0xe0e   : > { %v4487_v12 = vadd.f32 %v4455_v21, %v9175_v8 }
 0xe10   : > { %v6282_v4 = vmul.f32 -1.442695, %v4487_v12  ;;  %v4597_v12 = vsub.f32 1.0, %v4596_v47  ;;  %v4613_v47 = vmul.f32 %v10305_v55, %v4612_v14  ;;  %v4634_v14 = vand.u32 2147483647, %v10270_v39 }
 0xe12   : > { %6870 = vpow2.f32 %v6282_v4  ;;  %v4598_v48 = vmul.f32 %v10288_v31, %v4597_v12  ;;  %v4614_v63 = vadd.f32 %v10305_v55, %v4613_v47  ;;  %vm4635_vm6 = vcmp.eq.f32.partialorder %v4634_v14, 8.507059e+37 }
 0xe13   : > { %6872 = vrcp.f32 %v10282_v22  ;;  %v4591_v47 = vand.u32 2147483648, %v10282_v22 }
 0xe14   : > { %v4451_v26 = vpop.permute.xlu1 %4450  ;;  %v10401_v53 = vadd.f32 %v10288_v31, %v4598_v48  ;;  %v4618_v39 = vsel %vm10445_vm1, %v10305_v55, %v4614_v63  ;;  %v4637_v55 = vor.u32 1.1754944e-38, %v4636_v16 }
 0xe15   : > { %v4485_v10 = vadd.f32 %v4451_v26, %v12063_v35  ;;  %v4449_v34 = vpop.permute.xlu2 %4448  ;;  %v12072_v26 = vld [vmem:[#allocation11_spill] sm:$0xff] }
 0xe16   : > { %v4484_v29 = vadd.f32 %v4449_v34, %v12004_v6 }
 0xe17   : > { %v6280_v40 = vmul.f32 -1.442695, %v4485_v10 }
 0xe18   : > { %v6871_v52 = vpop.eup %6870  ;;  %v6279_v62 = vmul.f32 -1.442695, %v4484_v29 }
 0xe19   : > { %6874 = vpow2.f32 %v6280_v40  ;;  %v10343_v21 = vpop.eup %6872  ;;  %v10345_v57 = vadd.f32 1.0, %v6871_v52 }
 0xe1a   : > { %6876 = vpow2.f32 %v6279_v62  ;;  %v4581_v10 = vmul.f32 %v10343_v21, %v10282_v22  ;;  %vm4586_vm5 = vweird.f32 %v10343_v21 }
 0xe1b   : > { %6878 = vrcp.f32 %v10345_v57  ;;  %vm10476_vm8 = vmor %vm4585_vm7, %vm4586_vm5 }
 0xe1c   : > { %v4445_v0 = vpop.permute.xlu1 %4444  ;;  %v4453_v42 = vpop.permute.xlu0 %4452  ;;  %v4582_v52 = vsub.f32 1.0, %v4581_v10  ;;  %v4562_v10 = vsel %vm10396_vm11, %v4561_v23, %v4557_v33  ;;  %vm4710_vm11 = vweird.f32 %v10345_v57 }
 0xe1d   : > { %v4486_v28 = vadd.f32 %v4453_v42, %v12072_v26  ;;  %v4482_v34 = vadd.f32 %v4445_v0, %v12003_v61  ;;  %v4443_v29 = vpop.permute.xlu2 %4442 }
 0xe1e   : > { %v4481_v4 = vadd.f32 %v4443_v29, %v12011_v19  ;;  %v4583_v0 = vmul.f32 %v10343_v21, %v4582_v52  ;;  %v4623_v52 = vsel %vm4620_vm4, %v4622_v54, %v4618_v39 }
 0xe1f   : > { %v6875_v27 = vpop.eup %6874  ;;  %v6281_v1 = vmul.f32 -1.442695, %v4486_v28  ;;  %v4603_v28 = vsel %vm10423_vm14, %v10288_v31, %v10401_v53 }
 0xe20   : > { %v6877_v32 = vpop.eup %6876  ;;  %v10381_v30 = vadd.f32 1.0, %v6875_v27  ;;  %v4633_v27 = vsel %vm10453_vm3, %v10316_v20, %v4629_v59  ;;  %v4584_v46 = vadd.f32 %v10343_v21, %v4583_v0  ;;  %v4589_v20 = vand.u32 2147483647, %v10282_v22 }
 0xe21   : > { %v10389_v40 = vadd.f32 1.0, %v6877_v32  ;;  %6880 = vpow2.f32 %v6281_v1  ;;  %v10409_v12 = vpop.eup %6878  ;;  %v4638_v60 = vsel %vm4635_vm6, %v4637_v55, %v4633_v27  ;;  %v4716_v0 = vand.u32 2147483648, %v10345_v57 }
 0xe22   : > { %6882 = vtanh.f32 %v4482_v34  ;;  %v4706_v25 = vmul.f32 %v10409_v12, %v10345_v57  ;;  %v4588_v22 = vsel %vm10476_vm8, %v10343_v21, %v4584_v46  ;;  %vm4590_vm9 = vcmp.eq.f32.partialorder %v4589_v20, 8.507059e+37 }
 0xe23   : > { %6884 = vrcp.f32 %v10381_v30  ;;  %v4608_v16 = vsel %vm10434_vm0, %v10368_v24, %v4603_v28  ;;  %vm4680_vm10 = vweird.f32 %v10381_v30  ;;  %vm4711_vm14 = vweird.f32 %v10409_v12 }
 0xe24   : > { %6886 = vrcp.f32 %v10389_v40  ;;  %v4447_v18 = vpop.permute.xlu0 %4446  ;;  %v4731_v1 = vpop.permute.xlu1 %4730  ;;  %v4707_v13 = vsub.f32 1.0, %v4706_v25  ;;  %v4717_v24 = vor.u32 1.1754944e-38, %v4716_v0  ;;  %vm10518_vm0 = vmor %vm4710_vm11, %vm4711_vm14  ;;  %vm4665_vm6 = vweird.f32 %v10389_v40 }
 0xe25   : > { %v4483_v7 = vadd.f32 %v4447_v18, %v9132_v56  ;;  %v4729_v29 = vpop.permute.xlu2 %4728  ;;  %v4739_v59 = vmul.f32 %v4731_v1, %v4638_v60  ;;  %v4671_v1 = vand.u32 2147483648, %v10389_v40 }
 0xe26   : > { %v4738_v53 = vmul.f32 %v4729_v29, %v4623_v52  ;;  %v4708_v14 = vmul.f32 %v10409_v12, %v4707_v13 }
 0xe27   : > { %v6881_v2 = vpop.eup %6880  ;;  %6888 = vtanh.f32 %v4483_v7  ;;  %v4592_v7 = vor.u32 1.1754944e-38, %v4591_v47 }
 0xe28   : > { %v6883_v31 = vpop.eup %6882  ;;  %v10449_v43 = vadd.f32 1.0, %v6881_v2  ;;  %6890 = vtanh.f32 %v4481_v4  ;;  %v4714_v4 = vand.u32 2147483647, %v10345_v57  ;;  %v4709_v27 = vadd.f32 %v10409_v12, %v4708_v14 }
 0xe29   : > { %v10460_v48 = vpop.eup %6884  ;;  %v4742_v23 = vmul.f32 %v6883_v31, %v10341_v9  ;;  %v4593_v31 = vsel %vm4590_vm9, %v4592_v7, %v4588_v22 }
 0xe2a   : > { %v10467_v32 = vpop.eup %6886  ;;  %6892 = vrcp.f32 %v10449_v43  ;;  %v4676_v62 = vmul.f32 %v10460_v48, %v10381_v30  ;;  %vm10498_vm13 = vcmp.eq.f32.partialorder %v4714_v4, 8.507059e+37  ;;  %v4699_v55 = vand.u32 2147483647, %v10449_v43 }
 0xe2b   : > { %v4661_v18 = vmul.f32 %v10467_v32, %v10389_v40  ;;  %v10494_v3 = vadd.f32 %v4742_v23, %v4738_v53  ;;  %v4701_v47 = vand.u32 2147483648, %v10449_v43  ;;  %vm4681_vm2 = vweird.f32 %v10460_v48  ;;  %v10623_v23 = vld [vmem:[%s11790_s9 + $0x50] sm:$0xff] }
 0xe2c   : > { %v4441_v5 = vpop.permute.xlu0 %4440  ;;  %v4677_v21 = vsub.f32 1.0, %v4676_v62  ;;  %v4725_v41 = vpop.permute.xlu1 %4724  ;;  %v4686_v53 = vand.u32 2147483648, %v10381_v30  ;;  %vm4695_vm1 = vweird.f32 %v10449_v43  ;;  %vm4700_vm4 = vcmp.eq.f32.partialorder %v4699_v55, 8.507059e+37  ;;  %vm4682_vm7 = vmor %vm4680_vm10, %vm4681_vm2  ;;  %v10567_v55 = vld [vmem:[%s11790_s9 + $0x10] sm:$0xff] }
 0xe2d   : > { %v6889_v11 = vpop.eup %6888  ;;  %v4480_v63 = vadd.f32 %v4441_v5, %v9191_v51  ;;  %v4702_v57 = vor.u32 1.1754944e-38, %v4701_v47  ;;  %vm4666_vm5 = vweird.f32 %v10467_v32  ;;  %v10574_v47 = vld [vmem:[%s11790_s9 + $0x18] sm:$0xff] }
 0xe2e   : > { %v4743_v9 = vmul.f32 %v6889_v11, %v4562_v10  ;;  %v6891_v42 = vpop.eup %6890  ;;  %v4662_v10 = vsub.f32 1.0, %v4661_v18  ;;  %v4678_v29 = vmul.f32 %v10460_v48, %v4677_v21  ;;  %vm4667_vm8 = vmor %vm4665_vm6, %vm4666_vm5  ;;  %v4687_v21 = vor.u32 1.1754944e-38, %v4686_v53  ;;  %v10630_v53 = vld [vmem:[%s11790_s9 + $0x58] sm:$0xff] }
 0xe2f   : > { %6894 = vtanh.f32 %v4480_v63  ;;  %v4741_v54 = vmul.f32 %v6891_v42, %v10387_v37  ;;  %v4736_v37 = vmul.f32 %v4725_v41, %v4593_v31  ;;  %v4669_v42 = vand.u32 2147483647, %v10389_v40 }
 0xe30   : > { %v6893_v2 = vpop.eup %6892  ;;  %v10492_v25 = vadd.f32 %v4743_v9, %v4739_v59  ;;  %v4663_v52 = vmul.f32 %v10467_v32, %v4662_v10  ;;  %v4679_v22 = vadd.f32 %v10460_v48, %v4678_v29  ;;  %v4684_v9 = vand.u32 2147483647, %v10381_v30  ;;  %v10553_v29 = vld [vmem:[%s11790_s9] sm:$0xff] }
 0xe31   : > { %v4691_v34 = vmul.f32 %v6893_v2, %v10449_v43  ;;  %vm4696_vm15 = vweird.f32 %v6893_v2  ;;  %v4672_v31 = vor.u32 1.1754944e-38, %v4671_v1  ;;  %vm4670_vm11 = vcmp.eq.f32.partialorder %v4669_v42, 8.507059e+37 }
 0xe32   : > { %6896 = vtanh.f32 %v10492_v25  ;;  %vm4697_vm3 = vmor %vm4695_vm1, %vm4696_vm15  ;;  %v4664_v43 = vadd.f32 %v10467_v32, %v4663_v52  ;;  %v4683_v14 = vsel %vm4682_vm7, %v10460_v48, %v4679_v22  ;;  %vm4685_vm9 = vcmp.eq.f32.partialorder %v4684_v9, 8.507059e+37  ;;  %v10588_v52 = vld [vmem:[%s11790_s9 + $0x28] sm:$0xff] }
 0xe33   : > { %v4692_v28 = vsub.f32 1.0, %v4691_v34  ;;  %6898 = vtanh.f32 %v10494_v3  ;;  %v4688_v34 = vsel %vm4685_vm9, %v4687_v21, %v4683_v14 }
 0xe34   : > { %v4727_v46 = vpop.permute.xlu0 %4726 }
 0xe35   : > { %v6895_v13 = vpop.eup %6894  ;;  %v4693_v20 = vmul.f32 %v6893_v2, %v4692_v28  ;;  %v4737_v62 = vmul.f32 %v4727_v46, %v4608_v16  ;;  %v10560_v46 = vld [vmem:[%s11790_s9 + $0x8] sm:$0xff] }
 0xe36   : > { %v4740_v60 = vmul.f32 %v6895_v13, %v10351_v50  ;;  %v4713_v50 = vsel %vm10518_vm0, %v10409_v12, %v4709_v27  ;;  %v10581_v13 = vld [vmem:[%s11790_s9 + $0x20] sm:$0xff] }
 0xe37   : > { %v10525_v33 = vadd.f32 %v4741_v54, %v4737_v62  ;;  %v4694_v5 = vadd.f32 %v6893_v2, %v4693_v20  ;;  %v4718_v12 = vsel %vm10498_vm13, %v4717_v24, %v4713_v50  ;;  %v10595_v20 = vld [vmem:[%s11790_s9 + $0x30] sm:$0xff]  ;;  %v10602_v62 = vld [vmem:[%s11790_s9 + $0x38] sm:$0xff]  ;;  %v10644_v50 = vld [vmem:[%s11790_s9 + $0x68] sm:$0xff] }
 0xe38   : > { %v6897_v11 = vpop.eup %6896  ;;  %v10530_v18 = vadd.f32 %v4740_v60, %v4736_v37  ;;  %v10609_v37 = vld [vmem:[%s11790_s9 + $0x40] sm:$0xff]  ;;  %v10616_v60 = vld [vmem:[%s11790_s9 + $0x48] sm:$0xff] }
 0xe39   : > { %6900 = vtanh.f32 %v10525_v33  ;;  %v4698_v63 = vsel %vm4697_vm3, %v6893_v2, %v4694_v5  ;;  %v6899_v4 = vpop.eup %6898  ;;  %v4755_v0 = vmul.f32 %v6897_v11, %v4718_v12  ;;  %v4668_v2 = vsel %vm4667_vm8, %v10467_v32, %v4664_v43  ;;  %v10637_v5 = vld [vmem:[%s11790_s9 + $0x60] sm:$0xff]  ;;  %v10651_v11 = vld [vmem:[%s11790_s9 + $0x70] sm:$0xff] }
 0xe3a   : > { %6902 = vtanh.f32 %v10530_v18  ;;  %v4703_v59 = vsel %vm4700_vm4, %v4702_v57, %v4698_v63  ;;  %v4673_v39 = vsel %vm4670_vm11, %v4672_v31, %v4668_v2  ;;  %v10658_v57 = vld [vmem:[%s11790_s9 + $0x78] sm:$0xff] }
 0xe3b   : > { %v4754_v7 = vmul.f32 %v6899_v4, %v4703_v59 }
 0xe3d   : > { %v6608_v16 = vpack.i.bf16 %v4754_v7, %v4755_v0 }
 0xe3f   : > { %v6901_v10 = vpop.eup %6900  ;;  %6609 = vrot.lane.b32.xlu2 %v6608_v16, %s7158_s18 }
 0xe40   : > { %v6903_v40 = vpop.eup %6902  ;;  %v4753_v24 = vmul.f32 %v6901_v10, %v4688_v34 }
 0xe41   : > { %v4752_v28 = vmul.f32 %v6903_v40, %v4673_v39 }
 0xe43   : > { %v6613_v30 = vpack.i.bf16 %v4752_v28, %v4753_v24 }
 0xe45   : > { %6614 = vrot.lane.b32.xlu0 %v6613_v30, %s7158_s18 }
 0xe99   : > { %v6610_v41 = vpop.permute.xlu2 %6609 }
 0xe9a   : > { %v6611_v48 = vunpack.i.l.bf16 %v6610_v41  ;;  %v6612_v54 = vunpack.i.h.bf16 %v6610_v41 }
 0xe9c   : > { %4784 = vmatpush.msrb.mxu3 %v6611_v48 }
 0xe9e   : > { %4785 = vmatpush.msrb.mxu3 %v6612_v54 }
 0xeb7   : > { %v6615_v32 = vpop.permute.xlu0 %6614 }
 0xeb8   : > { %v6616_v27 = vunpack.i.l.bf16 %v6615_v32  ;;  %v6617_v1 = vunpack.i.h.bf16 %v6615_v32 }
 0xeba   : > { %4786 = vmatpush.msrb.mxu3 %v6616_v27 }
 0xebc   : > { %4787 = vmatpush.msrb.mxu3 %v6617_v1 }
 0xebd   : > { %6283 = vmatmul.msk.f32.vlgmr.msrb.gmra.mxu3 %vm3103_vm12, %v10553_v29 }
 0xec5   : > { %6284 = vmatmul.msk.f32.gmra.mxu3 %vm3103_vm12, %v10560_v46 }
 0xecd   : > { %6285 = vmatmul.msk.f32.gmra.mxu3 %vm3103_vm12, %v10567_v55 }
 0xed5   : > { %6286 = vmatmul.msk.f32.gmra.mxu3 %vm3103_vm12, %v10574_v47 }
 0xedd   : > { %6287 = vmatmul.msk.f32.gmra.mxu3 %vm3103_vm12, %v10581_v13 }
 0xee5   : > { %6288 = vmatmul.msk.f32.gmra.mxu3 %vm3103_vm12, %v10588_v52 }
 0xeed   : > { %6289 = vmatmul.msk.f32.gmra.mxu3 %vm3103_vm12, %v10595_v20 }
 0xef5   : > { %6290 = vmatmul.msk.f32.gmra.mxu3 %vm3103_vm12, %v10602_v62 }
 0xefd   : > { %6291 = vmatmul.msk.f32.gmra.mxu3 %vm3103_vm12, %v10609_v37 }
 0xf05   : > { %6292 = vmatmul.msk.f32.gmra.mxu3 %vm3103_vm12, %v10616_v60 }
 0xf0d   : > { %6293 = vmatmul.msk.f32.gmra.mxu3 %vm3103_vm12, %v10623_v23 }
 0xf15   : > { %6294 = vmatmul.msk.f32.gmra.mxu3 %vm3103_vm12, %v10630_v53 }
 0xf1d   : > { %6295 = vmatmul.msk.f32.gmra.mxu3 %vm3103_vm12, %v10637_v5 }
 0xf25   : > { %6296 = vmatmul.msk.f32.gmra.mxu3 %vm3103_vm12, %v10644_v50 }
 0xf2d   : > { %6297 = vmatmul.msk.f32.gmra.mxu3 %vm3103_vm12, %v10651_v11 }
 0xf35   : > { %6298 = vmatmul.msk.f32.gmra.mxu3 %vm3103_vm12, %v10658_v57 }
 0xf40   : > { %v4789_v22 = vpop.f32.mrf.mxu3 }
 0xf41   : > { %4853 = vrot.lane.b32.xlu1 %v4789_v22, %s7173_s19 }
 0xf48   : > { %v4792_v63 = vpop.f32.mrf.mxu3 }
 0xf49   : > { %4855 = vrot.lane.b32.xlu2 %v4792_v63, %s7173_s19 }
 0xf50   : > { %v4795_v43 = vpop.f32.mrf.mxu3 }
 0xf51   : > { %4857 = vrot.lane.b32.xlu0 %v4795_v43, %s7173_s19 }
 0xf58   : > { %v4798_v4 = vpop.f32.mrf.mxu3 }
 0xf59   : > { %4859 = vrot.lane.b32.xlu1 %v4798_v4, %s7173_s19 }
 0xf60   : > { %v4801_v59 = vpop.f32.mrf.mxu3 }
 0xf68   : > { %v4804_v12 = vpop.f32.mrf.mxu3 }
 0xf69   : > { %4863 = vrot.lane.b32.xlu0 %v4804_v12, %s7173_s19 }
 0xf70   : > { %v4807_v9 = vpop.f32.mrf.mxu3 }
 0xf71   : > { %4865 = vrot.lane.b32.xlu1 %v4807_v9, %s7173_s19 }
 0xf78   : > { %v4810_v7 = vpop.f32.mrf.mxu3 }
 0xf79   : > { %4867 = vrot.lane.b32.xlu2 %v4810_v7, %s7173_s19 }
 0xf80   : > { %v4813_v0 = vpop.f32.mrf.mxu3 }
 0xf81   : > { %4861 = vrot.lane.b32.xlu2 %v4801_v59, %s7173_s19 }
 0xf88   : > { %v4816_v42 = vpop.f32.mrf.mxu3 }
 0xf90   : > { %v4819_v14 = vpop.f32.mrf.mxu3 }
 0xf98   : > { %v4822_v16 = vpop.f32.mrf.mxu3 }
 0xfa0   : > { %v4825_v2 = vpop.f32.mrf.mxu3 }
 0xfa8   : > { %v4828_v21 = vpop.f32.mrf.mxu3 }
 0xfa9   : > { %4879 = vrot.lane.b32.xlu2 %v4828_v21, %s7173_s19 }
 0xfb0   : > { %v4831_v31 = vpop.f32.mrf.mxu3 }
 0xfb1   : > { %4873 = vrot.lane.b32.xlu2 %v4819_v14, %s7173_s19  ;;  %4881 = vrot.lane.b32.xlu1 %v4831_v31, %s7173_s19 }
 0xfb3   : > { %v4854_v34 = vpop.permute.xlu1 %4853 }
 0xfb4   : > { %v4901_v39 = vadd.f32 %v4854_v34, %v11983_v15 }
 0xfb8   : > { %v4834_v10 = vpop.f32.mrf.mxu3 }
 0xfb9   : > { %5159 = vrot.lane.b32.xlu2 %v10492_v25, %s7170_s15  ;;  %4875 = vrot.lane.b32.xlu1 %v4822_v16, %s7173_s19  ;;  %v4856_v25 = vpop.permute.xlu2 %4855 }
 0xfba   : > { %4883 = vrot.lane.b32.xlu0 %v4834_v10, %s7173_s19  ;;  %v4902_v40 = vadd.f32 %v4856_v25, %v8973_v49 }
 0xfbc   : > { %v6300_v24 = vmul.f32 -1.442695, %v4902_v40 }
 0xfbe   : > { %6904 = vpow2.f32 %v6300_v24 }
 0xfc1   : > { %5153 = vrot.lane.b32.xlu2 %v10530_v18, %s7170_s15  ;;  %4869 = vrot.lane.b32.xlu1 %v4813_v0, %s7173_s19  ;;  %v6299_v18 = vmul.f32 -1.442695, %v4901_v39 }
 0xfc2   : > { %4877 = vrot.lane.b32.xlu0 %v4825_v2, %s7173_s19 }
 0xfc3   : > { %v4858_v28 = vpop.permute.xlu0 %4857  ;;  %6906 = vpow2.f32 %v6299_v18 }
 0xfc4   : > { %v4903_v30 = vadd.f32 %v4858_v28, %v11984_v58  ;;  %v6905_v32 = vpop.eup %6904 }
 0xfc5   : > { %v10690_v1 = vadd.f32 1.0, %v6905_v32 }
 0xfc6   : > { %v6301_v48 = vmul.f32 -1.442695, %v4903_v30 }
 0xfc7   : > { %vm4953_vm13 = vweird.f32 %v10690_v1 }
 0xfc8   : > { %6908 = vpow2.f32 %v6301_v48 }
 0xfc9   : > { %5155 = vrot.lane.b32.xlu1 %v10525_v33, %s7170_s15 }
 0xfca   : > { %4871 = vrot.lane.b32.xlu0 %v4816_v42, %s7173_s19 }
 0xfcb   : > { %v4860_v41 = vpop.permute.xlu1 %4859 }
 0xfcc   : > { %v4904_v54 = vadd.f32 %v4860_v41, %v12054_v38 }
 0xfce   : > { %v6302_v27 = vmul.f32 -1.442695, %v4904_v54 }
 0xfd0   : > { %6910 = vpow2.f32 %v6302_v27 }
 0xfd1   : > { %6912 = vrcp.f32 %v10690_v1 }
 0xfd2   : > { %5157 = vrot.lane.b32.xlu0 %v10494_v3, %s7170_s15  ;;  %v6907_v3 = vpop.eup %6906 }
 0xfd3   : > { %v4868_v33 = vpop.permute.xlu2 %4867  ;;  %v10692_v22 = vadd.f32 1.0, %v6907_v3  ;;  %v6909_v12 = vpop.eup %6908 }
 0xfd4   : > { %v4908_v63 = vadd.f32 %v4868_v33, %v12057_v36  ;;  %v10700_v14 = vadd.f32 1.0, %v6909_v12 }
 0xfd5   : > { %6914 = vrcp.f32 %v10692_v22  ;;  %vm4938_vm15 = vweird.f32 %v10692_v22 }
 0xfd6   : > { %v6306_v9 = vmul.f32 -1.442695, %v4908_v63  ;;  %v6911_v16 = vpop.eup %6910  ;;  %vm4968_vm4 = vweird.f32 %v10700_v14 }
 0xfd7   : > { %v10702_v21 = vpop.eup %6912  ;;  %v10707_v34 = vadd.f32 1.0, %v6911_v16 }
 0xfd8   : > { %6916 = vpow2.f32 %v6306_v9  ;;  %v4949_v40 = vmul.f32 %v10702_v21, %v10690_v1  ;;  %vm4954_vm10 = vweird.f32 %v10702_v21 }
 0xfd9   : > { %6918 = vrcp.f32 %v10700_v14  ;;  %vm10753_vm0 = vmor %vm4953_vm13, %vm4954_vm10  ;;  %vm4983_vm9 = vweird.f32 %v10707_v34 }
 0xfda   : > { %v4950_v28 = vsub.f32 1.0, %v4949_v40 }
 0xfdb   : > { %v4864_v43 = vpop.permute.xlu0 %4863  ;;  %v4862_v4 = vpop.permute.xlu2 %4861 }
 0xfdc   : > { %v4906_v7 = vadd.f32 %v4864_v43, %v12055_v17  ;;  %v4905_v0 = vadd.f32 %v4862_v4, %v12058_v44  ;;  %v10704_v10 = vpop.eup %6914  ;;  %v4951_v63 = vmul.f32 %v10702_v21, %v4950_v28  ;;  %v4942_v28 = vand.u32 2147483647, %v10692_v22 }
 0xfdd   : > { %v4934_v39 = vmul.f32 %v10704_v10, %v10692_v22  ;;  %vm4939_vm14 = vweird.f32 %v10704_v10 }
 0xfde   : > { %v6304_v2 = vmul.f32 -1.442695, %v4906_v7  ;;  %v6303_v31 = vmul.f32 -1.442695, %v4905_v0  ;;  %v6917_v18 = vpop.eup %6916  ;;  %vm10758_vm2 = vmor %vm4938_vm15, %vm4939_vm14  ;;  %vm4943_vm1 = vcmp.eq.f32.partialorder %v4942_v28, 8.507059e+37 }
 0xfdf   : > { %v10715_v41 = vpop.eup %6918  ;;  %v4935_v33 = vsub.f32 1.0, %v4934_v39  ;;  %v10717_v48 = vadd.f32 1.0, %v6917_v18  ;;  %v4944_v39 = vand.u32 2147483648, %v10692_v22 }
 0xfe0   : > { %6920 = vpow2.f32 %v6304_v2  ;;  %v4964_v4 = vmul.f32 %v10715_v41, %v10700_v14  ;;  %v4952_v2 = vadd.f32 %v10702_v21, %v4951_v63  ;;  %vm4969_vm5 = vweird.f32 %v10715_v41 }
 0xfe1   : > { %6922 = vpow2.f32 %v6303_v31  ;;  %v4936_v12 = vmul.f32 %v10704_v10, %v4935_v33  ;;  %v4957_v33 = vand.u32 2147483647, %v10690_v1  ;;  %vm10806_vm8 = vmor %vm4968_vm4, %vm4969_vm5  ;;  %vm5059_vm10 = vweird.f32 %v10717_v48 }
 0xfe3   : > { %v4866_v59 = vpop.permute.xlu1 %4865  ;;  %v4937_v31 = vadd.f32 %v10704_v10, %v4936_v12  ;;  %vm4958_vm3 = vcmp.eq.f32.partialorder %v4957_v33, 8.507059e+37 }
 0xfe4   : > { %v4907_v42 = vadd.f32 %v4866_v59, %v12056_v45 }
 0xfe5   : > { %v4941_v22 = vsel %vm10758_vm2, %v10704_v10, %v4937_v31 }
 0xfe6   : > { %v6305_v25 = vmul.f32 -1.442695, %v4907_v42  ;;  %v6921_v54 = vpop.eup %6920 }
 0xfe7   : > { %v6923_v32 = vpop.eup %6922  ;;  %v10725_v59 = vadd.f32 1.0, %v6921_v54 }
 0xfe8   : > { %6924 = vpow2.f32 %v6305_v25  ;;  %v10728_v9 = vadd.f32 1.0, %v6923_v32  ;;  %v4965_v25 = vsub.f32 1.0, %v4964_v4  ;;  %v4945_v4 = vor.u32 1.1754944e-38, %v4944_v39 }
 0xfe9   : > { %6926 = vrcp.f32 %v10707_v34  ;;  %v4987_v32 = vand.u32 2147483647, %v10707_v34 }
 0xfea   : > { %6928 = vrcp.f32 %v10717_v48 }
 0xfeb   : > { %vm10829_vm13 = vcmp.eq.f32.partialorder %v4987_v32, 8.507059e+37 }
 0xfee   : > { %v6925_v3 = vpop.eup %6924 }
 0xfef   : > { %v10720_v43 = vpop.eup %6926  ;;  %v10730_v7 = vadd.f32 1.0, %v6925_v3  ;;  %v4956_v3 = vsel %vm10753_vm0, %v10702_v21, %v4952_v2  ;;  %v10777_v2 = vsel %vm4943_vm1, %v4945_v4, %v4941_v22  ;;  %vm5029_vm0 = vweird.f32 %v10725_v59 }
 0xff0   : > { %v4979_v42 = vmul.f32 %v10720_v43, %v10707_v34  ;;  %v10744_v18 = vpop.eup %6928  ;;  %vm4984_vm7 = vweird.f32 %v10720_v43  ;;  %vm5014_vm1 = vweird.f32 %v10728_v9 }
 0xff1   : > { %vm10822_vm11 = vmor %vm4983_vm9, %vm4984_vm7  ;;  %vm5060_vm14 = vweird.f32 %v10744_v18  ;;  %vm5044_vm9 = vweird.f32 %v10730_v7 }
 0xff2   : > { %v4980_v54 = vsub.f32 1.0, %v4979_v42  ;;  %vm10862_vm2 = vmor %vm5059_vm10, %vm5060_vm14 }
 0xff4   : > { %v4981_v31 = vmul.f32 %v10720_v43, %v4980_v54 }
0x1003   : > { %v4880_v24 = vpop.permute.xlu2 %4879 }
0x1004   : > { %v4914_v30 = vadd.f32 %v4880_v24, %v12063_v35  ;;  %v4959_v24 = vand.u32 2147483648, %v10690_v1  ;;  %v5055_v1 = vmul.f32 %v10744_v18, %v10717_v48 }
0x1006   : > { %v6308_v27 = vmul.f32 -1.442695, %v4914_v30  ;;  %v4960_v12 = vor.u32 1.1754944e-38, %v4959_v24  ;;  %v5056_v54 = vsub.f32 1.0, %v5055_v1  ;;  %v4989_v1 = vand.u32 2147483648, %v10707_v34 }
0x1008   : > { %6930 = vpow2.f32 %v6308_v27  ;;  %v4966_v27 = vmul.f32 %v10715_v41, %v4965_v25  ;;  %v10779_v25 = vsel %vm4958_vm3, %v4960_v12, %v4956_v3  ;;  %v4974_v3 = vand.u32 2147483648, %v10700_v14 }
0x1009   : > { %6932 = vrcp.f32 %v10725_v59 }
0x100a   : > { %6934 = vrcp.f32 %v10728_v9  ;;  %v4967_v28 = vadd.f32 %v10715_v41, %v4966_v27  ;;  %v4975_v34 = vor.u32 1.1754944e-38, %v4974_v3 }
0x100b   : > { %6936 = vrcp.f32 %v10730_v7  ;;  %v4874_v33 = vpop.permute.xlu2 %4873 }
0x100e   : > { %v6931_v63 = vpop.eup %6930 }
0x100f   : > { %v10772_v42 = vpop.eup %6932  ;;  %v10784_v39 = vadd.f32 1.0, %v6931_v63 }
0x1010   : > { %v10774_v10 = vpop.eup %6934  ;;  %v5025_v27 = vmul.f32 %v10772_v42, %v10725_v59  ;;  %vm5030_vm4 = vweird.f32 %v10772_v42 }
0x1011   : > { %v5010_v63 = vmul.f32 %v10774_v10, %v10728_v9  ;;  %vm5015_vm3 = vweird.f32 %v10774_v10  ;;  %vm5109_vm14 = vweird.f32 %v10784_v39 }
0x1012   : > { %v5026_v17 = vsub.f32 1.0, %v5025_v27  ;;  %vm10898_vm7 = vmor %vm5014_vm1, %vm5015_vm3 }
0x1023   : > { %v4882_v0 = vpop.permute.xlu1 %4881 }
0x1024   : > { %v4915_v16 = vadd.f32 %v4882_v0, %v12072_v26  ;;  %v4972_v0 = vand.u32 2147483647, %v10700_v14  ;;  %v5065_v14 = vand.u32 2147483648, %v10717_v48  ;;  %v5011_v26 = vsub.f32 1.0, %v5010_v63 }
0x1025   : > { %v4911_v63 = vadd.f32 %v4874_v33, %v12003_v61 }
0x1026   : > { %v6309_v40 = vmul.f32 -1.442695, %v4915_v16  ;;  %vm10790_vm6 = vcmp.eq.f32.partialorder %v4972_v0, 8.507059e+37  ;;  %v5066_v32 = vor.u32 1.1754944e-38, %v5065_v14  ;;  %v5012_v27 = vmul.f32 %v10774_v10, %v5011_v26 }
0x1027   : > { %v5035_v26 = vand.u32 2147483648, %v10725_v59 }
0x1028   : > { %6938 = vpow2.f32 %v6309_v40  ;;  %v10782_v40 = vpop.eup %6936 }
0x1029   : > { %6940 = vrcp.f32 %v10784_v39  ;;  %vm5045_vm5 = vweird.f32 %v10782_v40 }
0x102b   : > { %v4876_v16 = vpop.permute.xlu1 %4875 }
0x102c   : > { %v4884_v21 = vpop.permute.xlu0 %4883  ;;  %v4912_v35 = vadd.f32 %v4876_v16, %v9132_v56 }
0x102d   : > { %v4916_v24 = vadd.f32 %v4884_v21, %v9175_v8  ;;  %v4982_v21 = vadd.f32 %v10720_v43, %v4981_v31  ;;  %v4971_v31 = vsel %vm10806_vm8, %v10715_v41, %v4967_v28  ;;  %v5057_v8 = vmul.f32 %v10744_v18, %v5056_v54 }
0x102e   : > { %v6939_v30 = vpop.eup %6938  ;;  %v4990_v54 = vor.u32 1.1754944e-38, %v4989_v1  ;;  %v10838_v3 = vsel %vm10790_vm6, %v4975_v34, %v4971_v31  ;;  %v5027_v1 = vmul.f32 %v10772_v42, %v5026_v17  ;;  %vm10888_vm6 = vmor %vm5029_vm0, %vm5030_vm4 }
0x102f   : > { %v10797_v4 = vadd.f32 1.0, %v6939_v30  ;;  %v6310_v12 = vmul.f32 -1.442695, %v4916_v24  ;;  %v5040_v30 = vmul.f32 %v10782_v40, %v10730_v7  ;;  %v5063_v24 = vand.u32 2147483647, %v10717_v48  ;;  %v10846_v33 = vpop.eup %6940 }
0x1030   : > { %v4986_v41 = vsel %vm10822_vm11, %v10720_v43, %v4982_v21  ;;  %v5058_v44 = vadd.f32 %v10744_v18, %v5057_v8  ;;  %v5160_v8 = vpop.permute.xlu2 %5159  ;;  %v5013_v48 = vadd.f32 %v10774_v10, %v5012_v27  ;;  %vm10915_vm11 = vmor %vm5044_vm9, %vm5045_vm5  ;;  %vm5110_vm5 = vweird.f32 %v10846_v33 }
0x1031   : > { %6942 = vpow2.f32 %v6310_v12  ;;  %v5041_v12 = vsub.f32 1.0, %v5040_v30  ;;  %vm10842_vm15 = vcmp.eq.f32.partialorder %v5063_v24, 8.507059e+37  ;;  %v4991_v21 = vsel %vm10829_vm13, %v4990_v54, %v4986_v41  ;;  %vm10988_vm9 = vmor %vm5109_vm14, %vm5110_vm5 }
0x1032   : > { %6944 = vrcp.f32 %v10797_v4  ;;  %v5033_v24 = vand.u32 2147483647, %v10725_v59  ;;  %v5062_v34 = vsel %vm10862_vm2, %v10744_v18, %v5058_v44  ;;  %v5028_v41 = vadd.f32 %v10772_v42, %v5027_v1 }
0x1033   : > { %v4870_v0 = vpop.permute.xlu1 %4869  ;;  %6946 = vtanh.f32 %v4912_v35  ;;  %v5042_v35 = vmul.f32 %v10782_v40, %v5041_v12  ;;  %v5105_v54 = vmul.f32 %v10846_v33, %v10784_v39  ;;  %v5036_v59 = vor.u32 1.1754944e-38, %v5035_v26 }
0x1034   : > { %v4878_v16 = vpop.permute.xlu0 %4877  ;;  %v4909_v31 = vadd.f32 %v4870_v0, %v9191_v51  ;;  %6948 = vtanh.f32 %v4911_v63  ;;  %v5018_v63 = vand.u32 2147483647, %v10728_v9  ;;  %v5020_v0 = vand.u32 2147483648, %v10728_v9 }
0x1035   : > { %v4913_v56 = vadd.f32 %v4878_v16, %v12004_v6  ;;  %v5043_v12 = vadd.f32 %v10782_v40, %v5042_v35  ;;  %vm10902_vm8 = vcmp.eq.f32.partialorder %v5033_v24, 8.507059e+37  ;;  %v5032_v9 = vsel %vm10888_vm6, %v10772_v42, %v5028_v41 }
0x1036   : > { %vm5019_vm13 = vcmp.eq.f32.partialorder %v5018_v63, 8.507059e+37  ;;  %vm5124_vm3 = vweird.f32 %v10797_v4 }
0x1037   : > { %v6307_v22 = vmul.f32 -1.442695, %v4913_v56  ;;  %v6943_v30 = vpop.eup %6942  ;;  %v5067_v56 = vsel %vm10842_vm15, %v5066_v32, %v5062_v34  ;;  %v5047_v32 = vsel %vm10915_vm11, %v10782_v40, %v5043_v12  ;;  %v5021_v34 = vor.u32 1.1754944e-38, %v5020_v0 }
0x1038   : > { %v10856_v14 = vpop.eup %6944  ;;  %v10867_v17 = vadd.f32 1.0, %v6943_v30  ;;  %v5168_v42 = vmul.f32 %v5160_v8, %v5067_v56 }
0x1039   : > { %6950 = vpow2.f32 %v6307_v22  ;;  %v6947_v28 = vpop.eup %6946  ;;  %v5120_v18 = vmul.f32 %v10856_v14, %v10797_v4  ;;  %v5050_v22 = vand.u32 2147483648, %v10730_v7  ;;  %vm5125_vm15 = vweird.f32 %v10856_v14 }
0x103a   : > { %6952 = vrcp.f32 %v10867_v17  ;;  %v6949_v35 = vpop.eup %6948  ;;  %vm5139_vm2 = vweird.f32 %v10867_v17  ;;  %vm10973_vm4 = vmor %vm5124_vm3, %vm5125_vm15 }
0x103b   : > { %6954 = vtanh.f32 %v4909_v31  ;;  %v5048_v31 = vand.u32 2147483647, %v10730_v7  ;;  %v5017_v7 = vsel %vm10898_vm7, %v10774_v10, %v5013_v48  ;;  %v5121_v43 = vsub.f32 1.0, %v5120_v18  ;;  %v5156_v40 = vpop.permute.xlu1 %5155 }
0x103c   : > { %v4872_v16 = vpop.permute.xlu0 %4871  ;;  %v5037_v10 = vsel %vm10902_vm8, %v5036_v59, %v5032_v9  ;;  %v5022_v48 = vsel %vm5019_vm13, %v5021_v34, %v5017_v7  ;;  %v5143_v7 = vand.u32 2147483647, %v10867_v17  ;;  %v5113_v34 = vand.u32 2147483647, %v10784_v39 }
0x103d   : > { %v4910_v27 = vadd.f32 %v4872_v16, %v12011_v19  ;;  %v5172_v16 = vmul.f32 %v6947_v28, %v4991_v21  ;;  %v5106_v19 = vsub.f32 1.0, %v5105_v54  ;;  %v5051_v28 = vor.u32 1.1754944e-38, %v5050_v22 }
0x103e   : > { %vm5049_vm10 = vcmp.eq.f32.partialorder %v5048_v31, 8.507059e+37  ;;  %v5122_v0 = vmul.f32 %v10856_v14, %v5121_v43  ;;  %v5171_v22 = vmul.f32 %v6949_v35, %v10838_v3  ;;  %v5166_v9 = vmul.f32 %v5156_v40, %v5037_v10 }
0x103f   : > { %6956 = vtanh.f32 %v4910_v27  ;;  %v6951_v26 = vpop.eup %6950  ;;  %v5154_v27 = vpop.permute.xlu2 %5153  ;;  %v10933_v18 = vadd.f32 %v5172_v16, %v5168_v42  ;;  %v5052_v8 = vsel %vm5049_vm10, %v5051_v28, %v5047_v32  ;;  %v5107_v12 = vmul.f32 %v10846_v33, %v5106_v19 }
0x1040   : > { %v10925_v21 = vpop.eup %6952  ;;  %v10927_v41 = vadd.f32 1.0, %v6951_v26  ;;  %v5165_v30 = vmul.f32 %v5154_v27, %v5022_v48  ;;  %v5145_v35 = vand.u32 2147483648, %v10867_v17  ;;  %v5130_v32 = vand.u32 2147483648, %v10797_v4 }
0x1041   : > { %v6955_v44 = vpop.eup %6954  ;;  %v5135_v54 = vmul.f32 %v10925_v21, %v10867_v17  ;;  %vm5140_vm0 = vweird.f32 %v10925_v21  ;;  %v5108_v10 = vadd.f32 %v10846_v33, %v5107_v12  ;;  %vm5144_vm6 = vcmp.eq.f32.partialorder %v5143_v7, 8.507059e+37 }
0x1042   : > { %6958 = vrcp.f32 %v10927_v41  ;;  %v5169_v59 = vmul.f32 %v6955_v44, %v10777_v2  ;;  %v5123_v2 = vadd.f32 %v10856_v14, %v5122_v0  ;;  %vm10959_vm1 = vmor %vm5139_vm2, %vm5140_vm0  ;;  %v5128_v44 = vand.u32 2147483647, %v10797_v4 }
0x1043   : > { %v5136_v63 = vsub.f32 1.0, %v5135_v54  ;;  %6960 = vtanh.f32 %v10933_v18  ;;  %v5146_v54 = vor.u32 1.1754944e-38, %v5145_v35  ;;  %v5098_v12 = vand.u32 2147483647, %v10927_v41 }
0x1044   : > { %v5158_v1 = vpop.permute.xlu0 %5157  ;;  %v5127_v4 = vsel %vm10973_vm4, %v10856_v14, %v5123_v2  ;;  %vm5129_vm7 = vcmp.eq.f32.partialorder %v5128_v44, 8.507059e+37  ;;  %vm5094_vm11 = vweird.f32 %v10927_v41  ;;  %vm5114_vm14 = vcmp.eq.f32.partialorder %v5113_v34, 8.507059e+37 }
0x1045   : > { %v6957_v56 = vpop.eup %6956  ;;  %v5167_v31 = vmul.f32 %v5158_v1, %v5052_v8  ;;  %v5137_v16 = vmul.f32 %v10925_v21, %v5136_v63  ;;  %v5131_v8 = vor.u32 1.1754944e-38, %v5130_v32  ;;  %v5100_v63 = vand.u32 2147483648, %v10927_v41 }
0x1046   : > { %v5170_v19 = vmul.f32 %v6957_v56, %v10779_v25  ;;  %v10955_v25 = vadd.f32 %v5169_v59, %v5165_v30  ;;  %v5112_v30 = vsel %vm10988_vm9, %v10846_v33, %v5108_v10  ;;  %vm5099_vm10 = vcmp.eq.f32.partialorder %v5098_v12, 8.507059e+37 }
0x1047   : > { %v10947_v3 = vadd.f32 %v5171_v22, %v5167_v31  ;;  %v5138_v26 = vadd.f32 %v10925_v21, %v5137_v16  ;;  %v5132_v56 = vsel %vm5129_vm7, %v5131_v8, %v5127_v4 }
0x1048   : > { %v10950_v24 = vadd.f32 %v5170_v19, %v5166_v9  ;;  %v6959_v43 = vpop.eup %6958  ;;  %v5101_v19 = vor.u32 1.1754944e-38, %v5100_v63 }
0x1049   : > { %6962 = vtanh.f32 %v10947_v3  ;;  %v5090_v28 = vmul.f32 %v6959_v43, %v10927_v41  ;;  %v5142_v17 = vsel %vm10959_vm1, %v10925_v21, %v5138_v26  ;;  %v5115_v21 = vand.u32 2147483648, %v10784_v39  ;;  %v6961_v40 = vpop.eup %6960 }
0x104a   : > { %6964 = vtanh.f32 %v10950_v24  ;;  %v5147_v0 = vsel %vm5144_vm6, %v5146_v54, %v5142_v17  ;;  %vm5095_vm8 = vweird.f32 %v6959_v43 }
0x104b   : > { %v5091_v48 = vsub.f32 1.0, %v5090_v28  ;;  %6966 = vtanh.f32 %v10955_v25  ;;  %v5184_v31 = vmul.f32 %v6961_v40, %v5147_v0  ;;  %vm5096_vm13 = vmor %vm5094_vm11, %vm5095_vm8  ;;  %v5116_v35 = vor.u32 1.1754944e-38, %v5115_v21 }
0x104d   : > { %v5092_v22 = vmul.f32 %v6959_v43, %v5091_v48  ;;  %v5117_v32 = vsel %vm5114_vm14, %v5116_v35, %v5112_v30 }
0x104f   : > { %v6963_v14 = vpop.eup %6962  ;;  %v5093_v16 = vadd.f32 %v6959_v43, %v5092_v22 }
0x1050   : > { %v5183_v59 = vmul.f32 %v6963_v14, %v5132_v56  ;;  %v6965_v9 = vpop.eup %6964 }
0x1051   : > { %v5097_v2 = vsel %vm5096_vm13, %v6959_v43, %v5093_v16  ;;  %v6967_v26 = vpop.eup %6966  ;;  %v5182_v33 = vmul.f32 %v6965_v9, %v5117_v32 }
0x1052   : > { %v6618_v39 = vpack.i.bf16 %v5183_v59, %v5184_v31  ;;  %v5102_v7 = vsel %vm5099_vm10, %v5101_v19, %v5097_v2  ;;  %v12121_v19 = vld [vmem:[#allocation5_spill] sm:$0xff]  ;;  %v12122_v2 = vld [vmem:[#allocation6_spill] sm:$0xff] }
0x1053   : > { %v5181_v42 = vmul.f32 %v6967_v26, %v5102_v7 }
0x1054   : > { %6619 = vrot.lane.b32.xlu0 %v6618_v39, %s7157_s17 }
0x1055   : > { %v6623_v28 = vpack.i.bf16 %v5181_v42, %v5182_v33 }
0x1057   : > { %6624 = vrot.lane.b32.xlu1 %v6623_v28, %s7157_s17  ;;  %s7174_s17 = smov 5  }
0x10c6   : > { %v6620_v41 = vpop.permute.xlu0 %6619 }
0x10c7   : > { %v6621_v44 = vunpack.i.l.bf16 %v6620_v41  ;;  %v6622_v17 = vunpack.i.h.bf16 %v6620_v41 }
0x10c9   : > { %5213 = vmatpush.msra.mxu0 %v6621_v44  ;;  %v6625_v27 = vpop.permute.xlu1 %6624 }
0x10ca   : > { %v6626_v54 = vunpack.i.l.bf16 %v6625_v27  ;;  %v6627_v43 = vunpack.i.h.bf16 %v6625_v27 }
0x10cb   : > { %5214 = vmatpush.msra.mxu0 %v6622_v17 }
0x10cd   : > { %5215 = vmatpush.msra.mxu0 %v6626_v54 }
0x10cf   : > { %5216 = vmatpush.msra.mxu0 %v6627_v43 }
0x10d0   : > { %6311 = vmatmul.msk.f32.vlgmr.msra.gmra.mxu0 %vm3103_vm12, %v10553_v29 }
0x10d8   : > { %6312 = vmatmul.msk.f32.gmra.mxu0 %vm3103_vm12, %v10560_v46 }
0x10e0   : > { %6313 = vmatmul.msk.f32.gmra.mxu0 %vm3103_vm12, %v10567_v55 }
0x10e8   : > { %6314 = vmatmul.msk.f32.gmra.mxu0 %vm3103_vm12, %v10574_v47 }
0x10f0   : > { %6315 = vmatmul.msk.f32.gmra.mxu0 %vm3103_vm12, %v10581_v13 }
0x10f8   : > { %6316 = vmatmul.msk.f32.gmra.mxu0 %vm3103_vm12, %v10588_v52 }
0x1100   : > { %6317 = vmatmul.msk.f32.gmra.mxu0 %vm3103_vm12, %v10595_v20 }
0x1108   : > { %6318 = vmatmul.msk.f32.gmra.mxu0 %vm3103_vm12, %v10602_v62 }
0x1110   : > { %6319 = vmatmul.msk.f32.gmra.mxu0 %vm3103_vm12, %v10609_v37 }
0x1118   : > { %6320 = vmatmul.msk.f32.gmra.mxu0 %vm3103_vm12, %v10616_v60 }
0x1120   : > { %6321 = vmatmul.msk.f32.gmra.mxu0 %vm3103_vm12, %v10623_v23 }
0x1128   : > { %6322 = vmatmul.msk.f32.gmra.mxu0 %vm3103_vm12, %v10630_v53 }
0x1130   : > { %6323 = vmatmul.msk.f32.gmra.mxu0 %vm3103_vm12, %v10637_v5 }
0x1138   : > { %6324 = vmatmul.msk.f32.gmra.mxu0 %vm3103_vm12, %v10644_v50 }
0x1140   : > { %6325 = vmatmul.msk.f32.gmra.mxu0 %vm3103_vm12, %v10651_v11 }
0x1148   : > { %6326 = vmatmul.msk.f32.gmra.mxu0 %vm3103_vm12, %v10658_v57 }
0x114d   : > { %v5218_v29 = vpop.f32.mrf.mxu0 }
0x114e   : > { %5282 = vrot.lane.b32.xlu2 %v5218_v29, %s7174_s17 }
0x1155   : > { %v5221_v46 = vpop.f32.mrf.mxu0 }
0x1156   : > { %5284 = vrot.lane.b32.xlu0 %v5221_v46, %s7174_s17 }
0x115d   : > { %v5224_v55 = vpop.f32.mrf.mxu0 }
0x115e   : > { %5286 = vrot.lane.b32.xlu1 %v5224_v55, %s7174_s17  ;;  %v12123_v55 = vld [vmem:[#allocation11_spill] sm:$0xff] }
0x1165   : > { %v5227_v47 = vpop.f32.mrf.mxu0 }
0x1166   : > { %5288 = vrot.lane.b32.xlu2 %v5227_v47, %s7174_s17 }
0x116d   : > { %v5230_v13 = vpop.f32.mrf.mxu0 }
0x1175   : > { %v5233_v52 = vpop.f32.mrf.mxu0 }
0x1176   : > { %5292 = vrot.lane.b32.xlu1 %v5233_v52, %s7174_s17 }
0x117d   : > { %v5236_v20 = vpop.f32.mrf.mxu0 }
0x117e   : > { %5294 = vrot.lane.b32.xlu2 %v5236_v20, %s7174_s17 }
0x1185   : > { %v5239_v62 = vpop.f32.mrf.mxu0 }
0x1186   : > { %5296 = vrot.lane.b32.xlu0 %v5239_v62, %s7174_s17 }
0x118d   : > { %v5242_v37 = vpop.f32.mrf.mxu0 }
0x118e   : > { %5290 = vrot.lane.b32.xlu0 %v5230_v13, %s7174_s17 }
0x1195   : > { %v5245_v60 = vpop.f32.mrf.mxu0 }
0x119d   : > { %v5248_v23 = vpop.f32.mrf.mxu0 }
0x11a5   : > { %v5251_v53 = vpop.f32.mrf.mxu0 }
0x11ad   : > { %v5254_v5 = vpop.f32.mrf.mxu0 }
0x11b5   : > { %v5257_v50 = vpop.f32.mrf.mxu0 }
0x11b6   : > { %5308 = vrot.lane.b32.xlu0 %v5257_v50, %s7174_s17 }
0x11bd   : > { %v5260_v11 = vpop.f32.mrf.mxu0 }
0x11be   : > { %5302 = vrot.lane.b32.xlu0 %v5248_v23, %s7174_s17  ;;  %5310 = vrot.lane.b32.xlu2 %v5260_v11, %s7174_s17 }
0x11c5   : > { %v5263_v57 = vpop.f32.mrf.mxu0 }
0x11c6   : > { %5588 = vrot.lane.b32.xlu0 %v10933_v18, %s7170_s15  ;;  %5304 = vrot.lane.b32.xlu2 %v5251_v53, %s7174_s17  ;;  %v5283_v18 = vpop.permute.xlu2 %5282 }
0x11c7   : > { %5312 = vrot.lane.b32.xlu1 %v5263_v57, %s7174_s17  ;;  %v5330_v34 = vadd.f32 %v5283_v18, %v11983_v15  ;;  %v12124_v57 = vld [vmem:[#allocation8_spill] sm:$0xff] }
0x11c8   : > { %v5285_v4 = vpop.permute.xlu0 %5284 }
0x11c9   : > { %v6327_v10 = vmul.f32 -1.442695, %v5330_v34 }
0x11cb   : > { %6968 = vpow2.f32 %v6327_v10 }
0x11ce   : > { %5582 = vrot.lane.b32.xlu0 %v10955_v25, %s7170_s15  ;;  %5298 = vrot.lane.b32.xlu2 %v5242_v37, %s7174_s17  ;;  %v5289_v48 = vpop.permute.xlu2 %5288 }
0x11cf   : > { %5306 = vrot.lane.b32.xlu1 %v5254_v5, %s7174_s17  ;;  %v5333_v25 = vadd.f32 %v5289_v48, %v12054_v38 }
0x11d0   : > { %v5287_v40 = vpop.permute.xlu1 %5286 }
0x11d1   : > { %v6330_v21 = vmul.f32 -1.442695, %v5333_v25  ;;  %v6969_v63 = vpop.eup %6968  ;;  %v5332_v22 = vadd.f32 %v5287_v40, %v11984_v58 }
0x11d2   : > { %v11059_v12 = vadd.f32 1.0, %v6969_v63 }
0x11d3   : > { %6970 = vpow2.f32 %v6330_v21  ;;  %v6329_v14 = vmul.f32 -1.442695, %v5332_v22 }
0x11d4   : > { %6972 = vrcp.f32 %v11059_v12  ;;  %v5371_v40 = vand.u32 2147483647, %v11059_v12  ;;  %vm5367_vm0 = vweird.f32 %v11059_v12 }
0x11d6   : > { %5584 = vrot.lane.b32.xlu2 %v10950_v24, %s7170_s15  ;;  %v5331_v24 = vadd.f32 %v5285_v4, %v8973_v49  ;;  %vm5372_vm1 = vcmp.eq.f32.partialorder %v5371_v40, 8.507059e+37 }
0x11d7   : > { %5300 = vrot.lane.b32.xlu1 %v5245_v60, %s7174_s17  ;;  %s438_s17 = scalar_lea.vmem %s11794_s13, %s6146_s20 }
0x11d8   : > { %v5295_v8 = vpop.permute.xlu2 %5294  ;;  %v6328_v1 = vmul.f32 -1.442695, %v5331_v24 }
0x11d9   : > { %v6971_v30 = vpop.eup %6970 }
0x11da   : > { %6974 = vpow2.f32 %v6328_v1  ;;  %v11063_v9 = vadd.f32 1.0, %v6971_v30  ;;  %v11067_v7 = vpop.eup %6972 }
0x11db   : > { %6976 = vpow2.f32 %v6329_v14  ;;  %v5363_v17 = vmul.f32 %v11067_v7, %v11059_v12  ;;  %vm5368_vm15 = vweird.f32 %v11067_v7 }
0x11dc   : > { %vm11115_vm2 = vmor %vm5367_vm0, %vm5368_vm15  ;;  %v5416_v14 = vand.u32 2147483647, %v11063_v9  ;;  %vm5412_vm4 = vweird.f32 %v11063_v9 }
0x11dd   : > { %v5364_v13 = vsub.f32 1.0, %v5363_v17 }
0x11de   : > { %vm11135_vm5 = vcmp.eq.f32.partialorder %v5416_v14, 8.507059e+37 }
0x11df   : > { %5586 = vrot.lane.b32.xlu1 %v10947_v3, %s7170_s15  ;;  %v5336_v3 = vadd.f32 %v5295_v8, %v12056_v45  ;;  %v5365_v53 = vmul.f32 %v11067_v7, %v5364_v13  ;;  %v5373_v8 = vand.u32 2147483648, %v11059_v12 }
0x11e0   : > { %v6975_v32 = vpop.eup %6974 }
0x11e1   : > { %v6333_v56 = vmul.f32 -1.442695, %v5336_v3  ;;  %v6977_v33 = vpop.eup %6976  ;;  %v11070_v44 = vadd.f32 1.0, %v6975_v32  ;;  %v5366_v25 = vadd.f32 %v11067_v7, %v5365_v53  ;;  %v5374_v30 = vor.u32 1.1754944e-38, %v5373_v8 }
0x11e2   : > { %v11074_v27 = vadd.f32 1.0, %v6977_v33 }
0x11e3   : > { %6978 = vpow2.f32 %v6333_v56  ;;  %v5418_v56 = vand.u32 2147483648, %v11063_v9  ;;  %v5370_v12 = vsel %vm11115_vm2, %v11067_v7, %v5366_v25  ;;  %vm5382_vm6 = vweird.f32 %v11070_v44 }
0x11e4   : > { %6980 = vrcp.f32 %v11063_v9  ;;  %v11133_v32 = vsel %vm5372_vm1, %v5374_v30, %v5370_v12  ;;  %vm5397_vm10 = vweird.f32 %v11074_v27  ;;  %v12134_v30 = vld [vmem:[#allocation14_spill] sm:$0xff] }
0x11e8   : > { %v5293_v59 = vpop.permute.xlu1 %5292 }
0x11e9   : > { %v5335_v35 = vadd.f32 %v5293_v59, %v12121_v19  ;;  %v6979_v28 = vpop.eup %6978 }
0x11ea   : > { %v11076_v54 = vadd.f32 1.0, %v6979_v28  ;;  %v11078_v29 = vpop.eup %6980 }
0x11eb   : > { %v6332_v42 = vmul.f32 -1.442695, %v5335_v35  ;;  %v5408_v20 = vmul.f32 %v11078_v29, %v11063_v9  ;;  %vm5413_vm3 = vweird.f32 %v11078_v29 }
0x11ec   : > { %vm11145_vm7 = vmor %vm5412_vm4, %vm5413_vm3  ;;  %vm5473_vm15 = vweird.f32 %v11076_v54 }
0x11ed   : > { %v5409_v34 = vsub.f32 1.0, %v5408_v20 }
0x11ef   : > { %v5410_v63 = vmul.f32 %v11078_v29, %v5409_v34  ;;  %v5401_v34 = vand.u32 2147483647, %v11074_v27 }
0x11f1   : > { %vm11225_vm3 = vcmp.eq.f32.partialorder %v5401_v34, 8.507059e+37 }
0x11f8   : > { %v5297_v0 = vpop.permute.xlu0 %5296 }
0x11f9   : > { %v5337_v31 = vadd.f32 %v5297_v0, %v12057_v36 }
0x11fb   : > { %v6334_v39 = vmul.f32 -1.442695, %v5337_v31 }
0x11fd   : > { %6982 = vpow2.f32 %v6334_v39 }
0x11fe   : > { %6984 = vpow2.f32 %v6332_v42  ;;  %v5419_v42 = vor.u32 1.1754944e-38, %v5418_v56 }
0x1200   : > { %v5291_v16 = vpop.permute.xlu0 %5290 }
0x1201   : > { %v5334_v26 = vadd.f32 %v5291_v16, %v12122_v2  ;;  %v5411_v16 = vadd.f32 %v11078_v29, %v5410_v63  ;;  %v5479_v63 = vand.u32 2147483648, %v11076_v54 }
0x1203   : > { %v6331_v41 = vmul.f32 -1.442695, %v5334_v26  ;;  %v6983_v46 = vpop.eup %6982 }
0x1204   : > { %v6985_v52 = vpop.eup %6984  ;;  %v11086_v62 = vadd.f32 1.0, %v6983_v46  ;;  %v5386_v46 = vand.u32 2147483647, %v11070_v44 }
0x1205   : > { %6986 = vpow2.f32 %v6331_v41  ;;  %v11091_v50 = vadd.f32 1.0, %v6985_v52 }
0x1206   : > { %6988 = vrcp.f32 %v11070_v44  ;;  %vm11221_vm1 = vcmp.eq.f32.partialorder %v5386_v46, 8.507059e+37 }
0x1207   : > { %6990 = vrcp.f32 %v11074_v27  ;;  %vm5458_vm2 = vweird.f32 %v11091_v50 }
0x1208   : > { %6992 = vrcp.f32 %v11076_v54 }
0x1209   : > { %6994 = vrcp.f32 %v11086_v62 }
0x120b   : > { %v6987_v60 = vpop.eup %6986 }
0x120c   : > { %v11089_v5 = vpop.eup %6988  ;;  %v11099_v48 = vadd.f32 1.0, %v6987_v60  ;;  %v12131_v60 = vld [vmem:[#allocation15_spill] sm:$0xff] }
0x120d   : > { %v11093_v11 = vpop.eup %6990  ;;  %v5378_v4 = vmul.f32 %v11089_v5, %v11070_v44  ;;  %vm5383_vm8 = vweird.f32 %v11089_v5 }
0x120e   : > { %v11097_v10 = vpop.eup %6992  ;;  %v5393_v21 = vmul.f32 %v11093_v11, %v11074_v27  ;;  %vm5398_vm9 = vweird.f32 %v11093_v11  ;;  %vm11185_vm13 = vmor %vm5382_vm6, %vm5383_vm8  ;;  %vm5488_vm6 = vweird.f32 %v11086_v62 }
0x120f   : > { %v5469_v24 = vmul.f32 %v11097_v10, %v11076_v54  ;;  %v11119_v3 = vpop.eup %6994  ;;  %v5379_v1 = vsub.f32 1.0, %v5378_v4  ;;  %v5403_v4 = vand.u32 2147483648, %v11074_v27  ;;  %vm5474_vm11 = vweird.f32 %v11097_v10  ;;  %vm11199_vm14 = vmor %vm5397_vm10, %vm5398_vm9 }
0x1210   : > { %v5394_v59 = vsub.f32 1.0, %v5393_v21  ;;  %v5484_v26 = vmul.f32 %v11119_v3, %v11086_v62  ;;  %vm11214_vm0 = vmor %vm5473_vm15, %vm5474_vm11 }
0x1211   : > { %v5470_v35 = vsub.f32 1.0, %v5469_v24  ;;  %v5380_v33 = vmul.f32 %v11089_v5, %v5379_v1  ;;  %v5404_v7 = vor.u32 1.1754944e-38, %v5403_v4  ;;  %v5462_v4 = vand.u32 2147483647, %v11091_v50 }
0x1212   : > { %v5395_v13 = vmul.f32 %v11093_v11, %v5394_v59 }
0x1213   : > { %v5471_v53 = vmul.f32 %v11097_v10, %v5470_v35  ;;  %v11165_v8 = vadd.f32 %v11089_v5, %v5380_v33  ;;  %v5480_v33 = vor.u32 1.1754944e-38, %v5479_v63  ;;  %vm5463_vm15 = vcmp.eq.f32.partialorder %v5462_v4, 8.507059e+37 }
0x1215   : > { %v11175_v22 = vadd.f32 %v11097_v10, %v5471_v53  ;;  %v5385_v27 = vsel %vm11185_vm13, %v11089_v5, %v11165_v8  ;;  %v5464_v8 = vand.u32 2147483648, %v11091_v50  ;;  %vm5443_vm13 = vweird.f32 %v11099_v48 }
0x1217   : > { %v5476_v9 = vsel %vm11214_vm0, %v11097_v10, %v11175_v22  ;;  %v5447_v22 = vand.u32 2147483647, %v11099_v48 }
0x1218   : > { %v5311_v43 = vpop.permute.xlu2 %5310 }
0x1219   : > { %v5344_v47 = vadd.f32 %v5311_v43, %v12123_v55  ;;  %vm5448_vm0 = vcmp.eq.f32.partialorder %v5447_v22, 8.507059e+37 }
0x121b   : > { %v6337_v23 = vmul.f32 -1.442695, %v5344_v47  ;;  %v5388_v47 = vand.u32 2147483648, %v11070_v44 }
0x121d   : > { %6996 = vpow2.f32 %v6337_v23  ;;  %v11189_v12 = vor.u32 1.1754944e-38, %v5388_v47 }
0x121e   : > { %6998 = vrcp.f32 %v11091_v50 }
0x121f   : > { %7000 = vrcp.f32 %v11099_v48 }
0x1220   : > { %v5305_v17 = vpop.permute.xlu2 %5304 }
0x1221   : > { %v5341_v59 = vadd.f32 %v5305_v17, %v12134_v30 }
0x1223   : > { %v6997_v31 = vpop.eup %6996 }
0x1224   : > { %v11128_v39 = vpop.eup %6998  ;;  %v11143_v41 = vadd.f32 1.0, %v6997_v31 }
0x1225   : > { %v11141_v28 = vpop.eup %7000  ;;  %v5454_v20 = vmul.f32 %v11128_v39, %v11091_v50  ;;  %vm5459_vm8 = vweird.f32 %v11128_v39 }
0x1226   : > { %v5439_v40 = vmul.f32 %v11141_v28, %v11099_v48  ;;  %vm5444_vm11 = vweird.f32 %v11141_v28  ;;  %vm11277_vm10 = vmor %vm5458_vm2, %vm5459_vm8  ;;  %vm5553_vm2 = vweird.f32 %v11143_v41  ;;  %v5557_v4 = vand.u32 2147483647, %v11143_v41 }
0x1227   : > { %v5455_v24 = vsub.f32 1.0, %v5454_v20  ;;  %v5492_v20 = vand.u32 2147483647, %v11086_v62 }
0x1228   : > { %v5309_v37 = vpop.permute.xlu0 %5308  ;;  %v5299_v46 = vpop.permute.xlu2 %5298 }
0x1229   : > { %v5343_v18 = vadd.f32 %v5309_v37, %v12124_v57  ;;  %v5415_v37 = vsel %vm11145_vm7, %v11078_v29, %v5411_v16  ;;  %v11170_v29 = vadd.f32 %v11093_v11, %v5395_v13  ;;  %v5440_v16 = vsub.f32 1.0, %v5439_v40 }
0x122a   : > { %v11195_v31 = vsel %vm11135_vm5, %v5419_v42, %v5415_v37  ;;  %vm5489_vm5 = vweird.f32 %v11119_v3  ;;  %v5338_v40 = vadd.f32 %v5299_v46, %v9191_v51  ;;  %vm5493_vm9 = vcmp.eq.f32.partialorder %v5492_v20, 8.507059e+37 }
0x122b   : > { %v6336_v0 = vmul.f32 -1.442695, %v5343_v18  ;;  %v5485_v18 = vsub.f32 1.0, %v5484_v26  ;;  %v5400_v26 = vsel %vm11199_vm14, %v11093_v11, %v11170_v29  ;;  %v5441_v53 = vmul.f32 %v11141_v28, %v5440_v16  ;;  %vm11256_vm7 = vmor %vm5488_vm6, %vm5489_vm5 }
0x122c   : > { %vm11282_vm14 = vmor %vm5443_vm13, %vm5444_vm11  ;;  %v5405_v46 = vsel %vm11225_vm3, %v5404_v7, %v5400_v26  ;;  %v5559_v29 = vand.u32 2147483648, %v11143_v41  ;;  %vm5558_vm13 = vcmp.eq.f32.partialorder %v5557_v4, 8.507059e+37 }
0x122d   : > { %7002 = vpow2.f32 %v6336_v0  ;;  %v5477_v0 = vand.u32 2147483647, %v11076_v54  ;;  %v5486_v14 = vmul.f32 %v11119_v3, %v5485_v18  ;;  %v5456_v54 = vmul.f32 %v11128_v39, %v5455_v24 }
0x122e   : > { %7004 = vrcp.f32 %v11143_v41  ;;  %v5442_v63 = vadd.f32 %v11141_v28, %v5441_v53 }
0x122f   : > { %vm11233_vm4 = vcmp.eq.f32.partialorder %v5477_v0, 8.507059e+37  ;;  %v5487_v13 = vadd.f32 %v11119_v3, %v5486_v14  ;;  %v5449_v14 = vand.u32 2147483648, %v11099_v48  ;;  %v5390_v48 = vsel %vm11221_vm1, %v11189_v12, %v5385_v27 }
0x1230   : > { %v5303_v52 = vpop.permute.xlu0 %5302  ;;  %v5481_v50 = vsel %vm11233_vm4, %v5480_v33, %v5476_v9  ;;  %v5465_v27 = vor.u32 1.1754944e-38, %v5464_v8  ;;  %v5585_v11 = vpop.permute.xlu2 %5584 }
0x1231   : > { %v5340_v34 = vadd.f32 %v5303_v52, %v12003_v61  ;;  %v5457_v52 = vadd.f32 %v11128_v39, %v5456_v54  ;;  %v5450_v7 = vor.u32 1.1754944e-38, %v5449_v14 }
0x1233   : > { %v7003_v25 = vpop.eup %7002 }
0x1234   : > { %v11178_v1 = vadd.f32 1.0, %v7003_v25  ;;  %v11237_v47 = vpop.eup %7004 }
0x1235   : > { %vm5554_vm1 = vweird.f32 %v11237_v47 }
0x1236   : > { %vm11335_vm5 = vmor %vm5553_vm2, %vm5554_vm1 }
0x1238   : > { %v5589_v10 = vpop.permute.xlu0 %5588 }
0x1239   : > { %v5313_v43 = vpop.permute.xlu1 %5312 }
0x123a   : > { %v5345_v23 = vadd.f32 %v5313_v43, %v12131_v60 }
0x123c   : > { %v6338_v21 = vmul.f32 -1.442695, %v5345_v23  ;;  %v5494_v23 = vand.u32 2147483648, %v11086_v62  ;;  %v5491_v62 = vsel %vm11256_vm7, %v11119_v3, %v5487_v13  ;;  %vm5538_vm7 = vweird.f32 %v11178_v1 }
0x123e   : > { %7006 = vpow2.f32 %v6338_v21  ;;  %v5549_v21 = vmul.f32 %v11237_v47, %v11143_v41  ;;  %v5495_v0 = vor.u32 1.1754944e-38, %v5494_v23  ;;  %v5446_v23 = vsel %vm11282_vm14, %v11141_v28, %v5442_v63 }
0x123f   : > { %7008 = vrcp.f32 %v11178_v1  ;;  %v5451_v53 = vsel %vm5448_vm0, %v5450_v7, %v5446_v23  ;;  %v5544_v7 = vand.u32 2147483648, %v11178_v1 }
0x1240   : > { %7010 = vtanh.f32 %v5341_v59  ;;  %v5550_v3 = vsub.f32 1.0, %v5549_v21  ;;  %v5496_v35 = vsel %vm5493_vm9, %v5495_v0, %v5491_v62  ;;  %v5583_v9 = vpop.permute.xlu0 %5582 }
0x1241   : > { %v5307_v44 = vpop.permute.xlu1 %5306  ;;  %v5597_v54 = vmul.f32 %v5589_v10, %v5496_v35 }
0x1242   : > { %v5342_v17 = vadd.f32 %v5307_v44, %v12004_v6  ;;  %v12149_v44 = vld [vmem:[#allocation12_spill] sm:$0xff]  ;;  %v5551_v5 = vmul.f32 %v11237_v47, %v5550_v3 }
0x1244   : > { %v7007_v37 = vpop.eup %7006  ;;  %v6335_v18 = vmul.f32 -1.442695, %v5342_v17  ;;  %v5552_v22 = vadd.f32 %v11237_v47, %v5551_v5 }
0x1245   : > { %v11248_v25 = vadd.f32 1.0, %v7007_v37  ;;  %v11268_v24 = vpop.eup %7008  ;;  %v5461_v37 = vsel %vm11277_vm10, %v11128_v39, %v5457_v52 }
0x1246   : > { %7012 = vpow2.f32 %v6335_v18  ;;  %v7011_v59 = vpop.eup %7010  ;;  %v5534_v20 = vmul.f32 %v11268_v24, %v11178_v1  ;;  %v5466_v28 = vsel %vm5463_vm15, %v5465_v27, %v5461_v37  ;;  %vm5539_vm8 = vweird.f32 %v11268_v24 }
0x1247   : > { %7014 = vrcp.f32 %v11248_v25  ;;  %v5601_v26 = vmul.f32 %v7011_v59, %v11195_v31  ;;  %v5595_v21 = vmul.f32 %v5585_v11, %v5466_v28  ;;  %v5574_v35 = vand.u32 2147483648, %v11248_v25  ;;  %vm11365_vm10 = vmor %vm5538_vm7, %vm5539_vm8 }
0x1248   : > { %7016 = vtanh.f32 %v5340_v34  ;;  %v5535_v18 = vsub.f32 1.0, %v5534_v20  ;;  %vm5568_vm4 = vweird.f32 %v11248_v25  ;;  %v7138_v20 = vld [vmem:[%s11790_s9 + $0x40] sm:$0xff] }
0x1249   : > { %v5301_v56 = vpop.permute.xlu1 %5300  ;;  %7018 = vtanh.f32 %v5338_v40  ;;  %v11309_v10 = vadd.f32 %v5601_v26, %v5597_v54  ;;  %v5594_v40 = vmul.f32 %v5583_v9, %v5451_v53  ;;  %v5575_v23 = vor.u32 1.1754944e-38, %v5574_v35  ;;  %v7131_v35 = vld [vmem:[%s11790_s9 + $0x8] sm:$0xff] }
0x124a   : > { %v5339_v42 = vadd.f32 %v5301_v56, %v12149_v44  ;;  %v5536_v59 = vmul.f32 %v11268_v24, %v5535_v18 }
0x124c   : > { %v7013_v13 = vpop.eup %7012  ;;  %7020 = vtanh.f32 %v5339_v42 }
0x124d   : > { %v11301_v12 = vpop.eup %7014  ;;  %v11304_v33 = vadd.f32 1.0, %v7013_v13  ;;  %v5560_v13 = vor.u32 1.1754944e-38, %v5559_v29 }
0x124e   : > { %v5564_v39 = vmul.f32 %v11301_v12, %v11248_v25  ;;  %v7017_v43 = vpop.eup %7016  ;;  %vm5569_vm3 = vweird.f32 %v11301_v12 }
0x124f   : > { %7022 = vrcp.f32 %v11304_v33  ;;  %v7019_v31 = vpop.eup %7018  ;;  %v5600_v0 = vmul.f32 %v7017_v43, %v5405_v46  ;;  %vm11347_vm6 = vmor %vm5568_vm4, %vm5569_vm3  ;;  %v5529_v26 = vand.u32 2147483648, %v11304_v33  ;;  %vm5523_vm14 = vweird.f32 %v11304_v33 }
0x1250   : > { %v5565_v34 = vsub.f32 1.0, %v5564_v39  ;;  %7024 = vtanh.f32 %v11309_v10  ;;  %v5598_v14 = vmul.f32 %v7019_v31, %v11133_v32  ;;  %v7133_v32 = vld [vmem:[%s11790_s9 + $0x18] sm:$0xff] }
0x1251   : > { %v5587_v8 = vpop.permute.xlu1 %5586  ;;  %v5530_v4 = vor.u32 1.1754944e-38, %v5529_v26  ;;  %v7145_v26 = vld [vmem:[%s11790_s9 + $0x78] sm:$0xff] }
0x1252   : > { %v7021_v52 = vpop.eup %7020  ;;  %v5566_v62 = vmul.f32 %v11301_v12, %v5565_v34  ;;  %v5596_v63 = vmul.f32 %v5587_v8, %v5481_v50  ;;  %v11327_v54 = vadd.f32 %v5598_v14, %v5594_v40  ;;  %v5556_v50 = vsel %vm11335_vm5, %v11237_v47, %v5552_v22 }
0x1253   : > { %v5599_v56 = vmul.f32 %v7021_v52, %v5390_v48  ;;  %v5572_v48 = vand.u32 2147483647, %v11248_v25  ;;  %v5542_v25 = vand.u32 2147483647, %v11178_v1  ;;  %v5537_v47 = vadd.f32 %v11268_v24, %v5536_v59 }
0x1254   : > { %v11322_v3 = vadd.f32 %v5600_v0, %v5596_v63  ;;  %v5567_v16 = vadd.f32 %v11301_v12, %v5566_v62  ;;  %v5561_v43 = vsel %vm5558_vm13, %v5560_v13, %v5556_v50  ;;  %v7136_v50 = vld [vmem:[%s11790_s9 + $0x30] sm:$0xff]  ;;  %v7137_v13 = vld [vmem:[%s11790_s9 + $0x38] sm:$0xff] }
0x1255   : > { %v7023_v42 = vpop.eup %7022  ;;  %v11329_v17 = vadd.f32 %v5599_v56, %v5595_v21  ;;  %vm5573_vm9 = vcmp.eq.f32.partialorder %v5572_v48, 8.507059e+37  ;;  %v5541_v53 = vsel %vm11365_vm10, %v11268_v24, %v5537_v47  ;;  %v5545_v21 = vor.u32 1.1754944e-38, %v5544_v7  ;;  %v7134_v48 = vld [vmem:[%s11790_s9 + $0x20] sm:$0xff]  ;;  %v7143_v47 = vld [vmem:[%s11790_s9 + $0x68] sm:$0xff] }
0x1256   : > { %v5519_v46 = vmul.f32 %v7023_v42, %v11304_v33  ;;  %7026 = vtanh.f32 %v11322_v3  ;;  %v5571_v41 = vsel %vm11347_vm6, %v11301_v12, %v5567_v16  ;;  %v7025_v27 = vpop.eup %7024  ;;  %vm5524_vm11 = vweird.f32 %v7023_v42  ;;  %v7130_v16 = vld [vmem:[%s11790_s9] sm:$0xff] }
0x1257   : > { %7028 = vtanh.f32 %v11329_v17  ;;  %v5576_v11 = vsel %vm5573_vm9, %v5575_v23, %v5571_v41  ;;  %v5527_v12 = vand.u32 2147483647, %v11304_v33  ;;  %vm5525_vm15 = vmor %vm5523_vm14, %vm5524_vm11  ;;  %vm5543_vm2 = vcmp.eq.f32.partialorder %v5542_v25, 8.507059e+37  ;;  %v7139_v41 = vld [vmem:[%s11790_s9 + $0x48] sm:$0xff]  ;;  %v7140_v25 = vld [vmem:[%s11790_s9 + $0x50] sm:$0xff] }
0x1258   : > { %v5520_v37 = vsub.f32 1.0, %v5519_v46  ;;  %7030 = vtanh.f32 %v11327_v54  ;;  %v5613_v34 = vmul.f32 %v7025_v27, %v5576_v11  ;;  %v5546_v52 = vsel %vm5543_vm2, %v5545_v21, %v5541_v53  ;;  %v7135_v46 = vld [vmem:[%s11790_s9 + $0x28] sm:$0xff]  ;;  %v7142_v23 = vld [vmem:[%s11790_s9 + $0x60] sm:$0xff]  ;;  %v7144_v27 = vld [vmem:[%s11790_s9 + $0x70] sm:$0xff] }
0x1259   : > { %vm5528_vm0 = vcmp.eq.f32.partialorder %v5527_v12, 8.507059e+37 }
0x125a   : > { %v5521_v5 = vmul.f32 %v7023_v42, %v5520_v37  ;;  %v7141_v37 = vld [vmem:[%s11790_s9 + $0x58] sm:$0xff] }
0x125c   : > { %v7027_v9 = vpop.eup %7026  ;;  %v5522_v28 = vadd.f32 %v7023_v42, %v5521_v5 }
0x125d   : > { %v7029_v31 = vpop.eup %7028  ;;  %v5612_v18 = vmul.f32 %v7027_v9, %v5561_v43 }
0x125e   : > { %v5526_v1 = vsel %vm5525_vm15, %v7023_v42, %v5522_v28  ;;  %v7031_v40 = vpop.eup %7030  ;;  %v5611_v62 = vmul.f32 %v7029_v31, %v5546_v52  ;;  %v7132_v42 = vld [vmem:[%s11790_s9 + $0x10] sm:$0xff] }
0x125f   : > { %v6628_v8 = vpack.i.bf16 %v5612_v18, %v5613_v34  ;;  %v5531_v29 = vsel %vm5528_vm0, %v5530_v4, %v5526_v1 }
0x1260   : > { %v5610_v33 = vmul.f32 %v7031_v40, %v5531_v29 }
0x1261   : > { %6629 = vrot.lane.b32.xlu1 %v6628_v8, %s7156_s16 }
0x1262   : > { %v6633_v0 = vpack.i.bf16 %v5610_v33, %v5611_v62 }
0x1264   : > { %6634 = vrot.lane.b32.xlu2 %v6633_v0, %s7156_s16 }
0x12be   : > { %v6635_v22 = vpop.permute.xlu2 %6634 }
0x12bf   : > { %v6636_v56 = vunpack.i.l.bf16 %v6635_v22  ;;  %v6637_v59 = vunpack.i.h.bf16 %v6635_v22 }
0x12d3   : > { %v6630_v24 = vpop.permute.xlu1 %6629 }
0x12d4   : > { %v6631_v63 = vunpack.i.l.bf16 %v6630_v24  ;;  %v6632_v14 = vunpack.i.h.bf16 %v6630_v24 }
0x12d6   : > { %5642 = vmatpush.msrb.mxu1 %v6631_v63 }
0x12d8   : > { %5643 = vmatpush.msrb.mxu1 %v6632_v14 }
0x12da   : > { %5644 = vmatpush.msrb.mxu1 %v6636_v56 }
0x12dc   : > { %5645 = vmatpush.msrb.mxu1 %v6637_v59 }
0x12dd   : > { %6339 = vmatmul.msk.f32.vlgmr.msrb.gmra.mxu1 %vm3103_vm12, %v7130_v16 }
0x12e5   : > { %6340 = vmatmul.msk.f32.gmra.mxu1 %vm3103_vm12, %v7131_v35 }
0x12ed   : > { %6341 = vmatmul.msk.f32.gmra.mxu1 %vm3103_vm12, %v7132_v42 }
0x12f5   : > { %6342 = vmatmul.msk.f32.gmra.mxu1 %vm3103_vm12, %v7133_v32 }
0x12fd   : > { %6343 = vmatmul.msk.f32.gmra.mxu1 %vm3103_vm12, %v7134_v48 }
0x1305   : > { %6344 = vmatmul.msk.f32.gmra.mxu1 %vm3103_vm12, %v7135_v46 }
0x130d   : > { %6345 = vmatmul.msk.f32.gmra.mxu1 %vm3103_vm12, %v7136_v50 }
0x1315   : > { %6346 = vmatmul.msk.f32.gmra.mxu1 %vm3103_vm12, %v7137_v13 }
0x131d   : > { %6347 = vmatmul.msk.f32.gmra.mxu1 %vm3103_vm12, %v7138_v20 }
0x1325   : > { %6348 = vmatmul.msk.f32.gmra.mxu1 %vm3103_vm12, %v7139_v41 }
0x132d   : > { %6349 = vmatmul.msk.f32.gmra.mxu1 %vm3103_vm12, %v7140_v25 }
0x1335   : > { %6350 = vmatmul.msk.f32.gmra.mxu1 %vm3103_vm12, %v7141_v37 }
0x133d   : > { %6351 = vmatmul.msk.f32.gmra.mxu1 %vm3103_vm12, %v7142_v23 }
0x1345   : > { %6352 = vmatmul.msk.f32.gmra.mxu1 %vm3103_vm12, %v7143_v47 }
0x134d   : > { %6353 = vmatmul.msk.f32.gmra.mxu1 %vm3103_vm12, %v7144_v27 }
0x1355   : > { %6354 = vmatmul.msk.f32.gmra.mxu1 %vm3103_vm12, %v7145_v26 }
0x135a   : > { %v5647_v7 = vpop.f32.mrf.mxu1 }
0x135b   : > { %5711 = vrot.lane.b32.xlu0 %v5647_v7, %s7175_s30 }
0x1362   : > { %v5650_v5 = vpop.f32.mrf.mxu1 }
0x1363   : > { %5713 = vrot.lane.b32.xlu1 %v5650_v5, %s7175_s30 }
0x136a   : > { %v5653_v11 = vpop.f32.mrf.mxu1 }
0x136b   : > { %5715 = vrot.lane.b32.xlu2 %v5653_v11, %s7175_s30 }
0x1372   : > { %v5656_v12 = vpop.f32.mrf.mxu1 }
0x1373   : > { %5717 = vrot.lane.b32.xlu0 %v5656_v12, %s7175_s30 }
0x137a   : > { %v5659_v39 = vpop.f32.mrf.mxu1 }
0x1382   : > { %v5662_v9 = vpop.f32.mrf.mxu1 }
0x1383   : > { %5721 = vrot.lane.b32.xlu2 %v5662_v9, %s7175_s30 }
0x138a   : > { %v5665_v43 = vpop.f32.mrf.mxu1 }
0x138b   : > { %5723 = vrot.lane.b32.xlu0 %v5665_v43, %s7175_s30 }
0x1392   : > { %v5668_v28 = vpop.f32.mrf.mxu1 }
0x1393   : > { %5725 = vrot.lane.b32.xlu1 %v5668_v28, %s7175_s30 }
0x139a   : > { %v5671_v53 = vpop.f32.mrf.mxu1 }
0x139b   : > { %5719 = vrot.lane.b32.xlu1 %v5659_v39, %s7175_s30 }
0x13a2   : > { %v5674_v31 = vpop.f32.mrf.mxu1 }
0x13aa   : > { %v5677_v18 = vpop.f32.mrf.mxu1 }
0x13b2   : > { %v5680_v34 = vpop.f32.mrf.mxu1 }
0x13ba   : > { %v5683_v4 = vpop.f32.mrf.mxu1 }
0x13c2   : > { %v5686_v21 = vpop.f32.mrf.mxu1 }
0x13c3   : > { %5737 = vrot.lane.b32.xlu1 %v5686_v21, %s7175_s30 }
0x13ca   : > { %v5689_v1 = vpop.f32.mrf.mxu1 }
0x13cb   : > { %5731 = vrot.lane.b32.xlu1 %v5677_v18, %s7175_s30  ;;  %5739 = vrot.lane.b32.xlu0 %v5689_v1, %s7175_s30 }
0x13cd   : > { %v5712_v8 = vpop.permute.xlu0 %5711 }
0x13ce   : > { %v5759_v52 = vadd.f32 %v5712_v8, %v11983_v15 }
0x13d0   : > { %v6355_v0 = vmul.f32 -1.442695, %v5759_v52 }
0x13d2   : > { %v5692_v40 = vpop.f32.mrf.mxu1 }
0x13d3   : > { %6017 = vrot.lane.b32.xlu1 %v11309_v10, %s7170_s15  ;;  %5733 = vrot.lane.b32.xlu0 %v5680_v34, %s7175_s30  ;;  %v5716_v10 = vpop.permute.xlu2 %5715 }
0x13d4   : > { %5741 = vrot.lane.b32.xlu2 %v5692_v40, %s7175_s30  ;;  %v5761_v29 = vadd.f32 %v5716_v10, %v11984_v58 }
0x13d5   : > { %v5714_v33 = vpop.permute.xlu1 %5713 }
0x13d6   : > { %v5760_v62 = vadd.f32 %v5714_v33, %v8973_v49 }
0x13d8   : > { %v6356_v63 = vmul.f32 -1.442695, %v5760_v62 }
0x13db   : > { %6011 = vrot.lane.b32.xlu1 %v11327_v54, %s7170_s15  ;;  %5727 = vrot.lane.b32.xlu0 %v5671_v53, %s7175_s30  ;;  %v6357_v54 = vmul.f32 -1.442695, %v5761_v29 }
0x13dc   : > { %5735 = vrot.lane.b32.xlu2 %v5683_v4, %s7175_s30 }
0x13dd   : > { %7032 = vpow2.f32 %v6357_v54  ;;  %v5722_v14 = vpop.permute.xlu2 %5721 }
0x13de   : > { %7034 = vpow2.f32 %v6355_v0  ;;  %v5764_v15 = vadd.f32 %v5722_v14, %v12121_v19 }
0x13df   : > { %7036 = vpow2.f32 %v6356_v63 }
0x13e0   : > { %v6360_v48 = vmul.f32 -1.442695, %v5764_v15 }
0x13e3   : > { %6013 = vrot.lane.b32.xlu0 %v11329_v17, %s7170_s15  ;;  %v7033_v22 = vpop.eup %7032 }
0x13e4   : > { %5729 = vrot.lane.b32.xlu2 %v5674_v31, %s7175_s30  ;;  %v7035_v56 = vpop.eup %7034  ;;  %v11467_v58 = vadd.f32 1.0, %v7033_v22 }
0x13e5   : > { %v5718_v24 = vpop.permute.xlu0 %5717  ;;  %v7037_v35 = vpop.eup %7036  ;;  %v11470_v49 = vadd.f32 1.0, %v7035_v56 }
0x13e6   : > { %7038 = vrcp.f32 %v11467_v58  ;;  %v11475_v50 = vadd.f32 1.0, %v7037_v35  ;;  %v5830_v18 = vand.u32 2147483647, %v11467_v58  ;;  %v5832_v34 = vand.u32 2147483648, %v11467_v58 }
0x13e7   : > { %vm5826_vm3 = vweird.f32 %v11467_v58  ;;  %vm5796_vm7 = vweird.f32 %v11470_v49 }
0x13e8   : > { %vm11521_vm4 = vcmp.eq.f32.partialorder %v5830_v18, 8.507059e+37  ;;  %v5817_v35 = vand.u32 2147483648, %v11475_v50  ;;  %vm5811_vm13 = vweird.f32 %v11475_v50 }
0x13ec   : > { %6015 = vrot.lane.b32.xlu2 %v11322_v3, %s7170_s15  ;;  %v5762_v3 = vadd.f32 %v5718_v24, %v12054_v38  ;;  %v11480_v20 = vpop.eup %7038  ;;  %v5833_v24 = vor.u32 1.1754944e-38, %v5832_v34 }
0x13ed   : > { %v5822_v25 = vmul.f32 %v11480_v20, %v11467_v58  ;;  %vm5827_vm1 = vweird.f32 %v11480_v20 }
0x13ee   : > { %v6358_v16 = vmul.f32 -1.442695, %v5762_v3  ;;  %vm11528_vm6 = vmor %vm5826_vm3, %vm5827_vm1 }
0x13ef   : > { %v5823_v5 = vsub.f32 1.0, %v5822_v25 }
0x13f0   : > { %7040 = vpow2.f32 %v6358_v16 }
0x13f1   : > { %7042 = vrcp.f32 %v11470_v49  ;;  %v5824_v53 = vmul.f32 %v11480_v20, %v5823_v5 }
0x13f2   : > { %7044 = vpow2.f32 %v6360_v48 }
0x13f3   : > { %7046 = vrcp.f32 %v11475_v50  ;;  %v5825_v8 = vadd.f32 %v11480_v20, %v5824_v53 }
0x13f5   : > { %v5829_v3 = vsel %vm11528_vm6, %v11480_v20, %v5825_v8 }
0x13fd   : > { %v5724_v59 = vpop.permute.xlu0 %5723 }
0x13fe   : > { %v5765_v42 = vadd.f32 %v5724_v59, %v12056_v45  ;;  %v7041_v45 = vpop.eup %7040  ;;  %v5802_v59 = vand.u32 2147483648, %v11470_v49 }
0x13ff   : > { %v11482_v41 = vpop.eup %7042  ;;  %v11486_v23 = vadd.f32 1.0, %v7041_v45  ;;  %v11570_v45 = vsel %vm11521_vm4, %v5833_v24, %v5829_v3 }
0x1400   : > { %v6361_v38 = vmul.f32 -1.442695, %v5765_v42  ;;  %v7045_v37 = vpop.eup %7044  ;;  %vm5797_vm5 = vweird.f32 %v11482_v41 }
0x1401   : > { %v11488_v47 = vpop.eup %7046  ;;  %v11492_v7 = vadd.f32 1.0, %v7045_v37  ;;  %vm11550_vm9 = vmor %vm5796_vm7, %vm5797_vm5  ;;  %vm5841_vm1 = vweird.f32 %v11486_v23 }
0x1402   : > { %7048 = vpow2.f32 %v6361_v38  ;;  %v5807_v39 = vmul.f32 %v11488_v47, %v11475_v50  ;;  %vm5812_vm11 = vweird.f32 %v11488_v47 }
0x1403   : > { %vm11584_vm10 = vmor %vm5811_vm13, %vm5812_vm11  ;;  %vm5887_vm15 = vweird.f32 %v11492_v7  ;;  %v5891_v53 = vand.u32 2147483647, %v11492_v7 }
0x1404   : > { %v5808_v10 = vsub.f32 1.0, %v5807_v39 }
0x1405   : > { %v5726_v17 = vpop.permute.xlu1 %5725 }
0x1406   : > { %v5766_v32 = vadd.f32 %v5726_v17, %v12057_v36  ;;  %v5809_v63 = vmul.f32 %v11488_v47, %v5808_v10 }
0x1408   : > { %v6362_v13 = vmul.f32 -1.442695, %v5766_v32  ;;  %v7049_v27 = vpop.eup %7048 }
0x1409   : > { %v11495_v12 = vadd.f32 1.0, %v7049_v27 }
0x140a   : > { %7050 = vpow2.f32 %v6362_v13  ;;  %v5810_v13 = vadd.f32 %v11488_v47, %v5809_v63 }
0x140b   : > { %v5908_v16 = vand.u32 2147483648, %v11495_v12 }
0x140d   : > { %v5720_v46 = vpop.permute.xlu1 %5719 }
0x140e   : > { %v5763_v19 = vadd.f32 %v5720_v46, %v12122_v2  ;;  %v5792_v2 = vmul.f32 %v11482_v41, %v11470_v49 }
0x1410   : > { %v6359_v36 = vmul.f32 -1.442695, %v5763_v19  ;;  %v7051_v26 = vpop.eup %7050  ;;  %v5793_v11 = vsub.f32 1.0, %v5792_v2  ;;  %v5893_v19 = vand.u32 2147483648, %v11492_v7 }
0x1411   : > { %v11499_v9 = vadd.f32 1.0, %v7051_v26 }
0x1412   : > { %7052 = vpow2.f32 %v6359_v36  ;;  %v5794_v4 = vmul.f32 %v11482_v41, %v5793_v11  ;;  %v5803_v36 = vor.u32 1.1754944e-38, %v5802_v59  ;;  %v5818_v11 = vor.u32 1.1754944e-38, %v5817_v35 }
0x1413   : > { %7054 = vrcp.f32 %v11486_v23  ;;  %vm5917_vm11 = vweird.f32 %v11499_v9 }
0x1414   : > { %7056 = vrcp.f32 %v11492_v7  ;;  %v5795_v54 = vadd.f32 %v11482_v41, %v5794_v4  ;;  %v5845_v4 = vand.u32 2147483647, %v11486_v23 }
0x1415   : > { %7058 = vrcp.f32 %v11495_v12 }
0x1416   : > { %7060 = vrcp.f32 %v11499_v9  ;;  %vm11625_vm4 = vcmp.eq.f32.partialorder %v5845_v4, 8.507059e+37 }
0x1418   : > { %v7053_v43 = vpop.eup %7052 }
0x1419   : > { %v11508_v21 = vpop.eup %7054  ;;  %v11511_v1 = vadd.f32 1.0, %v7053_v43 }
0x141a   : > { %v11517_v29 = vpop.eup %7056  ;;  %v5837_v52 = vmul.f32 %v11508_v21, %v11486_v23  ;;  %vm5842_vm0 = vweird.f32 %v11508_v21 }
0x141b   : > { %v11534_v17 = vpop.eup %7058  ;;  %v5883_v42 = vmul.f32 %v11517_v29, %v11492_v7  ;;  %vm5888_vm2 = vweird.f32 %v11517_v29  ;;  %vm11621_vm3 = vmor %vm5841_vm1, %vm5842_vm0 }
0x141c   : > { %v11545_v58 = vpop.eup %7060  ;;  %v5838_v32 = vsub.f32 1.0, %v5837_v52  ;;  %v5898_v38 = vmul.f32 %v11534_v17, %v11495_v12  ;;  %vm5903_vm6 = vweird.f32 %v11534_v17  ;;  %vm11652_vm7 = vmor %vm5887_vm15, %vm5888_vm2  ;;  %vm5872_vm2 = vweird.f32 %v11511_v1 }
0x141d   : > { %v5913_v20 = vmul.f32 %v11545_v58, %v11499_v9  ;;  %v5884_v37 = vsub.f32 1.0, %v5883_v42  ;;  %vm5918_vm5 = vweird.f32 %v11545_v58 }
0x141e   : > { %v5839_v2 = vmul.f32 %v11508_v21, %v5838_v32  ;;  %v5899_v43 = vsub.f32 1.0, %v5898_v38  ;;  %v5923_v38 = vand.u32 2147483648, %v11499_v9 }
0x141f   : > { %v5914_v34 = vsub.f32 1.0, %v5913_v20  ;;  %v5885_v8 = vmul.f32 %v11517_v29, %v5884_v37  ;;  %v5909_v37 = vor.u32 1.1754944e-38, %v5908_v16 }
0x1421   : > { %v5915_v63 = vmul.f32 %v11545_v58, %v5914_v34  ;;  %v11630_v56 = vadd.f32 %v11517_v29, %v5885_v8 }
0x142e   : > { %v5742_v28 = vpop.permute.xlu2 %5741 }
0x142f   : > { %v5774_v31 = vadd.f32 %v5742_v28, %v12131_v60  ;;  %v5800_v60 = vand.u32 2147483647, %v11470_v49  ;;  %v5799_v49 = vsel %vm11550_vm9, %v11482_v41, %v5795_v54  ;;  %v5814_v28 = vsel %vm11584_vm10, %v11488_v47, %v5810_v13  ;;  %vm11682_vm10 = vmor %vm5917_vm11, %vm5918_vm5 }
0x1430   : > { %v5847_v47 = vand.u32 2147483648, %v11486_v23  ;;  %v5840_v54 = vadd.f32 %v11508_v21, %v5839_v2  ;;  %vm11663_vm9 = vcmp.eq.f32.partialorder %v5891_v53, 8.507059e+37 }
0x1431   : > { %v6366_v40 = vmul.f32 -1.442695, %v5774_v31  ;;  %vm11540_vm8 = vcmp.eq.f32.partialorder %v5800_v60, 8.507059e+37  ;;  %v11597_v31 = vor.u32 1.1754944e-38, %v5893_v19 }
0x1432   : > { %v11580_v27 = vsel %vm11540_vm8, %v5803_v36, %v5799_v49  ;;  %v5848_v23 = vor.u32 1.1754944e-38, %v5847_v47  ;;  %v5844_v59 = vsel %vm11621_vm3, %v11508_v21, %v5840_v54  ;;  %vm5902_vm8 = vweird.f32 %v11495_v12 }
0x1433   : > { %7062 = vpow2.f32 %v6366_v40  ;;  %vm11674_vm13 = vmor %vm5902_vm8, %vm5903_vm6 }
0x1434   : > { %7064 = vrcp.f32 %v11511_v1  ;;  %v5849_v19 = vsel %vm11625_vm4, %v5848_v23, %v5844_v59 }
0x1435   : > { %v5738_v62 = vpop.permute.xlu1 %5737 }
0x1436   : > { %v5772_v22 = vadd.f32 %v5738_v62, %v12124_v57  ;;  %v5736_v14 = vpop.permute.xlu2 %5735  ;;  %v5815_v57 = vand.u32 2147483647, %v11475_v50 }
0x1437   : > { %v5771_v15 = vadd.f32 %v5736_v14, %v12004_v6 }
0x1438   : > { %v6364_v48 = vmul.f32 -1.442695, %v5772_v22  ;;  %vm11588_vm14 = vcmp.eq.f32.partialorder %v5815_v57, 8.507059e+37 }
0x1439   : > { %v7063_v6 = vpop.eup %7062  ;;  %v6363_v46 = vmul.f32 -1.442695, %v5771_v15  ;;  %v11616_v0 = vsel %vm11588_vm14, %v5818_v11, %v5814_v28  ;;  %v5906_v15 = vand.u32 2147483647, %v11495_v12 }
0x143a   : > { %7066 = vpow2.f32 %v6364_v48  ;;  %v11572_v41 = vpop.eup %7064  ;;  %v11574_v25 = vadd.f32 1.0, %v7063_v6  ;;  %v5916_v48 = vadd.f32 %v11545_v58, %v5915_v63 }
0x143b   : > { %7068 = vpow2.f32 %v6363_v46  ;;  %v5868_v40 = vmul.f32 %v11572_v41, %v11511_v1  ;;  %v5921_v46 = vand.u32 2147483647, %v11499_v9  ;;  %vm5907_vm14 = vcmp.eq.f32.partialorder %v5906_v15, 8.507059e+37 }
0x143c   : > { %7070 = vrcp.f32 %v11574_v25  ;;  %v5920_v26 = vsel %vm11682_vm10, %v11545_v58, %v5916_v48  ;;  %vm5873_vm15 = vweird.f32 %v11572_v41  ;;  %v5876_v58 = vand.u32 2147483647, %v11511_v1 }
0x143d   : > { %v5732_v39 = vpop.permute.xlu1 %5731  ;;  %v5740_v50 = vpop.permute.xlu0 %5739  ;;  %v5869_v22 = vsub.f32 1.0, %v5868_v40  ;;  %vm5922_vm0 = vcmp.eq.f32.partialorder %v5921_v46, 8.507059e+37  ;;  %vm11705_vm1 = vmor %vm5872_vm2, %vm5873_vm15  ;;  %vm5997_vm4 = vweird.f32 %v11574_v25 }
0x143e   : > { %v5773_v18 = vadd.f32 %v5740_v50, %v12123_v55  ;;  %v5769_v10 = vadd.f32 %v5732_v39, %v12003_v61  ;;  %v5730_v33 = vpop.permute.xlu2 %5729  ;;  %v5900_v61 = vmul.f32 %v11534_v17, %v5899_v43  ;;  %v5878_v43 = vand.u32 2147483648, %v11511_v1 }
0x143f   : > { %v5768_v32 = vadd.f32 %v5730_v33, %v12149_v44  ;;  %v5870_v49 = vmul.f32 %v11572_v41, %v5869_v22  ;;  %v6001_v33 = vand.u32 2147483647, %v11574_v25  ;;  %vm5877_vm3 = vcmp.eq.f32.partialorder %v5876_v58, 8.507059e+37 }
0x1440   : > { %v7067_v60 = vpop.eup %7066  ;;  %v6365_v52 = vmul.f32 -1.442695, %v5773_v18  ;;  %v5901_v42 = vadd.f32 %v11534_v17, %v5900_v61  ;;  %v6003_v61 = vand.u32 2147483648, %v11574_v25 }
0x1441   : > { %v7069_v55 = vpop.eup %7068  ;;  %v11610_v62 = vadd.f32 1.0, %v7067_v60  ;;  %v5871_v39 = vadd.f32 %v11572_v41, %v5870_v49  ;;  %vm11723_vm5 = vcmp.eq.f32.partialorder %v6001_v33, 8.507059e+37 }
0x1442   : > { %v11618_v24 = vadd.f32 1.0, %v7069_v55  ;;  %7072 = vpow2.f32 %v6365_v52  ;;  %v11638_v57 = vpop.eup %7070  ;;  %v5905_v9 = vsel %vm11674_vm13, %v11534_v17, %v5901_v42  ;;  %v5924_v17 = vor.u32 1.1754944e-38, %v5923_v38 }
0x1443   : > { %7074 = vtanh.f32 %v5769_v10  ;;  %v5993_v13 = vmul.f32 %v11638_v57, %v11574_v25  ;;  %v5910_v53 = vsel %vm5907_vm14, %v5909_v37, %v5905_v9  ;;  %v5875_v1 = vsel %vm11705_vm1, %v11572_v41, %v5871_v39 }
0x1444   : > { %7076 = vrcp.f32 %v11610_v62  ;;  %v5925_v34 = vsel %vm5922_vm0, %v5924_v17, %v5920_v26  ;;  %v5879_v55 = vor.u32 1.1754944e-38, %v5878_v43  ;;  %vm5967_vm6 = vweird.f32 %v11610_v62 }
0x1445   : > { %7078 = vrcp.f32 %v11618_v24  ;;  %v5734_v35 = vpop.permute.xlu0 %5733  ;;  %v6018_v5 = vpop.permute.xlu1 %6017  ;;  %v5994_v28 = vsub.f32 1.0, %v5993_v13  ;;  %vm5952_vm0 = vweird.f32 %v11618_v24  ;;  %v5956_v58 = vand.u32 2147483647, %v11618_v24 }
0x1446   : > { %v5770_v21 = vadd.f32 %v5734_v35, %v12134_v30  ;;  %v5890_v30 = vsel %vm11652_vm7, %v11517_v29, %v11630_v56  ;;  %v6016_v11 = vpop.permute.xlu2 %6015  ;;  %v6026_v54 = vmul.f32 %v6018_v5, %v5925_v34  ;;  %v5880_v56 = vsel %vm5877_vm3, %v5879_v55, %v5875_v1 }
0x1447   : > { %v6025_v40 = vmul.f32 %v6016_v11, %v5910_v53  ;;  %v5995_v22 = vmul.f32 %v11638_v57, %v5994_v28  ;;  %v5895_v14 = vsel %vm11663_vm9, %v11597_v31, %v5890_v30  ;;  %vm5998_vm7 = vweird.f32 %v11638_v57 }
0x1448   : > { %v7073_v7 = vpop.eup %7072  ;;  %7080 = vtanh.f32 %v5770_v21  ;;  %v6004_v31 = vor.u32 1.1754944e-38, %v6003_v61  ;;  %v5958_v21 = vand.u32 2147483648, %v11618_v24  ;;  %vm11741_vm9 = vmor %vm5997_vm4, %vm5998_vm7  ;;  %vm5957_vm4 = vcmp.eq.f32.partialorder %v5956_v58, 8.507059e+37  ;;  %v6043_v61 = vld [vmem:[%s11792_s11] sm:$0xf] }
0x1449   : > { %v7075_v29 = vpop.eup %7074  ;;  %v11678_v20 = vadd.f32 1.0, %v7073_v7  ;;  %7082 = vtanh.f32 %v5768_v32  ;;  %v5996_v48 = vadd.f32 %v11638_v57, %v5995_v22 }
0x144a   : > { %v11689_v2 = vpop.eup %7076  ;;  %v6029_v4 = vmul.f32 %v7075_v29, %v11570_v45  ;;  %v5973_v29 = vand.u32 2147483648, %v11610_v62  ;;  %v5959_v10 = vor.u32 1.1754944e-38, %v5958_v21 }
0x144b   : > { %v11696_v50 = vpop.eup %7078  ;;  %7084 = vrcp.f32 %v11678_v20  ;;  %v5963_v18 = vmul.f32 %v11689_v2, %v11610_v62  ;;  %v5986_v46 = vand.u32 2147483647, %v11678_v20  ;;  %v5988_v38 = vand.u32 2147483648, %v11678_v20 }
0x144c   : > { %v5948_v60 = vmul.f32 %v11696_v50, %v11618_v24  ;;  %vm5968_vm11 = vweird.f32 %v11689_v2  ;;  %vm5982_vm13 = vweird.f32 %v11678_v20  ;;  %vm5953_vm15 = vweird.f32 %v11696_v50 }
0x144d   : > { %v5728_v47 = vpop.permute.xlu0 %5727  ;;  %v5964_v41 = vsub.f32 1.0, %v5963_v18  ;;  %v6012_v42 = vpop.permute.xlu1 %6011  ;;  %vm5987_vm14 = vcmp.eq.f32.partialorder %v5986_v46, 8.507059e+37  ;;  %v5989_v25 = vor.u32 1.1754944e-38, %v5988_v38  ;;  %vm5969_vm2 = vmor %vm5967_vm6, %vm5968_vm11 }
0x144e   : > { %v7081_v8 = vpop.eup %7080  ;;  %v5767_v52 = vadd.f32 %v5728_v47, %v9191_v51  ;;  %v6033_v51 = vadd.f32 %v6029_v4, %v6025_v40  ;;  %v5949_v59 = vsub.f32 1.0, %v5948_v60  ;;  %vm5954_vm1 = vmor %vm5952_vm0, %vm5953_vm15  ;;  %v5974_v40 = vor.u32 1.1754944e-38, %v5973_v29 }
0x144f   : > { %v6030_v45 = vmul.f32 %v7081_v8, %v5849_v19  ;;  %v7083_v63 = vpop.eup %7082  ;;  %v5965_v49 = vmul.f32 %v11689_v2, %v5964_v41  ;;  %v6023_v19 = vmul.f32 %v6012_v42, %v5880_v56 }
0x1450   : > { %7086 = vtanh.f32 %v5767_v52  ;;  %v6028_v32 = vmul.f32 %v7083_v63, %v11616_v0  ;;  %v5950_v44 = vmul.f32 %v11696_v50, %v5949_v59  ;;  %v6044_v63 = vld [vmem:[%s11793_s12] sm:$0xf] }
0x1451   : > { %v7085_v3 = vpop.eup %7084  ;;  %v6034_v23 = vadd.f32 %v6030_v45, %v6026_v54  ;;  %v5966_v5 = vadd.f32 %v11689_v2, %v5965_v49 }
0x1452   : > { %v5978_v15 = vmul.f32 %v7085_v3, %v11678_v20  ;;  %vm5983_vm8 = vweird.f32 %v7085_v3  ;;  %v5951_v39 = vadd.f32 %v11696_v50, %v5950_v44 }
0x1453   : > { %7088 = vtanh.f32 %v6034_v23  ;;  %vm5984_vm10 = vmor %vm5982_vm13, %vm5983_vm8  ;;  %v5970_v18 = vsel %vm5969_vm2, %v11689_v2, %v5966_v5 }
0x1454   : > { %v5979_v35 = vsub.f32 1.0, %v5978_v15  ;;  %7090 = vtanh.f32 %v6033_v51  ;;  %v5955_v4 = vsel %vm5954_vm1, %v11696_v50, %v5951_v39 }
0x1455   : > { %v6014_v6 = vpop.permute.xlu0 %6013  ;;  %v5960_v60 = vsel %vm5957_vm4, %v5959_v10, %v5955_v4 }
0x1456   : > { %v7087_v30 = vpop.eup %7086  ;;  %v5980_v7 = vmul.f32 %v7085_v3, %v5979_v35  ;;  %v6024_v13 = vmul.f32 %v6014_v6, %v5895_v14 }
0x1457   : > { %v6027_v0 = vmul.f32 %v7087_v30, %v11580_v27  ;;  %v6000_v27 = vsel %vm11741_vm9, %v11638_v57, %v5996_v48  ;;  %v5971_v57 = vand.u32 2147483647, %v11610_v62 }
0x1458   : > { %v6032_v36 = vadd.f32 %v6028_v32, %v6024_v13  ;;  %v5981_v9 = vadd.f32 %v7085_v3, %v5980_v7  ;;  %v6005_v43 = vsel %vm11723_vm5, %v6004_v31, %v6000_v27  ;;  %vm6084_vm5 = vcmask 3072  }
0x1459   : > { %v7089_v37 = vpop.eup %7088  ;;  %v6031_v26 = vadd.f32 %v6027_v0, %v6023_v19  ;;  %vm5972_vm3 = vcmp.eq.f32.partialorder %v5971_v57, 8.507059e+37 }
0x145a   : > { %7092 = vtanh.f32 %v6032_v36  ;;  %v5985_v11 = vsel %vm5984_vm10, %v7085_v3, %v5981_v9  ;;  %v7091_v20 = vpop.eup %7090  ;;  %v6042_v53 = vmul.f32 %v7089_v37, %v6005_v43  ;;  %v5975_v8 = vsel %vm5972_vm3, %v5974_v40, %v5970_v18 }
0x145b   : > { %7094 = vtanh.f32 %v6031_v26  ;;  %v5990_v17 = vsel %vm5987_vm14, %v5989_v25, %v5985_v11 }
0x145c   : > { %v6041_v28 = vmul.f32 %v7091_v20, %v5990_v17 }
0x145e   : > { %v6638_v34 = vpack.i.bf16 %v6041_v28, %v6042_v53 }
0x1460   : > { %v7093_v47 = vpop.eup %7092  ;;  %6639 = vrot.lane.b32.xlu2 %v6638_v34, %s7154_s14 }
0x1461   : > { %v7095_v24 = vpop.eup %7094  ;;  %v6040_v1 = vmul.f32 %v7093_v47, %v5975_v8 }
0x1462   : > { %v6039_v62 = vmul.f32 %v7095_v24, %v5960_v60 }
0x1464   : > { %v6643_v52 = vpack.i.bf16 %v6039_v62, %v6040_v1 }
0x1466   : > { %6644 = vrot.lane.b32.xlu0 %v6643_v52, %s7154_s14 }
0x14ba   : > { %v6640_v2 = vpop.permute.xlu2 %6639 }
0x14bb   : > { %v6641_v33 = vunpack.i.l.bf16 %v6640_v2  ;;  %v6642_v54 = vunpack.i.h.bf16 %v6640_v2 }
0x14bd   : > { %6076 = vmatpush.msrb.mxu2 %v6641_v33 }
0x14bf   : > { %6077 = vmatpush.msrb.mxu2 %v6642_v54 }
0x14d8   : > { %v6645_v50 = vpop.permute.xlu0 %6644 }
0x14d9   : > { %v6646_v45 = vunpack.i.l.bf16 %v6645_v50  ;;  %v6647_v55 = vunpack.i.h.bf16 %v6645_v50 }
0x14db   : > { %6078 = vmatpush.msrb.mxu2 %v6646_v45 }
0x14dd   : > { %6079 = vmatpush.msrb.mxu2 %v6647_v55 }
0x14de   : > { %6367 = vmatmul.msk.f32.vlgmr.msrb.gmra.mxu2 %vm3103_vm12, %v6043_v61 }
0x1561   : > { %v6081_v22 = vpop.f32.mrf.mxu2 }
0x1562   : > { %v6082_v14 = vadd.f32 %v6081_v22, %v6044_v63 }
0x1564   : > { %6085 = vst.msk [vmem:[%s438_s17] sm:$0xf] %vm6084_vm5, %v6082_v14 }
0x1565 PF: > { %s23_s25 = sadd.s32 1, %s7152_s25  }
0x1566   : > { %p20_p4 = scmp.ge.s32.totalorder %s23_s25, 4  }
0x1568   :  { %22 = sbr.rel (!%p20_p4) target bundleno = 1 (0x1), region = 102 }

</bundles_post_ra>
